<compile_context>
chip_gen: v7x
topology: tpu7x:2x2x1
jax: 0.10.0
libtpu: 0.0.40
codegen_flags: <defaults>
</compile_context>

<pallas_src>
import functools

import jax
import jax.numpy as jnp
from jax import lax
from jax.experimental import pallas as pl
from jax.experimental.pallas import tpu as pltpu

BN_EPS = 1e-5
# Stand-in for the -inf padding of MaxPool2d(padding=1).  The 3x3 window
# always contains the (finite) center pixel, so any value below every real
# input matches -inf-padding results exactly.
NEG = -3.0e38


def _crp_kernel(*refs, n_blocks, halo, th, use_mxu):
    if halo > 0:
        xc_ref, xp_ref, xn_ref, w_ref, bias_ref, out_ref, pbuf = refs
    else:
        xc_ref, w_ref, bias_ref, out_ref, pbuf = refs
        xp_ref = xn_ref = None

    _, _, W, C = xc_ref.shape            # current-tile block: (1, th, W, C)
    R = th + 2 * halo                    # working rows = tile + halo above/below
    t = pl.program_id(1)
    n_t = pl.num_programs(1)
    cdt = pbuf.dtype                     # storage/compute dtype (f32 or bf16)

    # ---- working buffer (R+2, W, C): NEG rows at top/bottom only; column
    #      boundaries are handled by the roll-based pooling below.
    neg_row = jnp.full((1, W, C), NEG, cdt)
    pbuf[0:1, :, :] = neg_row
    pbuf[R + 1:R + 2, :, :] = neg_row

    x_in = xc_ref[0]                                           # (th, W, C)
    pbuf[1 + halo:1 + halo + th, :, :] = x_in.astype(cdt)
    if halo > 0:
        pbuf[1:1 + halo, :, :] = xp_ref[0].astype(cdt)
        pbuf[1 + halo + th:1 + R, :, :] = xn_ref[0].astype(cdt)
        neg_halo = jnp.full((halo, W, C), NEG, cdt)            # hoisted

    def mask_out_of_image_rows():
        # Halo rows that fall outside the image must read as "-inf" padding
        # for *every* block's pooling, so re-mask them after each write-back.
        if halo > 0:
            @pl.when(t == 0)
            def _():
                pbuf[1:1 + halo, :, :] = neg_halo

            @pl.when(t == n_t - 1)
            def _():
                pbuf[1 + halo + th:1 + R, :, :] = neg_halo

    mask_out_of_image_rows()

    # ---- hoisted wrap masks for the roll-based horizontal max.  The masks are
    #      derived from rolled column indices, so they mark exactly the
    #      wrapped-around entries irrespective of the roll direction.
    col = lax.broadcasted_iota(jnp.int32, (R, W, C), 1)
    wrap_a = jnp.abs(pltpu.roll(col, 1, axis=1) - col) > 1
    wrap_b = jnp.abs(pltpu.roll(col, W - 1, axis=1) - col) > 1

    # Residual accumulates in f32 and is stored to the output exactly once.
    acc = x_in.astype(jnp.float32)                             # (th, W, C)

    for k in range(n_blocks):                                  # static, unrolled
        # -- MaxPool2d(kernel=3, stride=1, pad=1), separable:
        #    vertical max over leading-axis slices (no sublane realignment)...
        vmax = jnp.maximum(jnp.maximum(pbuf[0:R, :, :], pbuf[1:R + 1, :, :]),
                           pbuf[2:R + 2, :, :]).astype(jnp.float32)
        #    ...then horizontal max via XLU sublane rolls + boundary masks.
        nbr_a = jnp.where(wrap_a, NEG, pltpu.roll(vmax, 1, axis=1))
        nbr_b = jnp.where(wrap_b, NEG, pltpu.roll(vmax, W - 1, axis=1))
        pooled = jnp.maximum(jnp.maximum(vmax, nbr_a), nbr_b)   # (R, W, C) f32

        # -- 1x1 conv (BN scale pre-folded into the weights)
        if use_mxu:
            z = jnp.dot(pooled.astype(cdt).reshape(R * W, C), w_ref[k],
                        preferred_element_type=jnp.float32).reshape(R, W, C)
        else:
            # Tiny channel count (< 8): unrolled VPU multiply-adds.
            wk = w_ref[k].astype(jnp.float32)
            z = pooled[:, :, 0:1] * wk[0:1, :]
            for c in range(1, C):
                z = z + pooled[:, :, c:c + 1] * wk[c:c + 1, :]

        # -- folded BatchNorm2d (eval) bias + conv bias, then ReLU
        y = jnp.maximum(z + bias_ref[k:k + 1, :].astype(jnp.float32), 0.0)

        # -- residual over this tile's own rows; y feeds the next block
        acc = acc + y[halo:halo + th]
        if k + 1 < n_blocks:
            pbuf[1:R + 1, :, :] = y.astype(cdt)                 # aligned store
            mask_out_of_image_rows()

    out_ref[0] = acc.astype(out_ref.dtype)


def _vmem_capacity_bytes():
    try:
        return int(pltpu.get_tpu_info().vmem_capacity_bytes)
    except Exception:
        return 64 * 1024 * 1024          # conservative fallback (v7x-sized)


def _choose_tile(H, n_blocks, tile_h, vmem_cap):
    """Pick an H tile height (multiple of the halo, dividing H) or whole image."""
    halo = n_blocks
    cands = [m for m in range(halo, H + 1, halo) if H % m == 0]
    if not cands:
        return H, 0                      # whole-image fallback (halo-free, exact)
    if tile_h is None:
        # Generation-aware default: big tiles on 128-MiB parts (v5e/v6e),
        # small tiles on 64-MiB v7x.
        tile_h = 128 if vmem_cap >= (96 << 20) else 32
    fits = [c for c in cands if c <= tile_h]
    return (max(fits) if fits else min(cands)), halo


def crp_forward(x_nhwc, conv_w, conv_b, gamma, beta, run_mean, run_var,
                eps=BN_EPS, tile_h=None):
    """CRP forward, NHWC layout (no layout transposes in the forward path).

    x_nhwc:  (N, H, W, C) float32 or bfloat16
    conv_w:  (n, Cout, Cin, 1, 1)   PyTorch Conv2d weight layout
    conv_b, gamma, beta, run_mean, run_var: (n, C)
    """
    n, c_out, c_in = conv_w.shape[:3]
    N, H, W, C = x_nhwc.shape
    assert C == c_in == c_out, "CRP requires in_channels == out_channels"

    in_dt = x_nhwc.dtype
    cdt = jnp.bfloat16 if in_dt == jnp.bfloat16 else jnp.float32

    # Fold BN (eval) scale into the conv weights; only a per-channel bias is
    # passed to the kernel.
    inv_std = 1.0 / jnp.sqrt(run_var.astype(jnp.float32) + eps)
    scale = gamma.astype(jnp.float32) * inv_std                       # (n, C)
    w = jnp.transpose(conv_w[:, :, :, 0, 0], (0, 2, 1)).astype(jnp.float32)
    w = (w * scale[:, None, :]).astype(cdt)                           # (n, Cin, Cout)
    bias = ((conv_b.astype(jnp.float32) - run_mean.astype(jnp.float32)) * scale
            + beta.astype(jnp.float32))                               # (n, C)

    vmem_cap = _vmem_capacity_bytes()
    th, halo = _choose_tile(H, n, tile_h, vmem_cap)
    n_t = H // th
    R = th + 2 * halo
    use_mxu = C >= 8

    x_spec = pl.BlockSpec((1, th, W, C), lambda b, t: (b, t, 0, 0))
    w_spec = pl.BlockSpec((n, C, C), lambda b, t: (0, 0, 0))
    b_spec = pl.BlockSpec((n, C), lambda b, t: (0, 0))
    if halo > 0:
        tb = th // halo                  # halo-sized blocks per tile
        nhb = H // halo                  # halo-sized blocks in the image
        prev_spec = pl.BlockSpec(
            (1, halo, W, C),
            lambda b, t: (b, jnp.maximum(t * tb - 1, 0), 0, 0))
        next_spec = pl.BlockSpec(
            (1, halo, W, C),
            lambda b, t: (b, jnp.minimum(t * tb + tb, nhb - 1), 0, 0))
        in_specs = [x_spec, prev_spec, next_spec, w_spec, b_spec]
        inputs = (x_nhwc, x_nhwc, x_nhwc, w, bias)
    else:
        in_specs = [x_spec, w_spec, b_spec]
        inputs = (x_nhwc, w, bias)

    # VMEM budget: generous estimate, capped at ~80% of this generation's VMEM
    # so Mosaic keeps headroom for its internal scratch and double buffers.
    e_in = jnp.dtype(in_dt).itemsize
    e_cd = jnp.dtype(cdt).itemsize
    est = ((R + 2) * W * C * e_cd                      # padded working scratch
           + 2 * (th + 2 * halo) * W * C * e_in        # double-buffered inputs
           + 2 * th * W * C * e_in                     # double-buffered output
           + 2 * n * C * (C + 4) * 4                   # weights + bias
           + 10 * R * W * C * 4)                       # f32 temporaries (generous)
    vmem_limit = int(min(max(2 * est, 32 << 20), int(0.8 * vmem_cap)))

    # TODO(synk): when N == 1 and n_t == 1 (whole-image fallback) the grid has a
    #             single step, so a 2-TensorCore chip (v7x) only uses one core.

    return pl.pallas_call(
        functools.partial(_crp_kernel, n_blocks=n, halo=halo, th=th,
                          use_mxu=use_mxu),
        out_shape=jax.ShapeDtypeStruct((N, H, W, C), in_dt),
        grid=(N, n_t),
        in_specs=in_specs,
        out_specs=pl.BlockSpec((1, th, W, C), lambda b, t: (b, t, 0, 0)),
        scratch_shapes=[pltpu.VMEM((R + 2, W, C), cdt)],
        compiler_params=pltpu.CompilerParams(
            dimension_semantics=("parallel", "parallel"),
            vmem_limit_bytes=vmem_limit),
    )(*inputs)


def crp_forward_nchw(x_nchw, *params, **kwargs):
    """Compatibility shim for PyTorch-style NCHW callers (adds two transposes)."""
    out = crp_forward(jnp.transpose(x_nchw, (0, 2, 3, 1)), *params, **kwargs)
    return jnp.transpose(out, (0, 3, 1, 2))


def crp_reference(x_nhwc, conv_w, conv_b, gamma, beta, run_mean, run_var,
                  eps=BN_EPS):
    """Pure-JAX NHWC reference mirroring the PyTorch forward (eval-mode BN)."""
    x = x_nhwc.astype(jnp.float32)
    res = x
    n = conv_w.shape[0]
    for k in range(n):
        p = lax.reduce_window(x, -jnp.inf, lax.max,
                              window_dimensions=(1, 3, 3, 1),
                              window_strides=(1, 1, 1, 1),
                              padding=((0, 0), (1, 1), (1, 1), (0, 0)))
        z = jnp.einsum('nhwc,oc->nhwo', p,
                       conv_w[k, :, :, 0, 0].astype(jnp.float32),
                       precision=lax.Precision.HIGHEST)
        z = z + conv_b[k]
        inv = 1.0 / jnp.sqrt(run_var[k] + eps)
        y = (z - run_mean[k]) * (gamma[k] * inv) + beta[k]
        y = jnp.maximum(y, 0.0)
        res = res + y
        x = y
    return res


def _run_case(case, *, N, C, H, W, n_blocks, tile_h, dtype=jnp.float32,
              w_scale=0.3, rtol=1e-4, atol=1e-4):
    key = jax.random.fold_in(jax.random.PRNGKey(0), case)
    ks = jax.random.split(key, 7)
    x = jax.random.normal(ks[0], (N, H, W, C), jnp.float32).astype(dtype)
    conv_w = w_scale * jax.random.normal(ks[1], (n_blocks, C, C, 1, 1), jnp.float32)
    conv_b = 0.1 * jax.random.normal(ks[2], (n_blocks, C), jnp.float32)
    gamma = 1.0 + 0.1 * jax.random.normal(ks[3], (n_blocks, C), jnp.float32)
    beta = 0.1 * jax.random.normal(ks[4], (n_blocks, C), jnp.float32)
    run_mean = 0.1 * jax.random.normal(ks[5], (n_blocks, C), jnp.float32)
    run_var = jax.nn.softplus(
        jax.random.normal(ks[6], (n_blocks, C), jnp.float32)) + 0.5

    out = jax.block_until_ready(
        crp_forward(x, conv_w, conv_b, gamma, beta, run_mean, run_var,
                    tile_h=tile_h))
    ref = jax.block_until_ready(
        crp_reference(x.astype(jnp.float32), conv_w, conv_b, gamma, beta,
                      run_mean, run_var))
    assert out.shape == (N, H, W, C), out.shape
    assert out.dtype == x.dtype, out.dtype
    out32 = out.astype(jnp.float32)
    max_err = float(jnp.max(jnp.abs(out32 - ref)))
    assert jnp.allclose(out32, ref, rtol=rtol, atol=atol), (
        (N, C, H, W, tile_h, str(dtype)), max_err)


if __name__ == "__main__":
    # Multi-tile halo path, small-C (VPU fallback) path.
    _run_case(0, N=2, C=4, H=16, W=16, n_blocks=4, tile_h=8)
    # MXU path (C >= 8), f32, multi-tile halos.
    _run_case(1, N=1, C=64, H=16, W=8, n_blocks=4, tile_h=8, w_scale=0.2,
              rtol=1e-3, atol=1e-2)
    # Whole-image fallback (H not divisible by n_blocks, halo-free path).
    _run_case(2, N=1, C=4, H=10, W=16, n_blocks=4, tile_h=None)
    # bf16 fast path: bf16 scratch, bf16 MXU inputs (f32 accum), bf16 output.
    _run_case(3, N=1, C=128, H=16, W=8, n_blocks=4, tile_h=8,
              dtype=jnp.bfloat16, w_scale=0.15, rtol=5e-2, atol=5e-1)
    print("KERNEL_OK")
</pallas_src>

<mosaic_0001>
module attributes {stable_mosaic.version = 11 : i64} {
  func.func @_crp_kernel(%arg0: i32, %arg1: i32, %arg2: memref<1x8x16x4xf32, #tpu.memory_space<vmem>>, %arg3: memref<1x4x16x4xf32, #tpu.memory_space<vmem>>, %arg4: memref<1x4x16x4xf32, #tpu.memory_space<vmem>>, %arg5: memref<4x4x4xf32, #tpu.memory_space<vmem>>, %arg6: memref<4x4xf32, #tpu.memory_space<vmem>>, %arg7: memref<1x8x16x4xf32, #tpu.memory_space<vmem>>, %arg8: memref<18x16x4xf32, #tpu.memory_space<vmem>>) attributes {dimension_semantics = [#tpu.dimension_semantics<parallel>, #tpu.dimension_semantics<parallel>], iteration_bounds = array<i64: 2, 2>, scalar_prefetch = 0 : i64, scratch_operands = 1 : i64, tpu.core_type = #tpu.core_type<tc>, window_params = [{transform_indices = @transform_0, window_bounds = array<i64: 1, 8, 16, 4>}, {transform_indices = @transform_1, window_bounds = array<i64: 1, 4, 16, 4>}, {transform_indices = @transform_2, window_bounds = array<i64: 1, 4, 16, 4>}, {pipeline_mode = #tpu.pipeline_mode<synchronous>, transform_indices = @transform_3, window_bounds = array<i64: 4, 4, 4>}, {pipeline_mode = #tpu.pipeline_mode<synchronous>, transform_indices = @transform_4, window_bounds = array<i64: 4, 4>}, {transform_indices = @transform_5, window_bounds = array<i64: 1, 8, 16, 4>}]} {
    %cst = arith.constant -3.000000e+38 : f32
    %0 = vector.broadcast %cst : f32 to vector<1x16x4xf32>
    %c0 = arith.constant 0 : index
    %c0_0 = arith.constant 0 : index
    %c0_1 = arith.constant 0 : index
    %1 = vector.load %arg8[%c0, %c0_0, %c0_1] : memref<18x16x4xf32, #tpu.memory_space<vmem>>, vector<1x16x4xf32>
    tpu.vector_store %arg8[%c0, %c0_0, %c0_1], %0 {strides = array<i32>} : memref<18x16x4xf32, #tpu.memory_space<vmem>>, vector<1x16x4xf32>,
    %c17 = arith.constant 17 : index
    %c0_2 = arith.constant 0 : index
    %c0_3 = arith.constant 0 : index
    %2 = vector.load %arg8[%c17, %c0_2, %c0_3] : memref<18x16x4xf32, #tpu.memory_space<vmem>>, vector<1x16x4xf32>
    tpu.vector_store %arg8[%c17, %c0_2, %c0_3], %0 {strides = array<i32>} : memref<18x16x4xf32, #tpu.memory_space<vmem>>, vector<1x16x4xf32>,
    %c0_4 = arith.constant 0 : index
    %c0_5 = arith.constant 0 : index
    %c0_6 = arith.constant 0 : index
    %c0_7 = arith.constant 0 : index
    %3 = vector.load %arg2[%c0_4, %c0_5, %c0_6, %c0_7] : memref<1x8x16x4xf32, #tpu.memory_space<vmem>>, vector<1x8x16x4xf32>
    %4 = vector.shape_cast %3 : vector<1x8x16x4xf32> to vector<8x16x4xf32>
    %c5 = arith.constant 5 : index
    %c0_8 = arith.constant 0 : index
    %c0_9 = arith.constant 0 : index
    %5 = vector.load %arg8[%c5, %c0_8, %c0_9] : memref<18x16x4xf32, #tpu.memory_space<vmem>>, vector<8x16x4xf32>
    tpu.vector_store %arg8[%c5, %c0_8, %c0_9], %4 {strides = array<i32>} : memref<18x16x4xf32, #tpu.memory_space<vmem>>, vector<8x16x4xf32>,
    %c0_10 = arith.constant 0 : index
    %c0_11 = arith.constant 0 : index
    %c0_12 = arith.constant 0 : index
    %c0_13 = arith.constant 0 : index
    %6 = vector.load %arg3[%c0_10, %c0_11, %c0_12, %c0_13] : memref<1x4x16x4xf32, #tpu.memory_space<vmem>>, vector<1x4x16x4xf32>
    %7 = vector.shape_cast %6 : vector<1x4x16x4xf32> to vector<4x16x4xf32>
    %c1 = arith.constant 1 : index
    %c0_14 = arith.constant 0 : index
    %c0_15 = arith.constant 0 : index
    %8 = vector.load %arg8[%c1, %c0_14, %c0_15] : memref<18x16x4xf32, #tpu.memory_space<vmem>>, vector<4x16x4xf32>
    tpu.vector_store %arg8[%c1, %c0_14, %c0_15], %7 {strides = array<i32>} : memref<18x16x4xf32, #tpu.memory_space<vmem>>, vector<4x16x4xf32>,
    %c0_16 = arith.constant 0 : index
    %c0_17 = arith.constant 0 : index
    %c0_18 = arith.constant 0 : index
    %c0_19 = arith.constant 0 : index
    %9 = vector.load %arg4[%c0_16, %c0_17, %c0_18, %c0_19] : memref<1x4x16x4xf32, #tpu.memory_space<vmem>>, vector<1x4x16x4xf32>
    %10 = vector.shape_cast %9 : vector<1x4x16x4xf32> to vector<4x16x4xf32>
    %c13 = arith.constant 13 : index
    %c0_20 = arith.constant 0 : index
    %c0_21 = arith.constant 0 : index
    %11 = vector.load %arg8[%c13, %c0_20, %c0_21] : memref<18x16x4xf32, #tpu.memory_space<vmem>>, vector<4x16x4xf32>
    tpu.vector_store %arg8[%c13, %c0_20, %c0_21], %10 {strides = array<i32>} : memref<18x16x4xf32, #tpu.memory_space<vmem>>, vector<4x16x4xf32>,
    %cst_22 = arith.constant -3.000000e+38 : f32
    %12 = vector.broadcast %cst_22 : f32 to vector<4x16x4xf32>
    %c0_i32 = arith.constant 0 : i32
    %13 = arith.cmpi eq, %arg1, %c0_i32 : i32
    %14 = arith.extui %13 : i1 to i32
    %c0_i32_23 = arith.constant 0 : i32
    %15 = arith.cmpi ne, %14, %c0_i32_23 : i32
    scf.if %15 {
      %c1_127 = arith.constant 1 : index
      %c0_128 = arith.constant 0 : index
      %c0_129 = arith.constant 0 : index
      %254 = vector.load %arg8[%c1_127, %c0_128, %c0_129] : memref<18x16x4xf32, #tpu.memory_space<vmem>>, vector<4x16x4xf32>
      tpu.vector_store %arg8[%c1_127, %c0_128, %c0_129], %12 {strides = array<i32>} : memref<18x16x4xf32, #tpu.memory_space<vmem>>, vector<4x16x4xf32>,
    } else {
    }
    %c1_i32 = arith.constant 1 : i32
    %16 = arith.cmpi eq, %arg1, %c1_i32 : i32
    %17 = arith.extui %16 : i1 to i32
    %c0_i32_24 = arith.constant 0 : i32
    %18 = arith.cmpi ne, %17, %c0_i32_24 : i32
    scf.if %18 {
      %c13_127 = arith.constant 13 : index
      %c0_128 = arith.constant 0 : index
      %c0_129 = arith.constant 0 : index
      %254 = vector.load %arg8[%c13_127, %c0_128, %c0_129] : memref<18x16x4xf32, #tpu.memory_space<vmem>>, vector<4x16x4xf32>
      tpu.vector_store %arg8[%c13_127, %c0_128, %c0_129], %12 {strides = array<i32>} : memref<18x16x4xf32, #tpu.memory_space<vmem>>, vector<4x16x4xf32>,
    } else {
    }
    %19 = tpu.iota {dimensions = array<i32: 1>} : vector<16x16x4xi32>
    %c1_i32_25 = arith.constant 1 : i32
    %20 = tpu.dynamic_rotate %19 by %c1_i32_25 dim 1 : vector<16x16x4xi32>, i32 -> vector<16x16x4xi32>
    %21 = arith.subi %20, %19 : vector<16x16x4xi32>
    %22 = math.absi %21 : vector<16x16x4xi32>
    %c1_i32_26 = arith.constant 1 : i32
    %23 = vector.broadcast %c1_i32_26 : i32 to vector<16x16x4xi32>
    %24 = arith.cmpi sgt, %22, %23 : vector<16x16x4xi32>
    %c15_i32 = arith.constant 15 : i32
    %25 = tpu.dynamic_rotate %19 by %c15_i32 dim 1 : vector<16x16x4xi32>, i32 -> vector<16x16x4xi32>
    %26 = arith.subi %25, %19 : vector<16x16x4xi32>
    %27 = math.absi %26 : vector<16x16x4xi32>
    %c1_i32_27 = arith.constant 1 : i32
    %28 = vector.broadcast %c1_i32_27 : i32 to vector<16x16x4xi32>
    %29 = arith.cmpi sgt, %27, %28 : vector<16x16x4xi32>
    %c0_28 = arith.constant 0 : index
    %c0_29 = arith.constant 0 : index
    %c0_30 = arith.constant 0 : index
    %30 = vector.load %arg8[%c0_28, %c0_29, %c0_30] : memref<18x16x4xf32, #tpu.memory_space<vmem>>, vector<16x16x4xf32>
    %c1_31 = arith.constant 1 : index
    %c0_32 = arith.constant 0 : index
    %c0_33 = arith.constant 0 : index
    %31 = vector.load %arg8[%c1_31, %c0_32, %c0_33] : memref<18x16x4xf32, #tpu.memory_space<vmem>>, vector<16x16x4xf32>
    %32 = arith.maximumf %30, %31 : vector<16x16x4xf32>
    %c2 = arith.constant 2 : index
    %c0_34 = arith.constant 0 : index
    %c0_35 = arith.constant 0 : index
    %33 = vector.load %arg8[%c2, %c0_34, %c0_35] : memref<18x16x4xf32, #tpu.memory_space<vmem>>, vector<16x16x4xf32>
    %34 = arith.maximumf %32, %33 : vector<16x16x4xf32>
    %c1_i32_36 = arith.constant 1 : i32
    %35 = tpu.dynamic_rotate %34 by %c1_i32_36 dim 1 : vector<16x16x4xf32>, i32 -> vector<16x16x4xf32>
    %cst_37 = arith.constant -3.000000e+38 : f32
    %36 = vector.broadcast %cst_37 : f32 to vector<16x16x4xf32>
    %37 = arith.select %24, %36, %35 : vector<16x16x4xi1>, vector<16x16x4xf32>
    %c15_i32_38 = arith.constant 15 : i32
    %38 = tpu.dynamic_rotate %34 by %c15_i32_38 dim 1 : vector<16x16x4xf32>, i32 -> vector<16x16x4xf32>
    %cst_39 = arith.constant -3.000000e+38 : f32
    %39 = vector.broadcast %cst_39 : f32 to vector<16x16x4xf32>
    %40 = arith.select %29, %39, %38 : vector<16x16x4xi1>, vector<16x16x4xf32>
    %41 = arith.maximumf %34, %37 : vector<16x16x4xf32>
    %42 = arith.maximumf %41, %40 : vector<16x16x4xf32>
    %c0_40 = arith.constant 0 : index
    %c0_41 = arith.constant 0 : index
    %c0_42 = arith.constant 0 : index
    %43 = vector.load %arg5[%c0_40, %c0_41, %c0_42] : memref<4x4x4xf32, #tpu.memory_space<vmem>>, vector<1x4x4xf32>
    %44 = vector.shape_cast %43 : vector<1x4x4xf32> to vector<4x4xf32>
    %45 = vector.extract_strided_slice %42 {offsets = [0, 0, 0], sizes = [16, 16, 1], strides = [1, 1, 1]} : vector<16x16x4xf32> to vector<16x16x1xf32>
    %46 = vector.extract_strided_slice %44 {offsets = [0, 0], sizes = [1, 4], strides = [1, 1]} : vector<4x4xf32> to vector<1x4xf32>
    %47 = vector.shape_cast %46 : vector<1x4xf32> to vector<1x1x4xf32>
    %48 = vector.broadcast %45 : vector<16x16x1xf32> to vector<16x16x4xf32>
    %49 = vector.broadcast %47 : vector<1x1x4xf32> to vector<16x16x4xf32>
    %50 = arith.mulf %48, %49 : vector<16x16x4xf32>
    %51 = vector.extract_strided_slice %42 {offsets = [0, 0, 1], sizes = [16, 16, 1], strides = [1, 1, 1]} : vector<16x16x4xf32> to vector<16x16x1xf32>
    %52 = vector.extract_strided_slice %44 {offsets = [1, 0], sizes = [1, 4], strides = [1, 1]} : vector<4x4xf32> to vector<1x4xf32>
    %53 = vector.shape_cast %52 : vector<1x4xf32> to vector<1x1x4xf32>
    %54 = vector.broadcast %51 : vector<16x16x1xf32> to vector<16x16x4xf32>
    %55 = vector.broadcast %53 : vector<1x1x4xf32> to vector<16x16x4xf32>
    %56 = arith.mulf %54, %55 : vector<16x16x4xf32>
    %57 = arith.addf %50, %56 : vector<16x16x4xf32>
    %58 = vector.extract_strided_slice %42 {offsets = [0, 0, 2], sizes = [16, 16, 1], strides = [1, 1, 1]} : vector<16x16x4xf32> to vector<16x16x1xf32>
    %59 = vector.extract_strided_slice %44 {offsets = [2, 0], sizes = [1, 4], strides = [1, 1]} : vector<4x4xf32> to vector<1x4xf32>
    %60 = vector.shape_cast %59 : vector<1x4xf32> to vector<1x1x4xf32>
    %61 = vector.broadcast %58 : vector<16x16x1xf32> to vector<16x16x4xf32>
    %62 = vector.broadcast %60 : vector<1x1x4xf32> to vector<16x16x4xf32>
    %63 = arith.mulf %61, %62 : vector<16x16x4xf32>
    %64 = arith.addf %57, %63 : vector<16x16x4xf32>
    %65 = vector.extract_strided_slice %42 {offsets = [0, 0, 3], sizes = [16, 16, 1], strides = [1, 1, 1]} : vector<16x16x4xf32> to vector<16x16x1xf32>
    %66 = vector.extract_strided_slice %44 {offsets = [3, 0], sizes = [1, 4], strides = [1, 1]} : vector<4x4xf32> to vector<1x4xf32>
    %67 = vector.shape_cast %66 : vector<1x4xf32> to vector<1x1x4xf32>
    %68 = vector.broadcast %65 : vector<16x16x1xf32> to vector<16x16x4xf32>
    %69 = vector.broadcast %67 : vector<1x1x4xf32> to vector<16x16x4xf32>
    %70 = arith.mulf %68, %69 : vector<16x16x4xf32>
    %71 = arith.addf %64, %70 : vector<16x16x4xf32>
    %c0_43 = arith.constant 0 : index
    %c0_44 = arith.constant 0 : index
    %72 = vector.load %arg6[%c0_43, %c0_44] : memref<4x4xf32, #tpu.memory_space<vmem>>, vector<1x4xf32>
    %73 = vector.shape_cast %72 : vector<1x4xf32> to vector<1x1x4xf32>
    %74 = vector.broadcast %73 : vector<1x1x4xf32> to vector<16x16x4xf32>
    %75 = arith.addf %71, %74 : vector<16x16x4xf32>
    %cst_45 = arith.constant 0.000000e+00 : f32
    %76 = vector.broadcast %cst_45 : f32 to vector<16x16x4xf32>
    %77 = arith.maximumf %75, %76 : vector<16x16x4xf32>
    %78 = vector.extract_strided_slice %77 {offsets = [4, 0, 0], sizes = [8, 16, 4], strides = [1, 1, 1]} : vector<16x16x4xf32> to vector<8x16x4xf32>
    %79 = arith.addf %4, %78 : vector<8x16x4xf32>
    %c1_46 = arith.constant 1 : index
    %c0_47 = arith.constant 0 : index
    %c0_48 = arith.constant 0 : index
    %80 = vector.load %arg8[%c1_46, %c0_47, %c0_48] : memref<18x16x4xf32, #tpu.memory_space<vmem>>, vector<16x16x4xf32>
    tpu.vector_store %arg8[%c1_46, %c0_47, %c0_48], %77 {strides = array<i32>} : memref<18x16x4xf32, #tpu.memory_space<vmem>>, vector<16x16x4xf32>,
    %c0_i32_49 = arith.constant 0 : i32
    %81 = arith.cmpi eq, %arg1, %c0_i32_49 : i32
    %82 = arith.extui %81 : i1 to i32
    %c0_i32_50 = arith.constant 0 : i32
    %83 = arith.cmpi ne, %82, %c0_i32_50 : i32
    scf.if %83 {
      %c1_127 = arith.constant 1 : index
      %c0_128 = arith.constant 0 : index
      %c0_129 = arith.constant 0 : index
      %254 = vector.load %arg8[%c1_127, %c0_128, %c0_129] : memref<18x16x4xf32, #tpu.memory_space<vmem>>, vector<4x16x4xf32>
      tpu.vector_store %arg8[%c1_127, %c0_128, %c0_129], %12 {strides = array<i32>} : memref<18x16x4xf32, #tpu.memory_space<vmem>>, vector<4x16x4xf32>,
    } else {
    }
    %c1_i32_51 = arith.constant 1 : i32
    %84 = arith.cmpi eq, %arg1, %c1_i32_51 : i32
    %85 = arith.extui %84 : i1 to i32
    %c0_i32_52 = arith.constant 0 : i32
    %86 = arith.cmpi ne, %85, %c0_i32_52 : i32
    scf.if %86 {
      %c13_127 = arith.constant 13 : index
      %c0_128 = arith.constant 0 : index
      %c0_129 = arith.constant 0 : index
      %254 = vector.load %arg8[%c13_127, %c0_128, %c0_129] : memref<18x16x4xf32, #tpu.memory_space<vmem>>, vector<4x16x4xf32>
      tpu.vector_store %arg8[%c13_127, %c0_128, %c0_129], %12 {strides = array<i32>} : memref<18x16x4xf32, #tpu.memory_space<vmem>>, vector<4x16x4xf32>,
    } else {
    }
    %c0_53 = arith.constant 0 : index
    %c0_54 = arith.constant 0 : index
    %c0_55 = arith.constant 0 : index
    %87 = vector.load %arg8[%c0_53, %c0_54, %c0_55] : memref<18x16x4xf32, #tpu.memory_space<vmem>>, vector<16x16x4xf32>
    %c1_56 = arith.constant 1 : index
    %c0_57 = arith.constant 0 : index
    %c0_58 = arith.constant 0 : index
    %88 = vector.load %arg8[%c1_56, %c0_57, %c0_58] : memref<18x16x4xf32, #tpu.memory_space<vmem>>, vector<16x16x4xf32>
    %89 = arith.maximumf %87, %88 : vector<16x16x4xf32>
    %c2_59 = arith.constant 2 : index
    %c0_60 = arith.constant 0 : index
    %c0_61 = arith.constant 0 : index
    %90 = vector.load %arg8[%c2_59, %c0_60, %c0_61] : memref<18x16x4xf32, #tpu.memory_space<vmem>>, vector<16x16x4xf32>
    %91 = arith.maximumf %89, %90 : vector<16x16x4xf32>
    %c1_i32_62 = arith.constant 1 : i32
    %92 = tpu.dynamic_rotate %91 by %c1_i32_62 dim 1 : vector<16x16x4xf32>, i32 -> vector<16x16x4xf32>
    %cst_63 = arith.constant -3.000000e+38 : f32
    %93 = vector.broadcast %cst_63 : f32 to vector<16x16x4xf32>
    %94 = arith.select %24, %93, %92 : vector<16x16x4xi1>, vector<16x16x4xf32>
    %c15_i32_64 = arith.constant 15 : i32
    %95 = tpu.dynamic_rotate %91 by %c15_i32_64 dim 1 : vector<16x16x4xf32>, i32 -> vector<16x16x4xf32>
    %cst_65 = arith.constant -3.000000e+38 : f32
    %96 = vector.broadcast %cst_65 : f32 to vector<16x16x4xf32>
    %97 = arith.select %29, %96, %95 : vector<16x16x4xi1>, vector<16x16x4xf32>
    %98 = arith.maximumf %91, %94 : vector<16x16x4xf32>
    %99 = arith.maximumf %98, %97 : vector<16x16x4xf32>
    %c1_66 = arith.constant 1 : index
    %c0_67 = arith.constant 0 : index
    %c0_68 = arith.constant 0 : index
    %100 = vector.load %arg5[%c1_66, %c0_67, %c0_68] : memref<4x4x4xf32, #tpu.memory_space<vmem>>, vector<1x4x4xf32>
    %101 = vector.shape_cast %100 : vector<1x4x4xf32> to vector<4x4xf32>
    %102 = vector.extract_strided_slice %99 {offsets = [0, 0, 0], sizes = [16, 16, 1], strides = [1, 1, 1]} : vector<16x16x4xf32> to vector<16x16x1xf32>
    %103 = vector.extract_strided_slice %101 {offsets = [0, 0], sizes = [1, 4], strides = [1, 1]} : vector<4x4xf32> to vector<1x4xf32>
    %104 = vector.shape_cast %103 : vector<1x4xf32> to vector<1x1x4xf32>
    %105 = vector.broadcast %102 : vector<16x16x1xf32> to vector<16x16x4xf32>
    %106 = vector.broadcast %104 : vector<1x1x4xf32> to vector<16x16x4xf32>
    %107 = arith.mulf %105, %106 : vector<16x16x4xf32>
    %108 = vector.extract_strided_slice %99 {offsets = [0, 0, 1], sizes = [16, 16, 1], strides = [1, 1, 1]} : vector<16x16x4xf32> to vector<16x16x1xf32>
    %109 = vector.extract_strided_slice %101 {offsets = [1, 0], sizes = [1, 4], strides = [1, 1]} : vector<4x4xf32> to vector<1x4xf32>
    %110 = vector.shape_cast %109 : vector<1x4xf32> to vector<1x1x4xf32>
    %111 = vector.broadcast %108 : vector<16x16x1xf32> to vector<16x16x4xf32>
    %112 = vector.broadcast %110 : vector<1x1x4xf32> to vector<16x16x4xf32>
    %113 = arith.mulf %111, %112 : vector<16x16x4xf32>
    %114 = arith.addf %107, %113 : vector<16x16x4xf32>
    %115 = vector.extract_strided_slice %99 {offsets = [0, 0, 2], sizes = [16, 16, 1], strides = [1, 1, 1]} : vector<16x16x4xf32> to vector<16x16x1xf32>
    %116 = vector.extract_strided_slice %101 {offsets = [2, 0], sizes = [1, 4], strides = [1, 1]} : vector<4x4xf32> to vector<1x4xf32>
    %117 = vector.shape_cast %116 : vector<1x4xf32> to vector<1x1x4xf32>
    %118 = vector.broadcast %115 : vector<16x16x1xf32> to vector<16x16x4xf32>
    %119 = vector.broadcast %117 : vector<1x1x4xf32> to vector<16x16x4xf32>
    %120 = arith.mulf %118, %119 : vector<16x16x4xf32>
    %121 = arith.addf %114, %120 : vector<16x16x4xf32>
    %122 = vector.extract_strided_slice %99 {offsets = [0, 0, 3], sizes = [16, 16, 1], strides = [1, 1, 1]} : vector<16x16x4xf32> to vector<16x16x1xf32>
    %123 = vector.extract_strided_slice %101 {offsets = [3, 0], sizes = [1, 4], strides = [1, 1]} : vector<4x4xf32> to vector<1x4xf32>
    %124 = vector.shape_cast %123 : vector<1x4xf32> to vector<1x1x4xf32>
    %125 = vector.broadcast %122 : vector<16x16x1xf32> to vector<16x16x4xf32>
    %126 = vector.broadcast %124 : vector<1x1x4xf32> to vector<16x16x4xf32>
    %127 = arith.mulf %125, %126 : vector<16x16x4xf32>
    %128 = arith.addf %121, %127 : vector<16x16x4xf32>
    %c1_69 = arith.constant 1 : index
    %c0_70 = arith.constant 0 : index
    %129 = vector.load %arg6[%c1_69, %c0_70] : memref<4x4xf32, #tpu.memory_space<vmem>>, vector<1x4xf32>
    %130 = vector.shape_cast %129 : vector<1x4xf32> to vector<1x1x4xf32>
    %131 = vector.broadcast %130 : vector<1x1x4xf32> to vector<16x16x4xf32>
    %132 = arith.addf %128, %131 : vector<16x16x4xf32>
    %cst_71 = arith.constant 0.000000e+00 : f32
    %133 = vector.broadcast %cst_71 : f32 to vector<16x16x4xf32>
    %134 = arith.maximumf %132, %133 : vector<16x16x4xf32>
    %135 = vector.extract_strided_slice %134 {offsets = [4, 0, 0], sizes = [8, 16, 4], strides = [1, 1, 1]} : vector<16x16x4xf32> to vector<8x16x4xf32>
    %136 = arith.addf %79, %135 : vector<8x16x4xf32>
    %c1_72 = arith.constant 1 : index
    %c0_73 = arith.constant 0 : index
    %c0_74 = arith.constant 0 : index
    %137 = vector.load %arg8[%c1_72, %c0_73, %c0_74] : memref<18x16x4xf32, #tpu.memory_space<vmem>>, vector<16x16x4xf32>
    tpu.vector_store %arg8[%c1_72, %c0_73, %c0_74], %134 {strides = array<i32>} : memref<18x16x4xf32, #tpu.memory_space<vmem>>, vector<16x16x4xf32>,
    %c0_i32_75 = arith.constant 0 : i32
    %138 = arith.cmpi eq, %arg1, %c0_i32_75 : i32
    %139 = arith.extui %138 : i1 to i32
    %c0_i32_76 = arith.constant 0 : i32
    %140 = arith.cmpi ne, %139, %c0_i32_76 : i32
    scf.if %140 {
      %c1_127 = arith.constant 1 : index
      %c0_128 = arith.constant 0 : index
      %c0_129 = arith.constant 0 : index
      %254 = vector.load %arg8[%c1_127, %c0_128, %c0_129] : memref<18x16x4xf32, #tpu.memory_space<vmem>>, vector<4x16x4xf32>
      tpu.vector_store %arg8[%c1_127, %c0_128, %c0_129], %12 {strides = array<i32>} : memref<18x16x4xf32, #tpu.memory_space<vmem>>, vector<4x16x4xf32>,
    } else {
    }
    %c1_i32_77 = arith.constant 1 : i32
    %141 = arith.cmpi eq, %arg1, %c1_i32_77 : i32
    %142 = arith.extui %141 : i1 to i32
    %c0_i32_78 = arith.constant 0 : i32
    %143 = arith.cmpi ne, %142, %c0_i32_78 : i32
    scf.if %143 {
      %c13_127 = arith.constant 13 : index
      %c0_128 = arith.constant 0 : index
      %c0_129 = arith.constant 0 : index
      %254 = vector.load %arg8[%c13_127, %c0_128, %c0_129] : memref<18x16x4xf32, #tpu.memory_space<vmem>>, vector<4x16x4xf32>
      tpu.vector_store %arg8[%c13_127, %c0_128, %c0_129], %12 {strides = array<i32>} : memref<18x16x4xf32, #tpu.memory_space<vmem>>, vector<4x16x4xf32>,
    } else {
    }
    %c0_79 = arith.constant 0 : index
    %c0_80 = arith.constant 0 : index
    %c0_81 = arith.constant 0 : index
    %144 = vector.load %arg8[%c0_79, %c0_80, %c0_81] : memref<18x16x4xf32, #tpu.memory_space<vmem>>, vector<16x16x4xf32>
    %c1_82 = arith.constant 1 : index
    %c0_83 = arith.constant 0 : index
    %c0_84 = arith.constant 0 : index
    %145 = vector.load %arg8[%c1_82, %c0_83, %c0_84] : memref<18x16x4xf32, #tpu.memory_space<vmem>>, vector<16x16x4xf32>
    %146 = arith.maximumf %144, %145 : vector<16x16x4xf32>
    %c2_85 = arith.constant 2 : index
    %c0_86 = arith.constant 0 : index
    %c0_87 = arith.constant 0 : index
    %147 = vector.load %arg8[%c2_85, %c0_86, %c0_87] : memref<18x16x4xf32, #tpu.memory_space<vmem>>, vector<16x16x4xf32>
    %148 = arith.maximumf %146, %147 : vector<16x16x4xf32>
    %c1_i32_88 = arith.constant 1 : i32
    %149 = tpu.dynamic_rotate %148 by %c1_i32_88 dim 1 : vector<16x16x4xf32>, i32 -> vector<16x16x4xf32>
    %cst_89 = arith.constant -3.000000e+38 : f32
    %150 = vector.broadcast %cst_89 : f32 to vector<16x16x4xf32>
    %151 = arith.select %24, %150, %149 : vector<16x16x4xi1>, vector<16x16x4xf32>
    %c15_i32_90 = arith.constant 15 : i32
    %152 = tpu.dynamic_rotate %148 by %c15_i32_90 dim 1 : vector<16x16x4xf32>, i32 -> vector<16x16x4xf32>
    %cst_91 = arith.constant -3.000000e+38 : f32
    %153 = vector.broadcast %cst_91 : f32 to vector<16x16x4xf32>
    %154 = arith.select %29, %153, %152 : vector<16x16x4xi1>, vector<16x16x4xf32>
    %155 = arith.maximumf %148, %151 : vector<16x16x4xf32>
    %156 = arith.maximumf %155, %154 : vector<16x16x4xf32>
    %c2_92 = arith.constant 2 : index
    %c0_93 = arith.constant 0 : index
    %c0_94 = arith.constant 0 : index
    %157 = vector.load %arg5[%c2_92, %c0_93, %c0_94] : memref<4x4x4xf32, #tpu.memory_space<vmem>>, vector<1x4x4xf32>
    %158 = vector.shape_cast %157 : vector<1x4x4xf32> to vector<4x4xf32>
    %159 = vector.extract_strided_slice %156 {offsets = [0, 0, 0], sizes = [16, 16, 1], strides = [1, 1, 1]} : vector<16x16x4xf32> to vector<16x16x1xf32>
    %160 = vector.extract_strided_slice %158 {offsets = [0, 0], sizes = [1, 4], strides = [1, 1]} : vector<4x4xf32> to vector<1x4xf32>
    %161 = vector.shape_cast %160 : vector<1x4xf32> to vector<1x1x4xf32>
    %162 = vector.broadcast %159 : vector<16x16x1xf32> to vector<16x16x4xf32>
    %163 = vector.broadcast %161 : vector<1x1x4xf32> to vector<16x16x4xf32>
    %164 = arith.mulf %162, %163 : vector<16x16x4xf32>
    %165 = vector.extract_strided_slice %156 {offsets = [0, 0, 1], sizes = [16, 16, 1], strides = [1, 1, 1]} : vector<16x16x4xf32> to vector<16x16x1xf32>
    %166 = vector.extract_strided_slice %158 {offsets = [1, 0], sizes = [1, 4], strides = [1, 1]} : vector<4x4xf32> to vector<1x4xf32>
    %167 = vector.shape_cast %166 : vector<1x4xf32> to vector<1x1x4xf32>
    %168 = vector.broadcast %165 : vector<16x16x1xf32> to vector<16x16x4xf32>
    %169 = vector.broadcast %167 : vector<1x1x4xf32> to vector<16x16x4xf32>
    %170 = arith.mulf %168, %169 : vector<16x16x4xf32>
    %171 = arith.addf %164, %170 : vector<16x16x4xf32>
    %172 = vector.extract_strided_slice %156 {offsets = [0, 0, 2], sizes = [16, 16, 1], strides = [1, 1, 1]} : vector<16x16x4xf32> to vector<16x16x1xf32>
    %173 = vector.extract_strided_slice %158 {offsets = [2, 0], sizes = [1, 4], strides = [1, 1]} : vector<4x4xf32> to vector<1x4xf32>
    %174 = vector.shape_cast %173 : vector<1x4xf32> to vector<1x1x4xf32>
    %175 = vector.broadcast %172 : vector<16x16x1xf32> to vector<16x16x4xf32>
    %176 = vector.broadcast %174 : vector<1x1x4xf32> to vector<16x16x4xf32>
    %177 = arith.mulf %175, %176 : vector<16x16x4xf32>
    %178 = arith.addf %171, %177 : vector<16x16x4xf32>
    %179 = vector.extract_strided_slice %156 {offsets = [0, 0, 3], sizes = [16, 16, 1], strides = [1, 1, 1]} : vector<16x16x4xf32> to vector<16x16x1xf32>
    %180 = vector.extract_strided_slice %158 {offsets = [3, 0], sizes = [1, 4], strides = [1, 1]} : vector<4x4xf32> to vector<1x4xf32>
    %181 = vector.shape_cast %180 : vector<1x4xf32> to vector<1x1x4xf32>
    %182 = vector.broadcast %179 : vector<16x16x1xf32> to vector<16x16x4xf32>
    %183 = vector.broadcast %181 : vector<1x1x4xf32> to vector<16x16x4xf32>
    %184 = arith.mulf %182, %183 : vector<16x16x4xf32>
    %185 = arith.addf %178, %184 : vector<16x16x4xf32>
    %c2_95 = arith.constant 2 : index
    %c0_96 = arith.constant 0 : index
    %186 = vector.load %arg6[%c2_95, %c0_96] : memref<4x4xf32, #tpu.memory_space<vmem>>, vector<1x4xf32>
    %187 = vector.shape_cast %186 : vector<1x4xf32> to vector<1x1x4xf32>
    %188 = vector.broadcast %187 : vector<1x1x4xf32> to vector<16x16x4xf32>
    %189 = arith.addf %185, %188 : vector<16x16x4xf32>
    %cst_97 = arith.constant 0.000000e+00 : f32
    %190 = vector.broadcast %cst_97 : f32 to vector<16x16x4xf32>
    %191 = arith.maximumf %189, %190 : vector<16x16x4xf32>
    %192 = vector.extract_strided_slice %191 {offsets = [4, 0, 0], sizes = [8, 16, 4], strides = [1, 1, 1]} : vector<16x16x4xf32> to vector<8x16x4xf32>
    %193 = arith.addf %136, %192 : vector<8x16x4xf32>
    %c1_98 = arith.constant 1 : index
    %c0_99 = arith.constant 0 : index
    %c0_100 = arith.constant 0 : index
    %194 = vector.load %arg8[%c1_98, %c0_99, %c0_100] : memref<18x16x4xf32, #tpu.memory_space<vmem>>, vector<16x16x4xf32>
    tpu.vector_store %arg8[%c1_98, %c0_99, %c0_100], %191 {strides = array<i32>} : memref<18x16x4xf32, #tpu.memory_space<vmem>>, vector<16x16x4xf32>,
    %c0_i32_101 = arith.constant 0 : i32
    %195 = arith.cmpi eq, %arg1, %c0_i32_101 : i32
    %196 = arith.extui %195 : i1 to i32
    %c0_i32_102 = arith.constant 0 : i32
    %197 = arith.cmpi ne, %196, %c0_i32_102 : i32
    scf.if %197 {
      %c1_127 = arith.constant 1 : index
      %c0_128 = arith.constant 0 : index
      %c0_129 = arith.constant 0 : index
      %254 = vector.load %arg8[%c1_127, %c0_128, %c0_129] : memref<18x16x4xf32, #tpu.memory_space<vmem>>, vector<4x16x4xf32>
      tpu.vector_store %arg8[%c1_127, %c0_128, %c0_129], %12 {strides = array<i32>} : memref<18x16x4xf32, #tpu.memory_space<vmem>>, vector<4x16x4xf32>,
    } else {
    }
    %c1_i32_103 = arith.constant 1 : i32
    %198 = arith.cmpi eq, %arg1, %c1_i32_103 : i32
    %199 = arith.extui %198 : i1 to i32
    %c0_i32_104 = arith.constant 0 : i32
    %200 = arith.cmpi ne, %199, %c0_i32_104 : i32
    scf.if %200 {
      %c13_127 = arith.constant 13 : index
      %c0_128 = arith.constant 0 : index
      %c0_129 = arith.constant 0 : index
      %254 = vector.load %arg8[%c13_127, %c0_128, %c0_129] : memref<18x16x4xf32, #tpu.memory_space<vmem>>, vector<4x16x4xf32>
      tpu.vector_store %arg8[%c13_127, %c0_128, %c0_129], %12 {strides = array<i32>} : memref<18x16x4xf32, #tpu.memory_space<vmem>>, vector<4x16x4xf32>,
    } else {
    }
    %c0_105 = arith.constant 0 : index
    %c0_106 = arith.constant 0 : index
    %c0_107 = arith.constant 0 : index
    %201 = vector.load %arg8[%c0_105, %c0_106, %c0_107] : memref<18x16x4xf32, #tpu.memory_space<vmem>>, vector<16x16x4xf32>
    %c1_108 = arith.constant 1 : index
    %c0_109 = arith.constant 0 : index
    %c0_110 = arith.constant 0 : index
    %202 = vector.load %arg8[%c1_108, %c0_109, %c0_110] : memref<18x16x4xf32, #tpu.memory_space<vmem>>, vector<16x16x4xf32>
    %203 = arith.maximumf %201, %202 : vector<16x16x4xf32>
    %c2_111 = arith.constant 2 : index
    %c0_112 = arith.constant 0 : index
    %c0_113 = arith.constant 0 : index
    %204 = vector.load %arg8[%c2_111, %c0_112, %c0_113] : memref<18x16x4xf32, #tpu.memory_space<vmem>>, vector<16x16x4xf32>
    %205 = arith.maximumf %203, %204 : vector<16x16x4xf32>
    %c1_i32_114 = arith.constant 1 : i32
    %206 = tpu.dynamic_rotate %205 by %c1_i32_114 dim 1 : vector<16x16x4xf32>, i32 -> vector<16x16x4xf32>
    %cst_115 = arith.constant -3.000000e+38 : f32
    %207 = vector.broadcast %cst_115 : f32 to vector<16x16x4xf32>
    %208 = arith.select %24, %207, %206 : vector<16x16x4xi1>, vector<16x16x4xf32>
    %c15_i32_116 = arith.constant 15 : i32
    %209 = tpu.dynamic_rotate %205 by %c15_i32_116 dim 1 : vector<16x16x4xf32>, i32 -> vector<16x16x4xf32>
    %cst_117 = arith.constant -3.000000e+38 : f32
    %210 = vector.broadcast %cst_117 : f32 to vector<16x16x4xf32>
    %211 = arith.select %29, %210, %209 : vector<16x16x4xi1>, vector<16x16x4xf32>
    %212 = arith.maximumf %205, %208 : vector<16x16x4xf32>
    %213 = arith.maximumf %212, %211 : vector<16x16x4xf32>
    %c3 = arith.constant 3 : index
    %c0_118 = arith.constant 0 : index
    %c0_119 = arith.constant 0 : index
    %214 = vector.load %arg5[%c3, %c0_118, %c0_119] : memref<4x4x4xf32, #tpu.memory_space<vmem>>, vector<1x4x4xf32>
    %215 = vector.shape_cast %214 : vector<1x4x4xf32> to vector<4x4xf32>
    %216 = vector.extract_strided_slice %213 {offsets = [0, 0, 0], sizes = [16, 16, 1], strides = [1, 1, 1]} : vector<16x16x4xf32> to vector<16x16x1xf32>
    %217 = vector.extract_strided_slice %215 {offsets = [0, 0], sizes = [1, 4], strides = [1, 1]} : vector<4x4xf32> to vector<1x4xf32>
    %218 = vector.shape_cast %217 : vector<1x4xf32> to vector<1x1x4xf32>
    %219 = vector.broadcast %216 : vector<16x16x1xf32> to vector<16x16x4xf32>
    %220 = vector.broadcast %218 : vector<1x1x4xf32> to vector<16x16x4xf32>
    %221 = arith.mulf %219, %220 : vector<16x16x4xf32>
    %222 = vector.extract_strided_slice %213 {offsets = [0, 0, 1], sizes = [16, 16, 1], strides = [1, 1, 1]} : vector<16x16x4xf32> to vector<16x16x1xf32>
    %223 = vector.extract_strided_slice %215 {offsets = [1, 0], sizes = [1, 4], strides = [1, 1]} : vector<4x4xf32> to vector<1x4xf32>
    %224 = vector.shape_cast %223 : vector<1x4xf32> to vector<1x1x4xf32>
    %225 = vector.broadcast %222 : vector<16x16x1xf32> to vector<16x16x4xf32>
    %226 = vector.broadcast %224 : vector<1x1x4xf32> to vector<16x16x4xf32>
    %227 = arith.mulf %225, %226 : vector<16x16x4xf32>
    %228 = arith.addf %221, %227 : vector<16x16x4xf32>
    %229 = vector.extract_strided_slice %213 {offsets = [0, 0, 2], sizes = [16, 16, 1], strides = [1, 1, 1]} : vector<16x16x4xf32> to vector<16x16x1xf32>
    %230 = vector.extract_strided_slice %215 {offsets = [2, 0], sizes = [1, 4], strides = [1, 1]} : vector<4x4xf32> to vector<1x4xf32>
    %231 = vector.shape_cast %230 : vector<1x4xf32> to vector<1x1x4xf32>
    %232 = vector.broadcast %229 : vector<16x16x1xf32> to vector<16x16x4xf32>
    %233 = vector.broadcast %231 : vector<1x1x4xf32> to vector<16x16x4xf32>
    %234 = arith.mulf %232, %233 : vector<16x16x4xf32>
    %235 = arith.addf %228, %234 : vector<16x16x4xf32>
    %236 = vector.extract_strided_slice %213 {offsets = [0, 0, 3], sizes = [16, 16, 1], strides = [1, 1, 1]} : vector<16x16x4xf32> to vector<16x16x1xf32>
    %237 = vector.extract_strided_slice %215 {offsets = [3, 0], sizes = [1, 4], strides = [1, 1]} : vector<4x4xf32> to vector<1x4xf32>
    %238 = vector.shape_cast %237 : vector<1x4xf32> to vector<1x1x4xf32>
    %239 = vector.broadcast %236 : vector<16x16x1xf32> to vector<16x16x4xf32>
    %240 = vector.broadcast %238 : vector<1x1x4xf32> to vector<16x16x4xf32>
    %241 = arith.mulf %239, %240 : vector<16x16x4xf32>
    %242 = arith.addf %235, %241 : vector<16x16x4xf32>
    %c3_120 = arith.constant 3 : index
    %c0_121 = arith.constant 0 : index
    %243 = vector.load %arg6[%c3_120, %c0_121] : memref<4x4xf32, #tpu.memory_space<vmem>>, vector<1x4xf32>
    %244 = vector.shape_cast %243 : vector<1x4xf32> to vector<1x1x4xf32>
    %245 = vector.broadcast %244 : vector<1x1x4xf32> to vector<16x16x4xf32>
    %246 = arith.addf %242, %245 : vector<16x16x4xf32>
    %cst_122 = arith.constant 0.000000e+00 : f32
    %247 = vector.broadcast %cst_122 : f32 to vector<16x16x4xf32>
    %248 = arith.maximumf %246, %247 : vector<16x16x4xf32>
    %249 = vector.extract_strided_slice %248 {offsets = [4, 0, 0], sizes = [8, 16, 4], strides = [1, 1, 1]} : vector<16x16x4xf32> to vector<8x16x4xf32>
    %250 = arith.addf %193, %249 : vector<8x16x4xf32>
    %c0_123 = arith.constant 0 : index
    %c0_124 = arith.constant 0 : index
    %c0_125 = arith.constant 0 : index
    %c0_126 = arith.constant 0 : index
    %251 = vector.load %arg7[%c0_123, %c0_124, %c0_125, %c0_126] : memref<1x8x16x4xf32, #tpu.memory_space<vmem>>, vector<1x8x16x4xf32>
    %252 = vector.shape_cast %251 : vector<1x8x16x4xf32> to vector<8x16x4xf32>
    %253 = vector.shape_cast %250 : vector<8x16x4xf32> to vector<1x8x16x4xf32>
    tpu.vector_store %arg7[%c0_123, %c0_124, %c0_125, %c0_126], %253 {strides = array<i32>} : memref<1x8x16x4xf32, #tpu.memory_space<vmem>>, vector<1x8x16x4xf32>,
    return
  }
  func.func @transform_0(%arg0: i32, %arg1: i32) -> (i32, i32, i32, i32) {
    %c0_i32 = arith.constant 0 : i32
    %c0_i32_0 = arith.constant 0 : i32
    %c0_i32_1 = arith.constant 0 : i32
    return %arg0, %arg1, %c0_i32, %c0_i32_0 : i32, i32, i32, i32
  }
  func.func @transform_1(%arg0: i32, %arg1: i32) -> (i32, i32, i32, i32) {
    %c2_i32 = arith.constant 2 : i32
    %0 = arith.muli %arg1, %c2_i32 : i32
    %c1_i32 = arith.constant 1 : i32
    %1 = arith.subi %0, %c1_i32 : i32
    %c0_i32 = arith.constant 0 : i32
    %2 = arith.maxsi %1, %c0_i32 : i32
    %c0_i32_0 = arith.constant 0 : i32
    %c0_i32_1 = arith.constant 0 : i32
    %c0_i32_2 = arith.constant 0 : i32
    return %arg0, %2, %c0_i32_0, %c0_i32_1 : i32, i32, i32, i32
  }
  func.func @transform_2(%arg0: i32, %arg1: i32) -> (i32, i32, i32, i32) {
    %c2_i32 = arith.constant 2 : i32
    %0 = arith.muli %arg1, %c2_i32 : i32
    %c2_i32_0 = arith.constant 2 : i32
    %1 = arith.addi %0, %c2_i32_0 : i32
    %c3_i32 = arith.constant 3 : i32
    %2 = arith.minsi %1, %c3_i32 : i32
    %c0_i32 = arith.constant 0 : i32
    %c0_i32_1 = arith.constant 0 : i32
    %c0_i32_2 = arith.constant 0 : i32
    return %arg0, %2, %c0_i32, %c0_i32_1 : i32, i32, i32, i32
  }
  func.func @transform_3(%arg0: i32, %arg1: i32) -> (i32, i32, i32) {
    %c0_i32 = arith.constant 0 : i32
    %c0_i32_0 = arith.constant 0 : i32
    %c0_i32_1 = arith.constant 0 : i32
    %c0_i32_2 = arith.constant 0 : i32
    return %c0_i32, %c0_i32_0, %c0_i32_1 : i32, i32, i32
  }
  func.func @transform_4(%arg0: i32, %arg1: i32) -> (i32, i32) {
    %c0_i32 = arith.constant 0 : i32
    %c0_i32_0 = arith.constant 0 : i32
    %c0_i32_1 = arith.constant 0 : i32
    return %c0_i32, %c0_i32_0 : i32, i32
  }
  func.func @transform_5(%arg0: i32, %arg1: i32) -> (i32, i32, i32, i32) {
    %c0_i32 = arith.constant 0 : i32
    %c0_i32_0 = arith.constant 0 : i32
    %c0_i32_1 = arith.constant 0 : i32
    return %arg0, %arg1, %c0_i32, %c0_i32_0 : i32, i32, i32, i32
  }
}

</mosaic_0001>

<bundles_post_ra>
// kernel: tpu_custom_call.1
= control target key start
LH: loop header
LB: loop body
LE: loop exit
PB: predicated region body
PF: predicated region fallthrough
CT: control target
= control target key end

     0   :  { %s5595_s18 = smov 0   ;;  %s5597_s19 = smov 0   ;;  %s9684_s0 = inlined_call_operand.vmem [shape: f32[2,16,16,4], index: 0, kind: input, shape index: {}]   ;;  %s9685_s1 = inlined_call_operand.vmem [shape: f32[2,16,16,4], index: 1, kind: input, shape index: {}]   ;;  %s9686_s2 = inlined_call_operand.vmem [shape: f32[2,16,16,4], index: 2, kind: input, shape index: {}]   ;;  %s9687_s3 = inlined_call_operand.vmem [shape: f32[4,4,4], index: 3, kind: input, shape index: {}]   ;;  %s9688_s4 = inlined_call_operand.vmem [shape: f32[4,4], index: 4, kind: input, shape index: {}]   ;;  %s9689_s5 = inlined_call_operand.vmem [shape: f32[2,16,16,4], index: 5, kind: output, shape index: {}]  }
   0x1   :  { %s5599_s20 = smov 0   ;;  %s5601_s21 = smov 0  }
   0x2   :  { %s5603_s22 = smov 0  }
   0x3 LB: > { %s24_s23 = sadd.s32 1, %s5542_s20  ;;  %s27_s24 = sadd.s32 1, %s5546_s21  ;;  %s5550_s22 = sphi %s5603_s22, %s15_s22   ;;  %s5546_s21 = sphi %s5601_s21, %s9998_s21   ;;  %s5542_s20 = sphi %s5599_s20, %s9997_s20   ;;  %s5538_s19 = sphi %s5597_s19, %s9996_s19   ;;  %s5534_s18 = sphi %s5595_s18, %s9995_s18  }
   0x4   : > { %p25_p0 = scmp.ge.s32.totalorder %s24_s23, 2  ;;  %p5386_p1 = scmp.ge.s32.totalorder %s5550_s22, 1 }
   0x5   : > { %p277_p2 = scmp.lt.s32.totalorder %s5550_s22, 5 }
   0x6   : > { %s10000_s23 = smov (%p25_p0, %s24_s23), 0  ;;  %s10002_s24 = smov (!%p25_p0, %s27_s24), %s5546_s21 }
   0x7   : > { %p278_p3 = pnand %p5386_p1, %p277_p2  ;;  %p29_p4 = scmp.ge.s32.totalorder %s10002_s24, 2 }
   0x9   : > { %s10004_s24 = smov (%p29_p4, %s10002_s24), 0  ;;  %281 = sbr.rel (%p278_p3) target bundleno = 1652 (0x674), region = 40 }
  0x10   : > { %vm403_vm0 = vcmask 31744   ;;  %s5387_s25 = sshll.u32 %s5534_s18, 3  ;;  %p344_p5 = scmp.lt.s32.totalorder %s5538_s19, 1  ;;  %v5552_v0 = vmov -3e+38  }
  0x11   : > { %404 = vst.msk [vmem:[#allocation2] sm:$0xff] %vm403_vm0, %v5552_v0  ;;  %405 = vst.msk [vmem:[#allocation2 + $0x8] sm:$0xff] %vm403_vm0, %v5552_v0  ;;  %p346_p6 = scmp.lt.s32.totalorder %s5387_s25, 15  ;;  %s5391_s26 = sshll.u32 %s5534_s18, 1 }
  0x12   : > { %407 = vst.msk [vmem:[#allocation2 + $0x110] sm:$0xff] %vm403_vm0, %v5552_v0  ;;  %408 = vst.msk [vmem:[#allocation2 + $0x118] sm:$0xff] %vm403_vm0, %v5552_v0  ;;  %s10006_s19 = smov (!%p344_p5, %s5538_s19), 1  ;;  %s5392_s28 = sadd.s32 4294967295, %s5391_s26 }
  0x13   : > { %s10008_s25 = smov (!%p346_p6, %s5387_s25), 15  ;;  %s5633_s27 = sshll.u32 %s10006_s19, 5 }
  0x14   : > { %s5388_s29 = sshll.u32 %s10008_s25, 1  ;;  %p356_p7 = scmp.gt.s32.totalorder %s5392_s28, 0 }
  0x15   : > { %s350_s30 = sadd.s32 %s5633_s27, %s5388_s29  ;;  %s374_s6 = sadd.s32 2, %s5391_s26 }
  0x16   : > { %s5390_s7 = sshll.u32 %s350_s30, 3  ;;  %p375_p8 = scmp.lt.s32.totalorder %s374_s6, 3 }
  0x17   : > { %s5639_s10 = scalar_lea.vmem %s9684_s0, %s5390_s7  ;;  %s5644_s13 = scalar_lea.vmem %s9689_s5, %s5390_s7 }
  0x18   : > { %v5647_v1 = vld [vmem:[%s5639_s10] sm:$0xff]  ;;  %v5650_v2 = vld [vmem:[%s5639_s10 + $0x8] sm:$0xff]  ;;  %v5653_v3 = vld [vmem:[%s5639_s10 + $0x10] sm:$0xff]  ;;  %s10010_s28 = smov (!%p356_p7, %s5392_s28), 0  ;;  %s10012_s6 = smov (!%p375_p8, %s374_s6), 3 }
  0x19   : > { %9744 = vst [vmem:[#allocation3_spill] sm:$0xff] %v5647_v1  ;;  %9745 = vst [vmem:[#allocation4_spill] sm:$0xff] %v5650_v2  ;;  %v5664_v4 = vld [vmem:[%s5639_s10 + $0x18] sm:$0xff]  ;;  %v5667_v5 = vld [vmem:[%s5639_s10 + $0x20] sm:$0xff]  ;;  %s5393_s14 = sshll.u32 %s10010_s28, 2  ;;  %s5398_s15 = sshll.u32 %s10012_s6, 2 }
  0x1a   : > { %9746 = vst [vmem:[#allocation5_spill] sm:$0xff] %v5653_v3  ;;  %426 = vst.msk [vmem:[#allocation2 + $0x50] sm:$0xff] %vm403_vm0, %v5647_v1  ;;  %v5670_v6 = vld [vmem:[%s5639_s10 + $0x28] sm:$0xff]  ;;  %v5681_v7 = vld [vmem:[%s5639_s10 + $0x30] sm:$0xff]  ;;  %p361_p9 = scmp.lt.s32.totalorder %s5393_s14, 15  ;;  %p380_p10 = scmp.lt.s32.totalorder %s5398_s15, 15 }
  0x1b   : > { %427 = vst.msk [vmem:[#allocation2 + $0x58] sm:$0xff] %vm403_vm0, %v5650_v2  ;;  %428 = vst.msk [vmem:[#allocation2 + $0x60] sm:$0xff] %vm403_vm0, %v5653_v3  ;;  %v5684_v8 = vld [vmem:[%s5639_s10 + $0x38] sm:$0xff]  ;;  %v5687_v9 = vld [vmem:[%s5639_s10 + $0x40] sm:$0xff]  ;;  %p5406_p11 = scmp.ne.s32.totalorder %s5534_s18, 0 }
  0x1c   : > { %9747 = vst [vmem:[#allocation6_spill] sm:$0xff] %v5664_v4  ;;  %9748 = vst [vmem:[#allocation7_spill] sm:$0xff] %v5667_v5  ;;  %v5697_v10 = vld [vmem:[%s5639_s10 + $0x48] sm:$0xff]  ;;  %v5700_v11 = vld [vmem:[%s5639_s10 + $0x50] sm:$0xff]  ;;  %s10014_s14 = smov (!%p361_p9, %s5393_s14), 15  ;;  %s10016_s15 = smov (!%p380_p10, %s5398_s15), 15 }
  0x1d   : > { %9749 = vst [vmem:[#allocation8_spill] sm:$0xff] %v5670_v6  ;;  %429 = vst.msk [vmem:[#allocation2 + $0x68] sm:$0xff] %vm403_vm0, %v5664_v4  ;;  %v5703_v12 = vld [vmem:[%s5639_s10 + $0x58] sm:$0xff]  ;;  %v5713_v13 = vld [vmem:[%s5639_s10 + $0x60] sm:$0xff]  ;;  %s5394_s16 = sshll.u32 %s10014_s14, 1  ;;  %s5399_s19 = sshll.u32 %s10016_s15, 1 }
  0x1e   : > { %430 = vst.msk [vmem:[#allocation2 + $0x70] sm:$0xff] %vm403_vm0, %v5667_v5  ;;  %431 = vst.msk [vmem:[#allocation2 + $0x78] sm:$0xff] %vm403_vm0, %v5670_v6  ;;  %v5716_v14 = vld [vmem:[%s5639_s10 + $0x68] sm:$0xff]  ;;  %v5719_v15 = vld [vmem:[%s5639_s10 + $0x70] sm:$0xff]  ;;  %s365_s17 = sadd.s32 %s5394_s16, %s5633_s27  ;;  %s384_s26 = sadd.s32 %s5399_s19, %s5633_s27  ;;  %v5553_v33 = vmov (!%p5406_p11), -3e+38  }
  0x1f   : > { %9750 = vst [vmem:[#allocation9_spill] sm:$0xff] %v5681_v7  ;;  %9751 = vst [vmem:[#allocation10_spill] sm:$0xff] %v5684_v8  ;;  %v5728_v16 = vld [vmem:[%s5639_s10 + $0x78] sm:$0xff]  ;;  %s5396_s25 = sshll.u32 %s365_s17, 3  ;;  %s5401_s6 = sshll.u32 %s384_s26, 3 }
  0x20   : > { %9752 = vst [vmem:[#allocation11_spill] sm:$0xff] %v5687_v9  ;;  %432 = vst.msk [vmem:[#allocation2 + $0x80] sm:$0xff] %vm403_vm0, %v5681_v7  ;;  %s367_s30 = scalar_lea.vmem %s9685_s1, %s5396_s25  ;;  %s386_s9 = scalar_lea.vmem %s9686_s2, %s5401_s6 }
  0x21   : > { %433 = vst.msk [vmem:[#allocation2 + $0x88] sm:$0xff] %vm403_vm0, %v5684_v8  ;;  %434 = vst.msk [vmem:[#allocation2 + $0x90] sm:$0xff] %vm403_vm0, %v5687_v9  ;;  %v442_v17 = vld [vmem:[%s367_s30] sm:$0xff]  ;;  %v443_v18 = vld [vmem:[%s367_s30 + $0x8] sm:$0xff] }
  0x22   : > { %9753 = vst [vmem:[#allocation12_spill] sm:$0xff] %v5697_v10  ;;  %9754 = vst [vmem:[#allocation13_spill] sm:$0xff] %v5700_v11  ;;  %v444_v19 = vld [vmem:[%s367_s30 + $0x10] sm:$0xff]  ;;  %v445_v20 = vld [vmem:[%s367_s30 + $0x18] sm:$0xff] }
  0x23   : > { %9755 = vst [vmem:[#allocation14_spill] sm:$0xff] %v5703_v12  ;;  %435 = vst.msk [vmem:[#allocation2 + $0x98] sm:$0xff] %vm403_vm0, %v5697_v10  ;;  %v446_v21 = vld [vmem:[%s367_s30 + $0x20] sm:$0xff]  ;;  %v447_v22 = vld [vmem:[%s367_s30 + $0x28] sm:$0xff] }
  0x24   : > { %436 = vst.msk [vmem:[#allocation2 + $0xa0] sm:$0xff] %vm403_vm0, %v5700_v11  ;;  %437 = vst.msk [vmem:[#allocation2 + $0xa8] sm:$0xff] %vm403_vm0, %v5703_v12  ;;  %v448_v23 = vld [vmem:[%s367_s30 + $0x30] sm:$0xff]  ;;  %v449_v24 = vld [vmem:[%s367_s30 + $0x38] sm:$0xff] }
  0x25   : > { %9756 = vst [vmem:[#allocation15_spill] sm:$0xff] %v5713_v13  ;;  %9757 = vst [vmem:[#allocation16_spill] sm:$0xff] %v5716_v14  ;;  %v459_v25 = vld [vmem:[%s386_s9] sm:$0xff]  ;;  %v460_v26 = vld [vmem:[%s386_s9 + $0x8] sm:$0xff] }
  0x26   : > { %9758 = vst [vmem:[#allocation17_spill] sm:$0xff] %v5719_v15  ;;  %438 = vst.msk [vmem:[#allocation2 + $0xb0] sm:$0xff] %vm403_vm0, %v5713_v13  ;;  %v461_v27 = vld [vmem:[%s386_s9 + $0x10] sm:$0xff]  ;;  %v462_v28 = vld [vmem:[%s386_s9 + $0x18] sm:$0xff] }
  0x27   : > { %439 = vst.msk [vmem:[#allocation2 + $0xb8] sm:$0xff] %vm403_vm0, %v5716_v14  ;;  %440 = vst.msk [vmem:[#allocation2 + $0xc0] sm:$0xff] %vm403_vm0, %v5719_v15  ;;  %v463_v29 = vld [vmem:[%s386_s9 + $0x20] sm:$0xff]  ;;  %v464_v30 = vld [vmem:[%s386_s9 + $0x28] sm:$0xff] }
  0x28   : > { %9759 = vst [vmem:[#allocation18_spill] sm:$0xff] %v5728_v16  ;;  %441 = vst.msk [vmem:[#allocation2 + $0xc8] sm:$0xff] %vm403_vm0, %v5728_v16  ;;  %v465_v31 = vld [vmem:[%s386_s9 + $0x30] sm:$0xff]  ;;  %v466_v32 = vld [vmem:[%s386_s9 + $0x38] sm:$0xff] }
  0x29   : > { %451 = vst.msk [vmem:[#allocation2 + $0x10] sm:$0xff] %vm403_vm0, %v442_v17  ;;  %452 = vst.msk [vmem:[#allocation2 + $0x18] sm:$0xff] %vm403_vm0, %v443_v18 }
  0x2a   : > { %453 = vst.msk [vmem:[#allocation2 + $0x20] sm:$0xff] %vm403_vm0, %v444_v19  ;;  %454 = vst.msk [vmem:[#allocation2 + $0x28] sm:$0xff] %vm403_vm0, %v445_v20  ;;  %479 = sbr.rel (%p5406_p11) target bundleno = 53 (0x35), region = 44 }
  0x2b   : > { %455 = vst.msk [vmem:[#allocation2 + $0x30] sm:$0xff] %vm403_vm0, %v446_v21  ;;  %456 = vst.msk [vmem:[#allocation2 + $0x38] sm:$0xff] %vm403_vm0, %v447_v22 }
  0x2c   : > { %457 = vst.msk [vmem:[#allocation2 + $0x40] sm:$0xff] %vm403_vm0, %v448_v23  ;;  %458 = vst.msk [vmem:[#allocation2 + $0x48] sm:$0xff] %vm403_vm0, %v449_v24 }
  0x2d   : > { %468 = vst.msk [vmem:[#allocation2 + $0xd0] sm:$0xff] %vm403_vm0, %v459_v25  ;;  %469 = vst.msk [vmem:[#allocation2 + $0xd8] sm:$0xff] %vm403_vm0, %v460_v26 }
  0x2e   : > { %470 = vst.msk [vmem:[#allocation2 + $0xe0] sm:$0xff] %vm403_vm0, %v461_v27  ;;  %471 = vst.msk [vmem:[#allocation2 + $0xe8] sm:$0xff] %vm403_vm0, %v462_v28 }
  0x2f   : > { %472 = vst.msk [vmem:[#allocation2 + $0xf0] sm:$0xff] %vm403_vm0, %v463_v29  ;;  %473 = vst.msk [vmem:[#allocation2 + $0xf8] sm:$0xff] %vm403_vm0, %v464_v30 }
  0x30   : > { %474 = vst.msk [vmem:[#allocation2 + $0x100] sm:$0xff] %vm403_vm0, %v465_v31  ;;  %475 = vst.msk [vmem:[#allocation2 + $0x108] sm:$0xff] %vm403_vm0, %v466_v32 }
  0x31   : > { %480 = vst.msk [vmem:[#allocation2 + $0x10] sm:$0xff] %vm403_vm0, %v5553_v33  ;;  %481 = vst.msk [vmem:[#allocation2 + $0x18] sm:$0xff] %vm403_vm0, %v5553_v33 }
  0x32   : > { %482 = vst.msk [vmem:[#allocation2 + $0x20] sm:$0xff] %vm403_vm0, %v5553_v33  ;;  %483 = vst.msk [vmem:[#allocation2 + $0x28] sm:$0xff] %vm403_vm0, %v5553_v33 }
  0x33   : > { %484 = vst.msk [vmem:[#allocation2 + $0x30] sm:$0xff] %vm403_vm0, %v5553_v33  ;;  %485 = vst.msk [vmem:[#allocation2 + $0x38] sm:$0xff] %vm403_vm0, %v5553_v33 }
  0x34   : > { %486 = vst.msk [vmem:[#allocation2 + $0x40] sm:$0xff] %vm403_vm0, %v5553_v33  ;;  %487 = vst.msk [vmem:[#allocation2 + $0x48] sm:$0xff] %vm403_vm0, %v5553_v33 }
  0x35 PF: > { %p5407_p12 = scmp.ne.s32.totalorder %s5534_s18, 1 }
  0x36   : > { %v5554_v34 = vmov (!%p5407_p12), -3e+38  }
  0x37   : > { %491 = sbr.rel (%p5407_p12) target bundleno = 62 (0x3e), region = 48  ;;  %492 = vst.msk [vmem:[#allocation2 + $0xd0] sm:$0xff] (!%p5407_p12), %vm403_vm0, %v5554_v34  ;;  %493 = vst.msk [vmem:[#allocation2 + $0xd8] sm:$0xff] (!%p5407_p12), %vm403_vm0, %v5554_v34 }
  0x38   : > { %494 = vst.msk [vmem:[#allocation2 + $0xe0] sm:$0xff] (!%p5407_p12), %vm403_vm0, %v5554_v34  ;;  %495 = vst.msk [vmem:[#allocation2 + $0xe8] sm:$0xff] (!%p5407_p12), %vm403_vm0, %v5554_v34 }
  0x39   : > { %496 = vst.msk [vmem:[#allocation2 + $0xf0] sm:$0xff] (!%p5407_p12), %vm403_vm0, %v5554_v34  ;;  %497 = vst.msk [vmem:[#allocation2 + $0xf8] sm:$0xff] (!%p5407_p12), %vm403_vm0, %v5554_v34 }
  0x3a   : > { %498 = vst.msk [vmem:[#allocation2 + $0x100] sm:$0xff] (!%p5407_p12), %vm403_vm0, %v5554_v34  ;;  %499 = vst.msk [vmem:[#allocation2 + $0x108] sm:$0xff] (!%p5407_p12), %vm403_vm0, %v5554_v34 }
  0x3e PF: > { %v500_v35 = vlaneseq  ;;  %v535_v36 = vld [vmem:[#allocation2 + $0x10] sm:$0xff]  ;;  %v536_v37 = vld [vmem:[#allocation2 + $0x18] sm:$0xff]  ;;  %v567_v38 = vld [vmem:[#allocation2 + $0x20] sm:$0xff]  ;;  %v9690_v39 = vmov 0   ;;  %v9734_v1 = vmov 3  }
  0x3f   : > { %5481 = vset.pattern.permute.xlu1 %v9690_v39  ;;  %5480 = vset.pattern.permute.xlu0 %v9690_v39  ;;  %v568_v40 = vld [vmem:[#allocation2 + $0x28] sm:$0xff]  ;;  %v599_v41 = vmax.f32 %v535_v36, %v567_v38  ;;  %v5780_v42 = vld [vmem:[#allocation2 + $0x30] sm:$0xff]  ;;  %v5782_v43 = vld [vmem:[#allocation2 + $0x38] sm:$0xff] }
  0x40   : > { %v5784_v44 = vshrl.u32 %v500_v35, 7  ;;  %v600_v45 = vmax.f32 %v536_v37, %v568_v40  ;;  %v533_v46 = vld [vmem:[#allocation2] sm:$0xff]  ;;  %v534_v47 = vld [vmem:[#allocation2 + $0x8] sm:$0xff]  ;;  %v601_v48 = vmax.f32 %v567_v38, %v5780_v42  ;;  %v602_v49 = vmax.f32 %v568_v40, %v5782_v43 }
  0x41   : > { %v5788_v50 = vld [vmem:[#allocation2 + $0x40] sm:$0xff]  ;;  %v5791_v51 = vmax.f32 %v599_v41, %v5780_v42  ;;  %v597_v52 = vmax.f32 %v533_v46, %v535_v36  ;;  %v598_v53 = vmax.f32 %v534_v47, %v536_v37  ;;  %v5799_v58 = vld [vmem:[#allocation2 + $0x48] sm:$0xff] }
  0x42   : > { %9760 = vst [vmem:[#allocation19_spill] sm:$0xff] %v5784_v44  ;;  %v603_v54 = vmax.f32 %v5780_v42, %v5788_v50  ;;  %v502_v55 = vadd.s32 8, %v5784_v44  ;;  %v503_v56 = vrot.slane %v5784_v44, 7  ;;  %vm505_vm1 = vcmp.lt.s32.totalorder %v5784_v44, 1 }
  0x43   : > { %v518_v57 = vrot.slane %v5784_v44, 1  ;;  %vm520_vm2 = vcmp.lt.s32.totalorder %v5784_v44, 7  ;;  %v5803_v59 = vmax.f32 %v600_v45, %v5782_v43  ;;  %v695_v60 = vrot.slane %v5791_v51, 7 }
  0x44   : > { %v791_v61 = vrot.slane %v5791_v51, 1  ;;  %v504_v62 = vrot.slane %v502_v55, 7  ;;  %v519_v63 = vrot.slane %v502_v55, 1  ;;  %v662_v0 = vmax.f32 %v597_v52, %v567_v38 }
  0x45   : > { %v5807_v17 = vmax.f32 %v598_v53, %v568_v40  ;;  %v711_v18 = vrot.slane %v5803_v59, 7  ;;  %v807_v19 = vrot.slane %v5803_v59, 1  ;;  %v5812_v20 = vmax.f32 %v601_v48, %v5788_v50 }
  0x46   : > { %v5815_v21 = vmax.f32 %v602_v49, %v5799_v58  ;;  %v507_v22 = vsel %vm505_vm1, %v504_v62, %v503_v56  ;;  %v521_v23 = vsel %vm520_vm2, %v518_v57, %v519_v63  ;;  %v694_v24 = vrot.slane %v662_v0, 7 }
  0x47   : > { %v710_v25 = vrot.slane %v5807_v17, 7  ;;  %v508_v26 = vsub.s32 %v507_v22, %v5784_v44  ;;  %v523_v27 = vsub.s32 %v521_v23, %v5784_v44  ;;  %v743_v28 = vsel %vm505_vm1, %v711_v18, %v695_v60 }
  0x48   : > { %v823_v29 = vsel %vm520_vm2, %v791_v61, %v807_v19  ;;  %v790_v31 = vrot.slane %v662_v0, 1  ;;  %v806_v32 = vrot.slane %v5807_v17, 1  ;;  %v506_v33 = vsel %vm505_vm1, %v503_v56, %v504_v62 }
  0x49   : > { %v742_v30 = vsel %vm505_vm1, %v710_v25, %v694_v24  ;;  %v511_v34 = vsub.s32 0, %v508_v26  ;;  %v526_v35 = vsub.s32 0, %v523_v27  ;;  %v509_v36 = vsub.s32 %v506_v33, %v502_v55 }
  0x4a   : > { %v522_v37 = vsel %vm520_vm2, %v519_v63, %v518_v57  ;;  %v822_v38 = vsel %vm520_vm2, %v790_v31, %v806_v32  ;;  %v727_v41 = vsel %vm505_vm1, %v695_v60, %v711_v18  ;;  %v839_v45 = vsel %vm520_vm2, %v807_v19, %v791_v61 }
  0x4b   : > { %v524_v40 = vsub.s32 %v522_v37, %v502_v55  ;;  %v5841_v46 = vmin.u32 %v511_v34, %v508_v26  ;;  %v5843_v47 = vmin.u32 %v526_v35, %v523_v27  ;;  %v514_v48 = vsub.s32 0, %v509_v36  ;;  %v636_v35 = vld [vmem:[#allocation2 + $0x50] sm:$0xff] }
  0x4c   : > { %v726_v49 = vsel %vm505_vm1, %v694_v24, %v710_v25  ;;  %v838_v53 = vsel %vm520_vm2, %v806_v32, %v790_v31  ;;  %v696_v55 = vrot.slane %v5812_v20, 7  ;;  %v712_v56 = vrot.slane %v5815_v21, 7 }
  0x4d   : > { %9761 = vst [vmem:[#allocation20_spill] sm:$0xff] %v5841_v46  ;;  %9762 = vst [vmem:[#allocation21_spill] sm:$0xff] %v5843_v47  ;;  %v529_v52 = vsub.s32 0, %v524_v40  ;;  %vm516_vm3 = vcmp.gt.s32.totalorder %v5841_v46, 1  ;;  %vm531_vm4 = vcmp.gt.s32.totalorder %v5843_v47, 1  ;;  %v5853_v57 = vmin.u32 %v514_v48, %v509_v36 }
  0x4e   : > { %v792_v60 = vrot.slane %v5812_v20, 1  ;;  %v760_v61 = vsel %vm516_vm3, -3e+38, %v743_v28  ;;  %v856_v62 = vsel %vm531_vm4, -3e+38, %v823_v29  ;;  %v728_v26 = vsel %vm505_vm1, %v696_v55, %v712_v56 }
  0x4f   : > { %9763 = vst [vmem:[#allocation22_spill] sm:$0xff] %v5853_v57  ;;  %v758_v63 = vsel %vm516_vm3, -3e+38, %v742_v30  ;;  %v5862_v18 = vmin.u32 %v529_v52, %v524_v40  ;;  %v888_v19 = vmax.f32 %v5791_v51, %v760_v61  ;;  %v854_v22 = vsel %vm531_vm4, -3e+38, %v822_v38  ;;  %v637_v40 = vld [vmem:[#allocation2 + $0x58] sm:$0xff] }
  0x50   : > { %v886_v23 = vmax.f32 %v662_v0, %v758_v63  ;;  %vm517_vm5 = vcmp.gt.s32.totalorder %v5853_v57, 1  ;;  %v808_v32 = vrot.slane %v5815_v21, 1  ;;  %v604_v48 = vmax.f32 %v5782_v43, %v5799_v58  ;;  %v5912_v52 = vld [vmem:[#allocation2 + $0x68] sm:$0xff]  ;;  %v5921_v61 = vld [vmem:[#allocation2 + $0x70] sm:$0xff] }
  0x51   : > { %9764 = vst [vmem:[#allocation23_spill] sm:$0xff] %v5862_v18  ;;  %vm532_vm6 = vcmp.gt.s32.totalorder %v5862_v18, 1  ;;  %v761_v24 = vsel %vm517_vm5, -3e+38, %v727_v41  ;;  %v759_v25 = vsel %vm517_vm5, -3e+38, %v726_v49  ;;  %v5875_v27 = vmax.f32 %v888_v19, %v856_v62 }
  0x52   : > { %v5877_v51 = vmax.f32 %v886_v23, %v854_v22  ;;  %v857_v0 = vsel %vm532_vm6, -3e+38, %v839_v45  ;;  %v889_v28 = vmax.f32 %v5803_v59, %v761_v24  ;;  %v855_v29 = vsel %vm532_vm6, -3e+38, %v838_v53  ;;  %v5910_v49 = vld [vmem:[#allocation2 + $0x60] sm:$0xff] }
  0x53   : > { %v887_v30 = vmax.f32 %v5807_v17, %v759_v25  ;;  %v763_v31 = vsel %vm517_vm5, -3e+38, %v728_v26  ;;  %963 = vperm.xlu1 %5481, %v5875_v27   ;;  %v744_v59 = vsel %vm505_vm1, %v712_v56, %v696_v55  ;;  %v840_v17 = vsel %vm520_vm2, %v808_v32, %v792_v60 }
  0x54   : > { %953 = vperm.xlu0 %5480, %v5877_v51   ;;  %v5890_v33 = vmax.f32 %v889_v28, %v857_v0  ;;  %v891_v34 = vmax.f32 %v5815_v21, %v763_v31  ;;  %v762_v37 = vsel %vm516_vm3, -3e+38, %v744_v59  ;;  %v824_v38 = vsel %vm520_vm2, %v792_v60, %v808_v32 }
  0x55   : > { %v5895_v36 = vmax.f32 %v887_v30, %v855_v29  ;;  %v859_v41 = vsel %vm532_vm6, -3e+38, %v840_v17  ;;  %v858_v21 = vsel %vm531_vm4, -3e+38, %v824_v38  ;;  %v890_v45 = vmax.f32 %v5812_v20, %v762_v37 }
  0x56   : > { %v5914_v53 = vmax.f32 %v891_v34, %v859_v41  ;;  %v668_v55 = vmax.f32 %v603_v54, %v636_v35  ;;  %v605_v56 = vmax.f32 %v5788_v50, %v636_v35  ;;  %v606_v60 = vmax.f32 %v5799_v58, %v637_v40  ;;  %v641_v41 = vld [vmem:[#allocation2 + $0x78] sm:$0xff] }
  0x57   : > { %968 = vperm.xlu1 %5481, %v5890_v33   ;;  %v5925_v43 = vmax.f32 %v890_v45, %v858_v21  ;;  %v669_v20 = vmax.f32 %v604_v48, %v637_v40  ;;  %v607_v62 = vmax.f32 %v636_v35, %v5910_v49  ;;  %v608_v58 = vmax.f32 %v637_v40, %v5912_v52 }
  0x58   : > { %958 = vperm.xlu0 %5480, %v5895_v36   ;;  %v697_v63 = vrot.slane %v668_v55, 7  ;;  %v793_v19 = vrot.slane %v668_v55, 1  ;;  %v670_v42 = vmax.f32 %v605_v56, %v5910_v49  ;;  %v671_v54 = vmax.f32 %v606_v60, %v5912_v52 }
  0x59   : > { %v713_v50 = vrot.slane %v669_v20, 7  ;;  %v809_v22 = vrot.slane %v669_v20, 1  ;;  %v5932_v23 = vmax.f32 %v607_v62, %v5921_v61 }
  0x5a   : > { %v698_v24 = vrot.slane %v670_v42, 7  ;;  %v714_v25 = vrot.slane %v671_v54, 7  ;;  %v794_v26 = vrot.slane %v670_v42, 1  ;;  %v810_v0 = vrot.slane %v671_v54, 1 }
  0x5b   : > { %978 = vperm.xlu1 %5481, %v5914_v53   ;;  %v729_v28 = vsel %vm505_vm1, %v697_v63, %v713_v50  ;;  %v841_v29 = vsel %vm520_vm2, %v809_v22, %v793_v19  ;;  %v745_v30 = vsel %vm505_vm1, %v713_v50, %v697_v63  ;;  %v699_v31 = vrot.slane %v5932_v23, 7 }
  0x5c   : > { %973 = vperm.xlu0 %5480, %v5925_v43   ;;  %v765_v32 = vsel %vm517_vm5, -3e+38, %v729_v28  ;;  %v861_v34 = vsel %vm532_vm6, -3e+38, %v841_v29  ;;  %v764_v59 = vsel %vm516_vm3, -3e+38, %v745_v30  ;;  %v825_v35 = vsel %vm520_vm2, %v793_v19, %v809_v22 }
  0x5d   : > { %v893_v17 = vmax.f32 %v669_v20, %v765_v32  ;;  %v860_v37 = vsel %vm531_vm4, -3e+38, %v825_v35  ;;  %v892_v38 = vmax.f32 %v668_v55, %v764_v59  ;;  %v730_v40 = vsel %vm505_vm1, %v698_v24, %v714_v25  ;;  %v643_v30 = vld [vmem:[#allocation2 + $0x88] sm:$0xff]  ;;  %v5982_v32 = vld [vmem:[#allocation2 + $0x90] sm:$0xff] }
  0x5e   : > { %v767_v21 = vsel %vm517_vm5, -3e+38, %v730_v40  ;;  %v842_v45 = vsel %vm520_vm2, %v810_v0, %v794_v26  ;;  %v746_v48 = vsel %vm505_vm1, %v714_v25, %v698_v24  ;;  %v826_v56 = vsel %vm520_vm2, %v794_v26, %v810_v0  ;;  %v642_v24 = vld [vmem:[#allocation2 + $0x80] sm:$0xff] }
  0x5f   : > { %v5963_v60 = vmax.f32 %v893_v17, %v861_v34  ;;  %v5965_v20 = vmax.f32 %v892_v38, %v860_v37  ;;  %v863_v55 = vsel %vm532_vm6, -3e+38, %v842_v45  ;;  %v895_v62 = vmax.f32 %v671_v54, %v767_v21  ;;  %v5995_v37 = vld [vmem:[#allocation2 + $0x98] sm:$0xff] }
  0x60   : > { %v766_v63 = vsel %vm516_vm3, -3e+38, %v746_v48  ;;  %v862_v19 = vsel %vm531_vm4, -3e+38, %v826_v56  ;;  %v673_v50 = vmax.f32 %v608_v58, %v641_v41  ;;  %v795_v22 = vrot.slane %v5932_v23, 1 }
  0x61   : > { %988 = vperm.xlu1 %5481, %v5963_v60   ;;  %983 = vperm.xlu0 %5480, %v5965_v20   ;;  %v5976_v25 = vmax.f32 %v895_v62, %v863_v55  ;;  %v894_v26 = vmax.f32 %v670_v42, %v766_v63  ;;  %v609_v54 = vmax.f32 %v5910_v49, %v5921_v61 }
  0x62   : > { %v715_v0 = vrot.slane %v673_v50, 7  ;;  %v811_v28 = vrot.slane %v673_v50, 1  ;;  %v610_v29 = vmax.f32 %v5912_v52, %v641_v41  ;;  %v611_v58 = vmax.f32 %v5921_v61, %v642_v24 }
  0x63   : > { %v5984_v34 = vmax.f32 %v894_v26, %v862_v19  ;;  %v674_v59 = vmax.f32 %v609_v54, %v642_v24  ;;  %v612_v35 = vmax.f32 %v641_v41, %v643_v30  ;;  %v613_v17 = vmax.f32 %v642_v24, %v5982_v32 }
  0x64   : > { %v731_v42 = vsel %vm505_vm1, %v699_v31, %v715_v0  ;;  %v843_v49 = vsel %vm520_vm2, %v811_v28, %v795_v22  ;;  %v747_v52 = vsel %vm505_vm1, %v715_v0, %v699_v31  ;;  %v827_v61 = vsel %vm520_vm2, %v795_v22, %v811_v28  ;;  %v6009_v22 = vld [vmem:[#allocation2 + $0xa0] sm:$0xff] }
  0x65   : > { %998 = vperm.xlu1 %5481, %v5976_v25   ;;  %993 = vperm.xlu0 %5480, %v5984_v34   ;;  %v769_v38 = vsel %vm517_vm5, -3e+38, %v731_v42  ;;  %v865_v40 = vsel %vm532_vm6, -3e+38, %v843_v49  ;;  %v768_v41 = vsel %vm516_vm3, -3e+38, %v747_v52  ;;  %v675_v21 = vmax.f32 %v610_v29, %v643_v30 }
  0x66   : > { %v897_v31 = vmax.f32 %v673_v50, %v769_v38  ;;  %v864_v45 = vsel %vm531_vm4, -3e+38, %v827_v61  ;;  %v896_v48 = vmax.f32 %v5932_v23, %v768_v41  ;;  %v700_v56 = vrot.slane %v674_v59, 7 }
  0x67   : > { %v716_v55 = vrot.slane %v675_v21, 7  ;;  %v796_v62 = vrot.slane %v674_v59, 1  ;;  %v812_v63 = vrot.slane %v675_v21, 1  ;;  %v676_v19 = vmax.f32 %v611_v58, %v5982_v32  ;;  %v6025_v58 = vld [vmem:[#allocation2 + $0xa8] sm:$0xff] }
  0x68   : > { %v6011_v24 = vmax.f32 %v897_v31, %v865_v40  ;;  %v6013_v26 = vmax.f32 %v896_v48, %v864_v45  ;;  %v677_v54 = vmax.f32 %v612_v35, %v5995_v37  ;;  %v614_v50 = vmax.f32 %v643_v30, %v5995_v37 }
  0x69   : > { %v732_v0 = vsel %vm505_vm1, %v700_v56, %v716_v55  ;;  %v844_v23 = vsel %vm520_vm2, %v812_v63, %v796_v62  ;;  %v748_v28 = vsel %vm505_vm1, %v716_v55, %v700_v56  ;;  %v828_v29 = vsel %vm520_vm2, %v796_v62, %v812_v63 }
  0x6a   : > { %1008 = vperm.xlu1 %5481, %v6011_v24   ;;  %1003 = vperm.xlu0 %5480, %v6013_v26   ;;  %v771_v30 = vsel %vm517_vm5, -3e+38, %v732_v0  ;;  %v867_v35 = vsel %vm532_vm6, -3e+38, %v844_v23  ;;  %v770_v42 = vsel %vm516_vm3, -3e+38, %v748_v28  ;;  %v678_v49 = vmax.f32 %v613_v17, %v6009_v22 }
  0x6b   : > { %v899_v52 = vmax.f32 %v675_v21, %v771_v30  ;;  %v866_v61 = vsel %vm531_vm4, -3e+38, %v828_v29  ;;  %v898_v38 = vmax.f32 %v674_v59, %v770_v42  ;;  %v701_v40 = vrot.slane %v676_v19, 7  ;;  %v648_v23 = vld [vmem:[#allocation2 + $0xb0] sm:$0xff] }
  0x6c   : > { %v717_v41 = vrot.slane %v677_v54, 7  ;;  %v797_v31 = vrot.slane %v676_v19, 1  ;;  %v813_v45 = vrot.slane %v677_v54, 1  ;;  %v679_v48 = vmax.f32 %v614_v50, %v6025_v58 }
  0x6d   : > { %v6039_v56 = vmax.f32 %v899_v52, %v867_v35  ;;  %v6041_v55 = vmax.f32 %v898_v38, %v866_v61  ;;  %v702_v62 = vrot.slane %v678_v49, 7  ;;  %v798_v63 = vrot.slane %v678_v49, 1 }
  0x6e   : > { %v733_v17 = vsel %vm505_vm1, %v701_v40, %v717_v41  ;;  %v845_v21 = vsel %vm520_vm2, %v813_v45, %v797_v31  ;;  %v749_v59 = vsel %vm505_vm1, %v717_v41, %v701_v40  ;;  %v829_v0 = vsel %vm520_vm2, %v797_v31, %v813_v45 }
  0x6f   : > { %1018 = vperm.xlu1 %5481, %v6039_v56   ;;  %1013 = vperm.xlu0 %5480, %v6041_v55   ;;  %v773_v50 = vsel %vm517_vm5, -3e+38, %v733_v17  ;;  %v869_v28 = vsel %vm532_vm6, -3e+38, %v845_v21  ;;  %v772_v29 = vsel %vm516_vm3, -3e+38, %v749_v59  ;;  %v615_v30 = vmax.f32 %v5982_v32, %v6009_v22 }
  0x70   : > { %v901_v35 = vmax.f32 %v677_v54, %v773_v50  ;;  %v868_v42 = vsel %vm531_vm4, -3e+38, %v829_v0  ;;  %v900_v52 = vmax.f32 %v676_v19, %v772_v29  ;;  %v718_v61 = vrot.slane %v679_v48, 7  ;;  %v649_v21 = vld [vmem:[#allocation2 + $0xb8] sm:$0xff]  ;;  %v6082_v0 = vld [vmem:[#allocation2 + $0xc0] sm:$0xff] }
  0x71   : > { %v814_v38 = vrot.slane %v679_v48, 1  ;;  %v616_v40 = vmax.f32 %v5995_v37, %v6025_v58  ;;  %v680_v41 = vmax.f32 %v615_v30, %v648_v23  ;;  %v617_v31 = vmax.f32 %v6009_v22, %v648_v23  ;;  %v6090_v30 = vld [vmem:[#allocation2 + $0xc8] sm:$0xff] }
  0x72   : > { %v6066_v45 = vmax.f32 %v901_v35, %v869_v28  ;;  %v6068_v17 = vmax.f32 %v900_v52, %v868_v42  ;;  %v734_v32 = vsel %vm505_vm1, %v702_v62, %v718_v61  ;;  %v750_v54 = vsel %vm505_vm1, %v718_v61, %v702_v62  ;;  %v6093_v61 = vld [vmem:[#allocation2 + $0xd0] sm:$0xff] }
  0x73   : > { %v775_v19 = vsel %vm517_vm5, -3e+38, %v734_v32  ;;  %v846_v37 = vsel %vm520_vm2, %v814_v38, %v798_v63  ;;  %v774_v22 = vsel %vm516_vm3, -3e+38, %v750_v54  ;;  %v830_v59 = vsel %vm520_vm2, %v798_v63, %v814_v38 }
  0x74   : > { %1028 = vperm.xlu1 %5481, %v6066_v45   ;;  %1023 = vperm.xlu0 %5480, %v6068_v17   ;;  %v871_v62 = vsel %vm532_vm6, -3e+38, %v846_v37  ;;  %v903_v50 = vmax.f32 %v679_v48, %v775_v19  ;;  %v870_v28 = vsel %vm531_vm4, -3e+38, %v830_v59  ;;  %v902_v29 = vmax.f32 %v678_v49, %v774_v22  ;;  %v6103_v22 = vld [vmem:[#allocation2 + $0xd8] sm:$0xff] }
  0x75   : > { %v681_v35 = vmax.f32 %v616_v40, %v649_v21  ;;  %v703_v42 = vrot.slane %v680_v41, 7  ;;  %v799_v52 = vrot.slane %v680_v41, 1  ;;  %v618_v63 = vmax.f32 %v6025_v58, %v649_v21 }
  0x76   : > { %v6095_v38 = vmax.f32 %v903_v50, %v871_v62  ;;  %v6097_v32 = vmax.f32 %v902_v29, %v870_v28  ;;  %v682_v54 = vmax.f32 %v617_v31, %v6082_v0  ;;  %v619_v48 = vmax.f32 %v648_v23, %v6082_v0 }
  0x77   : > { %v719_v19 = vrot.slane %v681_v35, 7  ;;  %v815_v37 = vrot.slane %v681_v35, 1  ;;  %v683_v49 = vmax.f32 %v618_v63, %v6090_v30  ;;  %v620_v40 = vmax.f32 %v649_v21, %v6090_v30 }
  0x78   : > { %1038 = vperm.xlu1 %5481, %v6095_v38   ;;  %1033 = vperm.xlu0 %5480, %v6097_v32   ;;  %v704_v58 = vrot.slane %v682_v54, 7  ;;  %v800_v59 = vrot.slane %v682_v54, 1  ;;  %v684_v62 = vmax.f32 %v619_v48, %v6093_v61  ;;  %v621_v31 = vmax.f32 %v6082_v0, %v6093_v61 }
  0x79   : > { %v735_v23 = vsel %vm505_vm1, %v703_v42, %v719_v19  ;;  %v847_v50 = vsel %vm520_vm2, %v815_v37, %v799_v52  ;;  %v751_v21 = vsel %vm505_vm1, %v719_v19, %v703_v42  ;;  %v831_v28 = vsel %vm520_vm2, %v799_v52, %v815_v37 }
  0x7a   : > { %v777_v29 = vsel %vm517_vm5, -3e+38, %v735_v23  ;;  %v873_v63 = vsel %vm532_vm6, -3e+38, %v847_v50  ;;  %v776_v0 = vsel %vm516_vm3, -3e+38, %v751_v21  ;;  %v685_v48 = vmax.f32 %v620_v40, %v6103_v22 }
  0x7b   : > { %v905_v39 = vmax.f32 %v681_v35, %v777_v29  ;;  %v872_v15 = vsel %vm531_vm4, -3e+38, %v831_v28  ;;  %v904_v13 = vmax.f32 %v680_v41, %v776_v0  ;;  %v720_v42 = vrot.slane %v683_v49, 7 }
  0x7c   : > { %v816_v19 = vrot.slane %v683_v49, 1  ;;  %v705_v16 = vrot.slane %v684_v62, 7  ;;  %v721_v52 = vrot.slane %v685_v48, 7  ;;  %v801_v37 = vrot.slane %v684_v62, 1 }
  0x7d   : > { %v6127_v11 = vmax.f32 %v905_v39, %v873_v63  ;;  %v6129_v23 = vmax.f32 %v904_v13, %v872_v15  ;;  %v736_v50 = vsel %vm505_vm1, %v704_v58, %v720_v42  ;;  %v752_v40 = vsel %vm505_vm1, %v720_v42, %v704_v58  ;;  %v654_v42 = vld [vmem:[#allocation2 + $0xe0] sm:$0xff] }
  0x7e   : > { %v779_v35 = vsel %vm517_vm5, -3e+38, %v736_v50  ;;  %v848_v41 = vsel %vm520_vm2, %v816_v19, %v800_v59  ;;  %v778_v21 = vsel %vm516_vm3, -3e+38, %v752_v40  ;;  %v832_v39 = vsel %vm520_vm2, %v800_v59, %v816_v19  ;;  %v655_v19 = vld [vmem:[#allocation2 + $0xe8] sm:$0xff] }
  0x7f   : > { %1048 = vperm.xlu1 %5481, %v6127_v11   ;;  %1043 = vperm.xlu0 %5480, %v6129_v23   ;;  %v875_v13 = vsel %vm532_vm6, -3e+38, %v848_v41  ;;  %v907_v15 = vmax.f32 %v683_v49, %v779_v35  ;;  %v874_v58 = vsel %vm531_vm4, -3e+38, %v832_v39  ;;  %v906_v28 = vmax.f32 %v682_v54, %v778_v21 }
  0x80   : > { %v737_v29 = vsel %vm505_vm1, %v705_v16, %v721_v52  ;;  %v817_v63 = vrot.slane %v685_v48, 1  ;;  %v753_v0 = vsel %vm505_vm1, %v721_v52, %v705_v16  ;;  %v622_v59 = vmax.f32 %v6090_v30, %v6103_v22 }
  0x81   : > { %v6155_v50 = vmax.f32 %v907_v15, %v875_v13  ;;  %v6157_v40 = vmax.f32 %v906_v28, %v874_v58  ;;  %v781_v49 = vsel %vm517_vm5, -3e+38, %v737_v29  ;;  %v780_v54 = vsel %vm516_vm3, -3e+38, %v753_v0  ;;  %v656_v15 = vld [vmem:[#allocation2 + $0xf0] sm:$0xff]  ;;  %v657_v58 = vld [vmem:[#allocation2 + $0xf8] sm:$0xff] }
  0x82   : > { %v849_v35 = vsel %vm520_vm2, %v817_v63, %v801_v37  ;;  %v909_v41 = vmax.f32 %v685_v48, %v781_v49  ;;  %v833_v16 = vsel %vm520_vm2, %v801_v37, %v817_v63  ;;  %v908_v30 = vmax.f32 %v684_v62, %v780_v54 }
  0x83   : > { %1058 = vperm.xlu1 %5481, %v6155_v50   ;;  %1053 = vperm.xlu0 %5480, %v6157_v40   ;;  %v877_v52 = vsel %vm532_vm6, -3e+38, %v849_v35  ;;  %v876_v21 = vsel %vm531_vm4, -3e+38, %v833_v16  ;;  %v686_v39 = vmax.f32 %v621_v31, %v654_v42  ;;  %v687_v13 = vmax.f32 %v622_v59, %v655_v19  ;;  %v658_v59 = vld [vmem:[#allocation2 + $0x100] sm:$0xff] }
  0x84   : > { %v6173_v28 = vmax.f32 %v909_v41, %v877_v52  ;;  %v6175_v48 = vmax.f32 %v908_v30, %v876_v21  ;;  %v623_v62 = vmax.f32 %v6093_v61, %v654_v42  ;;  %v624_v37 = vmax.f32 %v6103_v22, %v655_v19  ;;  %v659_v41 = vld [vmem:[#allocation2 + $0x108] sm:$0xff] }
  0x85   : > { %v706_v29 = vrot.slane %v686_v39, 7  ;;  %v722_v63 = vrot.slane %v687_v13, 7  ;;  %v802_v0 = vrot.slane %v686_v39, 1  ;;  %v818_v49 = vrot.slane %v687_v13, 1 }
  0x86   : > { %v688_v54 = vmax.f32 %v623_v62, %v656_v15  ;;  %v689_v35 = vmax.f32 %v624_v37, %v657_v58  ;;  %v625_v14 = vmax.f32 %v654_v42, %v656_v15  ;;  %v626_v16 = vmax.f32 %v655_v19, %v657_v58 }
  0x87   : > { %1068 = vperm.xlu1 %5481, %v6173_v28   ;;  %1063 = vperm.xlu0 %5480, %v6175_v48   ;;  %v738_v31 = vsel %vm505_vm1, %v706_v29, %v722_v63  ;;  %v850_v61 = vsel %vm520_vm2, %v818_v49, %v802_v0  ;;  %v754_v22 = vsel %vm505_vm1, %v722_v63, %v706_v29 }
  0x88   : > { %v783_v30 = vsel %vm517_vm5, -3e+38, %v738_v31  ;;  %v879_v42 = vsel %vm532_vm6, -3e+38, %v850_v61  ;;  %v782_v19 = vsel %vm516_vm3, -3e+38, %v754_v22  ;;  %v834_v52 = vsel %vm520_vm2, %v802_v0, %v818_v49 }
  0x89   : > { %v911_v21 = vmax.f32 %v687_v13, %v783_v30  ;;  %v878_v62 = vsel %vm531_vm4, -3e+38, %v834_v52  ;;  %v910_v37 = vmax.f32 %v686_v39, %v782_v19  ;;  %v707_v29 = vrot.slane %v688_v54, 7  ;;  %v660_v49 = vld [vmem:[#allocation2 + $0x110] sm:$0xff] }
  0x8a   : > { %v723_v63 = vrot.slane %v689_v35, 7  ;;  %v803_v9 = vrot.slane %v688_v54, 1  ;;  %v819_v12 = vrot.slane %v689_v35, 1  ;;  %v690_v7 = vmax.f32 %v625_v14, %v658_v59  ;;  %v661_v14 = vld [vmem:[#allocation2 + $0x118] sm:$0xff] }
  0x8b   : > { %v6197_v31 = vmax.f32 %v911_v21, %v879_v42  ;;  %v6199_v10 = vmax.f32 %v910_v37, %v878_v62  ;;  %v691_v61 = vmax.f32 %v626_v16, %v659_v41  ;;  %v627_v5 = vmax.f32 %v656_v15, %v658_v59 }
  0x8c   : > { %v739_v22 = vsel %vm505_vm1, %v707_v29, %v723_v63  ;;  %v851_v13 = vsel %vm520_vm2, %v819_v12, %v803_v9  ;;  %v755_v39 = vsel %vm505_vm1, %v723_v63, %v707_v29  ;;  %v835_v0 = vsel %vm520_vm2, %v803_v9, %v819_v12 }
  0x8d   : > { %1078 = vperm.xlu1 %5481, %v6197_v31   ;;  %1073 = vperm.xlu0 %5480, %v6199_v10   ;;  %v785_v15 = vsel %vm517_vm5, -3e+38, %v739_v22  ;;  %v881_v16 = vsel %vm532_vm6, -3e+38, %v851_v13  ;;  %v784_v59 = vsel %vm516_vm3, -3e+38, %v755_v39  ;;  %v628_v30 = vmax.f32 %v657_v58, %v659_v41 }
  0x8e   : > { %v913_v42 = vmax.f32 %v689_v35, %v785_v15  ;;  %v880_v9 = vsel %vm531_vm4, -3e+38, %v835_v0  ;;  %v912_v12 = vmax.f32 %v688_v54, %v784_v59  ;;  %v708_v19 = vrot.slane %v690_v7, 7 }
  0x8f   : > { %v724_v52 = vrot.slane %v691_v61, 7  ;;  %v804_v21 = vrot.slane %v690_v7, 1  ;;  %v820_v62 = vrot.slane %v691_v61, 1  ;;  %v692_v37 = vmax.f32 %v627_v5, %v660_v49 }
  0x90   : > { %v6219_v29 = vmax.f32 %v913_v42, %v881_v16  ;;  %v6221_v63 = vmax.f32 %v912_v12, %v880_v9  ;;  %v693_v22 = vmax.f32 %v628_v30, %v661_v14 }
  0x91   : > { %v740_v13 = vsel %vm505_vm1, %v708_v19, %v724_v52  ;;  %v852_v58 = vsel %vm520_vm2, %v820_v62, %v804_v21  ;;  %v756_v35 = vsel %vm505_vm1, %v724_v52, %v708_v19  ;;  %v836_v54 = vsel %vm520_vm2, %v804_v21, %v820_v62 }
  0x92   : > { %1088 = vperm.xlu1 %5481, %v6219_v29   ;;  %1083 = vperm.xlu0 %5480, %v6221_v63   ;;  %v787_v5 = vsel %vm517_vm5, -3e+38, %v740_v13  ;;  %v883_v41 = vsel %vm532_vm6, -3e+38, %v852_v58  ;;  %v786_v39 = vsel %vm516_vm3, -3e+38, %v756_v35 }
  0x93   : > { %v915_v0 = vmax.f32 %v691_v61, %v787_v5  ;;  %v882_v49 = vsel %vm531_vm4, -3e+38, %v836_v54  ;;  %v914_v14 = vmax.f32 %v690_v7, %v786_v39  ;;  %v709_v15 = vrot.slane %v692_v37, 7 }
  0x94   : > { %v725_v16 = vrot.slane %v693_v22, 7  ;;  %v805_v59 = vrot.slane %v692_v37, 1  ;;  %v821_v30 = vrot.slane %v693_v22, 1 }
  0x95   : > { %v6241_v42 = vmax.f32 %v915_v0, %v883_v41  ;;  %v6243_v9 = vmax.f32 %v914_v14, %v882_v49  ;;  %v9708_v41 = vmov 1  }
  0x96   : > { %v741_v12 = vsel %vm505_vm1, %v709_v15, %v725_v16  ;;  %v853_v19 = vsel %vm520_vm2, %v821_v30, %v805_v59  ;;  %v757_v61 = vsel %vm505_vm1, %v725_v16, %v709_v15  ;;  %v837_v7 = vsel %vm520_vm2, %v805_v59, %v821_v30 }
  0x97   : > { %1098 = vperm.xlu1 %5481, %v6241_v42   ;;  %1093 = vperm.xlu0 %5480, %v6243_v9   ;;  %v789_v52 = vsel %vm517_vm5, -3e+38, %v741_v12  ;;  %v885_v21 = vsel %vm532_vm6, -3e+38, %v853_v19  ;;  %v788_v62 = vsel %vm516_vm3, -3e+38, %v757_v61 }
  0x98   : > { %v917_v13 = vmax.f32 %v693_v22, %v789_v52  ;;  %v884_v58 = vsel %vm531_vm4, -3e+38, %v837_v7  ;;  %v916_v35 = vmax.f32 %v692_v37, %v788_v62  ;;  %v9704_v59 = vmov 2  }
  0x9a   : > { %v6263_v54 = vmax.f32 %v917_v13, %v885_v21  ;;  %v6265_v5 = vmax.f32 %v916_v35, %v884_v58 }
  0x9c   : > { %1108 = vperm.xlu1 %5481, %v6263_v54   ;;  %1103 = vperm.xlu0 %5480, %v6265_v5  }
  0xa0   : > { %5483 = vset.pattern.permute.xlu1 %v9708_v41  ;;  %5482 = vset.pattern.permute.xlu0 %v9708_v41 }
  0xa1   : > { %1152 = vperm.xlu1 %5483, %v5895_v36   ;;  %1148 = vperm.xlu0 %5482, %v5877_v51  }
  0xa5   : > { %1156 = vperm.xlu1 %5483, %v5875_v27   ;;  %1160 = vperm.xlu0 %5482, %v5890_v33  }
  0xa9   : > { %1164 = vperm.xlu1 %5483, %v5925_v43   ;;  %1168 = vperm.xlu0 %5482, %v5914_v53  }
  0xad   : > { %1172 = vperm.xlu1 %5483, %v5965_v20   ;;  %1176 = vperm.xlu0 %5482, %v5963_v60  }
  0xb1   : > { %1180 = vperm.xlu1 %5483, %v5984_v34   ;;  %1184 = vperm.xlu0 %5482, %v5976_v25  }
  0xb5   : > { %1188 = vperm.xlu1 %5483, %v6013_v26   ;;  %1192 = vperm.xlu0 %5482, %v6011_v24  }
  0xb9   : > { %1196 = vperm.xlu1 %5483, %v6041_v55   ;;  %1200 = vperm.xlu0 %5482, %v6039_v56  }
  0xbd   : > { %1204 = vperm.xlu1 %5483, %v6068_v17   ;;  %1208 = vperm.xlu0 %5482, %v6066_v45  }
  0xc1   : > { %1212 = vperm.xlu1 %5483, %v6097_v32   ;;  %1216 = vperm.xlu0 %5482, %v6095_v38  }
  0xc5   : > { %1220 = vperm.xlu1 %5483, %v6129_v23   ;;  %1224 = vperm.xlu0 %5482, %v6127_v11  }
  0xc9   : > { %1228 = vperm.xlu1 %5483, %v6157_v40   ;;  %1232 = vperm.xlu0 %5482, %v6155_v50  }
  0xcd   : > { %1236 = vperm.xlu1 %5483, %v6175_v48   ;;  %1240 = vperm.xlu0 %5482, %v6173_v28  }
  0xd1   : > { %1244 = vperm.xlu1 %5483, %v6199_v10   ;;  %1248 = vperm.xlu0 %5482, %v6197_v31  }
  0xd2   : > { %v6297_v37 = vpop.permute.xlu1 %963 }
  0xd3   : > { %v6299_v22 = vpop.permute.xlu0 %953 }
  0xd5   : > { %1252 = vperm.xlu1 %5483, %v6221_v63   ;;  %1256 = vperm.xlu0 %5482, %v6219_v29  }
  0xd6   : > { %v6303_v39 = vpop.permute.xlu1 %968 }
  0xd7   : > { %v6305_v0 = vpop.permute.xlu0 %958 }
  0xd9   : > { %1260 = vperm.xlu1 %5483, %v6243_v9   ;;  %1264 = vperm.xlu0 %5482, %v6241_v42  }
  0xda   : > { %v6309_v49 = vpop.permute.xlu1 %978 }
  0xdb   : > { %v6311_v14 = vpop.permute.xlu0 %973 }
  0xdd   : > { %1268 = vperm.xlu1 %5483, %v6265_v5   ;;  %1272 = vperm.xlu0 %5482, %v6263_v54  }
  0xe0   : > { %v6315_v15 = vpop.permute.xlu1 %988  ;;  %v6317_v16 = vpop.permute.xlu0 %983 }
  0xe1   : > { %5484 = vset.pattern.permute.xlu1 %v9704_v59  ;;  %5485 = vset.pattern.permute.xlu0 %v9704_v59 }
  0xe2   : > { %1344 = vperm.xlu1 %5484, %v5877_v51   ;;  %1348 = vperm.xlu0 %5485, %v5895_v36  }
  0xe4   : > { %v6323_v30 = vpop.permute.xlu1 %998  ;;  %v6325_v12 = vpop.permute.xlu0 %993 }
  0xe6   : > { %1352 = vperm.xlu1 %5484, %v5875_v27   ;;  %1360 = vperm.xlu0 %5485, %v5925_v43  }
  0xe9   : > { %v6329_v19 = vpop.permute.xlu1 %1008  ;;  %v6331_v61 = vpop.permute.xlu0 %1003 }
  0xea   : > { %1356 = vperm.xlu1 %5484, %v5890_v33   ;;  %1368 = vperm.xlu0 %5485, %v5965_v20  }
  0xee   : > { %1364 = vperm.xlu1 %5484, %v5914_v53   ;;  %1376 = vperm.xlu0 %5485, %v5984_v34   ;;  %v6337_v7 = vpop.permute.xlu1 %1018  ;;  %v6339_v52 = vpop.permute.xlu0 %1013 }
  0xf2   : > { %1372 = vperm.xlu1 %5484, %v5963_v60   ;;  %1384 = vperm.xlu0 %5485, %v6013_v26  }
  0xf3   : > { %v6343_v21 = vpop.permute.xlu1 %1028  ;;  %v6345_v62 = vpop.permute.xlu0 %1023 }
  0xf6   : > { %1380 = vperm.xlu1 %5484, %v5976_v25   ;;  %1392 = vperm.xlu0 %5485, %v6041_v55  }
  0xf7   : > { %v6349_v13 = vpop.permute.xlu1 %1038  ;;  %v6351_v58 = vpop.permute.xlu0 %1033 }
  0xf8   : > { %9765 = vst [vmem:[#allocation24_spill] sm:$0xff] %v6349_v13 }
  0xfa   : > { %1388 = vperm.xlu1 %5484, %v6011_v24   ;;  %1400 = vperm.xlu0 %5485, %v6068_v17  }
  0xfe   : > { %1396 = vperm.xlu1 %5484, %v6039_v56   ;;  %1408 = vperm.xlu0 %5485, %v6097_v32   ;;  %v6357_v35 = vpop.permute.xlu1 %1048  ;;  %v6359_v59 = vpop.permute.xlu0 %1043 }
  0xff   : > { %9766 = vst [vmem:[#allocation25_spill] sm:$0xff] %v6357_v35 }
 0x102   : > { %1404 = vperm.xlu1 %5484, %v6066_v45   ;;  %1416 = vperm.xlu0 %5485, %v6129_v23   ;;  %v6363_v41 = vpop.permute.xlu1 %1058  ;;  %v6365_v18 = vpop.permute.xlu0 %1053 }
 0x103   : > { %9767 = vst [vmem:[#allocation26_spill] sm:$0xff] %v6363_v41 }
 0x106   : > { %1412 = vperm.xlu1 %5484, %v6095_v38   ;;  %1424 = vperm.xlu0 %5485, %v6157_v40   ;;  %v6369_v57 = vpop.permute.xlu1 %1068  ;;  %v6371_v47 = vpop.permute.xlu0 %1063 }
 0x107   : > { %9768 = vst [vmem:[#allocation27_spill] sm:$0xff] %v6369_v57 }
 0x10a   : > { %1420 = vperm.xlu1 %5484, %v6127_v11   ;;  %1432 = vperm.xlu0 %5485, %v6175_v48  }
 0x10c   : > { %v6375_v46 = vpop.permute.xlu1 %1078  ;;  %v6377_v8 = vpop.permute.xlu0 %1073 }
 0x10d   : > { %9769 = vst [vmem:[#allocation28_spill] sm:$0xff] %v6375_v46 }
 0x10e   : > { %1428 = vperm.xlu1 %5484, %v6155_v50   ;;  %1440 = vperm.xlu0 %5485, %v6199_v10  }
 0x111   : > { %v6381_v3 = vpop.permute.xlu1 %1088  ;;  %v6383_v41 = vpop.permute.xlu0 %1083 }
 0x112   : > { %9770 = vst [vmem:[#allocation29_spill] sm:$0xff] %v6381_v3  ;;  %1436 = vperm.xlu1 %5484, %v6173_v28   ;;  %1448 = vperm.xlu0 %5485, %v6221_v63  }
 0x116   : > { %1444 = vperm.xlu1 %5484, %v6197_v31   ;;  %1456 = vperm.xlu0 %5485, %v6243_v9   ;;  %v6389_v57 = vpop.permute.xlu1 %1098  ;;  %v6391_v46 = vpop.permute.xlu0 %1093 }
 0x117   : > { %9771 = vst [vmem:[#allocation30_spill] sm:$0xff] %v6389_v57 }
 0x11a   : > { %1452 = vperm.xlu1 %5484, %v6219_v29   ;;  %1464 = vperm.xlu0 %5485, %v6265_v5  }
 0x11b   : > { %v6395_v6 = vpop.permute.xlu1 %1108  ;;  %v6397_v3 = vpop.permute.xlu0 %1103 }
 0x11c   : > { %9772 = vst [vmem:[#allocation31_spill] sm:$0xff] %v6395_v6 }
 0x11e   : > { %1460 = vperm.xlu1 %5484, %v6241_v42   ;;  %5486 = vset.pattern.permute.xlu0 %v9734_v1 }
 0x11f   : > { %1540 = vperm.xlu0 %5486, %v5877_v51  }
 0x120   : > { %v6402_v35 = vpop.permute.xlu1 %1152  ;;  %v6404_v57 = vpop.permute.xlu0 %1148 }
 0x122   : > { %1468 = vperm.xlu1 %5484, %v6263_v54  }
 0x123   : > { %1552 = vperm.xlu0 %5486, %v5890_v33  }
 0x124   : > { %v6408_v13 = vpop.permute.xlu1 %1156  ;;  %v6410_v6 = vpop.permute.xlu0 %1160 }
 0x126   : > { %5487 = vset.pattern.permute.xlu1 %v9734_v1 }
 0x127   : > { %1544 = vperm.xlu1 %5487, %v5895_v36   ;;  %1560 = vperm.xlu0 %5486, %v5914_v53  }
 0x128   : > { %v6415_v4 = vpop.permute.xlu1 %1164  ;;  %v6417_v51 = vpop.permute.xlu0 %1168 }
 0x12b   : > { %1548 = vperm.xlu1 %5487, %v5875_v27   ;;  %1568 = vperm.xlu0 %5486, %v5963_v60  }
 0x12c   : > { %v6421_v2 = vpop.permute.xlu1 %1172  ;;  %v6423_v33 = vpop.permute.xlu0 %1176 }
 0x12f   : > { %1556 = vperm.xlu1 %5487, %v5925_v43   ;;  %1576 = vperm.xlu0 %5486, %v5976_v25  }
 0x130   : > { %v6427_v1 = vpop.permute.xlu1 %1180  ;;  %v6429_v36 = vpop.permute.xlu0 %1184 }
 0x133   : > { %1564 = vperm.xlu1 %5487, %v5965_v20   ;;  %1584 = vperm.xlu0 %5486, %v6011_v24  }
 0x134   : > { %v6433_v53 = vpop.permute.xlu1 %1188  ;;  %v6435_v27 = vpop.permute.xlu0 %1192 }
 0x137   : > { %1572 = vperm.xlu1 %5487, %v5984_v34   ;;  %1592 = vperm.xlu0 %5486, %v6039_v56  }
 0x138   : > { %v6439_v60 = vpop.permute.xlu1 %1196  ;;  %v6441_v43 = vpop.permute.xlu0 %1200 }
 0x13b   : > { %1580 = vperm.xlu1 %5487, %v6013_v26   ;;  %1600 = vperm.xlu0 %5486, %v6066_v45  }
 0x13c   : > { %v6445_v25 = vpop.permute.xlu1 %1204  ;;  %v6447_v20 = vpop.permute.xlu0 %1208 }
 0x13f   : > { %1588 = vperm.xlu1 %5487, %v6041_v55   ;;  %1608 = vperm.xlu0 %5486, %v6095_v38  }
 0x140   : > { %v6451_v24 = vpop.permute.xlu1 %1212  ;;  %v6453_v34 = vpop.permute.xlu0 %1216 }
 0x141   : > { %9773 = vst [vmem:[#allocation32_spill] sm:$0xff] %v6453_v34 }
 0x143   : > { %1596 = vperm.xlu1 %5487, %v6068_v17   ;;  %1616 = vperm.xlu0 %5486, %v6127_v11  }
 0x144   : > { %v6457_v56 = vpop.permute.xlu1 %1220  ;;  %v6459_v26 = vpop.permute.xlu0 %1224 }
 0x145   : > { %9774 = vst [vmem:[#allocation33_spill] sm:$0xff] %v6459_v26  ;;  %v6512_v26 = vsub.s32 2, %v5784_v44 }
 0x147   : > { %1604 = vperm.xlu1 %5487, %v6097_v32   ;;  %1624 = vperm.xlu0 %5486, %v6155_v50   ;;  %v6480_v50 = vsub.s32 0, %v5784_v44  ;;  %9782 = vst [vmem:[#allocation41_spill] sm:$0xff] %v6512_v26 }
 0x148   : > { %v6463_v45 = vpop.permute.xlu1 %1228  ;;  %v6465_v55 = vpop.permute.xlu0 %1232 }
 0x149   : > { %9775 = vst [vmem:[#allocation34_spill] sm:$0xff] %v6465_v55  ;;  %9778 = vst [vmem:[#allocation37_spill] sm:$0xff] %v6480_v50  ;;  %v6483_v55 = vsub.s32 1, %v5784_v44 }
 0x14b   : > { %1612 = vperm.xlu1 %5487, %v6129_v23   ;;  %1632 = vperm.xlu0 %5486, %v6173_v28   ;;  %9779 = vst [vmem:[#allocation38_spill] sm:$0xff] %v6483_v55  ;;  %v6490_v23 = vld [vmem:[%s9687_s3] sm:$0xf] }
 0x14c   : > { %v6469_v38 = vpop.permute.xlu1 %1236  ;;  %v6471_v17 = vpop.permute.xlu0 %1240 }
 0x14d   : > { %9776 = vst [vmem:[#allocation35_spill] sm:$0xff] %v6471_v17 }
 0x14f   : > { %1620 = vperm.xlu1 %5487, %v6157_v40   ;;  %1640 = vperm.xlu0 %5486, %v6197_v31   ;;  %v6498_v31 = vrot.slane %v6490_v23, %v6480_v50 }
 0x150   : > { %v6475_v11 = vpop.permute.xlu1 %1244  ;;  %v6477_v32 = vpop.permute.xlu0 %1248 }
 0x151   : > { %9777 = vst [vmem:[#allocation36_spill] sm:$0xff] %v6477_v32  ;;  %v6502_v32 = vrot.slane %v6490_v23, %v6483_v55  ;;  %v1143_v17 = vmul.f32 %v6498_v31, %v6391_v46 }
 0x153   : > { %1628 = vperm.xlu1 %5487, %v6175_v48   ;;  %1648 = vperm.xlu0 %5486, %v6219_v29   ;;  %v1280_v46 = vmul.f32 %v6502_v32, %v6402_v35  ;;  %v1283_v35 = vmul.f32 %v6502_v32, %v6415_v4 }
 0x154   : > { %v6492_v40 = vpop.permute.xlu1 %1252  ;;  %v6494_v28 = vpop.permute.xlu0 %1256 }
 0x155   : > { %9780 = vst [vmem:[#allocation39_spill] sm:$0xff] %v6494_v28 }
 0x157   : > { %1636 = vperm.xlu1 %5487, %v6199_v10   ;;  %1656 = vperm.xlu0 %5486, %v6241_v42   ;;  %v1145_v42 = vmul.f32 %v6498_v31, %v6397_v3 }
 0x158   : > { %v1261_v48 = vpop.permute.xlu1 %1260  ;;  %v6506_v29 = vpop.permute.xlu0 %1264 }
 0x159   : > { %9781 = vst [vmem:[#allocation40_spill] sm:$0xff] %v6506_v29  ;;  %v1307_v28 = vmul.f32 %v6502_v32, %v1261_v48  ;;  %v6527_v48 = vrot.slane %v6490_v23, %v6512_v26 }
 0x15b   : > { %v6514_v50 = vadd.f32 %v1307_v28, %v1143_v17  ;;  %1644 = vperm.xlu1 %5487, %v6221_v63   ;;  %1664 = vperm.xlu0 %5486, %v6263_v54   ;;  %v1116_v63 = vmul.f32 %v6498_v31, %v6305_v0  ;;  %v1281_v54 = vmul.f32 %v6502_v32, %v6408_v13 }
 0x15c   : > { %v1269_v10 = vpop.permute.xlu1 %1268  ;;  %v6518_v55 = vpop.permute.xlu0 %1272 }
 0x15d   : > { %9783 = vst [vmem:[#allocation42_spill] sm:$0xff] %v6518_v55  ;;  %v1309_v29 = vmul.f32 %v6502_v32, %v1269_v10  ;;  %v1312_v10 = vadd.f32 %v1280_v46, %v1116_v63  ;;  %v1285_v46 = vmul.f32 %v6502_v32, %v6421_v2 }
 0x15f   : > { %v6529_v17 = vadd.f32 %v1309_v29, %v1145_v42  ;;  %1652 = vperm.xlu1 %5487, %v6243_v9   ;;  %v1117_v29 = vmul.f32 %v6498_v31, %v6297_v37  ;;  %v1119_v9 = vmul.f32 %v6498_v31, %v6311_v14  ;;  %v1121_v37 = vmul.f32 %v6498_v31, %v6317_v16 }
 0x161   : > { %v6536_v3 = vpop.permute.xlu1 %1344  ;;  %v1349_v28 = vpop.permute.xlu0 %1348  ;;  %v1313_v13 = vadd.f32 %v1281_v54, %v1117_v29  ;;  %v1315_v34 = vadd.f32 %v1283_v35, %v1119_v9  ;;  %v1317_v54 = vadd.f32 %v1285_v46, %v1121_v37  ;;  %v1123_v35 = vmul.f32 %v6498_v31, %v6325_v12 }
 0x162   : > { %v1476_v26 = vmul.f32 %v6527_v48, %v1349_v28 }
 0x163   : > { %1660 = vperm.xlu1 %5487, %v6265_v5  }
 0x164   : > { %v6546_v0 = vadd.f32 %v1476_v26, %v1312_v10  ;;  %v1287_v10 = vmul.f32 %v6502_v32, %v6427_v1 }
 0x165   : > { %v1353_v42 = vpop.permute.xlu1 %1352  ;;  %v1361_v55 = vpop.permute.xlu0 %1360 }
 0x166   : > { %v1477_v4 = vmul.f32 %v6527_v48, %v1353_v42  ;;  %v1479_v63 = vmul.f32 %v6527_v48, %v1361_v55  ;;  %v1319_v9 = vadd.f32 %v1287_v10, %v1123_v35  ;;  %v1125_v42 = vmul.f32 %v6498_v31, %v6331_v61 }
 0x168   : > { %v6554_v5 = vadd.f32 %v1477_v4, %v1313_v13  ;;  %v6556_v28 = vadd.f32 %v1479_v63, %v1315_v34  ;;  %v1289_v34 = vmul.f32 %v6502_v32, %v6433_v53  ;;  %v1291_v63 = vmul.f32 %v6502_v32, %v6439_v60 }
 0x169   : > { %v6558_v14 = vpop.permute.xlu1 %1356  ;;  %v1369_v26 = vpop.permute.xlu0 %1368 }
 0x16a   : > { %v1481_v2 = vmul.f32 %v6527_v48, %v1369_v26  ;;  %v1321_v12 = vadd.f32 %v1289_v34, %v1125_v42  ;;  %v1127_v26 = vmul.f32 %v6498_v31, %v6339_v52 }
 0x16c   : > { %v6565_v55 = vadd.f32 %v1481_v2, %v1317_v54  ;;  %v1323_v61 = vadd.f32 %v1291_v63, %v1127_v26  ;;  %v1293_v2 = vmul.f32 %v6502_v32, %v6445_v25 }
 0x16d   : > { %v6567_v29 = vpop.permute.xlu1 %1364  ;;  %v1377_v16 = vpop.permute.xlu0 %1376 }
 0x16e   : > { %v1483_v13 = vmul.f32 %v6527_v48, %v1377_v16  ;;  %v1129_v16 = vmul.f32 %v6498_v31, %v6345_v62 }
 0x170   : > { %v6574_v1 = vadd.f32 %v1483_v13, %v1319_v9  ;;  %v1325_v52 = vadd.f32 %v1293_v2, %v1129_v16  ;;  %v1295_v13 = vmul.f32 %v6502_v32, %v6451_v24 }
 0x171   : > { %v6576_v46 = vpop.permute.xlu1 %1372  ;;  %v1385_v4 = vpop.permute.xlu0 %1384 }
 0x172   : > { %v1485_v37 = vmul.f32 %v6527_v48, %v1385_v4  ;;  %v1131_v4 = vmul.f32 %v6498_v31, %v6351_v58 }
 0x174   : > { %v6583_v53 = vadd.f32 %v1485_v37, %v1321_v12  ;;  %v1327_v62 = vadd.f32 %v1295_v13, %v1131_v4  ;;  %v1297_v37 = vmul.f32 %v6502_v32, %v6457_v56 }
 0x175   : > { %v6585_v54 = vpop.permute.xlu1 %1380  ;;  %v1393_v10 = vpop.permute.xlu0 %1392 }
 0x176   : > { %v1487_v35 = vmul.f32 %v6527_v48, %v1393_v10  ;;  %v1133_v10 = vmul.f32 %v6498_v31, %v6359_v59 }
 0x178   : > { %v6592_v60 = vadd.f32 %v1487_v35, %v1323_v61  ;;  %v1329_v58 = vadd.f32 %v1297_v37, %v1133_v10  ;;  %v1299_v35 = vmul.f32 %v6502_v32, %v6463_v45 }
 0x179   : > { %v6594_v9 = vpop.permute.xlu1 %1388  ;;  %v1401_v34 = vpop.permute.xlu0 %1400 }
 0x17a   : > { %v1489_v42 = vmul.f32 %v6527_v48, %v1401_v34  ;;  %v1135_v34 = vmul.f32 %v6498_v31, %v6365_v18 }
 0x17c   : > { %v6601_v25 = vadd.f32 %v1489_v42, %v1325_v52  ;;  %v1331_v59 = vadd.f32 %v1299_v35, %v1135_v34  ;;  %v1301_v42 = vmul.f32 %v6502_v32, %v6469_v38 }
 0x17d   : > { %v6603_v12 = vpop.permute.xlu1 %1396  ;;  %v1409_v63 = vpop.permute.xlu0 %1408 }
 0x17e   : > { %v1491_v26 = vmul.f32 %v6527_v48, %v1409_v63  ;;  %v1137_v63 = vmul.f32 %v6498_v31, %v6371_v47 }
 0x180   : > { %v6610_v24 = vadd.f32 %v1491_v26, %v1327_v62  ;;  %v1333_v18 = vadd.f32 %v1301_v42, %v1137_v63  ;;  %v1303_v26 = vmul.f32 %v6502_v32, %v6475_v11 }
 0x181   : > { %v6612_v61 = vpop.permute.xlu1 %1404  ;;  %v1417_v2 = vpop.permute.xlu0 %1416 }
 0x182   : > { %v1493_v16 = vmul.f32 %v6527_v48, %v1417_v2  ;;  %v1139_v2 = vmul.f32 %v6498_v31, %v6377_v8 }
 0x184   : > { %v6619_v56 = vadd.f32 %v1493_v16, %v1329_v58  ;;  %v1335_v47 = vadd.f32 %v1303_v26, %v1139_v2  ;;  %v1305_v16 = vmul.f32 %v6502_v32, %v6492_v40  ;;  %v6657_v26 = vsub.s32 3, %v5784_v44 }
 0x185   : > { %v6621_v52 = vpop.permute.xlu1 %1412  ;;  %v1425_v13 = vpop.permute.xlu0 %1424 }
 0x186   : > { %v1495_v4 = vmul.f32 %v6527_v48, %v1425_v13  ;;  %v1141_v13 = vmul.f32 %v6498_v31, %v6383_v41 }
 0x188   : > { %v6628_v45 = vadd.f32 %v1495_v4, %v1331_v59  ;;  %v1337_v8 = vadd.f32 %v1305_v16, %v1141_v13  ;;  %v1115_v16 = vmul.f32 %v6498_v31, %v6299_v22  ;;  %v6673_v13 = vrot.slane %v6490_v23, %v6657_v26 }
 0x189   : > { %v6630_v62 = vpop.permute.xlu1 %1420  ;;  %v1433_v37 = vpop.permute.xlu0 %1432  ;;  %v1118_v22 = vmul.f32 %v6498_v31, %v6303_v39  ;;  %v1120_v39 = vmul.f32 %v6498_v31, %v6309_v49  ;;  %v1482_v49 = vmul.f32 %v6527_v48, %v6576_v46  ;;  %v1124_v46 = vmul.f32 %v6498_v31, %v6323_v30 }
 0x18a   : > { %v1497_v10 = vmul.f32 %v6527_v48, %v1433_v37  ;;  %v1290_v30 = vmul.f32 %v6502_v32, %v6435_v27 }
 0x18c   : > { %v6637_v38 = vadd.f32 %v1497_v10, %v1333_v18  ;;  %v1279_v10 = vmul.f32 %v6502_v32, %v6404_v57  ;;  %v1282_v57 = vmul.f32 %v6502_v32, %v6410_v6  ;;  %v1284_v6 = vmul.f32 %v6502_v32, %v6417_v51 }
 0x18d   : > { %v6639_v58 = vpop.permute.xlu1 %1428  ;;  %v1441_v35 = vpop.permute.xlu0 %1440 }
 0x18e   : > { %v1499_v34 = vmul.f32 %v6527_v48, %v1441_v35 }
 0x190   : > { %v6646_v11 = vadd.f32 %v1499_v34, %v1335_v47  ;;  %v1475_v34 = vmul.f32 %v6527_v48, %v6536_v3  ;;  %v1478_v3 = vmul.f32 %v6527_v48, %v6558_v14  ;;  %v1480_v14 = vmul.f32 %v6527_v48, %v6567_v29 }
 0x191   : > { %v6648_v59 = vpop.permute.xlu1 %1436  ;;  %v1449_v42 = vpop.permute.xlu0 %1448 }
 0x192   : > { %v1501_v4 = vmul.f32 %v6527_v48, %v1449_v42  ;;  %v1311_v42 = vadd.f32 %v1279_v10, %v1115_v16 }
 0x194   : > { %v6651_v63 = vadd.f32 %v1501_v4, %v1337_v8 }
 0x195   : > { %v6653_v37 = vpop.permute.xlu1 %1444  ;;  %v1457_v18 = vpop.permute.xlu0 %1456 }
 0x196   : > { %v1503_v40 = vmul.f32 %v6527_v48, %v1457_v18  ;;  %v1507_v18 = vadd.f32 %v1475_v34, %v1311_v42 }
 0x198   : > { %v6660_v41 = vadd.f32 %v1503_v40, %v6514_v50  ;;  %v1314_v40 = vadd.f32 %v1282_v57, %v1118_v22  ;;  %v1286_v57 = vmul.f32 %v6502_v32, %v6423_v33 }
 0x199   : > { %v6664_v2 = vpop.permute.xlu1 %1452  ;;  %v1465_v35 = vpop.permute.xlu0 %1464 }
 0x19a   : > { %v1505_v47 = vmul.f32 %v6527_v48, %v1465_v35  ;;  %v1510_v16 = vadd.f32 %v1478_v3, %v1314_v40 }
 0x19c   : > { %v6676_v50 = vadd.f32 %v1505_v47, %v6529_v17  ;;  %v6690_v17 = vld [vmem:[%s9688_s4] ss:$0 sm:$0xff] }
 0x19d   : > { %v6680_v8 = vpop.permute.xlu1 %1460 }
 0x19e   : > { %v1541_v4 = vpop.permute.xlu0 %1540 }
 0x19f   : > { %v1671_v23 = vmul.f32 %v6673_v13, %v1541_v4  ;;  %v1316_v4 = vadd.f32 %v1284_v6, %v1120_v39  ;;  %v1288_v39 = vmul.f32 %v6502_v32, %v6429_v36 }
 0x1a1   : > { %v1703_v10 = vadd.f32 %v1671_v23, %v1507_v18  ;;  %v6694_v35 = vpop.permute.xlu1 %1468  ;;  %v1122_v18 = vmul.f32 %v6498_v31, %v6315_v15  ;;  %v1512_v40 = vadd.f32 %v1480_v14, %v1316_v4 }
 0x1a2   : > { %v1553_v47 = vpop.permute.xlu0 %1552 }
 0x1a3   : > { %v1740_v34 = vadd.f32 %v6690_v17, %v1703_v10  ;;  %v1674_v42 = vmul.f32 %v6673_v13, %v1553_v47  ;;  %v1318_v6 = vadd.f32 %v1286_v57, %v1122_v18 }
 0x1a5   : > { %v1772_v51 = vmax.f32 %v1740_v34, 0.0  ;;  %v1706_v22 = vadd.f32 %v1674_v42, %v1510_v16  ;;  %v1514_v14 = vadd.f32 %v1482_v49, %v1318_v6  ;;  %v1484_v34 = vmul.f32 %v6527_v48, %v6585_v54 }
 0x1a6   : > { %v1545_v3 = vpop.permute.xlu1 %1544  ;;  %v1561_v23 = vpop.permute.xlu0 %1560 }
 0x1a7   : > { %1820 = vst.msk [vmem:[#allocation2 + $0x10] sm:$0xff] %vm403_vm0, %v1772_v51  ;;  %v1743_v29 = vadd.f32 %v6690_v17, %v1706_v22  ;;  %v1672_v10 = vmul.f32 %v6673_v13, %v1545_v3  ;;  %v1676_v33 = vmul.f32 %v6673_v13, %v1561_v23  ;;  %v1320_v22 = vadd.f32 %v1288_v39, %v1124_v46 }
 0x1a8   : > { %v1126_v23 = vmul.f32 %v6498_v31, %v6329_v19  ;;  %v1292_v46 = vmul.f32 %v6502_v32, %v6441_v43  ;;  %v1294_v43 = vmul.f32 %v6502_v32, %v6447_v20  ;;  %v9784_v20 = vld [vmem:[#allocation4_spill] sm:$0xff] }
 0x1a9   : > { %v1775_v47 = vmax.f32 %v1743_v29, 0.0  ;;  %v1704_v15 = vadd.f32 %v1672_v10, %v6546_v0  ;;  %v1708_v16 = vadd.f32 %v1676_v33, %v1512_v40  ;;  %v1516_v40 = vadd.f32 %v1484_v34, %v1320_v22 }
 0x1aa   : > { %v1549_v42 = vpop.permute.xlu1 %1548  ;;  %v1569_v4 = vpop.permute.xlu0 %1568  ;;  %v1486_v29 = vmul.f32 %v6527_v48, %v6594_v9 }
 0x1ab   : > { %1823 = vst.msk [vmem:[#allocation2 + $0x28] sm:$0xff] %vm403_vm0, %v1775_v47  ;;  %v1741_v57 = vadd.f32 %v6690_v17, %v1704_v15  ;;  %v1745_v51 = vadd.f32 %v6690_v17, %v1708_v16  ;;  %v1673_v36 = vmul.f32 %v6673_v13, %v1549_v42  ;;  %v1678_v0 = vmul.f32 %v6673_v13, %v1569_v4 }
 0x1ac   : > { %v1322_v47 = vadd.f32 %v1290_v30, %v1126_v23  ;;  %v1490_v23 = vmul.f32 %v6527_v48, %v6612_v61 }
 0x1ad   : > { %v1773_v18 = vmax.f32 %v1741_v57, 0.0  ;;  %v1777_v49 = vmax.f32 %v1745_v51, 0.0  ;;  %v1705_v54 = vadd.f32 %v1673_v36, %v6554_v5  ;;  %v1710_v3 = vadd.f32 %v1678_v0, %v1514_v14 }
 0x1ae   : > { %v1557_v10 = vpop.permute.xlu1 %1556  ;;  %v1577_v33 = vpop.permute.xlu0 %1576  ;;  %v1518_v14 = vadd.f32 %v1486_v29, %v1322_v47  ;;  %v1488_v0 = vmul.f32 %v6527_v48, %v6603_v12 }
 0x1af   : > { %1821 = vst.msk [vmem:[#allocation2 + $0x18] sm:$0xff] %vm403_vm0, %v1773_v18  ;;  %1825 = vst.msk [vmem:[#allocation2 + $0x38] sm:$0xff] %vm403_vm0, %v1777_v49  ;;  %v1742_v27 = vadd.f32 %v6690_v17, %v1705_v54  ;;  %v1747_v6 = vadd.f32 %v6690_v17, %v1710_v3  ;;  %v1675_v5 = vmul.f32 %v6673_v13, %v1557_v10 }
 0x1b0   : > { %v1680_v39 = vmul.f32 %v6673_v13, %v1577_v33  ;;  %v1130_v54 = vmul.f32 %v6498_v31, %v6343_v21 }
 0x1b1   : > { %v1774_v19 = vmax.f32 %v1742_v27, 0.0  ;;  %v1779_v15 = vmax.f32 %v1747_v6, 0.0  ;;  %v1707_v16 = vadd.f32 %v1675_v5, %v6556_v28  ;;  %v1128_v28 = vmul.f32 %v6498_v31, %v6337_v7 }
 0x1b2   : > { %v1712_v9 = vadd.f32 %v1680_v39, %v1516_v40  ;;  %v1565_v34 = vpop.permute.xlu1 %1564  ;;  %v1585_v42 = vpop.permute.xlu0 %1584  ;;  %v1326_v21 = vadd.f32 %v1294_v43, %v1130_v54  ;;  %v9786_v39 = vld [vmem:[#allocation32_spill] sm:$0xff] }
 0x1b3   : > { %1822 = vst.msk [vmem:[#allocation2 + $0x20] sm:$0xff] %vm403_vm0, %v1774_v19  ;;  %1827 = vst.msk [vmem:[#allocation2 + $0x48] sm:$0xff] %vm403_vm0, %v1779_v15  ;;  %v1744_v4 = vadd.f32 %v6690_v17, %v1707_v16  ;;  %v1677_v51 = vmul.f32 %v6673_v13, %v1565_v34  ;;  %v1682_v36 = vmul.f32 %v6673_v13, %v1585_v42 }
 0x1b4   : > { %v1749_v57 = vadd.f32 %v6690_v17, %v1712_v9  ;;  %v1324_v3 = vadd.f32 %v1292_v46, %v1128_v28  ;;  %v1296_v47 = vmul.f32 %v6502_v32, %v9786_v39  ;;  %v1522_v19 = vadd.f32 %v1490_v23, %v1326_v21  ;;  %v9787_v46 = vld [vmem:[#allocation6_spill] sm:$0xff]  ;;  %v9790_v28 = vld [vmem:[#allocation25_spill] sm:$0xff] }
 0x1b5   : > { %v1776_v22 = vmax.f32 %v1744_v4, 0.0  ;;  %v1709_v18 = vadd.f32 %v1677_v51, %v6565_v55  ;;  %v1714_v49 = vadd.f32 %v1682_v36, %v1518_v14  ;;  %v9789_v4 = vld [vmem:[#allocation24_spill] sm:$0xff]  ;;  %v1492_v51 = vmul.f32 %v6527_v48, %v6621_v52  ;;  %v9793_v52 = vld [vmem:[#allocation3_spill] sm:$0xff] }
 0x1b6   : > { %v1781_v30 = vmax.f32 %v1749_v57, 0.0  ;;  %v1573_v40 = vpop.permute.xlu1 %1572  ;;  %v1593_v7 = vpop.permute.xlu0 %1592  ;;  %v1520_v33 = vadd.f32 %v1488_v0, %v1324_v3  ;;  %v1132_v57 = vmul.f32 %v6498_v31, %v9789_v4  ;;  %v1134_v43 = vmul.f32 %v6498_v31, %v9790_v28  ;;  %v9792_v3 = vld [vmem:[#allocation34_spill] sm:$0xff] }
 0x1b7   : > { %1824 = vst.msk [vmem:[#allocation2 + $0x30] sm:$0xff] %vm403_vm0, %v1776_v22  ;;  %v1746_v12 = vadd.f32 %v6690_v17, %v1709_v18  ;;  %v1751_v55 = vadd.f32 %v6690_v17, %v1714_v49  ;;  %v1679_v10 = vmul.f32 %v6673_v13, %v1573_v40  ;;  %v1684_v27 = vmul.f32 %v6673_v13, %v1593_v7  ;;  %v9791_v49 = vld [vmem:[#allocation33_spill] sm:$0xff]  ;;  %v9800_v4 = vld [vmem:[#allocation10_spill] sm:$0xff] }
 0x1b8   : > { %v6759_v29 = vadd.f32 %v1781_v30, %v9784_v20  ;;  %1829 = vst.msk [vmem:[#allocation2 + $0x58] sm:$0xff] %vm403_vm0, %v1781_v30  ;;  %v1328_v18 = vadd.f32 %v1296_v47, %v1132_v57  ;;  %v1298_v54 = vmul.f32 %v6502_v32, %v9791_v49  ;;  %v1300_v23 = vmul.f32 %v6502_v32, %v9792_v3 }
 0x1b9   : > { %v1778_v61 = vmax.f32 %v1746_v12, 0.0  ;;  %v1783_v6 = vmax.f32 %v1751_v55, 0.0  ;;  %v1711_v5 = vadd.f32 %v1679_v10, %v6574_v1  ;;  %v1716_v15 = vadd.f32 %v1684_v27, %v1520_v33  ;;  %v9795_v27 = vld [vmem:[#allocation8_spill] sm:$0xff] }
 0x1ba   : > { %9785 = vst [vmem:[#allocation4_spill] sm:$0xff] %v6759_v29  ;;  %v1581_v16 = vpop.permute.xlu1 %1580  ;;  %v1601_v9 = vpop.permute.xlu0 %1600  ;;  %v1524_v21 = vadd.f32 %v1492_v51, %v1328_v18  ;;  %v1494_v33 = vmul.f32 %v6527_v48, %v6630_v62 }
 0x1bb   : > { %1826 = vst.msk [vmem:[#allocation2 + $0x40] sm:$0xff] %vm403_vm0, %v1778_v61  ;;  %v6771_v14 = vadd.f32 %v1783_v6, %v9787_v46  ;;  %1831 = vst.msk [vmem:[#allocation2 + $0x68] sm:$0xff] %vm403_vm0, %v1783_v6  ;;  %v1748_v34 = vadd.f32 %v6690_v17, %v1711_v5  ;;  %v1681_v42 = vmul.f32 %v6673_v13, %v1581_v16 }
 0x1bc   : > { %v1686_v1 = vmul.f32 %v6673_v13, %v1601_v9  ;;  %v1753_v36 = vadd.f32 %v6690_v17, %v1716_v15  ;;  %v1330_v16 = vadd.f32 %v1298_v54, %v1134_v43  ;;  %v1496_v9 = vmul.f32 %v6527_v48, %v6639_v58 }
 0x1bd   : > { %9788 = vst [vmem:[#allocation32_spill] sm:$0xff] %v6771_v14  ;;  %v1780_v0 = vmax.f32 %v1748_v34, 0.0  ;;  %v1713_v22 = vadd.f32 %v1681_v42, %v6583_v53  ;;  %v9798_v42 = vld [vmem:[#allocation5_spill] sm:$0xff] }
 0x1be   : > { %v1718_v30 = vadd.f32 %v1686_v1, %v1522_v19  ;;  %v1785_v40 = vmax.f32 %v1753_v36, 0.0  ;;  %v1589_v7 = vpop.permute.xlu1 %1588  ;;  %v1609_v20 = vpop.permute.xlu0 %1608  ;;  %v9797_v19 = vld [vmem:[#allocation26_spill] sm:$0xff]  ;;  %v1526_v28 = vadd.f32 %v1494_v33, %v1330_v16  ;;  %v9806_v33 = vld [vmem:[#allocation12_spill] sm:$0xff] }
 0x1bf   : > { %v6790_v12 = vadd.f32 %v1780_v0, %v9793_v52  ;;  %1828 = vst.msk [vmem:[#allocation2 + $0x50] sm:$0xff] %vm403_vm0, %v1780_v0  ;;  %v1750_v55 = vadd.f32 %v6690_v17, %v1713_v22  ;;  %v1683_v10 = vmul.f32 %v6673_v13, %v1589_v7  ;;  %v1688_v6 = vmul.f32 %v6673_v13, %v1609_v20  ;;  %v9803_v20 = vld [vmem:[#allocation7_spill] sm:$0xff] }
 0x1c0   : > { %v1755_v53 = vadd.f32 %v6690_v17, %v1718_v30  ;;  %v6799_v61 = vadd.f32 %v1785_v40, %v9795_v27  ;;  %1833 = vst.msk [vmem:[#allocation2 + $0x78] sm:$0xff] %vm403_vm0, %v1785_v40  ;;  %v1136_v15 = vmul.f32 %v6498_v31, %v9797_v19  ;;  %v9802_v30 = vld [vmem:[#allocation35_spill] sm:$0xff] }
 0x1c1   : > { %9794 = vst [vmem:[#allocation6_spill] sm:$0xff] %v6790_v12  ;;  %v1782_v5 = vmax.f32 %v1750_v55, 0.0  ;;  %v1715_v47 = vadd.f32 %v1683_v10, %v6592_v60  ;;  %v1720_v46 = vadd.f32 %v1688_v6, %v1524_v21  ;;  %v1302_v18 = vmul.f32 %v6502_v32, %v9802_v30 }
 0x1c2   : > { %9796 = vst [vmem:[#allocation24_spill] sm:$0xff] %v6799_v61  ;;  %v1787_v39 = vmax.f32 %v1755_v53, 0.0  ;;  %v1597_v62 = vpop.permute.xlu1 %1596  ;;  %v1617_v34 = vpop.permute.xlu0 %1616  ;;  %v1332_v36 = vadd.f32 %v1300_v23, %v1136_v15  ;;  %v1498_v21 = vmul.f32 %v6527_v48, %v6648_v59 }
 0x1c3   : > { %v6809_v1 = vadd.f32 %v1782_v5, %v9798_v42  ;;  %1830 = vst.msk [vmem:[#allocation2 + $0x60] sm:$0xff] %vm403_vm0, %v1782_v5  ;;  %v1752_v60 = vadd.f32 %v6690_v17, %v1715_v47  ;;  %v1685_v51 = vmul.f32 %v6673_v13, %v1597_v62  ;;  %v1757_v58 = vadd.f32 %v6690_v17, %v1720_v46  ;;  %v9808_v5 = vld [vmem:[#allocation28_spill] sm:$0xff]  ;;  %v9810_v62 = vld [vmem:[#allocation39_spill] sm:$0xff] }
 0x1c4   : > { %v6813_v57 = vadd.f32 %v1787_v39, %v9800_v4  ;;  %1835 = vst.msk [vmem:[#allocation2 + $0x88] sm:$0xff] %vm403_vm0, %v1787_v39  ;;  %v1690_v43 = vmul.f32 %v6673_v13, %v1617_v34  ;;  %v1528_v49 = vadd.f32 %v1496_v9, %v1332_v36  ;;  %v1140_v39 = vmul.f32 %v6498_v31, %v9808_v5  ;;  %v9809_v9 = vld [vmem:[#allocation36_spill] sm:$0xff] }
 0x1c5   : > { %9799 = vst [vmem:[#allocation25_spill] sm:$0xff] %v6809_v1  ;;  %v1784_v0 = vmax.f32 %v1752_v60, 0.0  ;;  %v1717_v22 = vadd.f32 %v1685_v51, %v6601_v25  ;;  %v1789_v54 = vmax.f32 %v1757_v58, 0.0  ;;  %v9805_v25 = vld [vmem:[#allocation27_spill] sm:$0xff]  ;;  %v1304_v46 = vmul.f32 %v6502_v32, %v9809_v9  ;;  %v9811_v60 = vld [vmem:[#allocation9_spill] sm:$0xff]  ;;  %v9821_v9 = vld [vmem:[#allocation40_spill] sm:$0xff] }
 0x1c6   : > { %9801 = vst [vmem:[#allocation33_spill] sm:$0xff] %v6813_v57  ;;  %v1722_v3 = vadd.f32 %v1690_v43, %v1526_v28  ;;  %v1605_v40 = vpop.permute.xlu1 %1604  ;;  %v1625_v7 = vpop.permute.xlu0 %1624  ;;  %v1138_v10 = vmul.f32 %v6498_v31, %v9805_v25  ;;  %v1306_v59 = vmul.f32 %v6502_v32, %v9810_v62  ;;  %v1500_v43 = vmul.f32 %v6527_v48, %v6653_v37 }
 0x1c7   : > { %v6824_v52 = vadd.f32 %v1784_v0, %v9803_v20  ;;  %1832 = vst.msk [vmem:[#allocation2 + $0x70] sm:$0xff] %vm403_vm0, %v1784_v0  ;;  %v1754_v23 = vadd.f32 %v6690_v17, %v1717_v22  ;;  %v1687_v55 = vmul.f32 %v6673_v13, %v1605_v40  ;;  %v1692_v53 = vmul.f32 %v6673_v13, %v1625_v7  ;;  %v9813_v0 = vld [vmem:[#allocation14_spill] sm:$0xff] }
 0x1c8   : > { %v6835_v27 = vadd.f32 %v1789_v54, %v9806_v33  ;;  %1837 = vst.msk [vmem:[#allocation2 + $0x98] sm:$0xff] %vm403_vm0, %v1789_v54  ;;  %v1759_v6 = vadd.f32 %v6690_v17, %v1722_v3  ;;  %v1334_v16 = vadd.f32 %v1302_v18, %v1138_v10  ;;  %v9815_v3 = vld [vmem:[#allocation29_spill] sm:$0xff]  ;;  %v1336_v7 = vadd.f32 %v1304_v46, %v1140_v39  ;;  %v9818_v10 = vld [vmem:[#allocation16_spill] sm:$0xff] }
 0x1c9   : > { %9804 = vst [vmem:[#allocation34_spill] sm:$0xff] %v6824_v52  ;;  %v1786_v47 = vmax.f32 %v1754_v23, 0.0  ;;  %v1719_v19 = vadd.f32 %v1687_v55, %v6610_v24  ;;  %v1724_v15 = vadd.f32 %v1692_v53, %v1528_v49  ;;  %v1142_v40 = vmul.f32 %v6498_v31, %v9815_v3  ;;  %v9816_v53 = vld [vmem:[#allocation11_spill] sm:$0xff] }
 0x1ca   : > { %9807 = vst [vmem:[#allocation3_spill] sm:$0xff] %v6835_v27  ;;  %v1791_v34 = vmax.f32 %v1759_v6, 0.0  ;;  %v1613_v42 = vpop.permute.xlu1 %1612  ;;  %v1633_v4 = vpop.permute.xlu0 %1632  ;;  %v1530_v58 = vadd.f32 %v1498_v21, %v1334_v16  ;;  %v1502_v20 = vmul.f32 %v6527_v48, %v6664_v2  ;;  %v1532_v5 = vadd.f32 %v1500_v43, %v1336_v7  ;;  %v9827_v7 = vld [vmem:[#allocation31_spill] sm:$0xff] }
 0x1cb   : > { %v6847_v51 = vadd.f32 %v1786_v47, %v9811_v60  ;;  %1834 = vst.msk [vmem:[#allocation2 + $0x80] sm:$0xff] %vm403_vm0, %v1786_v47  ;;  %v1756_v36 = vadd.f32 %v6690_v17, %v1719_v19  ;;  %v1761_v24 = vadd.f32 %v6690_v17, %v1724_v15  ;;  %v1689_v28 = vmul.f32 %v6673_v13, %v1613_v42  ;;  %v9820_v47 = vld [vmem:[#allocation30_spill] sm:$0xff] }
 0x1cc   : > { %v6856_v22 = vadd.f32 %v1791_v34, %v9813_v0  ;;  %1839 = vst.msk [vmem:[#allocation2 + $0xa8] sm:$0xff] %vm403_vm0, %v1791_v34  ;;  %v1694_v30 = vmul.f32 %v6673_v13, %v1633_v4  ;;  %v1338_v6 = vadd.f32 %v1306_v59, %v1142_v40  ;;  %v1144_v19 = vmul.f32 %v6498_v31, %v9820_v47  ;;  %v9822_v59 = vld [vmem:[#allocation13_spill] sm:$0xff] }
 0x1cd   : > { %9812 = vst [vmem:[#allocation8_spill] sm:$0xff] %v6847_v51  ;;  %v1788_v18 = vmax.f32 %v1756_v36, 0.0  ;;  %v1793_v49 = vmax.f32 %v1761_v24, 0.0  ;;  %v1721_v54 = vadd.f32 %v1689_v28, %v6619_v56  ;;  %v1308_v46 = vmul.f32 %v6502_v32, %v9821_v9 }
 0x1ce   : > { %9814 = vst [vmem:[#allocation26_spill] sm:$0xff] %v6856_v22  ;;  %v1726_v23 = vadd.f32 %v1694_v30, %v1530_v58  ;;  %v1621_v37 = vpop.permute.xlu1 %1620  ;;  %v1641_v55 = vpop.permute.xlu0 %1640  ;;  %v1534_v62 = vadd.f32 %v1502_v20, %v1338_v6  ;;  %v1504_v0 = vmul.f32 %v6527_v48, %v6680_v8  ;;  %v9825_v30 = vld [vmem:[#allocation18_spill] sm:$0xff]  ;;  %v1146_v20 = vmul.f32 %v6498_v31, %v9827_v7 }
 0x1cf   : > { %v6866_v25 = vadd.f32 %v1788_v18, %v9816_v53  ;;  %1836 = vst.msk [vmem:[#allocation2 + $0x90] sm:$0xff] %vm403_vm0, %v1788_v18  ;;  %v6870_v21 = vadd.f32 %v1793_v49, %v9818_v10  ;;  %1841 = vst.msk [vmem:[#allocation2 + $0xb8] sm:$0xff] %vm403_vm0, %v1793_v49  ;;  %v1758_v56 = vadd.f32 %v6690_v17, %v1721_v54  ;;  %v9828_v53 = vld [vmem:[#allocation15_spill] sm:$0xff] }
 0x1d0   : > { %v1691_v33 = vmul.f32 %v6673_v13, %v1621_v37  ;;  %v1763_v2 = vadd.f32 %v6690_v17, %v1726_v23  ;;  %v1696_v39 = vmul.f32 %v6673_v13, %v1641_v55  ;;  %v1340_v23 = vadd.f32 %v1308_v46, %v1144_v19 }
 0x1d1   : > { %9817 = vst [vmem:[#allocation5_spill] sm:$0xff] %v6866_v25  ;;  %9819 = vst [vmem:[#allocation10_spill] sm:$0xff] %v6870_v21  ;;  %v1790_v15 = vmax.f32 %v1758_v56, 0.0 }
 0x1d2   : > { %v1723_v16 = vadd.f32 %v1691_v33, %v6628_v45  ;;  %v1795_v34 = vmax.f32 %v1763_v2, 0.0  ;;  %v1728_v42 = vadd.f32 %v1696_v39, %v1532_v5  ;;  %v1629_v4 = vpop.permute.xlu1 %1628  ;;  %v1649_v60 = vpop.permute.xlu0 %1648  ;;  %v9824_v45 = vld [vmem:[#allocation42_spill] sm:$0xff]  ;;  %v1536_v31 = vadd.f32 %v1504_v0, %v1340_v23 }
 0x1d3   : > { %v6883_v36 = vadd.f32 %v1790_v15, %v9822_v59  ;;  %1838 = vst.msk [vmem:[#allocation2 + $0xa0] sm:$0xff] %vm403_vm0, %v1790_v15  ;;  %v1693_v28 = vmul.f32 %v6673_v13, %v1629_v4  ;;  %v1698_v58 = vmul.f32 %v6673_v13, %v1649_v60  ;;  %v1310_v43 = vmul.f32 %v6502_v32, %v9824_v45 }
 0x1d4   : > { %v1760_v24 = vadd.f32 %v6690_v17, %v1723_v16  ;;  %v6894_v18 = vadd.f32 %v1795_v34, %v9825_v30  ;;  %1843 = vst.msk [vmem:[#allocation2 + $0xc8] sm:$0xff] %vm403_vm0, %v1795_v34  ;;  %v1765_v49 = vadd.f32 %v6690_v17, %v1728_v42  ;;  %v1506_v32 = vmul.f32 %v6527_v48, %v6694_v35  ;;  %v9830_v16 = vld [vmem:[#allocation17_spill] sm:$0xff] }
 0x1d5   : > { %9823 = vst [vmem:[#allocation35_spill] sm:$0xff] %v6883_v36  ;;  %v1725_v3 = vadd.f32 %v1693_v28, %v6637_v38  ;;  %v1730_v40 = vadd.f32 %v1698_v58, %v1534_v62  ;;  %v1342_v6 = vadd.f32 %v1310_v43, %v1146_v20 }
 0x1d6   : > { %9826 = vst [vmem:[#allocation7_spill] sm:$0xff] %v6894_v18  ;;  %v1792_v54 = vmax.f32 %v1760_v24, 0.0  ;;  %v1797_v37 = vmax.f32 %v1765_v49, 0.0  ;;  %v1637_v8 = vpop.permute.xlu1 %1636  ;;  %v1657_v55 = vpop.permute.xlu0 %1656 }
 0x1d7   : > { %v1762_v56 = vadd.f32 %v6690_v17, %v1725_v3  ;;  %v1767_v38 = vadd.f32 %v6690_v17, %v1730_v40  ;;  %v1695_v33 = vmul.f32 %v6673_v13, %v1637_v8  ;;  %v1700_v48 = vmul.f32 %v6673_v13, %v1657_v55 }
 0x1d8   : > { %v6904_v10 = vadd.f32 %v1792_v54, %v9828_v53  ;;  %1840 = vst.msk [vmem:[#allocation2 + $0xb0] sm:$0xff] %vm403_vm0, %v1792_v54  ;;  %1845 = vst.msk [vmem:[#allocation2 + $0xd8] sm:$0xff] %vm403_vm0, %v1797_v37  ;;  %v1538_v39 = vadd.f32 %v1506_v32, %v1342_v6 }
 0x1d9   : > { %v1794_v35 = vmax.f32 %v1762_v56, 0.0  ;;  %v1799_v5 = vmax.f32 %v1767_v38, 0.0  ;;  %v1727_v2 = vadd.f32 %v1695_v33, %v6646_v11  ;;  %v1732_v47 = vadd.f32 %v1700_v48, %v1536_v31 }
 0x1da   : > { %9829 = vst [vmem:[#allocation27_spill] sm:$0xff] %v6904_v10  ;;  %v1645_v19 = vpop.permute.xlu1 %1644  ;;  %v1665_v15 = vpop.permute.xlu0 %1664 }
 0x1db   : > { %v6914_v9 = vadd.f32 %v1794_v35, %v9830_v16  ;;  %1842 = vst.msk [vmem:[#allocation2 + $0xc0] sm:$0xff] %vm403_vm0, %v1794_v35  ;;  %1847 = vst.msk [vmem:[#allocation2 + $0xe8] sm:$0xff] %vm403_vm0, %v1799_v5  ;;  %v1764_v46 = vadd.f32 %v6690_v17, %v1727_v2  ;;  %v1697_v62 = vmul.f32 %v6673_v13, %v1645_v19 }
 0x1dc   : > { %v1702_v34 = vmul.f32 %v6673_v13, %v1665_v15  ;;  %v1769_v42 = vadd.f32 %v6690_v17, %v1732_v47 }
 0x1dd   : > { %9831 = vst [vmem:[#allocation12_spill] sm:$0xff] %v6914_v9  ;;  %v1796_v11 = vmax.f32 %v1764_v46, 0.0  ;;  %v1729_v4 = vadd.f32 %v1697_v62, %v6651_v63 }
 0x1de   : > { %v1734_v60 = vadd.f32 %v1702_v34, %v1538_v39  ;;  %v1801_v59 = vmax.f32 %v1769_v42, 0.0  ;;  %v1653_v24 = vpop.permute.xlu1 %1652 }
 0x1df   : > { %1844 = vst.msk [vmem:[#allocation2 + $0xd0] sm:$0xff] %vm403_vm0, %v1796_v11  ;;  %v1766_v28 = vadd.f32 %v6690_v17, %v1729_v4  ;;  %v1699_v45 = vmul.f32 %v6673_v13, %v1653_v24 }
 0x1e0   : > { %v1771_v58 = vadd.f32 %v6690_v17, %v1734_v60  ;;  %1849 = vst.msk [vmem:[#allocation2 + $0xf8] sm:$0xff] %vm403_vm0, %v1801_v59 }
 0x1e1   : > { %v1798_v43 = vmax.f32 %v1766_v28, 0.0  ;;  %v1731_v30 = vadd.f32 %v1699_v45, %v6660_v41  ;;  %v5559_v41 = vmov (!%p5406_p11), -3e+38  }
 0x1e2   : > { %v1803_v0 = vmax.f32 %v1771_v58, 0.0  ;;  %v1661_v49 = vpop.permute.xlu1 %1660  ;;  %1855 = vst.msk [vmem:[#allocation2 + $0x10] sm:$0xff] (!%p5406_p11), %vm403_vm0, %v5559_v41  ;;  %1856 = vst.msk [vmem:[#allocation2 + $0x18] sm:$0xff] (!%p5406_p11), %vm403_vm0, %v5559_v41 }
 0x1e3   : > { %1846 = vst.msk [vmem:[#allocation2 + $0xe0] sm:$0xff] %vm403_vm0, %v1798_v43  ;;  %v1768_v63 = vadd.f32 %v6690_v17, %v1731_v30  ;;  %v1701_v54 = vmul.f32 %v6673_v13, %v1661_v49  ;;  %1857 = vst.msk [vmem:[#allocation2 + $0x20] sm:$0xff] (!%p5406_p11), %vm403_vm0, %v5559_v41 }
 0x1e4   : > { %1851 = vst.msk [vmem:[#allocation2 + $0x108] sm:$0xff] %vm403_vm0, %v1803_v0  ;;  %1858 = vst.msk [vmem:[#allocation2 + $0x28] sm:$0xff] (!%p5406_p11), %vm403_vm0, %v5559_v41 }
 0x1e5   : > { %v1800_v3 = vmax.f32 %v1768_v63, 0.0  ;;  %v1733_v40 = vadd.f32 %v1701_v54, %v6676_v50  ;;  %1854 = sbr.rel (%p5406_p11) target bundleno = 492 (0x1ec), region = 52  ;;  %1859 = vst.msk [vmem:[#allocation2 + $0x30] sm:$0xff] (!%p5406_p11), %vm403_vm0, %v5559_v41  ;;  %1860 = vst.msk [vmem:[#allocation2 + $0x38] sm:$0xff] (!%p5406_p11), %vm403_vm0, %v5559_v41 }
 0x1e6   : > { %1861 = vst.msk [vmem:[#allocation2 + $0x40] sm:$0xff] (!%p5406_p11), %vm403_vm0, %v5559_v41  ;;  %1862 = vst.msk [vmem:[#allocation2 + $0x48] sm:$0xff] (!%p5406_p11), %vm403_vm0, %v5559_v41 }
 0x1e7   : > { %1848 = vst.msk [vmem:[#allocation2 + $0xf0] sm:$0xff] %vm403_vm0, %v1800_v3  ;;  %v1770_v7 = vadd.f32 %v6690_v17, %v1733_v40 }
 0x1e9   : > { %v1802_v20 = vmax.f32 %v1770_v7, 0.0 }
 0x1eb   : > { %1850 = vst.msk [vmem:[#allocation2 + $0x100] sm:$0xff] %vm403_vm0, %v1802_v20 }
 0x1ec PF: > { %1865 = sbr.rel (%p5407_p12) target bundleno = 499 (0x1f3), region = 56  ;;  %v5560_v13 = vmov (!%p5407_p12), -3e+38  }
 0x1ed   : > { %1866 = vst.msk [vmem:[#allocation2 + $0xd0] sm:$0xff] (!%p5407_p12), %vm403_vm0, %v5560_v13  ;;  %1867 = vst.msk [vmem:[#allocation2 + $0xd8] sm:$0xff] (!%p5407_p12), %vm403_vm0, %v5560_v13 }
 0x1ee   : > { %1868 = vst.msk [vmem:[#allocation2 + $0xe0] sm:$0xff] (!%p5407_p12), %vm403_vm0, %v5560_v13  ;;  %1869 = vst.msk [vmem:[#allocation2 + $0xe8] sm:$0xff] (!%p5407_p12), %vm403_vm0, %v5560_v13 }
 0x1ef   : > { %1870 = vst.msk [vmem:[#allocation2 + $0xf0] sm:$0xff] (!%p5407_p12), %vm403_vm0, %v5560_v13  ;;  %1871 = vst.msk [vmem:[#allocation2 + $0xf8] sm:$0xff] (!%p5407_p12), %vm403_vm0, %v5560_v13 }
 0x1f0   : > { %1872 = vst.msk [vmem:[#allocation2 + $0x100] sm:$0xff] (!%p5407_p12), %vm403_vm0, %v5560_v13  ;;  %1873 = vst.msk [vmem:[#allocation2 + $0x108] sm:$0xff] (!%p5407_p12), %vm403_vm0, %v5560_v13 }
 0x1f3 PF: > { %v9832_v50 = vmov 0   ;;  %v1876_v17 = vld [vmem:[#allocation2 + $0x10] sm:$0xff]  ;;  %v1877_v23 = vld [vmem:[#allocation2 + $0x18] sm:$0xff]  ;;  %v1908_v32 = vld [vmem:[#allocation2 + $0x20] sm:$0xff] }
 0x1f4   : > { %5489 = vset.pattern.permute.xlu1 %v9832_v50  ;;  %5488 = vset.pattern.permute.xlu0 %v9832_v50  ;;  %v1909_v37 = vld [vmem:[#allocation2 + $0x28] sm:$0xff]  ;;  %v1940_v8 = vmax.f32 %v1876_v17, %v1908_v32  ;;  %v6959_v55 = vld [vmem:[#allocation2 + $0x30] sm:$0xff]  ;;  %v6961_v53 = vld [vmem:[#allocation2 + $0x38] sm:$0xff] }
 0x1f5   : > { %v1941_v56 = vmax.f32 %v1877_v23, %v1909_v37  ;;  %v1874_v38 = vld [vmem:[#allocation2] sm:$0xff]  ;;  %v1875_v33 = vld [vmem:[#allocation2 + $0x8] sm:$0xff]  ;;  %v1942_v6 = vmax.f32 %v1908_v32, %v6959_v55  ;;  %v1943_v31 = vmax.f32 %v1909_v37, %v6961_v53 }
 0x1f6   : > { %v6965_v48 = vld [vmem:[#allocation2 + $0x40] sm:$0xff]  ;;  %v2004_v35 = vmax.f32 %v1940_v8, %v6959_v55  ;;  %v1938_v5 = vmax.f32 %v1874_v38, %v1876_v17  ;;  %v1939_v2 = vmax.f32 %v1875_v33, %v1877_v23  ;;  %v6968_v39 = vld [vmem:[#allocation2 + $0x48] sm:$0xff] }
 0x1f7   : > { %v1944_v47 = vmax.f32 %v6959_v55, %v6965_v48  ;;  %v2005_v19 = vmax.f32 %v1941_v56, %v6961_v53  ;;  %v2006_v15 = vmax.f32 %v1942_v6, %v6965_v48  ;;  %v2007_v16 = vmax.f32 %v1943_v31, %v6968_v39  ;;  %v7242_v21 = vld [vmem:[#allocation2 + $0xe8] sm:$0xff] }
 0x1f8   : > { %v1945_v46 = vmax.f32 %v6961_v53, %v6968_v39  ;;  %v2035_v62 = vrot.slane %v2004_v35, 7  ;;  %v2131_v34 = vrot.slane %v2004_v35, 1  ;;  %v2002_v42 = vmax.f32 %v1938_v5, %v1908_v32 }
 0x1f9   : > { %v2003_v11 = vmax.f32 %v1939_v2, %v1909_v37  ;;  %v2051_v4 = vrot.slane %v2005_v19, 7  ;;  %v2147_v60 = vrot.slane %v2005_v19, 1  ;;  %v2036_v59 = vrot.slane %v2006_v15, 7 }
 0x1fa   : > { %v2052_v24 = vrot.slane %v2007_v16, 7  ;;  %v2034_v28 = vrot.slane %v2002_v42, 7  ;;  %v2130_v45 = vrot.slane %v2002_v42, 1 }
 0x1fb   : > { %v2050_v58 = vrot.slane %v2003_v11, 7  ;;  %v2146_v43 = vrot.slane %v2003_v11, 1  ;;  %v2083_v0 = vsel %vm505_vm1, %v2051_v4, %v2035_v62  ;;  %v2163_v30 = vsel %vm520_vm2, %v2131_v34, %v2147_v60 }
 0x1fc   : > { %v2067_v49 = vsel %vm505_vm1, %v2035_v62, %v2051_v4  ;;  %v2179_v63 = vsel %vm520_vm2, %v2147_v60, %v2131_v34  ;;  %v2100_v3 = vsel %vm516_vm3, -3e+38, %v2083_v0  ;;  %v2196_v7 = vsel %vm531_vm4, -3e+38, %v2163_v30  ;;  %v1977_v34 = vld [vmem:[#allocation2 + $0x58] sm:$0xff] }
 0x1fd   : > { %v2082_v20 = vsel %vm505_vm1, %v2050_v58, %v2034_v28  ;;  %v2162_v41 = vsel %vm520_vm2, %v2130_v45, %v2146_v43  ;;  %v2228_v13 = vmax.f32 %v2004_v35, %v2100_v3  ;;  %v2101_v32 = vsel %vm517_vm5, -3e+38, %v2067_v49  ;;  %v1976_v35 = vld [vmem:[#allocation2 + $0x50] sm:$0xff] }
 0x1fe   : > { %v2098_v50 = vsel %vm516_vm3, -3e+38, %v2082_v20  ;;  %v2194_v17 = vsel %vm531_vm4, -3e+38, %v2162_v41  ;;  %v2197_v55 = vsel %vm532_vm6, -3e+38, %v2179_v63  ;;  %v2229_v53 = vmax.f32 %v2005_v19, %v2101_v32 }
 0x1ff   : > { %v2226_v37 = vmax.f32 %v2002_v42, %v2098_v50  ;;  %v2066_v56 = vsel %vm505_vm1, %v2034_v28, %v2050_v58  ;;  %v7003_v38 = vmax.f32 %v2228_v13, %v2196_v7  ;;  %v2178_v6 = vsel %vm520_vm2, %v2146_v43, %v2130_v45  ;;  %v7040_v13 = vld [vmem:[#allocation2 + $0x60] sm:$0xff] }
 0x200   : > { %v2099_v33 = vsel %vm517_vm5, -3e+38, %v2066_v56  ;;  %v2068_v31 = vsel %vm505_vm1, %v2036_v59, %v2052_v24  ;;  %v7013_v2 = vmax.f32 %v2229_v53, %v2197_v55  ;;  %v2195_v19 = vsel %vm532_vm6, -3e+38, %v2178_v6 }
 0x201   : > { %v7011_v5 = vmax.f32 %v2226_v37, %v2194_v17  ;;  %v2227_v62 = vmax.f32 %v2003_v11, %v2099_v33  ;;  %2304 = vperm.xlu1 %5489, %v7003_v38   ;;  %v2103_v42 = vsel %vm517_vm5, -3e+38, %v2068_v31  ;;  %v2132_v4 = vrot.slane %v2006_v15, 1  ;;  %v7057_v33 = vld [vmem:[#allocation2 + $0x70] sm:$0xff] }
 0x202   : > { %v2148_v60 = vrot.slane %v2007_v16, 1  ;;  %v2084_v28 = vsel %vm505_vm1, %v2052_v24, %v2036_v59  ;;  %v2231_v45 = vmax.f32 %v2007_v16, %v2103_v42  ;;  %v2008_v11 = vmax.f32 %v1944_v47, %v1976_v35 }
 0x203   : > { %2294 = vperm.xlu0 %5488, %v7011_v5   ;;  %v7023_v58 = vmax.f32 %v2227_v62, %v2195_v19  ;;  %v2102_v43 = vsel %vm516_vm3, -3e+38, %v2084_v28  ;;  %v2009_v63 = vmax.f32 %v1945_v46, %v1977_v34  ;;  %v1946_v46 = vmax.f32 %v6965_v48, %v1976_v35  ;;  %v7059_v48 = vld [vmem:[#allocation2 + $0x78] sm:$0xff] }
 0x204   : > { %v2180_v0 = vsel %vm520_vm2, %v2148_v60, %v2132_v4  ;;  %v2164_v30 = vsel %vm520_vm2, %v2132_v4, %v2148_v60  ;;  %v2230_v49 = vmax.f32 %v2006_v15, %v2102_v43  ;;  %v2037_v3 = vrot.slane %v2008_v11, 7  ;;  %v7042_v15 = vld [vmem:[#allocation2 + $0x68] sm:$0xff] }
 0x205   : > { %v2199_v59 = vsel %vm532_vm6, -3e+38, %v2180_v0  ;;  %v2198_v24 = vsel %vm531_vm4, -3e+38, %v2164_v30  ;;  %v2133_v16 = vrot.slane %v2008_v11, 1  ;;  %2309 = vperm.xlu1 %5489, %v7013_v2   ;;  %v2053_v20 = vrot.slane %v2009_v63, 7 }
 0x206   : > { %v7036_v7 = vmax.f32 %v2231_v45, %v2199_v59  ;;  %v7038_v47 = vmax.f32 %v2230_v49, %v2198_v24  ;;  %v2149_v41 = vrot.slane %v2009_v63, 1  ;;  %v1947_v50 = vmax.f32 %v6968_v39, %v1977_v34 }
 0x207   : > { %2299 = vperm.xlu0 %5488, %v7023_v58   ;;  %v1948_v17 = vmax.f32 %v1976_v35, %v7040_v13  ;;  %v1949_v32 = vmax.f32 %v1977_v34, %v7042_v15  ;;  %v2069_v37 = vsel %vm505_vm1, %v2037_v3, %v2053_v20  ;;  %v2085_v53 = vsel %vm505_vm1, %v2053_v20, %v2037_v3 }
 0x208   : > { %v2181_v55 = vsel %vm520_vm2, %v2149_v41, %v2133_v16  ;;  %v2165_v56 = vsel %vm520_vm2, %v2133_v16, %v2149_v41  ;;  %v2105_v39 = vsel %vm517_vm5, -3e+38, %v2069_v37  ;;  %v2104_v31 = vsel %vm516_vm3, -3e+38, %v2085_v53 }
 0x209   : > { %v2201_v6 = vsel %vm532_vm6, -3e+38, %v2181_v55  ;;  %v2010_v35 = vmax.f32 %v1946_v46, %v7040_v13  ;;  %2319 = vperm.xlu1 %5489, %v7036_v7   ;;  %v2233_v19 = vmax.f32 %v2009_v63, %v2105_v39  ;;  %v2200_v62 = vsel %vm531_vm4, -3e+38, %v2165_v56 }
 0x20a   : > { %v2232_v34 = vmax.f32 %v2008_v11, %v2104_v31  ;;  %v2011_v42 = vmax.f32 %v1947_v50, %v7042_v15  ;;  %v2012_v28 = vmax.f32 %v1948_v17, %v7057_v33  ;;  %v2013_v45 = vmax.f32 %v1949_v32, %v7059_v48 }
 0x20b   : > { %2314 = vperm.xlu0 %5488, %v7038_v47   ;;  %v2038_v4 = vrot.slane %v2010_v35, 7  ;;  %v2134_v60 = vrot.slane %v2010_v35, 1  ;;  %v7075_v43 = vmax.f32 %v2233_v19, %v2201_v6 }
 0x20c   : > { %v7077_v0 = vmax.f32 %v2232_v34, %v2200_v62  ;;  %v2054_v30 = vrot.slane %v2011_v42, 7  ;;  %v2150_v49 = vrot.slane %v2011_v42, 1  ;;  %v2039_v63 = vrot.slane %v2012_v28, 7 }
 0x20d   : > { %v2055_v59 = vrot.slane %v2013_v45, 7  ;;  %v2135_v24 = vrot.slane %v2012_v28, 1  ;;  %v2151_v11 = vrot.slane %v2013_v45, 1  ;;  %2329 = vperm.xlu1 %5489, %v7075_v43  }
 0x20e   : > { %v2070_v3 = vsel %vm505_vm1, %v2038_v4, %v2054_v30  ;;  %v2182_v16 = vsel %vm520_vm2, %v2150_v49, %v2134_v60  ;;  %v2086_v20 = vsel %vm505_vm1, %v2054_v30, %v2038_v4  ;;  %v2166_v41 = vsel %vm520_vm2, %v2134_v60, %v2150_v49  ;;  %v1982_v4 = vld [vmem:[#allocation2 + $0x80] sm:$0xff] }
 0x20f   : > { %2324 = vperm.xlu0 %5488, %v7077_v0   ;;  %v2107_v46 = vsel %vm517_vm5, -3e+38, %v2070_v3  ;;  %v2203_v50 = vsel %vm532_vm6, -3e+38, %v2182_v16  ;;  %v2106_v17 = vsel %vm516_vm3, -3e+38, %v2086_v20  ;;  %v2071_v32 = vsel %vm505_vm1, %v2039_v63, %v2055_v59 }
 0x210   : > { %v2235_v37 = vmax.f32 %v2011_v42, %v2107_v46  ;;  %v2202_v55 = vsel %vm531_vm4, -3e+38, %v2166_v41  ;;  %v2234_v53 = vmax.f32 %v2010_v35, %v2106_v17  ;;  %v2109_v56 = vsel %vm517_vm5, -3e+38, %v2071_v32  ;;  %v7133_v20 = vld [vmem:[#allocation2 + $0xa8] sm:$0xff] }
 0x211   : > { %v2183_v39 = vsel %vm520_vm2, %v2151_v11, %v2135_v24  ;;  %v2237_v6 = vmax.f32 %v2013_v45, %v2109_v56  ;;  %v2087_v31 = vsel %vm505_vm1, %v2055_v59, %v2039_v63  ;;  %v2167_v19 = vsel %vm520_vm2, %v2135_v24, %v2151_v11  ;;  %v1983_v63 = vld [vmem:[#allocation2 + $0x88] sm:$0xff]  ;;  %v7121_v59 = vld [vmem:[#allocation2 + $0x90] sm:$0xff]  ;;  %v7123_v24 = vld [vmem:[#allocation2 + $0x98] sm:$0xff] }
 0x212   : > { %v7107_v62 = vmax.f32 %v2235_v37, %v2203_v50  ;;  %v7109_v34 = vmax.f32 %v2234_v53, %v2202_v55  ;;  %v2205_v35 = vsel %vm532_vm6, -3e+38, %v2183_v39  ;;  %v2108_v42 = vsel %vm516_vm3, -3e+38, %v2087_v31 }
 0x213   : > { %v7115_v60 = vmax.f32 %v2237_v6, %v2205_v35  ;;  %v2204_v45 = vsel %vm531_vm4, -3e+38, %v2167_v19  ;;  %v2236_v30 = vmax.f32 %v2012_v28, %v2108_v42  ;;  %v1950_v49 = vmax.f32 %v7040_v13, %v7057_v33  ;;  %v7131_v28 = vld [vmem:[#allocation2 + $0xa0] sm:$0xff] }
 0x214   : > { %2339 = vperm.xlu1 %5489, %v7107_v62   ;;  %2334 = vperm.xlu0 %5488, %v7109_v34   ;;  %v1951_v11 = vmax.f32 %v7042_v15, %v7059_v48  ;;  %v1952_v3 = vmax.f32 %v7057_v33, %v1982_v4  ;;  %v1953_v16 = vmax.f32 %v7059_v48, %v1983_v63 }
 0x215   : > { %v7135_v13 = vmax.f32 %v2236_v30, %v2204_v45  ;;  %v2014_v41 = vmax.f32 %v1950_v49, %v1982_v4  ;;  %v1954_v46 = vmax.f32 %v1982_v4, %v7121_v59  ;;  %v1955_v50 = vmax.f32 %v1983_v63, %v7123_v24 }
 0x216   : > { %v2015_v17 = vmax.f32 %v1951_v11, %v1983_v63  ;;  %v2016_v32 = vmax.f32 %v1952_v3, %v7121_v59  ;;  %v2017_v15 = vmax.f32 %v1953_v16, %v7123_v24  ;;  %v1956_v33 = vmax.f32 %v7121_v59, %v7131_v28 }
 0x217   : > { %v2040_v48 = vrot.slane %v2014_v41, 7  ;;  %v2136_v37 = vrot.slane %v2014_v41, 1  ;;  %v2018_v55 = vmax.f32 %v1954_v46, %v7131_v28  ;;  %v2019_v53 = vmax.f32 %v1955_v50, %v7133_v20 }
 0x218   : > { %2349 = vperm.xlu1 %5489, %v7115_v60   ;;  %2344 = vperm.xlu0 %5488, %v7135_v13   ;;  %v2056_v56 = vrot.slane %v2015_v17, 7  ;;  %v2152_v39 = vrot.slane %v2015_v17, 1  ;;  %v2041_v6 = vrot.slane %v2016_v32, 7  ;;  %v2057_v31 = vrot.slane %v2017_v15, 7 }
 0x219   : > { %v2137_v19 = vrot.slane %v2016_v32, 1  ;;  %v2153_v35 = vrot.slane %v2017_v15, 1  ;;  %v2042_v42 = vrot.slane %v2018_v55, 7  ;;  %v2058_v4 = vrot.slane %v2019_v53, 7 }
 0x21a   : > { %v2072_v45 = vsel %vm505_vm1, %v2040_v48, %v2056_v56  ;;  %v2184_v30 = vsel %vm520_vm2, %v2152_v39, %v2136_v37  ;;  %v2088_v49 = vsel %vm505_vm1, %v2056_v56, %v2040_v48  ;;  %v2168_v63 = vsel %vm520_vm2, %v2136_v37, %v2152_v39 }
 0x21b   : > { %v2111_v59 = vsel %vm517_vm5, -3e+38, %v2072_v45  ;;  %v2207_v11 = vsel %vm532_vm6, -3e+38, %v2184_v30  ;;  %v2110_v3 = vsel %vm516_vm3, -3e+38, %v2088_v49  ;;  %v2073_v16 = vsel %vm505_vm1, %v2041_v6, %v2057_v31 }
 0x21c   : > { %v2239_v46 = vmax.f32 %v2015_v17, %v2111_v59  ;;  %v2206_v50 = vsel %vm531_vm4, -3e+38, %v2168_v63  ;;  %v2238_v48 = vmax.f32 %v2014_v41, %v2110_v3  ;;  %v2113_v37 = vsel %vm517_vm5, -3e+38, %v2073_v16 }
 0x21d   : > { %v2185_v56 = vsel %vm520_vm2, %v2153_v35, %v2137_v19  ;;  %v2241_v39 = vmax.f32 %v2017_v15, %v2113_v37  ;;  %v2089_v45 = vsel %vm505_vm1, %v2057_v31, %v2041_v6  ;;  %v2169_v30 = vsel %vm520_vm2, %v2137_v19, %v2153_v35  ;;  %v1988_v31 = vld [vmem:[#allocation2 + $0xb0] sm:$0xff] }
 0x21e   : > { %v7173_v49 = vmax.f32 %v2239_v46, %v2207_v11  ;;  %v7175_v17 = vmax.f32 %v2238_v48, %v2206_v50  ;;  %v2209_v41 = vsel %vm532_vm6, -3e+38, %v2185_v56  ;;  %v2112_v63 = vsel %vm516_vm3, -3e+38, %v2089_v45  ;;  %v1989_v46 = vld [vmem:[#allocation2 + $0xb8] sm:$0xff] }
 0x21f   : > { %v7181_v59 = vmax.f32 %v2241_v39, %v2209_v41  ;;  %v2208_v15 = vsel %vm531_vm4, -3e+38, %v2169_v30  ;;  %v2240_v3 = vmax.f32 %v2016_v32, %v2112_v63  ;;  %v2074_v6 = vsel %vm505_vm1, %v2042_v42, %v2058_v4  ;;  %v1990_v41 = vld [vmem:[#allocation2 + $0xc0] sm:$0xff] }
 0x220   : > { %2359 = vperm.xlu1 %5489, %v7173_v49   ;;  %2354 = vperm.xlu0 %5488, %v7175_v17   ;;  %v2115_v19 = vsel %vm517_vm5, -3e+38, %v2074_v6  ;;  %v2138_v35 = vrot.slane %v2018_v55, 1  ;;  %v2154_v11 = vrot.slane %v2019_v53, 1  ;;  %v2090_v16 = vsel %vm505_vm1, %v2058_v4, %v2042_v42 }
 0x221   : > { %v7193_v50 = vmax.f32 %v2240_v3, %v2208_v15  ;;  %v2243_v32 = vmax.f32 %v2019_v53, %v2115_v19  ;;  %v2114_v48 = vsel %vm516_vm3, -3e+38, %v2090_v16  ;;  %v1957_v37 = vmax.f32 %v7123_v24, %v7133_v20  ;;  %v7215_v16 = vld [vmem:[#allocation2 + $0xd0] sm:$0xff] }
 0x222   : > { %v2186_v56 = vsel %vm520_vm2, %v2154_v11, %v2138_v35  ;;  %v2170_v39 = vsel %vm520_vm2, %v2138_v35, %v2154_v11  ;;  %v2242_v45 = vmax.f32 %v2018_v55, %v2114_v48  ;;  %v2020_v30 = vmax.f32 %v1956_v33, %v1988_v31  ;;  %v1991_v35 = vld [vmem:[#allocation2 + $0xc8] sm:$0xff]  ;;  %v7217_v48 = vld [vmem:[#allocation2 + $0xd8] sm:$0xff] }
 0x223   : > { %v2211_v42 = vsel %vm532_vm6, -3e+38, %v2186_v56  ;;  %v2210_v53 = vsel %vm531_vm4, -3e+38, %v2170_v39  ;;  %v2021_v4 = vmax.f32 %v1957_v37, %v1989_v46  ;;  %v1958_v63 = vmax.f32 %v7131_v28, %v1988_v31 }
 0x224   : > { %2369 = vperm.xlu1 %5489, %v7181_v59   ;;  %2364 = vperm.xlu0 %5488, %v7193_v50   ;;  %v7210_v24 = vmax.f32 %v2243_v32, %v2211_v42  ;;  %v7212_v15 = vmax.f32 %v2242_v45, %v2210_v53  ;;  %v2043_v55 = vrot.slane %v2020_v30, 7  ;;  %v2139_v33 = vrot.slane %v2020_v30, 1  ;;  %v7229_v53 = vld [vmem:[#allocation2 + $0xe0] sm:$0xff] }
 0x225   : > { %v2059_v3 = vrot.slane %v2021_v4, 7  ;;  %v2155_v6 = vrot.slane %v2021_v4, 1  ;;  %v1959_v19 = vmax.f32 %v7133_v20, %v1989_v46  ;;  %v2022_v11 = vmax.f32 %v1958_v63, %v1990_v41 }
 0x226   : > { %v1960_v28 = vmax.f32 %v1988_v31, %v1990_v41  ;;  %v1961_v37 = vmax.f32 %v1989_v46, %v1991_v35  ;;  %v1962_v56 = vmax.f32 %v1990_v41, %v7215_v16  ;;  %v1963_v32 = vmax.f32 %v1991_v35, %v7217_v48 }
 0x227   : > { %v2075_v39 = vsel %vm505_vm1, %v2043_v55, %v2059_v3  ;;  %v2187_v45 = vsel %vm520_vm2, %v2155_v6, %v2139_v33  ;;  %v2091_v20 = vsel %vm505_vm1, %v2059_v3, %v2043_v55  ;;  %v2171_v42 = vsel %vm520_vm2, %v2139_v33, %v2155_v6 }
 0x228   : > { %2379 = vperm.xlu1 %5489, %v7210_v24   ;;  %2374 = vperm.xlu0 %5488, %v7212_v15   ;;  %v2117_v31 = vsel %vm517_vm5, -3e+38, %v2075_v39  ;;  %v2213_v46 = vsel %vm532_vm6, -3e+38, %v2187_v45  ;;  %v2116_v41 = vsel %vm516_vm3, -3e+38, %v2091_v20  ;;  %v2023_v63 = vmax.f32 %v1959_v19, %v1991_v35 }
 0x229   : > { %v2245_v55 = vmax.f32 %v2021_v4, %v2117_v31  ;;  %v2212_v33 = vsel %vm531_vm4, -3e+38, %v2171_v42  ;;  %v2244_v3 = vmax.f32 %v2020_v30, %v2116_v41  ;;  %v2044_v6 = vrot.slane %v2022_v11, 7 }
 0x22a   : > { %v2060_v9 = vrot.slane %v2023_v63, 7  ;;  %v2140_v10 = vrot.slane %v2022_v11, 1  ;;  %v2156_v18 = vrot.slane %v2023_v63, 1  ;;  %v2024_v36 = vmax.f32 %v1960_v28, %v7215_v16 }
 0x22b   : > { %v7244_v39 = vmax.f32 %v2245_v55, %v2213_v46  ;;  %v7246_v45 = vmax.f32 %v2244_v3, %v2212_v33  ;;  %v2025_v20 = vmax.f32 %v1961_v37, %v7217_v48  ;;  %v2026_v4 = vmax.f32 %v1962_v56, %v7229_v53 }
 0x22c   : > { %v2076_v19 = vsel %vm505_vm1, %v2044_v6, %v2060_v9  ;;  %v2188_v30 = vsel %vm520_vm2, %v2156_v18, %v2140_v10  ;;  %v2092_v35 = vsel %vm505_vm1, %v2060_v9, %v2044_v6  ;;  %v2172_v28 = vsel %vm520_vm2, %v2140_v10, %v2156_v18 }
 0x22d   : > { %2389 = vperm.xlu1 %5489, %v7244_v39   ;;  %2384 = vperm.xlu0 %5488, %v7246_v45   ;;  %v2119_v37 = vsel %vm517_vm5, -3e+38, %v2076_v19  ;;  %v2215_v56 = vsel %vm532_vm6, -3e+38, %v2188_v30  ;;  %v2118_v42 = vsel %vm516_vm3, -3e+38, %v2092_v35  ;;  %v2027_v31 = vmax.f32 %v1963_v32, %v7242_v21 }
 0x22e   : > { %v2247_v46 = vmax.f32 %v2023_v63, %v2119_v37  ;;  %v2214_v9 = vsel %vm531_vm4, -3e+38, %v2172_v28  ;;  %v2246_v18 = vmax.f32 %v2022_v11, %v2118_v42  ;;  %v2045_v10 = vrot.slane %v2024_v36, 7 }
 0x22f   : > { %v2061_v41 = vrot.slane %v2025_v20, 7  ;;  %v2141_v55 = vrot.slane %v2024_v36, 1  ;;  %v2157_v33 = vrot.slane %v2025_v20, 1  ;;  %v2046_v3 = vrot.slane %v2026_v4, 7 }
 0x230   : > { %v7269_v6 = vmax.f32 %v2247_v46, %v2215_v56  ;;  %v7271_v19 = vmax.f32 %v2246_v18, %v2214_v9  ;;  %v2062_v30 = vrot.slane %v2027_v31, 7  ;;  %v2142_v25 = vrot.slane %v2026_v4, 1 }
 0x231   : > { %v2077_v35 = vsel %vm505_vm1, %v2045_v10, %v2061_v41  ;;  %v2189_v32 = vsel %vm520_vm2, %v2157_v33, %v2141_v55  ;;  %v2093_v11 = vsel %vm505_vm1, %v2061_v41, %v2045_v10  ;;  %v2173_v63 = vsel %vm520_vm2, %v2141_v55, %v2157_v33  ;;  %v1996_v41 = vld [vmem:[#allocation2 + $0xf0] sm:$0xff] }
 0x232   : > { %2399 = vperm.xlu1 %5489, %v7269_v6   ;;  %2394 = vperm.xlu0 %5488, %v7271_v19   ;;  %v2121_v28 = vsel %vm517_vm5, -3e+38, %v2077_v35  ;;  %v2217_v37 = vsel %vm532_vm6, -3e+38, %v2189_v32  ;;  %v2120_v56 = vsel %vm516_vm3, -3e+38, %v2093_v11  ;;  %v2078_v42 = vsel %vm505_vm1, %v2046_v3, %v2062_v30 }
 0x233   : > { %v2249_v46 = vmax.f32 %v2025_v20, %v2121_v28  ;;  %v2216_v9 = vsel %vm531_vm4, -3e+38, %v2173_v63  ;;  %v2248_v18 = vmax.f32 %v2024_v36, %v2120_v56  ;;  %v2123_v10 = vsel %vm517_vm5, -3e+38, %v2078_v42  ;;  %v1997_v11 = vld [vmem:[#allocation2 + $0xf8] sm:$0xff] }
 0x234   : > { %v2158_v55 = vrot.slane %v2027_v31, 1  ;;  %v2251_v33 = vmax.f32 %v2027_v31, %v2123_v10  ;;  %v2094_v35 = vsel %vm505_vm1, %v2062_v30, %v2046_v3  ;;  %v1964_v32 = vmax.f32 %v7215_v16, %v7229_v53  ;;  %v1998_v16 = vld [vmem:[#allocation2 + $0x100] sm:$0xff] }
 0x235   : > { %v7299_v22 = vmax.f32 %v2249_v46, %v2217_v37  ;;  %v7301_v20 = vmax.f32 %v2248_v18, %v2216_v9  ;;  %v2122_v36 = vsel %vm516_vm3, -3e+38, %v2094_v35  ;;  %v1965_v63 = vmax.f32 %v7217_v48, %v7242_v21  ;;  %v1999_v35 = vld [vmem:[#allocation2 + $0x108] sm:$0xff] }
 0x236   : > { %v2190_v31 = vsel %vm520_vm2, %v2158_v55, %v2142_v25  ;;  %v2174_v3 = vsel %vm520_vm2, %v2142_v25, %v2158_v55  ;;  %v2250_v30 = vmax.f32 %v2026_v4, %v2122_v36  ;;  %v2028_v28 = vmax.f32 %v1964_v32, %v1996_v41 }
 0x237   : > { %2409 = vperm.xlu1 %5489, %v7299_v22   ;;  %2404 = vperm.xlu0 %5488, %v7301_v20   ;;  %v2219_v37 = vsel %vm532_vm6, -3e+38, %v2190_v31  ;;  %v2218_v56 = vsel %vm531_vm4, -3e+38, %v2174_v3  ;;  %v2029_v48 = vmax.f32 %v1965_v63, %v1997_v11  ;;  %v1966_v42 = vmax.f32 %v7229_v53, %v1996_v41 }
 0x238   : > { %v7318_v46 = vmax.f32 %v2251_v33, %v2219_v37  ;;  %v7320_v9 = vmax.f32 %v2250_v30, %v2218_v56  ;;  %v2047_v25 = vrot.slane %v2028_v28, 7  ;;  %v2143_v4 = vrot.slane %v2028_v28, 1  ;;  %v2000_v30 = vld [vmem:[#allocation2 + $0x110] sm:$0xff] }
 0x239   : > { %v2063_v18 = vrot.slane %v2029_v48, 7  ;;  %v2159_v10 = vrot.slane %v2029_v48, 1  ;;  %v1967_v55 = vmax.f32 %v7242_v21, %v1997_v11  ;;  %v2030_v32 = vmax.f32 %v1966_v42, %v1998_v16  ;;  %v2001_v21 = vld [vmem:[#allocation2 + $0x118] sm:$0xff] }
 0x23a   : > { %v1968_v36 = vmax.f32 %v1996_v41, %v1998_v16  ;;  %v1969_v31 = vmax.f32 %v1997_v11, %v1999_v35 }
 0x23b   : > { %2419 = vperm.xlu1 %5489, %v7318_v46   ;;  %2414 = vperm.xlu0 %5488, %v7320_v9   ;;  %v2079_v53 = vsel %vm505_vm1, %v2047_v25, %v2063_v18  ;;  %v2191_v33 = vsel %vm520_vm2, %v2159_v10, %v2143_v4  ;;  %v2095_v63 = vsel %vm505_vm1, %v2063_v18, %v2047_v25  ;;  %v2048_v3 = vrot.slane %v2030_v32, 7 }
 0x23c   : > { %v2125_v41 = vsel %vm517_vm5, -3e+38, %v2079_v53  ;;  %v2221_v11 = vsel %vm532_vm6, -3e+38, %v2191_v33  ;;  %v2124_v16 = vsel %vm516_vm3, -3e+38, %v2095_v63  ;;  %v2175_v37 = vsel %vm520_vm2, %v2143_v4, %v2159_v10 }
 0x23d   : > { %v2253_v56 = vmax.f32 %v2029_v48, %v2125_v41  ;;  %v2220_v42 = vsel %vm531_vm4, -3e+38, %v2175_v37  ;;  %v2252_v25 = vmax.f32 %v2028_v28, %v2124_v16  ;;  %v2031_v18 = vmax.f32 %v1967_v55, %v1999_v35 }
 0x23e   : > { %v2144_v51 = vrot.slane %v2030_v32, 1  ;;  %v2032_v27 = vmax.f32 %v1968_v36, %v2000_v30  ;;  %v2033_v52 = vmax.f32 %v1969_v31, %v2001_v21 }
 0x23f   : > { %v7341_v57 = vmax.f32 %v2253_v56, %v2221_v11  ;;  %v7343_v53 = vmax.f32 %v2252_v25, %v2220_v42  ;;  %v2064_v33 = vrot.slane %v2031_v18, 7  ;;  %v2160_v1 = vrot.slane %v2031_v18, 1 }
 0x240   : > { %v2049_v61 = vrot.slane %v2032_v27, 7  ;;  %v2065_v63 = vrot.slane %v2033_v52, 7  ;;  %v2145_v12 = vrot.slane %v2032_v27, 1  ;;  %v2161_v14 = vrot.slane %v2033_v52, 1 }
 0x241   : > { %2429 = vperm.xlu1 %5489, %v7341_v57   ;;  %2424 = vperm.xlu0 %5488, %v7343_v53   ;;  %v2080_v28 = vsel %vm505_vm1, %v2048_v3, %v2064_v33  ;;  %v2192_v48 = vsel %vm520_vm2, %v2160_v1, %v2144_v51  ;;  %v2096_v4 = vsel %vm505_vm1, %v2064_v33, %v2048_v3 }
 0x242   : > { %v2127_v10 = vsel %vm517_vm5, -3e+38, %v2080_v28  ;;  %v2223_v55 = vsel %vm532_vm6, -3e+38, %v2192_v48  ;;  %v2126_v35 = vsel %vm516_vm3, -3e+38, %v2096_v4  ;;  %v2176_v36 = vsel %vm520_vm2, %v2144_v51, %v2160_v1 }
 0x243   : > { %v2255_v31 = vmax.f32 %v2031_v18, %v2127_v10  ;;  %v2222_v30 = vsel %vm531_vm4, -3e+38, %v2176_v36  ;;  %v2254_v21 = vmax.f32 %v2030_v32, %v2126_v35  ;;  %v2081_v3 = vsel %vm505_vm1, %v2049_v61, %v2065_v63 }
 0x244   : > { %v2129_v41 = vsel %vm517_vm5, -3e+38, %v2081_v3  ;;  %v2193_v11 = vsel %vm520_vm2, %v2161_v14, %v2145_v12  ;;  %v2097_v16 = vsel %vm505_vm1, %v2065_v63, %v2049_v61  ;;  %v2177_v1 = vsel %vm520_vm2, %v2145_v12, %v2161_v14 }
 0x245   : > { %v7373_v51 = vmax.f32 %v2255_v31, %v2223_v55  ;;  %v7375_v37 = vmax.f32 %v2254_v21, %v2222_v30  ;;  %v2225_v32 = vsel %vm532_vm6, -3e+38, %v2193_v11  ;;  %v2257_v56 = vmax.f32 %v2033_v52, %v2129_v41 }
 0x246   : > { %v2128_v23 = vsel %vm516_vm3, -3e+38, %v2097_v16  ;;  %v2224_v42 = vsel %vm531_vm4, -3e+38, %v2177_v1  ;;  %v9837_v52 = vmov 1   ;;  %v9838_v28 = vmov 2  }
 0x247   : > { %2439 = vperm.xlu1 %5489, %v7373_v51   ;;  %2434 = vperm.xlu0 %5488, %v7375_v37   ;;  %v7385_v61 = vmax.f32 %v2257_v56, %v2225_v32  ;;  %v2256_v14 = vmax.f32 %v2032_v27, %v2128_v23 }
 0x249   : > { %v7387_v12 = vmax.f32 %v2256_v14, %v2224_v42 }
 0x24b   : > { %2449 = vperm.xlu1 %5489, %v7385_v61   ;;  %2444 = vperm.xlu0 %5488, %v7387_v12  }
 0x24f   : > { %5491 = vset.pattern.permute.xlu1 %v9837_v52  ;;  %5490 = vset.pattern.permute.xlu0 %v9837_v52 }
 0x250   : > { %2493 = vperm.xlu1 %5491, %v7023_v58   ;;  %2489 = vperm.xlu0 %5490, %v7011_v5  }
 0x254   : > { %2497 = vperm.xlu1 %5491, %v7003_v38   ;;  %2501 = vperm.xlu0 %5490, %v7013_v2  }
 0x258   : > { %2505 = vperm.xlu1 %5491, %v7038_v47   ;;  %2509 = vperm.xlu0 %5490, %v7036_v7  }
 0x25c   : > { %2513 = vperm.xlu1 %5491, %v7077_v0   ;;  %2517 = vperm.xlu0 %5490, %v7075_v43  }
 0x260   : > { %2521 = vperm.xlu1 %5491, %v7109_v34   ;;  %2525 = vperm.xlu0 %5490, %v7107_v62  }
 0x264   : > { %2529 = vperm.xlu1 %5491, %v7135_v13   ;;  %2533 = vperm.xlu0 %5490, %v7115_v60  }
 0x268   : > { %2537 = vperm.xlu1 %5491, %v7175_v17   ;;  %2541 = vperm.xlu0 %5490, %v7173_v49  }
 0x26c   : > { %2545 = vperm.xlu1 %5491, %v7193_v50   ;;  %2549 = vperm.xlu0 %5490, %v7181_v59  }
 0x270   : > { %2553 = vperm.xlu1 %5491, %v7212_v15   ;;  %2557 = vperm.xlu0 %5490, %v7210_v24  }
 0x274   : > { %2561 = vperm.xlu1 %5491, %v7246_v45   ;;  %2565 = vperm.xlu0 %5490, %v7244_v39  }
 0x278   : > { %2569 = vperm.xlu1 %5491, %v7271_v19   ;;  %2573 = vperm.xlu0 %5490, %v7269_v6  }
 0x27c   : > { %2577 = vperm.xlu1 %5491, %v7301_v20   ;;  %2581 = vperm.xlu0 %5490, %v7299_v22  }
 0x280   : > { %2585 = vperm.xlu1 %5491, %v7320_v9   ;;  %2589 = vperm.xlu0 %5490, %v7318_v46   ;;  %v7419_v27 = vpop.permute.xlu1 %2304 }
 0x282   : > { %v7421_v54 = vpop.permute.xlu0 %2294 }
 0x284   : > { %2593 = vperm.xlu1 %5491, %v7343_v53   ;;  %2597 = vperm.xlu0 %5490, %v7341_v57   ;;  %v7425_v40 = vpop.permute.xlu1 %2309 }
 0x286   : > { %v7427_v8 = vpop.permute.xlu0 %2299 }
 0x288   : > { %2601 = vperm.xlu1 %5491, %v7375_v37   ;;  %2605 = vperm.xlu0 %5490, %v7373_v51   ;;  %v7431_v25 = vpop.permute.xlu1 %2319 }
 0x28a   : > { %v7433_v18 = vpop.permute.xlu0 %2314 }
 0x28c   : > { %2609 = vperm.xlu1 %5491, %v7387_v12   ;;  %2613 = vperm.xlu0 %5490, %v7385_v61   ;;  %v7437_v33 = vpop.permute.xlu1 %2329 }
 0x28e   : > { %v7439_v63 = vpop.permute.xlu0 %2324 }
 0x290   : > { %5492 = vset.pattern.permute.xlu1 %v9838_v28  ;;  %5493 = vset.pattern.permute.xlu0 %v9838_v28 }
 0x291   : > { %2685 = vperm.xlu1 %5492, %v7011_v5   ;;  %2689 = vperm.xlu0 %5493, %v7023_v58  }
 0x293   : > { %v7445_v48 = vpop.permute.xlu1 %2339  ;;  %v7447_v4 = vpop.permute.xlu0 %2334 }
 0x295   : > { %2693 = vperm.xlu1 %5492, %v7003_v38   ;;  %2701 = vperm.xlu0 %5493, %v7038_v47  }
 0x297   : > { %v7453_v10 = vpop.permute.xlu1 %2349  ;;  %v7455_v55 = vpop.permute.xlu0 %2344 }
 0x299   : > { %2697 = vperm.xlu1 %5492, %v7013_v2   ;;  %2709 = vperm.xlu0 %5493, %v7077_v0  }
 0x29d   : > { %2705 = vperm.xlu1 %5492, %v7036_v7   ;;  %2717 = vperm.xlu0 %5493, %v7109_v34  }
 0x29f   : > { %v7459_v35 = vpop.permute.xlu1 %2359  ;;  %v7461_v36 = vpop.permute.xlu0 %2354 }
 0x2a1   : > { %2713 = vperm.xlu1 %5492, %v7075_v43   ;;  %2725 = vperm.xlu0 %5493, %v7135_v13  }
 0x2a3   : > { %v7465_v31 = vpop.permute.xlu1 %2369  ;;  %v7467_v30 = vpop.permute.xlu0 %2364 }
 0x2a5   : > { %2721 = vperm.xlu1 %5492, %v7107_v62   ;;  %2733 = vperm.xlu0 %5493, %v7175_v17  }
 0x2a7   : > { %v7471_v21 = vpop.permute.xlu1 %2379  ;;  %v7473_v3 = vpop.permute.xlu0 %2374 }
 0x2a8   : > { %9839 = vst [vmem:[#allocation28_spill] sm:$0xff] %v7471_v21 }
 0x2a9   : > { %2729 = vperm.xlu1 %5492, %v7115_v60   ;;  %2741 = vperm.xlu0 %5493, %v7193_v50  }
 0x2ac   : > { %v7477_v41 = vpop.permute.xlu1 %2389  ;;  %v7479_v11 = vpop.permute.xlu0 %2384 }
 0x2ad   : > { %9840 = vst [vmem:[#allocation36_spill] sm:$0xff] %v7477_v41  ;;  %2737 = vperm.xlu1 %5492, %v7173_v49   ;;  %2749 = vperm.xlu0 %5493, %v7212_v15  }
 0x2b1   : > { %2745 = vperm.xlu1 %5492, %v7181_v59   ;;  %2757 = vperm.xlu0 %5493, %v7246_v45   ;;  %v7485_v16 = vpop.permute.xlu1 %2399  ;;  %v7487_v1 = vpop.permute.xlu0 %2394 }
 0x2b2   : > { %9841 = vst [vmem:[#allocation39_spill] sm:$0xff] %v7485_v16 }
 0x2b5   : > { %2753 = vperm.xlu1 %5492, %v7210_v24   ;;  %2765 = vperm.xlu0 %5493, %v7271_v19  }
 0x2b6   : > { %v7491_v32 = vpop.permute.xlu1 %2409  ;;  %v7493_v56 = vpop.permute.xlu0 %2404 }
 0x2b7   : > { %9842 = vst [vmem:[#allocation9_spill] sm:$0xff] %v7491_v32  ;;  %v9847_v32 = vmov 3  }
 0x2b9   : > { %2761 = vperm.xlu1 %5492, %v7244_v39   ;;  %2773 = vperm.xlu0 %5493, %v7301_v20  }
 0x2ba   : > { %v7497_v23 = vpop.permute.xlu1 %2419  ;;  %v7499_v42 = vpop.permute.xlu0 %2414 }
 0x2bb   : > { %9843 = vst [vmem:[#allocation14_spill] sm:$0xff] %v7497_v23 }
 0x2bd   : > { %2769 = vperm.xlu1 %5492, %v7269_v6   ;;  %2781 = vperm.xlu0 %5493, %v7320_v9  }
 0x2c0   : > { %v7503_v14 = vpop.permute.xlu1 %2429  ;;  %v7505_v52 = vpop.permute.xlu0 %2424 }
 0x2c1   : > { %9844 = vst [vmem:[#allocation29_spill] sm:$0xff] %v7503_v14  ;;  %2777 = vperm.xlu1 %5492, %v7299_v22   ;;  %2789 = vperm.xlu0 %5493, %v7343_v53  }
 0x2c5   : > { %2785 = vperm.xlu1 %5492, %v7318_v46   ;;  %2797 = vperm.xlu0 %5493, %v7375_v37  }
 0x2c6   : > { %v7511_v28 = vpop.permute.xlu1 %2439  ;;  %v7513_v44 = vpop.permute.xlu0 %2434 }
 0x2c7   : > { %9845 = vst [vmem:[#allocation11_spill] sm:$0xff] %v7511_v28 }
 0x2c9   : > { %2793 = vperm.xlu1 %5492, %v7341_v57   ;;  %2805 = vperm.xlu0 %5493, %v7387_v12  }
 0x2ca   : > { %v7517_v23 = vpop.permute.xlu1 %2449  ;;  %v7519_v14 = vpop.permute.xlu0 %2444 }
 0x2cb   : > { %9846 = vst [vmem:[#allocation16_spill] sm:$0xff] %v7517_v23 }
 0x2cd   : > { %2801 = vperm.xlu1 %5492, %v7373_v51   ;;  %5494 = vset.pattern.permute.xlu0 %v9847_v32 }
 0x2ce   : > { %2881 = vperm.xlu0 %5494, %v7011_v5  }
 0x2cf   : > { %v7524_v16 = vpop.permute.xlu1 %2493  ;;  %v7526_v41 = vpop.permute.xlu0 %2489 }
 0x2d1   : > { %2809 = vperm.xlu1 %5492, %v7385_v61  }
 0x2d2   : > { %2893 = vperm.xlu0 %5494, %v7013_v2  }
 0x2d3   : > { %v7530_v28 = vpop.permute.xlu1 %2497  ;;  %v7532_v21 = vpop.permute.xlu0 %2501 }
 0x2d5   : > { %5495 = vset.pattern.permute.xlu1 %v9847_v32 }
 0x2d6   : > { %2885 = vperm.xlu1 %5495, %v7023_v58   ;;  %2901 = vperm.xlu0 %5494, %v7036_v7  }
 0x2d7   : > { %v7537_v23 = vpop.permute.xlu1 %2505  ;;  %v7539_v5 = vpop.permute.xlu0 %2509 }
 0x2da   : > { %2889 = vperm.xlu1 %5495, %v7003_v38   ;;  %2909 = vperm.xlu0 %5494, %v7075_v43  }
 0x2db   : > { %v7543_v29 = vpop.permute.xlu1 %2513  ;;  %v7545_v2 = vpop.permute.xlu0 %2517 }
 0x2de   : > { %2897 = vperm.xlu1 %5495, %v7038_v47   ;;  %2917 = vperm.xlu0 %5494, %v7107_v62  }
 0x2df   : > { %v7549_v32 = vpop.permute.xlu1 %2521  ;;  %v7551_v58 = vpop.permute.xlu0 %2525 }
 0x2e2   : > { %2905 = vperm.xlu1 %5495, %v7077_v0   ;;  %2925 = vperm.xlu0 %5494, %v7115_v60  }
 0x2e3   : > { %v7555_v7 = vpop.permute.xlu1 %2529  ;;  %v7557_v38 = vpop.permute.xlu0 %2533 }
 0x2e6   : > { %2913 = vperm.xlu1 %5495, %v7109_v34   ;;  %2933 = vperm.xlu0 %5494, %v7173_v49  }
 0x2e7   : > { %v7561_v43 = vpop.permute.xlu1 %2537  ;;  %v7563_v47 = vpop.permute.xlu0 %2541 }
 0x2ea   : > { %2921 = vperm.xlu1 %5495, %v7135_v13   ;;  %2941 = vperm.xlu0 %5494, %v7181_v59  }
 0x2eb   : > { %v7567_v62 = vpop.permute.xlu1 %2545  ;;  %v7569_v0 = vpop.permute.xlu0 %2549 }
 0x2ee   : > { %2929 = vperm.xlu1 %5495, %v7175_v17   ;;  %2949 = vperm.xlu0 %5494, %v7210_v24  }
 0x2ef   : > { %v7573_v60 = vpop.permute.xlu1 %2553  ;;  %v7575_v34 = vpop.permute.xlu0 %2557 }
 0x2f0   : > { %9848 = vst [vmem:[#allocation30_spill] sm:$0xff] %v7575_v34 }
 0x2f2   : > { %2937 = vperm.xlu1 %5495, %v7193_v50   ;;  %2957 = vperm.xlu0 %5494, %v7244_v39  }
 0x2f3   : > { %v7579_v49 = vpop.permute.xlu1 %2561  ;;  %v7581_v13 = vpop.permute.xlu0 %2565 }
 0x2f4   : > { %9849 = vst [vmem:[#allocation40_spill] sm:$0xff] %v7581_v13 }
 0x2f6   : > { %2945 = vperm.xlu1 %5495, %v7212_v15   ;;  %2965 = vperm.xlu0 %5494, %v7269_v6  }
 0x2f7   : > { %v7585_v59 = vpop.permute.xlu1 %2569  ;;  %v7587_v17 = vpop.permute.xlu0 %2573 }
 0x2f8   : > { %9850 = vst [vmem:[#allocation13_spill] sm:$0xff] %v7587_v17 }
 0x2fa   : > { %2953 = vperm.xlu1 %5495, %v7246_v45   ;;  %2973 = vperm.xlu0 %5494, %v7299_v22   ;;  %v7606_v22 = vld [vmem:[%s9687_s3 + $0x4] sm:$0xf] }
 0x2fb   : > { %v7591_v24 = vpop.permute.xlu1 %2577  ;;  %v7593_v50 = vpop.permute.xlu0 %2581 }
 0x2fc   : > { %9851 = vst [vmem:[#allocation42_spill] sm:$0xff] %v7593_v50  ;;  %v9855_v50 = vld [vmem:[#allocation38_spill] sm:$0xff] }
 0x2fe   : > { %2961 = vperm.xlu1 %5495, %v7271_v19   ;;  %2981 = vperm.xlu0 %5494, %v7318_v46   ;;  %v9854_v19 = vld [vmem:[#allocation37_spill] sm:$0xff] }
 0x2ff   : > { %v7597_v39 = vpop.permute.xlu1 %2585  ;;  %v7599_v15 = vpop.permute.xlu0 %2589  ;;  %v7614_v46 = vrot.slane %v7606_v22, %v9854_v19 }
 0x300   : > { %9852 = vst [vmem:[#allocation18_spill] sm:$0xff] %v7599_v15  ;;  %v7618_v15 = vrot.slane %v7606_v22, %v9855_v50 }
 0x301   : > { %v2484_v17 = vmul.f32 %v7614_v46, %v7513_v44  ;;  %v9858_v44 = vld [vmem:[#allocation41_spill] sm:$0xff] }
 0x302   : > { %2969 = vperm.xlu1 %5495, %v7301_v20   ;;  %2989 = vperm.xlu0 %5494, %v7341_v57  }
 0x303   : > { %v7608_v45 = vpop.permute.xlu1 %2593  ;;  %v7610_v6 = vpop.permute.xlu0 %2597 }
 0x304   : > { %9853 = vst [vmem:[#allocation31_spill] sm:$0xff] %v7610_v6 }
 0x306   : > { %2977 = vperm.xlu1 %5495, %v7320_v9   ;;  %2997 = vperm.xlu0 %5494, %v7373_v51   ;;  %v2486_v9 = vmul.f32 %v7614_v46, %v7519_v14 }
 0x307   : > { %v2602_v57 = vpop.permute.xlu1 %2601  ;;  %v7622_v20 = vpop.permute.xlu0 %2605 }
 0x308   : > { %9856 = vst [vmem:[#allocation15_spill] sm:$0xff] %v7622_v20  ;;  %v2648_v6 = vmul.f32 %v7618_v15, %v2602_v57  ;;  %v2621_v20 = vmul.f32 %v7618_v15, %v7524_v16  ;;  %v7640_v57 = vrot.slane %v7606_v22, %v9858_v44  ;;  %v2624_v16 = vmul.f32 %v7618_v15, %v7537_v23 }
 0x30a   : > { %v7627_v13 = vadd.f32 %v2648_v6, %v2484_v17  ;;  %2985 = vperm.xlu1 %5495, %v7343_v53   ;;  %3005 = vperm.xlu0 %5494, %v7385_v61   ;;  %v2457_v53 = vmul.f32 %v7614_v46, %v7427_v8  ;;  %v2622_v61 = vmul.f32 %v7618_v15, %v7530_v28 }
 0x30b   : > { %v2610_v50 = vpop.permute.xlu1 %2609  ;;  %v7631_v19 = vpop.permute.xlu0 %2613 }
 0x30c   : > { %9857 = vst [vmem:[#allocation17_spill] sm:$0xff] %v7631_v19  ;;  %v2650_v51 = vmul.f32 %v7618_v15, %v2610_v50  ;;  %v2653_v50 = vadd.f32 %v2621_v20, %v2457_v53  ;;  %v2626_v20 = vmul.f32 %v7618_v15, %v7543_v29 }
 0x30e   : > { %v7642_v17 = vadd.f32 %v2650_v51, %v2486_v9  ;;  %2993 = vperm.xlu1 %5495, %v7375_v37   ;;  %v2458_v9 = vmul.f32 %v7614_v46, %v7419_v27  ;;  %v2460_v37 = vmul.f32 %v7614_v46, %v7433_v18  ;;  %v2462_v27 = vmul.f32 %v7614_v46, %v7439_v63 }
 0x310   : > { %v7649_v14 = vpop.permute.xlu1 %2685  ;;  %v2690_v6 = vpop.permute.xlu0 %2689  ;;  %v2654_v28 = vadd.f32 %v2622_v61, %v2458_v9  ;;  %v2656_v34 = vadd.f32 %v2624_v16, %v2460_v37  ;;  %v2628_v16 = vmul.f32 %v7618_v15, %v7549_v32 }
 0x311   : > { %v2817_v44 = vmul.f32 %v7640_v57, %v2690_v6 }
 0x312   : > { %3001 = vperm.xlu1 %5495, %v7387_v12  }
 0x313   : > { %v7659_v8 = vadd.f32 %v2817_v44, %v2653_v50  ;;  %v2658_v50 = vadd.f32 %v2626_v20, %v2462_v27  ;;  %v2464_v44 = vmul.f32 %v7614_v46, %v7447_v4 }
 0x314   : > { %v2694_v51 = vpop.permute.xlu1 %2693  ;;  %v2702_v19 = vpop.permute.xlu0 %2701 }
 0x315   : > { %v2818_v23 = vmul.f32 %v7640_v57, %v2694_v51  ;;  %v2820_v53 = vmul.f32 %v7640_v57, %v2702_v19  ;;  %v2660_v37 = vadd.f32 %v2628_v16, %v2464_v44  ;;  %v2466_v51 = vmul.f32 %v7614_v46, %v7455_v55 }
 0x317   : > { %v7667_v12 = vadd.f32 %v2818_v23, %v2654_v28  ;;  %v7669_v6 = vadd.f32 %v2820_v53, %v2656_v34  ;;  %v2630_v34 = vmul.f32 %v7618_v15, %v7555_v7  ;;  %v2632_v53 = vmul.f32 %v7618_v15, %v7561_v43 }
 0x318   : > { %v7671_v18 = vpop.permute.xlu1 %2697  ;;  %v2710_v61 = vpop.permute.xlu0 %2709 }
 0x319   : > { %v2822_v29 = vmul.f32 %v7640_v57, %v2710_v61  ;;  %v2662_v4 = vadd.f32 %v2630_v34, %v2466_v51  ;;  %v2468_v61 = vmul.f32 %v7614_v46, %v7461_v36 }
 0x31b   : > { %v7678_v19 = vadd.f32 %v2822_v29, %v2658_v50  ;;  %v2664_v55 = vadd.f32 %v2632_v53, %v2468_v61  ;;  %v2634_v29 = vmul.f32 %v7618_v15, %v7567_v62 }
 0x31c   : > { %v7680_v9 = vpop.permute.xlu1 %2705  ;;  %v2718_v63 = vpop.permute.xlu0 %2717 }
 0x31d   : > { %v2824_v28 = vmul.f32 %v7640_v57, %v2718_v63  ;;  %v2470_v63 = vmul.f32 %v7614_v46, %v7467_v30 }
 0x31f   : > { %v7687_v32 = vadd.f32 %v2824_v28, %v2660_v37  ;;  %v2666_v36 = vadd.f32 %v2634_v29, %v2470_v63  ;;  %v2636_v28 = vmul.f32 %v7618_v15, %v7573_v60 }
 0x320   : > { %v7689_v20 = vpop.permute.xlu1 %2713  ;;  %v2726_v23 = vpop.permute.xlu0 %2725 }
 0x321   : > { %v2826_v27 = vmul.f32 %v7640_v57, %v2726_v23  ;;  %v2472_v23 = vmul.f32 %v7614_v46, %v7473_v3 }
 0x323   : > { %v7696_v7 = vadd.f32 %v2826_v27, %v2662_v4  ;;  %v2668_v30 = vadd.f32 %v2636_v28, %v2472_v23  ;;  %v2638_v27 = vmul.f32 %v7618_v15, %v7579_v49 }
 0x324   : > { %v7698_v50 = vpop.permute.xlu1 %2721  ;;  %v2734_v16 = vpop.permute.xlu0 %2733 }
 0x325   : > { %v2828_v44 = vmul.f32 %v7640_v57, %v2734_v16  ;;  %v2474_v16 = vmul.f32 %v7614_v46, %v7479_v11 }
 0x327   : > { %v7705_v43 = vadd.f32 %v2828_v44, %v2664_v55  ;;  %v2670_v3 = vadd.f32 %v2638_v27, %v2474_v16  ;;  %v2640_v44 = vmul.f32 %v7618_v15, %v7585_v59 }
 0x328   : > { %v7707_v37 = vpop.permute.xlu1 %2729  ;;  %v2742_v34 = vpop.permute.xlu0 %2741 }
 0x329   : > { %v2830_v51 = vmul.f32 %v7640_v57, %v2742_v34  ;;  %v2476_v34 = vmul.f32 %v7614_v46, %v7487_v1 }
 0x32b   : > { %v7714_v62 = vadd.f32 %v2830_v51, %v2666_v36  ;;  %v2672_v11 = vadd.f32 %v2640_v44, %v2476_v34  ;;  %v2642_v51 = vmul.f32 %v7618_v15, %v7591_v24 }
 0x32c   : > { %v7716_v4 = vpop.permute.xlu1 %2737  ;;  %v2750_v53 = vpop.permute.xlu0 %2749 }
 0x32d   : > { %v2832_v61 = vmul.f32 %v7640_v57, %v2750_v53  ;;  %v2478_v53 = vmul.f32 %v7614_v46, %v7493_v56 }
 0x32f   : > { %v7723_v60 = vadd.f32 %v2832_v61, %v2668_v30  ;;  %v2674_v1 = vadd.f32 %v2642_v51, %v2478_v53  ;;  %v2644_v61 = vmul.f32 %v7618_v15, %v7597_v39 }
 0x330   : > { %v7725_v55 = vpop.permute.xlu1 %2745  ;;  %v2758_v29 = vpop.permute.xlu0 %2757 }
 0x331   : > { %v2834_v63 = vmul.f32 %v7640_v57, %v2758_v29  ;;  %v2480_v29 = vmul.f32 %v7614_v46, %v7499_v42 }
 0x333   : > { %v7732_v49 = vadd.f32 %v2834_v63, %v2670_v3  ;;  %v2676_v56 = vadd.f32 %v2644_v61, %v2480_v29  ;;  %v2646_v63 = vmul.f32 %v7618_v15, %v7608_v45 }
 0x334   : > { %v7734_v36 = vpop.permute.xlu1 %2753  ;;  %v2766_v28 = vpop.permute.xlu0 %2765 }
 0x335   : > { %v2836_v23 = vmul.f32 %v7640_v57, %v2766_v28  ;;  %v2482_v28 = vmul.f32 %v7614_v46, %v7505_v52  ;;  %v2620_v52 = vmul.f32 %v7618_v15, %v7526_v41  ;;  %v2623_v41 = vmul.f32 %v7618_v15, %v7532_v21 }
 0x336   : > { %v2625_v21 = vmul.f32 %v7618_v15, %v7539_v5 }
 0x337   : > { %v7741_v59 = vadd.f32 %v2836_v23, %v2672_v11  ;;  %v2678_v42 = vadd.f32 %v2646_v63, %v2482_v28  ;;  %v2816_v63 = vmul.f32 %v7640_v57, %v7649_v14  ;;  %v2819_v14 = vmul.f32 %v7640_v57, %v7671_v18 }
 0x338   : > { %v7743_v30 = vpop.permute.xlu1 %2761  ;;  %v2774_v27 = vpop.permute.xlu0 %2773  ;;  %v2821_v18 = vmul.f32 %v7640_v57, %v7680_v9 }
 0x339   : > { %v2838_v16 = vmul.f32 %v7640_v57, %v2774_v27 }
 0x33b   : > { %v7750_v24 = vadd.f32 %v2838_v16, %v2674_v1 }
 0x33c   : > { %v7752_v3 = vpop.permute.xlu1 %2769  ;;  %v2782_v44 = vpop.permute.xlu0 %2781 }
 0x33d   : > { %v2840_v34 = vmul.f32 %v7640_v57, %v2782_v44 }
 0x33f   : > { %v7759_v39 = vadd.f32 %v2840_v34, %v2676_v56  ;;  %v2456_v56 = vmul.f32 %v7614_v46, %v7421_v54  ;;  %v7783_v34 = vrot.slane %v7606_v22, %v6657_v26  ;;  %v2459_v54 = vmul.f32 %v7614_v46, %v7425_v40 }
 0x340   : > { %v7761_v11 = vpop.permute.xlu1 %2777  ;;  %v2790_v51 = vpop.permute.xlu0 %2789  ;;  %v2461_v40 = vmul.f32 %v7614_v46, %v7431_v25  ;;  %v2823_v25 = vmul.f32 %v7640_v57, %v7689_v20  ;;  %v2465_v20 = vmul.f32 %v7614_v46, %v7445_v48  ;;  %v2631_v48 = vmul.f32 %v7618_v15, %v7557_v38 }
 0x341   : > { %v2842_v23 = vmul.f32 %v7640_v57, %v2790_v51  ;;  %v2652_v28 = vadd.f32 %v2620_v52, %v2456_v56 }
 0x343   : > { %v7764_v53 = vadd.f32 %v2842_v23, %v2678_v42  ;;  %v2848_v23 = vadd.f32 %v2816_v63, %v2652_v28  ;;  %v2627_v28 = vmul.f32 %v7618_v15, %v7545_v2 }
 0x344   : > { %v7766_v27 = vpop.permute.xlu1 %2785  ;;  %v2798_v1 = vpop.permute.xlu0 %2797 }
 0x345   : > { %v2844_v45 = vmul.f32 %v7640_v57, %v2798_v1  ;;  %v2655_v1 = vadd.f32 %v2623_v41, %v2459_v54  ;;  %v2657_v41 = vadd.f32 %v2625_v21, %v2461_v40  ;;  %v2463_v54 = vmul.f32 %v7614_v46, %v7437_v33 }
 0x347   : > { %v7770_v61 = vadd.f32 %v2844_v45, %v7627_v13  ;;  %v2659_v21 = vadd.f32 %v2627_v28, %v2463_v54 }
 0x348   : > { %v7774_v16 = vpop.permute.xlu1 %2793  ;;  %v2806_v29 = vpop.permute.xlu0 %2805 }
 0x349   : > { %v2846_v44 = vmul.f32 %v7640_v57, %v2806_v29 }
 0x34b   : > { %v7786_v13 = vadd.f32 %v2846_v44, %v7642_v17  ;;  %v7800_v17 = vld [vmem:[%s9688_s4 + $0x1] ss:$0 sm:$0xff]  ;;  %v2851_v44 = vadd.f32 %v2819_v14, %v2655_v1 }
 0x34c   : > { %v7790_v51 = vpop.permute.xlu1 %2801 }
 0x34d   : > { %v2882_v42 = vpop.permute.xlu0 %2881 }
 0x34e   : > { %v3012_v22 = vmul.f32 %v7783_v34, %v2882_v42 }
 0x350   : > { %v3044_v45 = vadd.f32 %v3012_v22, %v2848_v23  ;;  %v7804_v52 = vpop.permute.xlu1 %2809  ;;  %v2853_v22 = vadd.f32 %v2821_v18, %v2657_v41  ;;  %v2825_v18 = vmul.f32 %v7640_v57, %v7698_v50 }
 0x351   : > { %v2894_v29 = vpop.permute.xlu0 %2893 }
 0x352   : > { %v3081_v56 = vadd.f32 %v7800_v17, %v3044_v45  ;;  %v3015_v63 = vmul.f32 %v7783_v34, %v2894_v29  ;;  %v2629_v45 = vmul.f32 %v7618_v15, %v7551_v58 }
 0x354   : > { %v3113_v5 = vmax.f32 %v3081_v56, 0.0  ;;  %v3047_v42 = vadd.f32 %v3015_v63, %v2851_v44  ;;  %v2855_v44 = vadd.f32 %v2823_v25, %v2659_v21 }
 0x355   : > { %v2886_v23 = vpop.permute.xlu1 %2885  ;;  %v2902_v14 = vpop.permute.xlu0 %2901 }
 0x356   : > { %3161 = vst.msk [vmem:[#allocation2 + $0x10] sm:$0xff] %vm403_vm0, %v3113_v5  ;;  %v3084_v9 = vadd.f32 %v7800_v17, %v3047_v42  ;;  %v3013_v1 = vmul.f32 %v7783_v34, %v2886_v23  ;;  %v3017_v2 = vmul.f32 %v7783_v34, %v2902_v14  ;;  %v2661_v5 = vadd.f32 %v2629_v45, %v2465_v20 }
 0x357   : > { %v2467_v23 = vmul.f32 %v7614_v46, %v7453_v10 }
 0x358   : > { %v3116_v40 = vmax.f32 %v3084_v9, 0.0  ;;  %v3045_v33 = vadd.f32 %v3013_v1, %v7659_v8  ;;  %v3049_v29 = vadd.f32 %v3017_v2, %v2853_v22  ;;  %v2857_v14 = vadd.f32 %v2825_v18, %v2661_v5 }
 0x359   : > { %v2890_v56 = vpop.permute.xlu1 %2889  ;;  %v2910_v63 = vpop.permute.xlu0 %2909  ;;  %v2827_v22 = vmul.f32 %v7640_v57, %v7707_v37  ;;  %v2663_v45 = vadd.f32 %v2631_v48, %v2467_v23 }
 0x35a   : > { %3164 = vst.msk [vmem:[#allocation2 + $0x28] sm:$0xff] %vm403_vm0, %v3116_v40  ;;  %v3082_v28 = vadd.f32 %v7800_v17, %v3045_v33  ;;  %v3086_v41 = vadd.f32 %v7800_v17, %v3049_v29  ;;  %v3014_v58 = vmul.f32 %v7783_v34, %v2890_v56  ;;  %v3019_v8 = vmul.f32 %v7783_v34, %v2910_v63 }
 0x35b   : > { %v2633_v29 = vmul.f32 %v7618_v15, %v7563_v47  ;;  %v2859_v20 = vadd.f32 %v2827_v22, %v2663_v45  ;;  %v2635_v47 = vmul.f32 %v7618_v15, %v7569_v0  ;;  %v9859_v0 = vld [vmem:[#allocation4_spill] sm:$0xff] }
 0x35c   : > { %v3114_v42 = vmax.f32 %v3082_v28, 0.0  ;;  %v3118_v54 = vmax.f32 %v3086_v41, 0.0  ;;  %v3046_v50 = vadd.f32 %v3014_v58, %v7667_v12  ;;  %v3051_v25 = vadd.f32 %v3019_v8, %v2855_v44 }
 0x35d   : > { %v2898_v9 = vpop.permute.xlu1 %2897  ;;  %v2918_v1 = vpop.permute.xlu0 %2917  ;;  %v2829_v58 = vmul.f32 %v7640_v57, %v7716_v4 }
 0x35e   : > { %3162 = vst.msk [vmem:[#allocation2 + $0x18] sm:$0xff] %vm403_vm0, %v3114_v42  ;;  %3166 = vst.msk [vmem:[#allocation2 + $0x38] sm:$0xff] %vm403_vm0, %v3118_v54  ;;  %v3083_v38 = vadd.f32 %v7800_v17, %v3046_v50  ;;  %v3088_v2 = vadd.f32 %v7800_v17, %v3051_v25  ;;  %v3016_v12 = vmul.f32 %v7783_v34, %v2898_v9 }
 0x35f   : > { %v3021_v21 = vmul.f32 %v7783_v34, %v2918_v1  ;;  %v2471_v54 = vmul.f32 %v7614_v46, %v7465_v31  ;;  %v2831_v25 = vmul.f32 %v7640_v57, %v7725_v55 }
 0x360   : > { %v3115_v10 = vmax.f32 %v3083_v38, 0.0  ;;  %v3120_v40 = vmax.f32 %v3088_v2, 0.0  ;;  %v3048_v33 = vadd.f32 %v3016_v12, %v7669_v6  ;;  %v2469_v6 = vmul.f32 %v7614_v46, %v7459_v35  ;;  %v9861_v12 = vld [vmem:[#allocation30_spill] sm:$0xff] }
 0x361   : > { %v3053_v37 = vadd.f32 %v3021_v21, %v2857_v14  ;;  %v2906_v44 = vpop.permute.xlu1 %2905  ;;  %v2926_v18 = vpop.permute.xlu0 %2925  ;;  %v2667_v31 = vadd.f32 %v2635_v47, %v2471_v54  ;;  %v2637_v21 = vmul.f32 %v7618_v15, %v9861_v12  ;;  %v9867_v54 = vld [vmem:[#allocation13_spill] sm:$0xff] }
 0x362   : > { %3163 = vst.msk [vmem:[#allocation2 + $0x20] sm:$0xff] %vm403_vm0, %v3115_v10  ;;  %3168 = vst.msk [vmem:[#allocation2 + $0x48] sm:$0xff] %vm403_vm0, %v3120_v40  ;;  %v3085_v56 = vadd.f32 %v7800_v17, %v3048_v33  ;;  %v3018_v28 = vmul.f32 %v7783_v34, %v2906_v44  ;;  %v3023_v41 = vmul.f32 %v7783_v34, %v2926_v18  ;;  %v9864_v18 = vld [vmem:[#allocation28_spill] sm:$0xff] }
 0x363   : > { %v3090_v63 = vadd.f32 %v7800_v17, %v3053_v37  ;;  %v2665_v50 = vadd.f32 %v2633_v29, %v2469_v6  ;;  %v2863_v45 = vadd.f32 %v2831_v25, %v2667_v31  ;;  %v9862_v37 = vld [vmem:[#allocation32_spill] sm:$0xff]  ;;  %v2835_v31 = vmul.f32 %v7640_v57, %v7743_v30 }
 0x364   : > { %v3117_v8 = vmax.f32 %v3085_v56, 0.0  ;;  %v3050_v48 = vadd.f32 %v3018_v28, %v7678_v19  ;;  %v3055_v42 = vadd.f32 %v3023_v41, %v2859_v20  ;;  %v2473_v56 = vmul.f32 %v7614_v46, %v9864_v18  ;;  %v9865_v41 = vld [vmem:[#allocation36_spill] sm:$0xff] }
 0x365   : > { %v3122_v5 = vmax.f32 %v3090_v63, 0.0  ;;  %v2914_v23 = vpop.permute.xlu1 %2913  ;;  %v2934_v35 = vpop.permute.xlu0 %2933  ;;  %v2861_v9 = vadd.f32 %v2829_v58, %v2665_v50  ;;  %v2833_v63 = vmul.f32 %v7640_v57, %v7734_v36  ;;  %v2475_v6 = vmul.f32 %v7614_v46, %v9865_v41  ;;  %v9868_v36 = vld [vmem:[#allocation6_spill] sm:$0xff] }
 0x366   : > { %3165 = vst.msk [vmem:[#allocation2 + $0x30] sm:$0xff] %vm403_vm0, %v3117_v8  ;;  %v3087_v4 = vadd.f32 %v7800_v17, %v3050_v48  ;;  %v3092_v19 = vadd.f32 %v7800_v17, %v3055_v42  ;;  %v3020_v22 = vmul.f32 %v7783_v34, %v2914_v23  ;;  %v3025_v1 = vmul.f32 %v7783_v34, %v2934_v35  ;;  %v9866_v48 = vld [vmem:[#allocation40_spill] sm:$0xff] }
 0x367   : > { %v7869_v14 = vadd.f32 %v3122_v5, %v9859_v0  ;;  %3170 = vst.msk [vmem:[#allocation2 + $0x58] sm:$0xff] %vm403_vm0, %v3122_v5  ;;  %v2669_v5 = vadd.f32 %v2637_v21, %v2473_v56  ;;  %v2639_v42 = vmul.f32 %v7618_v15, %v9866_v48  ;;  %v2641_v50 = vmul.f32 %v7618_v15, %v9867_v54  ;;  %v9872_v21 = vld [vmem:[#allocation39_spill] sm:$0xff] }
 0x368   : > { %v3119_v55 = vmax.f32 %v3087_v4, 0.0  ;;  %v3124_v38 = vmax.f32 %v3092_v19, 0.0  ;;  %v3052_v2 = vadd.f32 %v3020_v22, %v7687_v32  ;;  %v3057_v10 = vadd.f32 %v3025_v1, %v2861_v9  ;;  %v9870_v9 = vld [vmem:[#allocation24_spill] sm:$0xff] }
 0x369   : > { %9860 = vst [vmem:[#allocation4_spill] sm:$0xff] %v7869_v14  ;;  %v2922_v40 = vpop.permute.xlu1 %2921  ;;  %v2942_v33 = vpop.permute.xlu0 %2941  ;;  %v2865_v22 = vadd.f32 %v2833_v63, %v2669_v5 }
 0x36a   : > { %3167 = vst.msk [vmem:[#allocation2 + $0x40] sm:$0xff] %vm403_vm0, %v3119_v55  ;;  %v7881_v29 = vadd.f32 %v3124_v38, %v9862_v37  ;;  %3172 = vst.msk [vmem:[#allocation2 + $0x68] sm:$0xff] %vm403_vm0, %v3124_v38  ;;  %v3089_v20 = vadd.f32 %v7800_v17, %v3052_v2  ;;  %v3022_v44 = vmul.f32 %v7783_v34, %v2922_v40 }
 0x36b   : > { %v3027_v32 = vmul.f32 %v7783_v34, %v2942_v33  ;;  %v3094_v28 = vadd.f32 %v7800_v17, %v3057_v10  ;;  %v2671_v10 = vadd.f32 %v2639_v42, %v2475_v6  ;;  %v2837_v40 = vmul.f32 %v7640_v57, %v7752_v3 }
 0x36c   : > { %9863 = vst [vmem:[#allocation30_spill] sm:$0xff] %v7881_v29  ;;  %v3121_v47 = vmax.f32 %v3089_v20, 0.0  ;;  %v3054_v58 = vadd.f32 %v3022_v44, %v7696_v7  ;;  %v9873_v20 = vld [vmem:[#allocation25_spill] sm:$0xff] }
 0x36d   : > { %v3059_v8 = vadd.f32 %v3027_v32, %v2863_v45  ;;  %v3126_v25 = vmax.f32 %v3094_v28, 0.0  ;;  %v2930_v23 = vpop.permute.xlu1 %2929  ;;  %v2950_v35 = vpop.permute.xlu0 %2949  ;;  %v2477_v45 = vmul.f32 %v7614_v46, %v9872_v21  ;;  %v9875_v32 = vld [vmem:[#allocation33_spill] sm:$0xff]  ;;  %v2867_v28 = vadd.f32 %v2835_v31, %v2671_v10  ;;  %v9884_v10 = vld [vmem:[#allocation18_spill] sm:$0xff] }
 0x36e   : > { %v7900_v0 = vadd.f32 %v3121_v47, %v9868_v36  ;;  %3169 = vst.msk [vmem:[#allocation2 + $0x50] sm:$0xff] %vm403_vm0, %v3121_v47  ;;  %v3091_v4 = vadd.f32 %v7800_v17, %v3054_v58  ;;  %v3024_v19 = vmul.f32 %v7783_v34, %v2930_v23  ;;  %v3029_v55 = vmul.f32 %v7783_v34, %v2950_v35  ;;  %v9877_v58 = vld [vmem:[#allocation42_spill] sm:$0xff] }
 0x36f   : > { %v3096_v7 = vadd.f32 %v7800_v17, %v3059_v8  ;;  %v7909_v1 = vadd.f32 %v3126_v25, %v9870_v9  ;;  %3174 = vst.msk [vmem:[#allocation2 + $0x78] sm:$0xff] %vm403_vm0, %v3126_v25  ;;  %v2673_v63 = vadd.f32 %v2641_v50, %v2477_v45  ;;  %v2643_v8 = vmul.f32 %v7618_v15, %v9877_v58  ;;  %v9878_v23 = vld [vmem:[#allocation34_spill] sm:$0xff] }
 0x370   : > { %9869 = vst [vmem:[#allocation32_spill] sm:$0xff] %v7900_v0  ;;  %v3123_v38 = vmax.f32 %v3091_v4, 0.0  ;;  %v3056_v12 = vadd.f32 %v3024_v19, %v7705_v43  ;;  %v3061_v33 = vadd.f32 %v3029_v55, %v2865_v22  ;;  %v2839_v19 = vmul.f32 %v7640_v57, %v7761_v11  ;;  %v9881_v22 = vld [vmem:[#allocation3_spill] sm:$0xff]  ;;  %v9883_v55 = vld [vmem:[#allocation14_spill] sm:$0xff] }
 0x371   : > { %9871 = vst [vmem:[#allocation28_spill] sm:$0xff] %v7909_v1  ;;  %v3128_v2 = vmax.f32 %v3096_v7, 0.0  ;;  %v2938_v30 = vpop.permute.xlu1 %2937  ;;  %v2958_v37 = vpop.permute.xlu0 %2957  ;;  %v2869_v5 = vadd.f32 %v2837_v40, %v2673_v63  ;;  %v2645_v40 = vmul.f32 %v7618_v15, %v9884_v10 }
 0x372   : > { %v7919_v44 = vadd.f32 %v3123_v38, %v9873_v20  ;;  %3171 = vst.msk [vmem:[#allocation2 + $0x60] sm:$0xff] %vm403_vm0, %v3123_v38  ;;  %v3093_v43 = vadd.f32 %v7800_v17, %v3056_v12  ;;  %v3026_v56 = vmul.f32 %v7783_v34, %v2938_v30  ;;  %v3098_v3 = vadd.f32 %v7800_v17, %v3061_v33  ;;  %v9885_v33 = vld [vmem:[#allocation31_spill] sm:$0xff] }
 0x373   : > { %v7923_v18 = vadd.f32 %v3128_v2, %v9875_v32  ;;  %3176 = vst.msk [vmem:[#allocation2 + $0x88] sm:$0xff] %vm403_vm0, %v3128_v2  ;;  %v3031_v41 = vmul.f32 %v7783_v34, %v2958_v37  ;;  %v2481_v38 = vmul.f32 %v7614_v46, %v9883_v55  ;;  %v2647_v11 = vmul.f32 %v7618_v15, %v9885_v33  ;;  %v9886_v32 = vld [vmem:[#allocation8_spill] sm:$0xff] }
 0x374   : > { %9874 = vst [vmem:[#allocation36_spill] sm:$0xff] %v7919_v44  ;;  %v3125_v6 = vmax.f32 %v3093_v43, 0.0  ;;  %v3058_v47 = vadd.f32 %v3026_v56, %v7714_v62  ;;  %v3130_v48 = vmax.f32 %v3098_v3, 0.0  ;;  %v9880_v62 = vld [vmem:[#allocation9_spill] sm:$0xff]  ;;  %v2841_v3 = vmul.f32 %v7640_v57, %v7766_v27 }
 0x375   : > { %9876 = vst [vmem:[#allocation40_spill] sm:$0xff] %v7923_v18  ;;  %v3063_v42 = vadd.f32 %v3031_v41, %v2867_v28  ;;  %v2946_v54 = vpop.permute.xlu1 %2945  ;;  %v2966_v25 = vpop.permute.xlu0 %2965  ;;  %v2479_v7 = vmul.f32 %v7614_v46, %v9880_v62  ;;  %v9888_v41 = vld [vmem:[#allocation26_spill] sm:$0xff] }
 0x376   : > { %v7934_v35 = vadd.f32 %v3125_v6, %v9878_v23  ;;  %3173 = vst.msk [vmem:[#allocation2 + $0x70] sm:$0xff] %vm403_vm0, %v3125_v6  ;;  %v3095_v50 = vadd.f32 %v7800_v17, %v3058_v47  ;;  %v3028_v36 = vmul.f32 %v7783_v34, %v2946_v54  ;;  %v3033_v4 = vmul.f32 %v7783_v34, %v2966_v25  ;;  %v9893_v62 = vld [vmem:[#allocation10_spill] sm:$0xff] }
 0x377   : > { %v7945_v31 = vadd.f32 %v3130_v48, %v9881_v22  ;;  %3178 = vst.msk [vmem:[#allocation2 + $0x98] sm:$0xff] %vm403_vm0, %v3130_v48  ;;  %v3100_v9 = vadd.f32 %v7800_v17, %v3063_v42  ;;  %v2675_v45 = vadd.f32 %v2643_v8, %v2479_v7  ;;  %v9890_v48 = vld [vmem:[#allocation29_spill] sm:$0xff]  ;;  %v2677_v54 = vadd.f32 %v2645_v40, %v2481_v38  ;;  %v9895_v38 = vld [vmem:[#allocation11_spill] sm:$0xff] }
 0x378   : > { %9879 = vst [vmem:[#allocation13_spill] sm:$0xff] %v7934_v35  ;;  %v3127_v2 = vmax.f32 %v3095_v50, 0.0  ;;  %v3060_v12 = vadd.f32 %v3028_v36, %v7723_v60  ;;  %v3065_v21 = vadd.f32 %v3033_v4, %v2869_v5  ;;  %v2483_v42 = vmul.f32 %v7614_v46, %v9890_v48  ;;  %v9891_v36 = vld [vmem:[#allocation5_spill] sm:$0xff] }
 0x379   : > { %9882 = vst [vmem:[#allocation6_spill] sm:$0xff] %v7945_v31  ;;  %v3132_v30 = vmax.f32 %v3100_v9, 0.0  ;;  %v2954_v37 = vpop.permute.xlu1 %2953  ;;  %v2974_v20 = vpop.permute.xlu0 %2973  ;;  %v2871_v28 = vadd.f32 %v2839_v19, %v2675_v45  ;;  %v2843_v25 = vmul.f32 %v7640_v57, %v7774_v16  ;;  %v2873_v9 = vadd.f32 %v2841_v3, %v2677_v54  ;;  %v9896_v45 = vld [vmem:[#allocation15_spill] sm:$0xff] }
 0x37a   : > { %v7957_v43 = vadd.f32 %v3127_v2, %v9886_v32  ;;  %3175 = vst.msk [vmem:[#allocation2 + $0x80] sm:$0xff] %vm403_vm0, %v3127_v2  ;;  %v3097_v56 = vadd.f32 %v7800_v17, %v3060_v12  ;;  %v3102_v60 = vadd.f32 %v7800_v17, %v3065_v21  ;;  %v3030_v63 = vmul.f32 %v7783_v34, %v2954_v37 }
 0x37b   : > { %v7966_v6 = vadd.f32 %v3132_v30, %v9888_v41  ;;  %3180 = vst.msk [vmem:[#allocation2 + $0xa8] sm:$0xff] %vm403_vm0, %v3132_v30  ;;  %v3035_v47 = vmul.f32 %v7783_v34, %v2974_v20  ;;  %v2679_v22 = vadd.f32 %v2647_v11, %v2483_v42  ;;  %v2485_v2 = vmul.f32 %v7614_v46, %v9895_v38  ;;  %v9897_v11 = vld [vmem:[#allocation35_spill] sm:$0xff]  ;;  %v9902_v42 = vld [vmem:[#allocation16_spill] sm:$0xff] }
 0x37c   : > { %9887 = vst [vmem:[#allocation24_spill] sm:$0xff] %v7957_v43  ;;  %v3129_v58 = vmax.f32 %v3097_v56, 0.0  ;;  %v3134_v8 = vmax.f32 %v3102_v60, 0.0  ;;  %v3062_v5 = vadd.f32 %v3030_v63, %v7732_v49  ;;  %v2649_v10 = vmul.f32 %v7618_v15, %v9896_v45  ;;  %v9900_v41 = vld [vmem:[#allocation7_spill] sm:$0xff] }
 0x37d   : > { %9889 = vst [vmem:[#allocation39_spill] sm:$0xff] %v7966_v6  ;;  %v3067_v23 = vadd.f32 %v3035_v47, %v2871_v28  ;;  %v2962_v27 = vpop.permute.xlu1 %2961  ;;  %v2982_v50 = vpop.permute.xlu0 %2981  ;;  %v2875_v40 = vadd.f32 %v2843_v25, %v2679_v22  ;;  %v2845_v3 = vmul.f32 %v7640_v57, %v7790_v51  ;;  %v2487_v54 = vmul.f32 %v7614_v46, %v9902_v42 }
 0x37e   : > { %v7976_v4 = vadd.f32 %v3129_v58, %v9891_v36  ;;  %3177 = vst.msk [vmem:[#allocation2 + $0x90] sm:$0xff] %vm403_vm0, %v3129_v58  ;;  %v7980_v7 = vadd.f32 %v3134_v8, %v9893_v62  ;;  %3182 = vst.msk [vmem:[#allocation2 + $0xb8] sm:$0xff] %vm403_vm0, %v3134_v8  ;;  %v3099_v49 = vadd.f32 %v7800_v17, %v3062_v5 }
 0x37f   : > { %v3032_v19 = vmul.f32 %v7783_v34, %v2962_v27  ;;  %v3104_v16 = vadd.f32 %v7800_v17, %v3067_v23  ;;  %v3037_v55 = vmul.f32 %v7783_v34, %v2982_v50  ;;  %v2681_v25 = vadd.f32 %v2649_v10, %v2485_v2  ;;  %v9903_v50 = vld [vmem:[#allocation27_spill] sm:$0xff] }
 0x380   : > { %9892 = vst [vmem:[#allocation25_spill] sm:$0xff] %v7976_v4  ;;  %9894 = vst [vmem:[#allocation33_spill] sm:$0xff] %v7980_v7  ;;  %v3131_v12 = vmax.f32 %v3099_v49, 0.0 }
 0x381   : > { %v3064_v21 = vadd.f32 %v3032_v19, %v7741_v59  ;;  %v3136_v33 = vmax.f32 %v3104_v16, 0.0  ;;  %v3069_v30 = vadd.f32 %v3037_v55, %v2873_v9  ;;  %v2970_v37 = vpop.permute.xlu1 %2969  ;;  %v2990_v20 = vpop.permute.xlu0 %2989  ;;  %v9899_v59 = vld [vmem:[#allocation17_spill] sm:$0xff]  ;;  %v2877_v46 = vadd.f32 %v2845_v3, %v2681_v25 }
 0x382   : > { %v7993_v32 = vadd.f32 %v3131_v12, %v9897_v11  ;;  %3179 = vst.msk [vmem:[#allocation2 + $0xa0] sm:$0xff] %vm403_vm0, %v3131_v12  ;;  %v3034_v60 = vmul.f32 %v7783_v34, %v2970_v37  ;;  %v3039_v63 = vmul.f32 %v7783_v34, %v2990_v20  ;;  %v2651_v28 = vmul.f32 %v7618_v15, %v9899_v59  ;;  %v9905_v12 = vld [vmem:[#allocation12_spill] sm:$0xff] }
 0x383   : > { %v3101_v56 = vadd.f32 %v7800_v17, %v3064_v21  ;;  %v8004_v47 = vadd.f32 %v3136_v33, %v9900_v41  ;;  %3184 = vst.msk [vmem:[#allocation2 + $0xc8] sm:$0xff] %vm403_vm0, %v3136_v33  ;;  %v3106_v58 = vadd.f32 %v7800_v17, %v3069_v30  ;;  %v2847_v15 = vmul.f32 %v7640_v57, %v7804_v52 }
 0x384   : > { %9898 = vst [vmem:[#allocation42_spill] sm:$0xff] %v7993_v32  ;;  %v3066_v5 = vadd.f32 %v3034_v60, %v7750_v24  ;;  %v3071_v48 = vadd.f32 %v3039_v63, %v2875_v40  ;;  %v2683_v19 = vadd.f32 %v2651_v28, %v2487_v54 }
 0x385   : > { %9901 = vst [vmem:[#allocation34_spill] sm:$0xff] %v8004_v47  ;;  %v3133_v8 = vmax.f32 %v3101_v56, 0.0  ;;  %v3138_v23 = vmax.f32 %v3106_v58, 0.0  ;;  %v2978_v51 = vpop.permute.xlu1 %2977  ;;  %v2998_v27 = vpop.permute.xlu0 %2997 }
 0x386   : > { %v3103_v62 = vadd.f32 %v7800_v17, %v3066_v5  ;;  %v3108_v24 = vadd.f32 %v7800_v17, %v3071_v48  ;;  %v3036_v49 = vmul.f32 %v7783_v34, %v2978_v51  ;;  %v3041_v57 = vmul.f32 %v7783_v34, %v2998_v27 }
 0x387   : > { %v8014_v36 = vadd.f32 %v3133_v8, %v9903_v50  ;;  %3181 = vst.msk [vmem:[#allocation2 + $0xb0] sm:$0xff] %vm403_vm0, %v3133_v8  ;;  %3186 = vst.msk [vmem:[#allocation2 + $0xd8] sm:$0xff] %vm403_vm0, %v3138_v23  ;;  %v2879_v16 = vadd.f32 %v2847_v15, %v2683_v19 }
 0x388   : > { %v3135_v52 = vmax.f32 %v3103_v62, 0.0  ;;  %v3140_v22 = vmax.f32 %v3108_v24, 0.0  ;;  %v3068_v9 = vadd.f32 %v3036_v49, %v7759_v39  ;;  %v3073_v55 = vadd.f32 %v3041_v57, %v2877_v46 }
 0x389   : > { %9904 = vst [vmem:[#allocation9_spill] sm:$0xff] %v8014_v36  ;;  %v2986_v38 = vpop.permute.xlu1 %2985  ;;  %v3006_v2 = vpop.permute.xlu0 %3005 }
 0x38a   : > { %v8024_v21 = vadd.f32 %v3135_v52, %v9905_v12  ;;  %3183 = vst.msk [vmem:[#allocation2 + $0xc0] sm:$0xff] %vm403_vm0, %v3135_v52  ;;  %3188 = vst.msk [vmem:[#allocation2 + $0xe8] sm:$0xff] %vm403_vm0, %v3140_v22  ;;  %v3105_v45 = vadd.f32 %v7800_v17, %v3068_v9  ;;  %v3038_v10 = vmul.f32 %v7783_v34, %v2986_v38 }
 0x38b   : > { %v3043_v40 = vmul.f32 %v7783_v34, %v3006_v2  ;;  %v3110_v33 = vadd.f32 %v7800_v17, %v3073_v55 }
 0x38c   : > { %9906 = vst [vmem:[#allocation3_spill] sm:$0xff] %v8024_v21  ;;  %v3137_v39 = vmax.f32 %v3105_v45, 0.0  ;;  %v3070_v30 = vadd.f32 %v3038_v10, %v7764_v53 }
 0x38d   : > { %v3075_v37 = vadd.f32 %v3043_v40, %v2879_v16  ;;  %v3142_v20 = vmax.f32 %v3110_v33, 0.0  ;;  %v2994_v11 = vpop.permute.xlu1 %2993 }
 0x38e   : > { %3185 = vst.msk [vmem:[#allocation2 + $0xd0] sm:$0xff] %vm403_vm0, %v3137_v39  ;;  %v3107_v56 = vadd.f32 %v7800_v17, %v3070_v30  ;;  %v3040_v63 = vmul.f32 %v7783_v34, %v2994_v11 }
 0x38f   : > { %v3112_v60 = vadd.f32 %v7800_v17, %v3075_v37  ;;  %3190 = vst.msk [vmem:[#allocation2 + $0xf8] sm:$0xff] %vm403_vm0, %v3142_v20 }
 0x390   : > { %v3139_v59 = vmax.f32 %v3107_v56, 0.0  ;;  %v3072_v3 = vadd.f32 %v3040_v63, %v7770_v61  ;;  %v5561_v61 = vmov (!%p5406_p11), -3e+38  }
 0x391   : > { %v3144_v28 = vmax.f32 %v3112_v60, 0.0  ;;  %v3002_v41 = vpop.permute.xlu1 %3001  ;;  %3196 = vst.msk [vmem:[#allocation2 + $0x10] sm:$0xff] (!%p5406_p11), %vm403_vm0, %v5561_v61  ;;  %3197 = vst.msk [vmem:[#allocation2 + $0x18] sm:$0xff] (!%p5406_p11), %vm403_vm0, %v5561_v61 }
 0x392   : > { %3187 = vst.msk [vmem:[#allocation2 + $0xe0] sm:$0xff] %vm403_vm0, %v3139_v59  ;;  %v3109_v53 = vadd.f32 %v7800_v17, %v3072_v3  ;;  %v3042_v58 = vmul.f32 %v7783_v34, %v3002_v41  ;;  %3198 = vst.msk [vmem:[#allocation2 + $0x20] sm:$0xff] (!%p5406_p11), %vm403_vm0, %v5561_v61 }
 0x393   : > { %3192 = vst.msk [vmem:[#allocation2 + $0x108] sm:$0xff] %vm403_vm0, %v3144_v28  ;;  %3199 = vst.msk [vmem:[#allocation2 + $0x28] sm:$0xff] (!%p5406_p11), %vm403_vm0, %v5561_v61 }
 0x394   : > { %v3141_v8 = vmax.f32 %v3109_v53, 0.0  ;;  %v3074_v5 = vadd.f32 %v3042_v58, %v7786_v13  ;;  %3195 = sbr.rel (%p5406_p11) target bundleno = 923 (0x39b), region = 60  ;;  %3200 = vst.msk [vmem:[#allocation2 + $0x30] sm:$0xff] (!%p5406_p11), %vm403_vm0, %v5561_v61  ;;  %3201 = vst.msk [vmem:[#allocation2 + $0x38] sm:$0xff] (!%p5406_p11), %vm403_vm0, %v5561_v61 }
 0x395   : > { %3202 = vst.msk [vmem:[#allocation2 + $0x40] sm:$0xff] (!%p5406_p11), %vm403_vm0, %v5561_v61  ;;  %3203 = vst.msk [vmem:[#allocation2 + $0x48] sm:$0xff] (!%p5406_p11), %vm403_vm0, %v5561_v61 }
 0x396   : > { %3189 = vst.msk [vmem:[#allocation2 + $0xf0] sm:$0xff] %vm403_vm0, %v3141_v8  ;;  %v3111_v48 = vadd.f32 %v7800_v17, %v3074_v5 }
 0x398   : > { %v3143_v42 = vmax.f32 %v3111_v48, 0.0 }
 0x39a   : > { %3191 = vst.msk [vmem:[#allocation2 + $0x100] sm:$0xff] %vm403_vm0, %v3143_v42 }
 0x39b PF: > { %3206 = sbr.rel (%p5407_p12) target bundleno = 930 (0x3a2), region = 64  ;;  %v5562_v34 = vmov (!%p5407_p12), -3e+38  }
 0x39c   : > { %3207 = vst.msk [vmem:[#allocation2 + $0xd0] sm:$0xff] (!%p5407_p12), %vm403_vm0, %v5562_v34  ;;  %3208 = vst.msk [vmem:[#allocation2 + $0xd8] sm:$0xff] (!%p5407_p12), %vm403_vm0, %v5562_v34 }
 0x39d   : > { %3209 = vst.msk [vmem:[#allocation2 + $0xe0] sm:$0xff] (!%p5407_p12), %vm403_vm0, %v5562_v34  ;;  %3210 = vst.msk [vmem:[#allocation2 + $0xe8] sm:$0xff] (!%p5407_p12), %vm403_vm0, %v5562_v34 }
 0x39e   : > { %3211 = vst.msk [vmem:[#allocation2 + $0xf0] sm:$0xff] (!%p5407_p12), %vm403_vm0, %v5562_v34  ;;  %3212 = vst.msk [vmem:[#allocation2 + $0xf8] sm:$0xff] (!%p5407_p12), %vm403_vm0, %v5562_v34 }
 0x39f   : > { %3213 = vst.msk [vmem:[#allocation2 + $0x100] sm:$0xff] (!%p5407_p12), %vm403_vm0, %v5562_v34  ;;  %3214 = vst.msk [vmem:[#allocation2 + $0x108] sm:$0xff] (!%p5407_p12), %vm403_vm0, %v5562_v34 }
 0x3a2 PF: > { %v9907_v13 = vmov 0   ;;  %v3217_v17 = vld [vmem:[#allocation2 + $0x10] sm:$0xff]  ;;  %v3218_v54 = vld [vmem:[#allocation2 + $0x18] sm:$0xff]  ;;  %v3249_v25 = vld [vmem:[#allocation2 + $0x20] sm:$0xff] }
 0x3a3   : > { %5497 = vset.pattern.permute.xlu1 %v9907_v13  ;;  %5496 = vset.pattern.permute.xlu0 %v9907_v13  ;;  %v3250_v15 = vld [vmem:[#allocation2 + $0x28] sm:$0xff]  ;;  %v3281_v23 = vmax.f32 %v3217_v17, %v3249_v25  ;;  %v8069_v51 = vld [vmem:[#allocation2 + $0x30] sm:$0xff]  ;;  %v8071_v27 = vld [vmem:[#allocation2 + $0x38] sm:$0xff] }
 0x3a4   : > { %v3282_v50 = vmax.f32 %v3218_v54, %v3250_v15  ;;  %v3215_v62 = vld [vmem:[#allocation2] sm:$0xff]  ;;  %v3216_v24 = vld [vmem:[#allocation2 + $0x8] sm:$0xff]  ;;  %v3283_v49 = vmax.f32 %v3249_v25, %v8069_v51  ;;  %v3284_v19 = vmax.f32 %v3250_v15, %v8071_v27 }
 0x3a5   : > { %v8075_v46 = vld [vmem:[#allocation2 + $0x40] sm:$0xff]  ;;  %v3345_v57 = vmax.f32 %v3281_v23, %v8069_v51  ;;  %v3279_v52 = vmax.f32 %v3215_v62, %v3217_v17  ;;  %v3280_v22 = vmax.f32 %v3216_v24, %v3218_v54  ;;  %v8078_v9 = vld [vmem:[#allocation2 + $0x48] sm:$0xff] }
 0x3a6   : > { %v3285_v16 = vmax.f32 %v8069_v51, %v8075_v46  ;;  %v3346_v55 = vmax.f32 %v3282_v50, %v8071_v27  ;;  %v3347_v38 = vmax.f32 %v3283_v49, %v8075_v46  ;;  %v3348_v2 = vmax.f32 %v3284_v19, %v8078_v9  ;;  %v8352_v7 = vld [vmem:[#allocation2 + $0xe8] sm:$0xff] }
 0x3a7   : > { %v3286_v12 = vmax.f32 %v8071_v27, %v8078_v9  ;;  %v3376_v45 = vrot.slane %v3345_v57, 7  ;;  %v3472_v10 = vrot.slane %v3345_v57, 1  ;;  %v3343_v40 = vmax.f32 %v3279_v52, %v3249_v25 }
 0x3a8   : > { %v3344_v33 = vmax.f32 %v3280_v22, %v3250_v15  ;;  %v3392_v39 = vrot.slane %v3346_v55, 7  ;;  %v3488_v30 = vrot.slane %v3346_v55, 1  ;;  %v3377_v37 = vrot.slane %v3347_v38, 7 }
 0x3a9   : > { %v3393_v20 = vrot.slane %v3348_v2, 7  ;;  %v3375_v11 = vrot.slane %v3343_v40, 7  ;;  %v3471_v60 = vrot.slane %v3343_v40, 1 }
 0x3aa   : > { %v3391_v56 = vrot.slane %v3344_v33, 7  ;;  %v3487_v63 = vrot.slane %v3344_v33, 1  ;;  %v3424_v28 = vsel %vm505_vm1, %v3392_v39, %v3376_v45  ;;  %v3504_v3 = vsel %vm520_vm2, %v3472_v10, %v3488_v30 }
 0x3ab   : > { %v3408_v41 = vsel %vm505_vm1, %v3376_v45, %v3392_v39  ;;  %v3520_v53 = vsel %vm520_vm2, %v3488_v30, %v3472_v10  ;;  %v3441_v8 = vsel %vm516_vm3, -3e+38, %v3424_v28  ;;  %v3537_v48 = vsel %vm531_vm4, -3e+38, %v3504_v3  ;;  %v3318_v10 = vld [vmem:[#allocation2 + $0x58] sm:$0xff] }
 0x3ac   : > { %v3423_v42 = vsel %vm505_vm1, %v3391_v56, %v3375_v11  ;;  %v3503_v61 = vsel %vm520_vm2, %v3471_v60, %v3487_v63  ;;  %v3569_v34 = vmax.f32 %v3345_v57, %v3441_v8  ;;  %v3442_v25 = vsel %vm517_vm5, -3e+38, %v3408_v41  ;;  %v3317_v57 = vld [vmem:[#allocation2 + $0x50] sm:$0xff] }
 0x3ad   : > { %v3439_v13 = vsel %vm516_vm3, -3e+38, %v3423_v42  ;;  %v3535_v17 = vsel %vm531_vm4, -3e+38, %v3503_v61  ;;  %v3538_v51 = vsel %vm532_vm6, -3e+38, %v3520_v53  ;;  %v3570_v27 = vmax.f32 %v3346_v55, %v3442_v25 }
 0x3ae   : > { %v3567_v15 = vmax.f32 %v3343_v40, %v3439_v13  ;;  %v3407_v50 = vsel %vm505_vm1, %v3375_v11, %v3391_v56  ;;  %v8113_v62 = vmax.f32 %v3569_v34, %v3537_v48  ;;  %v3519_v49 = vsel %vm520_vm2, %v3487_v63, %v3471_v60  ;;  %v8150_v34 = vld [vmem:[#allocation2 + $0x60] sm:$0xff] }
 0x3af   : > { %v3440_v24 = vsel %vm517_vm5, -3e+38, %v3407_v50  ;;  %v3409_v19 = vsel %vm505_vm1, %v3377_v37, %v3393_v20  ;;  %v8123_v22 = vmax.f32 %v3570_v27, %v3538_v51  ;;  %v3536_v55 = vsel %vm532_vm6, -3e+38, %v3519_v49 }
 0x3b0   : > { %v8121_v52 = vmax.f32 %v3567_v15, %v3535_v17  ;;  %v3568_v45 = vmax.f32 %v3344_v33, %v3440_v24  ;;  %3645 = vperm.xlu1 %5497, %v8113_v62   ;;  %v3444_v40 = vsel %vm517_vm5, -3e+38, %v3409_v19  ;;  %v3473_v39 = vrot.slane %v3347_v38, 1  ;;  %v8167_v24 = vld [vmem:[#allocation2 + $0x70] sm:$0xff] }
 0x3b1   : > { %v3489_v30 = vrot.slane %v3348_v2, 1  ;;  %v3425_v11 = vsel %vm505_vm1, %v3393_v20, %v3377_v37  ;;  %v3572_v60 = vmax.f32 %v3348_v2, %v3444_v40  ;;  %v3349_v33 = vmax.f32 %v3285_v16, %v3317_v57 }
 0x3b2   : > { %3635 = vperm.xlu0 %5496, %v8121_v52   ;;  %v8133_v56 = vmax.f32 %v3568_v45, %v3536_v55  ;;  %v3443_v63 = vsel %vm516_vm3, -3e+38, %v3425_v11  ;;  %v3350_v53 = vmax.f32 %v3286_v12, %v3318_v10  ;;  %v3287_v12 = vmax.f32 %v8075_v46, %v3317_v57  ;;  %v8169_v46 = vld [vmem:[#allocation2 + $0x78] sm:$0xff] }
 0x3b3   : > { %v3521_v28 = vsel %vm520_vm2, %v3489_v30, %v3473_v39  ;;  %v3505_v3 = vsel %vm520_vm2, %v3473_v39, %v3489_v30  ;;  %v3571_v41 = vmax.f32 %v3347_v38, %v3443_v63  ;;  %v3378_v8 = vrot.slane %v3349_v33, 7  ;;  %v8152_v38 = vld [vmem:[#allocation2 + $0x68] sm:$0xff] }
 0x3b4   : > { %v3540_v37 = vsel %vm532_vm6, -3e+38, %v3521_v28  ;;  %v3539_v20 = vsel %vm531_vm4, -3e+38, %v3505_v3  ;;  %v3474_v2 = vrot.slane %v3349_v33, 1  ;;  %3650 = vperm.xlu1 %5497, %v8123_v22   ;;  %v3394_v42 = vrot.slane %v3350_v53, 7 }
 0x3b5   : > { %v8146_v48 = vmax.f32 %v3572_v60, %v3540_v37  ;;  %v8148_v16 = vmax.f32 %v3571_v41, %v3539_v20  ;;  %v3490_v61 = vrot.slane %v3350_v53, 1  ;;  %v3288_v13 = vmax.f32 %v8078_v9, %v3318_v10 }
 0x3b6   : > { %3640 = vperm.xlu0 %5496, %v8133_v56   ;;  %v3289_v17 = vmax.f32 %v3317_v57, %v8150_v34  ;;  %v3290_v25 = vmax.f32 %v3318_v10, %v8152_v38  ;;  %v3410_v15 = vsel %vm505_vm1, %v3378_v8, %v3394_v42  ;;  %v3426_v27 = vsel %vm505_vm1, %v3394_v42, %v3378_v8 }
 0x3b7   : > { %v3522_v51 = vsel %vm520_vm2, %v3490_v61, %v3474_v2  ;;  %v3506_v50 = vsel %vm520_vm2, %v3474_v2, %v3490_v61  ;;  %v3446_v9 = vsel %vm517_vm5, -3e+38, %v3410_v15  ;;  %v3445_v19 = vsel %vm516_vm3, -3e+38, %v3426_v27 }
 0x3b8   : > { %v3542_v49 = vsel %vm532_vm6, -3e+38, %v3522_v51  ;;  %v3351_v57 = vmax.f32 %v3287_v12, %v8150_v34  ;;  %3660 = vperm.xlu1 %5497, %v8146_v48   ;;  %v3574_v55 = vmax.f32 %v3350_v53, %v3446_v9  ;;  %v3541_v45 = vsel %vm531_vm4, -3e+38, %v3506_v50 }
 0x3b9   : > { %v3573_v10 = vmax.f32 %v3349_v33, %v3445_v19  ;;  %v3352_v40 = vmax.f32 %v3288_v13, %v8152_v38  ;;  %v3353_v11 = vmax.f32 %v3289_v17, %v8167_v24  ;;  %v3354_v60 = vmax.f32 %v3290_v25, %v8169_v46 }
 0x3ba   : > { %3655 = vperm.xlu0 %5496, %v8148_v16   ;;  %v3379_v39 = vrot.slane %v3351_v57, 7  ;;  %v3475_v30 = vrot.slane %v3351_v57, 1  ;;  %v8185_v63 = vmax.f32 %v3574_v55, %v3542_v49 }
 0x3bb   : > { %v8187_v28 = vmax.f32 %v3573_v10, %v3541_v45  ;;  %v3395_v3 = vrot.slane %v3352_v40, 7  ;;  %v3491_v41 = vrot.slane %v3352_v40, 1  ;;  %v3380_v53 = vrot.slane %v3353_v11, 7 }
 0x3bc   : > { %v3396_v37 = vrot.slane %v3354_v60, 7  ;;  %v3476_v20 = vrot.slane %v3353_v11, 1  ;;  %v3492_v33 = vrot.slane %v3354_v60, 1  ;;  %3670 = vperm.xlu1 %5497, %v8185_v63  }
 0x3bd   : > { %v3411_v8 = vsel %vm505_vm1, %v3379_v39, %v3395_v3  ;;  %v3523_v2 = vsel %vm520_vm2, %v3491_v41, %v3475_v30  ;;  %v3427_v42 = vsel %vm505_vm1, %v3395_v3, %v3379_v39  ;;  %v3507_v61 = vsel %vm520_vm2, %v3475_v30, %v3491_v41  ;;  %v3323_v39 = vld [vmem:[#allocation2 + $0x80] sm:$0xff] }
 0x3be   : > { %3665 = vperm.xlu0 %5496, %v8187_v28   ;;  %v3448_v12 = vsel %vm517_vm5, -3e+38, %v3411_v8  ;;  %v3544_v13 = vsel %vm532_vm6, -3e+38, %v3523_v2  ;;  %v3447_v17 = vsel %vm516_vm3, -3e+38, %v3427_v42  ;;  %v3412_v25 = vsel %vm505_vm1, %v3380_v53, %v3396_v37 }
 0x3bf   : > { %v3576_v15 = vmax.f32 %v3352_v40, %v3448_v12  ;;  %v3543_v51 = vsel %vm531_vm4, -3e+38, %v3507_v61  ;;  %v3575_v27 = vmax.f32 %v3351_v57, %v3447_v17  ;;  %v3450_v50 = vsel %vm517_vm5, -3e+38, %v3412_v25  ;;  %v8243_v42 = vld [vmem:[#allocation2 + $0xa8] sm:$0xff] }
 0x3c0   : > { %v3524_v9 = vsel %vm520_vm2, %v3492_v33, %v3476_v20  ;;  %v3578_v49 = vmax.f32 %v3354_v60, %v3450_v50  ;;  %v3428_v19 = vsel %vm505_vm1, %v3396_v37, %v3380_v53  ;;  %v3508_v55 = vsel %vm520_vm2, %v3476_v20, %v3492_v33  ;;  %v3324_v53 = vld [vmem:[#allocation2 + $0x88] sm:$0xff]  ;;  %v8231_v37 = vld [vmem:[#allocation2 + $0x90] sm:$0xff]  ;;  %v8233_v20 = vld [vmem:[#allocation2 + $0x98] sm:$0xff] }
 0x3c1   : > { %v8217_v45 = vmax.f32 %v3576_v15, %v3544_v13  ;;  %v8219_v10 = vmax.f32 %v3575_v27, %v3543_v51  ;;  %v3546_v57 = vsel %vm532_vm6, -3e+38, %v3524_v9  ;;  %v3449_v40 = vsel %vm516_vm3, -3e+38, %v3428_v19 }
 0x3c2   : > { %v8225_v30 = vmax.f32 %v3578_v49, %v3546_v57  ;;  %v3545_v60 = vsel %vm531_vm4, -3e+38, %v3508_v55  ;;  %v3577_v3 = vmax.f32 %v3353_v11, %v3449_v40  ;;  %v3291_v41 = vmax.f32 %v8150_v34, %v8167_v24  ;;  %v8241_v11 = vld [vmem:[#allocation2 + $0xa0] sm:$0xff] }
 0x3c3   : > { %3680 = vperm.xlu1 %5497, %v8217_v45   ;;  %3675 = vperm.xlu0 %5496, %v8219_v10   ;;  %v3292_v33 = vmax.f32 %v8152_v38, %v8169_v46  ;;  %v3293_v8 = vmax.f32 %v8167_v24, %v3323_v39  ;;  %v3294_v2 = vmax.f32 %v8169_v46, %v3324_v53 }
 0x3c4   : > { %v8245_v34 = vmax.f32 %v3577_v3, %v3545_v60  ;;  %v3355_v61 = vmax.f32 %v3291_v41, %v3323_v39  ;;  %v3295_v12 = vmax.f32 %v3323_v39, %v8231_v37  ;;  %v3296_v13 = vmax.f32 %v3324_v53, %v8233_v20 }
 0x3c5   : > { %v3356_v17 = vmax.f32 %v3292_v33, %v3324_v53  ;;  %v3357_v25 = vmax.f32 %v3293_v8, %v8231_v37  ;;  %v3358_v38 = vmax.f32 %v3294_v2, %v8233_v20  ;;  %v3297_v24 = vmax.f32 %v8231_v37, %v8241_v11 }
 0x3c6   : > { %v3381_v46 = vrot.slane %v3355_v61, 7  ;;  %v3477_v15 = vrot.slane %v3355_v61, 1  ;;  %v3359_v51 = vmax.f32 %v3295_v12, %v8241_v11  ;;  %v3360_v27 = vmax.f32 %v3296_v13, %v8243_v42 }
 0x3c7   : > { %3690 = vperm.xlu1 %5497, %v8225_v30   ;;  %3685 = vperm.xlu0 %5496, %v8245_v34   ;;  %v3397_v50 = vrot.slane %v3356_v17, 7  ;;  %v3493_v9 = vrot.slane %v3356_v17, 1  ;;  %v3382_v49 = vrot.slane %v3357_v25, 7  ;;  %v3398_v19 = vrot.slane %v3358_v38, 7 }
 0x3c8   : > { %v3478_v55 = vrot.slane %v3357_v25, 1  ;;  %v3494_v57 = vrot.slane %v3358_v38, 1  ;;  %v3383_v40 = vrot.slane %v3359_v51, 7  ;;  %v3399_v39 = vrot.slane %v3360_v27, 7 }
 0x3c9   : > { %v3413_v60 = vsel %vm505_vm1, %v3381_v46, %v3397_v50  ;;  %v3525_v3 = vsel %vm520_vm2, %v3493_v9, %v3477_v15  ;;  %v3429_v41 = vsel %vm505_vm1, %v3397_v50, %v3381_v46  ;;  %v3509_v53 = vsel %vm520_vm2, %v3477_v15, %v3493_v9 }
 0x3ca   : > { %v3452_v37 = vsel %vm517_vm5, -3e+38, %v3413_v60  ;;  %v3548_v33 = vsel %vm532_vm6, -3e+38, %v3525_v3  ;;  %v3451_v8 = vsel %vm516_vm3, -3e+38, %v3429_v41  ;;  %v3414_v2 = vsel %vm505_vm1, %v3382_v49, %v3398_v19 }
 0x3cb   : > { %v3580_v12 = vmax.f32 %v3356_v17, %v3452_v37  ;;  %v3547_v13 = vsel %vm531_vm4, -3e+38, %v3509_v53  ;;  %v3579_v46 = vmax.f32 %v3355_v61, %v3451_v8  ;;  %v3454_v15 = vsel %vm517_vm5, -3e+38, %v3414_v2 }
 0x3cc   : > { %v3526_v50 = vsel %vm520_vm2, %v3494_v57, %v3478_v55  ;;  %v3582_v9 = vmax.f32 %v3358_v38, %v3454_v15  ;;  %v3430_v60 = vsel %vm505_vm1, %v3398_v19, %v3382_v49  ;;  %v3510_v3 = vsel %vm520_vm2, %v3478_v55, %v3494_v57  ;;  %v3329_v19 = vld [vmem:[#allocation2 + $0xb0] sm:$0xff] }
 0x3cd   : > { %v8283_v41 = vmax.f32 %v3580_v12, %v3548_v33  ;;  %v8285_v17 = vmax.f32 %v3579_v46, %v3547_v13  ;;  %v3550_v61 = vsel %vm532_vm6, -3e+38, %v3526_v50  ;;  %v3453_v53 = vsel %vm516_vm3, -3e+38, %v3430_v60  ;;  %v3330_v12 = vld [vmem:[#allocation2 + $0xb8] sm:$0xff] }
 0x3ce   : > { %v8291_v37 = vmax.f32 %v3582_v9, %v3550_v61  ;;  %v3549_v38 = vsel %vm531_vm4, -3e+38, %v3510_v3  ;;  %v3581_v8 = vmax.f32 %v3357_v25, %v3453_v53  ;;  %v3415_v49 = vsel %vm505_vm1, %v3383_v40, %v3399_v39  ;;  %v3331_v61 = vld [vmem:[#allocation2 + $0xc0] sm:$0xff] }
 0x3cf   : > { %3700 = vperm.xlu1 %5497, %v8283_v41   ;;  %3695 = vperm.xlu0 %5496, %v8285_v17   ;;  %v3456_v55 = vsel %vm517_vm5, -3e+38, %v3415_v49  ;;  %v3479_v57 = vrot.slane %v3359_v51, 1  ;;  %v3495_v33 = vrot.slane %v3360_v27, 1  ;;  %v3431_v2 = vsel %vm505_vm1, %v3399_v39, %v3383_v40 }
 0x3d0   : > { %v8303_v13 = vmax.f32 %v3581_v8, %v3549_v38  ;;  %v3584_v25 = vmax.f32 %v3360_v27, %v3456_v55  ;;  %v3455_v46 = vsel %vm516_vm3, -3e+38, %v3431_v2  ;;  %v3298_v15 = vmax.f32 %v8233_v20, %v8243_v42  ;;  %v8325_v2 = vld [vmem:[#allocation2 + $0xd0] sm:$0xff] }
 0x3d1   : > { %v3527_v50 = vsel %vm520_vm2, %v3495_v33, %v3479_v57  ;;  %v3511_v9 = vsel %vm520_vm2, %v3479_v57, %v3495_v33  ;;  %v3583_v60 = vmax.f32 %v3359_v51, %v3455_v46  ;;  %v3361_v3 = vmax.f32 %v3297_v24, %v3329_v19  ;;  %v3332_v57 = vld [vmem:[#allocation2 + $0xc8] sm:$0xff]  ;;  %v8327_v46 = vld [vmem:[#allocation2 + $0xd8] sm:$0xff] }
 0x3d2   : > { %v3552_v40 = vsel %vm532_vm6, -3e+38, %v3527_v50  ;;  %v3551_v27 = vsel %vm531_vm4, -3e+38, %v3511_v9  ;;  %v3362_v39 = vmax.f32 %v3298_v15, %v3330_v12  ;;  %v3299_v53 = vmax.f32 %v8241_v11, %v3329_v19 }
 0x3d3   : > { %3710 = vperm.xlu1 %5497, %v8291_v37   ;;  %3705 = vperm.xlu0 %5496, %v8303_v13   ;;  %v8320_v20 = vmax.f32 %v3584_v25, %v3552_v40  ;;  %v8322_v38 = vmax.f32 %v3583_v60, %v3551_v27  ;;  %v3384_v51 = vrot.slane %v3361_v3, 7  ;;  %v3480_v24 = vrot.slane %v3361_v3, 1  ;;  %v8339_v27 = vld [vmem:[#allocation2 + $0xe0] sm:$0xff] }
 0x3d4   : > { %v3400_v8 = vrot.slane %v3362_v39, 7  ;;  %v3496_v49 = vrot.slane %v3362_v39, 1  ;;  %v3300_v55 = vmax.f32 %v8243_v42, %v3330_v12  ;;  %v3363_v33 = vmax.f32 %v3299_v53, %v3331_v61 }
 0x3d5   : > { %v3301_v11 = vmax.f32 %v3329_v19, %v3331_v61  ;;  %v3302_v15 = vmax.f32 %v3330_v12, %v3332_v57  ;;  %v3303_v50 = vmax.f32 %v3331_v61, %v8325_v2  ;;  %v3304_v25 = vmax.f32 %v3332_v57, %v8327_v46 }
 0x3d6   : > { %v3416_v9 = vsel %vm505_vm1, %v3384_v51, %v3400_v8  ;;  %v3528_v60 = vsel %vm520_vm2, %v3496_v49, %v3480_v24  ;;  %v3432_v42 = vsel %vm505_vm1, %v3400_v8, %v3384_v51  ;;  %v3512_v40 = vsel %vm520_vm2, %v3480_v24, %v3496_v49 }
 0x3d7   : > { %3720 = vperm.xlu1 %5497, %v8320_v20   ;;  %3715 = vperm.xlu0 %5496, %v8322_v38   ;;  %v3458_v19 = vsel %vm517_vm5, -3e+38, %v3416_v9  ;;  %v3554_v12 = vsel %vm532_vm6, -3e+38, %v3528_v60  ;;  %v3457_v61 = vsel %vm516_vm3, -3e+38, %v3432_v42  ;;  %v3364_v53 = vmax.f32 %v3300_v55, %v3332_v57 }
 0x3d8   : > { %v3586_v51 = vmax.f32 %v3362_v39, %v3458_v19  ;;  %v3553_v24 = vsel %vm531_vm4, -3e+38, %v3512_v40  ;;  %v3585_v8 = vmax.f32 %v3361_v3, %v3457_v61  ;;  %v3385_v49 = vrot.slane %v3363_v33, 7 }
 0x3d9   : > { %v3401_v21 = vrot.slane %v3364_v53, 7  ;;  %v3481_v36 = vrot.slane %v3363_v33, 1  ;;  %v3497_v47 = vrot.slane %v3364_v53, 1  ;;  %v3365_v32 = vmax.f32 %v3301_v11, %v8325_v2 }
 0x3da   : > { %v8354_v9 = vmax.f32 %v3586_v51, %v3554_v12  ;;  %v8356_v60 = vmax.f32 %v3585_v8, %v3553_v24  ;;  %v3366_v42 = vmax.f32 %v3302_v15, %v8327_v46  ;;  %v3367_v39 = vmax.f32 %v3303_v50, %v8339_v27 }
 0x3db   : > { %v3417_v55 = vsel %vm505_vm1, %v3385_v49, %v3401_v21  ;;  %v3529_v3 = vsel %vm520_vm2, %v3497_v47, %v3481_v36  ;;  %v3433_v57 = vsel %vm505_vm1, %v3401_v21, %v3385_v49  ;;  %v3513_v11 = vsel %vm520_vm2, %v3481_v36, %v3497_v47 }
 0x3dc   : > { %3730 = vperm.xlu1 %5497, %v8354_v9   ;;  %3725 = vperm.xlu0 %5496, %v8356_v60   ;;  %v3460_v15 = vsel %vm517_vm5, -3e+38, %v3417_v55  ;;  %v3556_v50 = vsel %vm532_vm6, -3e+38, %v3529_v3  ;;  %v3459_v40 = vsel %vm516_vm3, -3e+38, %v3433_v57  ;;  %v3368_v19 = vmax.f32 %v3304_v25, %v8352_v7 }
 0x3dd   : > { %v3588_v12 = vmax.f32 %v3364_v53, %v3460_v15  ;;  %v3555_v21 = vsel %vm531_vm4, -3e+38, %v3513_v11  ;;  %v3587_v47 = vmax.f32 %v3363_v33, %v3459_v40  ;;  %v3386_v36 = vrot.slane %v3365_v32, 7 }
 0x3de   : > { %v3402_v61 = vrot.slane %v3366_v42, 7  ;;  %v3482_v51 = vrot.slane %v3365_v32, 1  ;;  %v3498_v24 = vrot.slane %v3366_v42, 1  ;;  %v3387_v8 = vrot.slane %v3367_v39, 7 }
 0x3df   : > { %v8379_v49 = vmax.f32 %v3588_v12, %v3556_v50  ;;  %v8381_v55 = vmax.f32 %v3587_v47, %v3555_v21  ;;  %v3403_v3 = vrot.slane %v3368_v19, 7  ;;  %v3483_v4 = vrot.slane %v3367_v39, 1 }
 0x3e0   : > { %v3418_v57 = vsel %vm505_vm1, %v3386_v36, %v3402_v61  ;;  %v3530_v25 = vsel %vm520_vm2, %v3498_v24, %v3482_v51  ;;  %v3434_v33 = vsel %vm505_vm1, %v3402_v61, %v3386_v36  ;;  %v3514_v53 = vsel %vm520_vm2, %v3482_v51, %v3498_v24  ;;  %v3337_v61 = vld [vmem:[#allocation2 + $0xf0] sm:$0xff] }
 0x3e1   : > { %3740 = vperm.xlu1 %5497, %v8379_v49   ;;  %3735 = vperm.xlu0 %5496, %v8381_v55   ;;  %v3462_v11 = vsel %vm517_vm5, -3e+38, %v3418_v57  ;;  %v3558_v15 = vsel %vm532_vm6, -3e+38, %v3530_v25  ;;  %v3461_v50 = vsel %vm516_vm3, -3e+38, %v3434_v33  ;;  %v3419_v40 = vsel %vm505_vm1, %v3387_v8, %v3403_v3 }
 0x3e2   : > { %v3590_v12 = vmax.f32 %v3366_v42, %v3462_v11  ;;  %v3557_v21 = vsel %vm531_vm4, -3e+38, %v3514_v53  ;;  %v3589_v47 = vmax.f32 %v3365_v32, %v3461_v50  ;;  %v3464_v36 = vsel %vm517_vm5, -3e+38, %v3419_v40  ;;  %v3338_v33 = vld [vmem:[#allocation2 + $0xf8] sm:$0xff] }
 0x3e3   : > { %v3499_v51 = vrot.slane %v3368_v19, 1  ;;  %v3592_v24 = vmax.f32 %v3368_v19, %v3464_v36  ;;  %v3435_v57 = vsel %vm505_vm1, %v3403_v3, %v3387_v8  ;;  %v3305_v25 = vmax.f32 %v8325_v2, %v8339_v27  ;;  %v3339_v2 = vld [vmem:[#allocation2 + $0x100] sm:$0xff] }
 0x3e4   : > { %v8409_v6 = vmax.f32 %v3590_v12, %v3558_v15  ;;  %v8411_v42 = vmax.f32 %v3589_v47, %v3557_v21  ;;  %v3463_v32 = vsel %vm516_vm3, -3e+38, %v3435_v57  ;;  %v3306_v53 = vmax.f32 %v8327_v46, %v8352_v7  ;;  %v3340_v57 = vld [vmem:[#allocation2 + $0x108] sm:$0xff] }
 0x3e5   : > { %v3531_v19 = vsel %vm520_vm2, %v3499_v51, %v3483_v4  ;;  %v3515_v8 = vsel %vm520_vm2, %v3483_v4, %v3499_v51  ;;  %v3591_v3 = vmax.f32 %v3367_v39, %v3463_v32  ;;  %v3369_v11 = vmax.f32 %v3305_v25, %v3337_v61 }
 0x3e6   : > { %3750 = vperm.xlu1 %5497, %v8409_v6   ;;  %3745 = vperm.xlu0 %5496, %v8411_v42   ;;  %v3560_v15 = vsel %vm532_vm6, -3e+38, %v3531_v19  ;;  %v3559_v50 = vsel %vm531_vm4, -3e+38, %v3515_v8  ;;  %v3370_v46 = vmax.f32 %v3306_v53, %v3338_v33  ;;  %v3307_v40 = vmax.f32 %v8339_v27, %v3337_v61 }
 0x3e7   : > { %v8428_v12 = vmax.f32 %v3592_v24, %v3560_v15  ;;  %v8430_v21 = vmax.f32 %v3591_v3, %v3559_v50  ;;  %v3388_v4 = vrot.slane %v3369_v11, 7  ;;  %v3484_v39 = vrot.slane %v3369_v11, 1  ;;  %v3341_v3 = vld [vmem:[#allocation2 + $0x110] sm:$0xff] }
 0x3e8   : > { %v3404_v47 = vrot.slane %v3370_v46, 7  ;;  %v3500_v36 = vrot.slane %v3370_v46, 1  ;;  %v3308_v51 = vmax.f32 %v8352_v7, %v3338_v33  ;;  %v3371_v25 = vmax.f32 %v3307_v40, %v3339_v2  ;;  %v3342_v7 = vld [vmem:[#allocation2 + $0x118] sm:$0xff] }
 0x3e9   : > { %v3309_v32 = vmax.f32 %v3337_v61, %v3339_v2  ;;  %v3310_v19 = vmax.f32 %v3338_v33, %v3340_v57 }
 0x3ea   : > { %3760 = vperm.xlu1 %5497, %v8428_v12   ;;  %3755 = vperm.xlu0 %5496, %v8430_v21   ;;  %v3420_v27 = vsel %vm505_vm1, %v3388_v4, %v3404_v47  ;;  %v3532_v24 = vsel %vm520_vm2, %v3500_v36, %v3484_v39  ;;  %v3436_v53 = vsel %vm505_vm1, %v3404_v47, %v3388_v4  ;;  %v3389_v8 = vrot.slane %v3371_v25, 7 }
 0x3eb   : > { %v3466_v61 = vsel %vm517_vm5, -3e+38, %v3420_v27  ;;  %v3562_v33 = vsel %vm532_vm6, -3e+38, %v3532_v24  ;;  %v3465_v2 = vsel %vm516_vm3, -3e+38, %v3436_v53  ;;  %v3516_v15 = vsel %vm520_vm2, %v3484_v39, %v3500_v36 }
 0x3ec   : > { %v3594_v50 = vmax.f32 %v3370_v46, %v3466_v61  ;;  %v3561_v40 = vsel %vm531_vm4, -3e+38, %v3516_v15  ;;  %v3593_v4 = vmax.f32 %v3369_v11, %v3465_v2  ;;  %v3372_v47 = vmax.f32 %v3308_v51, %v3340_v57 }
 0x3ed   : > { %v3485_v43 = vrot.slane %v3371_v25, 1  ;;  %v3373_v31 = vmax.f32 %v3309_v32, %v3341_v3  ;;  %v3374_v35 = vmax.f32 %v3310_v19, %v3342_v7 }
 0x3ee   : > { %v8451_v18 = vmax.f32 %v3594_v50, %v3562_v33  ;;  %v8453_v27 = vmax.f32 %v3593_v4, %v3561_v40  ;;  %v3405_v24 = vrot.slane %v3372_v47, 7  ;;  %v3501_v44 = vrot.slane %v3372_v47, 1 }
 0x3ef   : > { %v3390_v1 = vrot.slane %v3373_v31, 7  ;;  %v3406_v53 = vrot.slane %v3374_v35, 7  ;;  %v3486_v0 = vrot.slane %v3373_v31, 1  ;;  %v3502_v29 = vrot.slane %v3374_v35, 1 }
 0x3f0   : > { %3770 = vperm.xlu1 %5497, %v8451_v18   ;;  %3765 = vperm.xlu0 %5496, %v8453_v27   ;;  %v3421_v11 = vsel %vm505_vm1, %v3389_v8, %v3405_v24  ;;  %v3533_v46 = vsel %vm520_vm2, %v3501_v44, %v3485_v43  ;;  %v3437_v39 = vsel %vm505_vm1, %v3405_v24, %v3389_v8 }
 0x3f1   : > { %v3468_v36 = vsel %vm517_vm5, -3e+38, %v3421_v11  ;;  %v3564_v51 = vsel %vm532_vm6, -3e+38, %v3533_v46  ;;  %v3467_v57 = vsel %vm516_vm3, -3e+38, %v3437_v39  ;;  %v3517_v32 = vsel %vm520_vm2, %v3485_v43, %v3501_v44 }
 0x3f2   : > { %v3596_v19 = vmax.f32 %v3372_v47, %v3468_v36  ;;  %v3563_v3 = vsel %vm531_vm4, -3e+38, %v3517_v32  ;;  %v3595_v7 = vmax.f32 %v3371_v25, %v3467_v57  ;;  %v3422_v8 = vsel %vm505_vm1, %v3390_v1, %v3406_v53 }
 0x3f3   : > { %v3470_v61 = vsel %vm517_vm5, -3e+38, %v3422_v8  ;;  %v3534_v33 = vsel %vm520_vm2, %v3502_v29, %v3486_v0  ;;  %v3438_v2 = vsel %vm505_vm1, %v3406_v53, %v3390_v1  ;;  %v3518_v44 = vsel %vm520_vm2, %v3486_v0, %v3502_v29 }
 0x3f4   : > { %v8483_v43 = vmax.f32 %v3596_v19, %v3564_v51  ;;  %v8485_v15 = vmax.f32 %v3595_v7, %v3563_v3  ;;  %v3566_v25 = vsel %vm532_vm6, -3e+38, %v3534_v33  ;;  %v3598_v50 = vmax.f32 %v3374_v35, %v3470_v61 }
 0x3f5   : > { %v3469_v54 = vsel %vm516_vm3, -3e+38, %v3438_v2  ;;  %v3565_v40 = vsel %vm531_vm4, -3e+38, %v3518_v44  ;;  %v9913_v35 = vmov 1   ;;  %v9914_v53 = vmov 2  }
 0x3f6   : > { %3780 = vperm.xlu1 %5497, %v8483_v43   ;;  %3775 = vperm.xlu0 %5496, %v8485_v15   ;;  %v8495_v1 = vmax.f32 %v3598_v50, %v3566_v25  ;;  %v3597_v29 = vmax.f32 %v3373_v31, %v3469_v54 }
 0x3f8   : > { %v8497_v0 = vmax.f32 %v3597_v29, %v3565_v40 }
 0x3fa   : > { %3790 = vperm.xlu1 %5497, %v8495_v1   ;;  %3785 = vperm.xlu0 %5496, %v8497_v0  }
 0x3fe   : > { %5499 = vset.pattern.permute.xlu1 %v9913_v35  ;;  %5498 = vset.pattern.permute.xlu0 %v9913_v35 }
 0x3ff   : > { %3834 = vperm.xlu1 %5499, %v8133_v56   ;;  %3830 = vperm.xlu0 %5498, %v8121_v52  }
 0x403   : > { %3838 = vperm.xlu1 %5499, %v8113_v62   ;;  %3842 = vperm.xlu0 %5498, %v8123_v22  }
 0x407   : > { %3846 = vperm.xlu1 %5499, %v8148_v16   ;;  %3850 = vperm.xlu0 %5498, %v8146_v48  }
 0x40b   : > { %3854 = vperm.xlu1 %5499, %v8187_v28   ;;  %3858 = vperm.xlu0 %5498, %v8185_v63  }
 0x40f   : > { %3862 = vperm.xlu1 %5499, %v8219_v10   ;;  %3866 = vperm.xlu0 %5498, %v8217_v45  }
 0x413   : > { %3870 = vperm.xlu1 %5499, %v8245_v34   ;;  %3874 = vperm.xlu0 %5498, %v8225_v30  }
 0x417   : > { %3878 = vperm.xlu1 %5499, %v8285_v17   ;;  %3882 = vperm.xlu0 %5498, %v8283_v41  }
 0x41b   : > { %3886 = vperm.xlu1 %5499, %v8303_v13   ;;  %3890 = vperm.xlu0 %5498, %v8291_v37  }
 0x41f   : > { %3894 = vperm.xlu1 %5499, %v8322_v38   ;;  %3898 = vperm.xlu0 %5498, %v8320_v20  }
 0x423   : > { %3902 = vperm.xlu1 %5499, %v8356_v60   ;;  %3906 = vperm.xlu0 %5498, %v8354_v9  }
 0x427   : > { %3910 = vperm.xlu1 %5499, %v8381_v55   ;;  %3914 = vperm.xlu0 %5498, %v8379_v49  }
 0x42b   : > { %3918 = vperm.xlu1 %5499, %v8411_v42   ;;  %3922 = vperm.xlu0 %5498, %v8409_v6  }
 0x42f   : > { %3926 = vperm.xlu1 %5499, %v8430_v21   ;;  %3930 = vperm.xlu0 %5498, %v8428_v12   ;;  %v8529_v31 = vpop.permute.xlu1 %3645 }
 0x431   : > { %v8531_v59 = vpop.permute.xlu0 %3635 }
 0x433   : > { %3934 = vperm.xlu1 %5499, %v8453_v27   ;;  %3938 = vperm.xlu0 %5498, %v8451_v18   ;;  %v8535_v58 = vpop.permute.xlu1 %3650 }
 0x435   : > { %v8537_v5 = vpop.permute.xlu0 %3640 }
 0x437   : > { %3942 = vperm.xlu1 %5499, %v8485_v15   ;;  %3946 = vperm.xlu0 %5498, %v8483_v43   ;;  %v8541_v23 = vpop.permute.xlu1 %3660 }
 0x439   : > { %v8543_v4 = vpop.permute.xlu0 %3655 }
 0x43b   : > { %3950 = vperm.xlu1 %5499, %v8497_v0   ;;  %3954 = vperm.xlu0 %5498, %v8495_v1   ;;  %v8547_v47 = vpop.permute.xlu1 %3670 }
 0x43d   : > { %v8549_v24 = vpop.permute.xlu0 %3665 }
 0x43f   : > { %5500 = vset.pattern.permute.xlu1 %v9914_v53  ;;  %5501 = vset.pattern.permute.xlu0 %v9914_v53 }
 0x440   : > { %4026 = vperm.xlu1 %5500, %v8121_v52   ;;  %4030 = vperm.xlu0 %5501, %v8133_v56  }
 0x442   : > { %v8555_v11 = vpop.permute.xlu1 %3680  ;;  %v8557_v46 = vpop.permute.xlu0 %3675 }
 0x444   : > { %4034 = vperm.xlu1 %5500, %v8113_v62   ;;  %4042 = vperm.xlu0 %5501, %v8148_v16  }
 0x446   : > { %v8563_v39 = vpop.permute.xlu1 %3690  ;;  %v8565_v36 = vpop.permute.xlu0 %3685 }
 0x448   : > { %4038 = vperm.xlu1 %5500, %v8123_v22   ;;  %4050 = vperm.xlu0 %5501, %v8187_v28  }
 0x44c   : > { %4046 = vperm.xlu1 %5500, %v8146_v48   ;;  %4058 = vperm.xlu0 %5501, %v8219_v10  }
 0x44e   : > { %v8569_v51 = vpop.permute.xlu1 %3700  ;;  %v8571_v57 = vpop.permute.xlu0 %3695 }
 0x450   : > { %4054 = vperm.xlu1 %5500, %v8185_v63   ;;  %4066 = vperm.xlu0 %5501, %v8245_v34  }
 0x452   : > { %v8575_v32 = vpop.permute.xlu1 %3710  ;;  %v8577_v19 = vpop.permute.xlu0 %3705 }
 0x454   : > { %4062 = vperm.xlu1 %5500, %v8217_v45   ;;  %4074 = vperm.xlu0 %5501, %v8285_v17  }
 0x456   : > { %v8581_v3 = vpop.permute.xlu1 %3720  ;;  %v8583_v7 = vpop.permute.xlu0 %3715 }
 0x457   : > { %9915 = vst [vmem:[#allocation14_spill] sm:$0xff] %v8581_v3 }
 0x458   : > { %4070 = vperm.xlu1 %5500, %v8225_v30   ;;  %4082 = vperm.xlu0 %5501, %v8303_v13  }
 0x45b   : > { %v8587_v8 = vpop.permute.xlu1 %3730  ;;  %v8589_v61 = vpop.permute.xlu0 %3725 }
 0x45c   : > { %9916 = vst [vmem:[#allocation18_spill] sm:$0xff] %v8587_v8  ;;  %4078 = vperm.xlu1 %5500, %v8283_v41   ;;  %4090 = vperm.xlu0 %5501, %v8322_v38  }
 0x460   : > { %4086 = vperm.xlu1 %5500, %v8291_v37   ;;  %4098 = vperm.xlu0 %5501, %v8356_v60   ;;  %v8595_v33 = vpop.permute.xlu1 %3740  ;;  %v8597_v2 = vpop.permute.xlu0 %3735 }
 0x461   : > { %9917 = vst [vmem:[#allocation31_spill] sm:$0xff] %v8595_v33 }
 0x464   : > { %4094 = vperm.xlu1 %5500, %v8320_v20   ;;  %4106 = vperm.xlu0 %5501, %v8381_v55  }
 0x465   : > { %v8601_v44 = vpop.permute.xlu1 %3750  ;;  %v8603_v25 = vpop.permute.xlu0 %3745 }
 0x466   : > { %9918 = vst [vmem:[#allocation8_spill] sm:$0xff] %v8601_v44  ;;  %v9923_v44 = vmov 3  }
 0x468   : > { %4102 = vperm.xlu1 %5500, %v8354_v9   ;;  %4114 = vperm.xlu0 %5501, %v8411_v42  }
 0x469   : > { %v8607_v50 = vpop.permute.xlu1 %3760  ;;  %v8609_v54 = vpop.permute.xlu0 %3755 }
 0x46a   : > { %9919 = vst [vmem:[#allocation26_spill] sm:$0xff] %v8607_v50 }
 0x46c   : > { %4110 = vperm.xlu1 %5500, %v8379_v49   ;;  %4122 = vperm.xlu0 %5501, %v8430_v21  }
 0x46f   : > { %v8613_v40 = vpop.permute.xlu1 %3770  ;;  %v8615_v29 = vpop.permute.xlu0 %3765 }
 0x470   : > { %9920 = vst [vmem:[#allocation29_spill] sm:$0xff] %v8613_v40  ;;  %4118 = vperm.xlu1 %5500, %v8409_v6   ;;  %4130 = vperm.xlu0 %5501, %v8453_v27  }
 0x474   : > { %4126 = vperm.xlu1 %5500, %v8428_v12   ;;  %4138 = vperm.xlu0 %5501, %v8485_v15  }
 0x475   : > { %v8621_v35 = vpop.permute.xlu1 %3780  ;;  %v8623_v53 = vpop.permute.xlu0 %3775 }
 0x476   : > { %9921 = vst [vmem:[#allocation5_spill] sm:$0xff] %v8621_v35 }
 0x478   : > { %4134 = vperm.xlu1 %5500, %v8451_v18   ;;  %4146 = vperm.xlu0 %5501, %v8497_v0  }
 0x479   : > { %v8627_v50 = vpop.permute.xlu1 %3790  ;;  %v8629_v40 = vpop.permute.xlu0 %3785 }
 0x47a   : > { %9922 = vst [vmem:[#allocation10_spill] sm:$0xff] %v8627_v50 }
 0x47c   : > { %4142 = vperm.xlu1 %5500, %v8483_v43   ;;  %5502 = vset.pattern.permute.xlu0 %v9923_v44 }
 0x47d   : > { %4222 = vperm.xlu0 %5502, %v8121_v52  }
 0x47e   : > { %v8634_v33 = vpop.permute.xlu1 %3834  ;;  %v8636_v8 = vpop.permute.xlu0 %3830 }
 0x480   : > { %4150 = vperm.xlu1 %5500, %v8495_v1  }
 0x481   : > { %4234 = vperm.xlu0 %5502, %v8123_v22  }
 0x482   : > { %v8640_v35 = vpop.permute.xlu1 %3838  ;;  %v8642_v3 = vpop.permute.xlu0 %3842 }
 0x484   : > { %5503 = vset.pattern.permute.xlu1 %v9923_v44 }
 0x485   : > { %4226 = vperm.xlu1 %5503, %v8133_v56   ;;  %4242 = vperm.xlu0 %5502, %v8146_v48  }
 0x486   : > { %v8647_v50 = vpop.permute.xlu1 %3846  ;;  %v8649_v52 = vpop.permute.xlu0 %3850 }
 0x489   : > { %4230 = vperm.xlu1 %5503, %v8113_v62   ;;  %4250 = vperm.xlu0 %5502, %v8185_v63  }
 0x48a   : > { %v8653_v14 = vpop.permute.xlu1 %3854  ;;  %v8655_v22 = vpop.permute.xlu0 %3858 }
 0x48d   : > { %4238 = vperm.xlu1 %5503, %v8148_v16   ;;  %4258 = vperm.xlu0 %5502, %v8217_v45  }
 0x48e   : > { %v8659_v44 = vpop.permute.xlu1 %3862  ;;  %v8661_v56 = vpop.permute.xlu0 %3866 }
 0x491   : > { %4246 = vperm.xlu1 %5503, %v8187_v28   ;;  %4266 = vperm.xlu0 %5502, %v8225_v30  }
 0x492   : > { %v8665_v48 = vpop.permute.xlu1 %3870  ;;  %v8667_v62 = vpop.permute.xlu0 %3874 }
 0x495   : > { %4254 = vperm.xlu1 %5503, %v8219_v10   ;;  %4274 = vperm.xlu0 %5502, %v8283_v41  }
 0x496   : > { %v8671_v63 = vpop.permute.xlu1 %3878  ;;  %v8673_v16 = vpop.permute.xlu0 %3882 }
 0x499   : > { %4262 = vperm.xlu1 %5503, %v8245_v34   ;;  %4282 = vperm.xlu0 %5502, %v8291_v37  }
 0x49a   : > { %v8677_v45 = vpop.permute.xlu1 %3886  ;;  %v8679_v28 = vpop.permute.xlu0 %3890 }
 0x49d   : > { %4270 = vperm.xlu1 %5503, %v8285_v17   ;;  %4290 = vperm.xlu0 %5502, %v8320_v20  }
 0x49e   : > { %v8683_v30 = vpop.permute.xlu1 %3894  ;;  %v8685_v10 = vpop.permute.xlu0 %3898 }
 0x49f   : > { %9924 = vst [vmem:[#allocation11_spill] sm:$0xff] %v8685_v10 }
 0x4a1   : > { %4278 = vperm.xlu1 %5503, %v8303_v13   ;;  %4298 = vperm.xlu0 %5502, %v8354_v9  }
 0x4a2   : > { %v8689_v41 = vpop.permute.xlu1 %3902  ;;  %v8691_v34 = vpop.permute.xlu0 %3906 }
 0x4a3   : > { %9925 = vst [vmem:[#allocation15_spill] sm:$0xff] %v8691_v34 }
 0x4a5   : > { %4286 = vperm.xlu1 %5503, %v8322_v38   ;;  %4306 = vperm.xlu0 %5502, %v8379_v49  }
 0x4a6   : > { %v8695_v37 = vpop.permute.xlu1 %3910  ;;  %v8697_v17 = vpop.permute.xlu0 %3914 }
 0x4a7   : > { %9926 = vst [vmem:[#allocation35_spill] sm:$0xff] %v8697_v17 }
 0x4a9   : > { %4294 = vperm.xlu1 %5503, %v8356_v60   ;;  %4314 = vperm.xlu0 %5502, %v8409_v6   ;;  %v8716_v6 = vld [vmem:[%s9687_s3 + $0x8] sm:$0xf] }
 0x4aa   : > { %v8701_v20 = vpop.permute.xlu1 %3918  ;;  %v8703_v13 = vpop.permute.xlu0 %3922 }
 0x4ab   : > { %9927 = vst [vmem:[#allocation17_spill] sm:$0xff] %v8703_v13  ;;  %v9931_v13 = vld [vmem:[#allocation38_spill] sm:$0xff] }
 0x4ad   : > { %4302 = vperm.xlu1 %5503, %v8381_v55   ;;  %4322 = vperm.xlu0 %5502, %v8428_v12   ;;  %v9930_v55 = vld [vmem:[#allocation37_spill] sm:$0xff] }
 0x4ae   : > { %v8707_v9 = vpop.permute.xlu1 %3926  ;;  %v8709_v38 = vpop.permute.xlu0 %3930  ;;  %v8724_v12 = vrot.slane %v8716_v6, %v9930_v55 }
 0x4af   : > { %9928 = vst [vmem:[#allocation7_spill] sm:$0xff] %v8709_v38  ;;  %v8728_v38 = vrot.slane %v8716_v6, %v9931_v13 }
 0x4b0   : > { %v3825_v17 = vmul.f32 %v8724_v12, %v8623_v53  ;;  %v9934_v53 = vld [vmem:[#allocation41_spill] sm:$0xff] }
 0x4b1   : > { %4310 = vperm.xlu1 %5503, %v8411_v42   ;;  %4330 = vperm.xlu0 %5502, %v8451_v18  }
 0x4b2   : > { %v8718_v60 = vpop.permute.xlu1 %3934  ;;  %v8720_v49 = vpop.permute.xlu0 %3938 }
 0x4b3   : > { %9929 = vst [vmem:[#allocation16_spill] sm:$0xff] %v8720_v49 }
 0x4b5   : > { %4318 = vperm.xlu1 %5503, %v8430_v21   ;;  %4338 = vperm.xlu0 %5502, %v8483_v43   ;;  %v3827_v21 = vmul.f32 %v8724_v12, %v8629_v40 }
 0x4b6   : > { %v3943_v18 = vpop.permute.xlu1 %3942  ;;  %v8732_v42 = vpop.permute.xlu0 %3946 }
 0x4b7   : > { %9932 = vst [vmem:[#allocation27_spill] sm:$0xff] %v8732_v42  ;;  %v3989_v49 = vmul.f32 %v8728_v38, %v3943_v18  ;;  %v3962_v42 = vmul.f32 %v8728_v38, %v8634_v33  ;;  %v8750_v18 = vrot.slane %v8716_v6, %v9934_v53  ;;  %v3965_v33 = vmul.f32 %v8728_v38, %v8647_v50 }
 0x4b9   : > { %v8737_v34 = vadd.f32 %v3989_v49, %v3825_v17  ;;  %4326 = vperm.xlu1 %5503, %v8453_v27   ;;  %4346 = vperm.xlu0 %5502, %v8495_v1   ;;  %v3798_v27 = vmul.f32 %v8724_v12, %v8537_v5  ;;  %v3963_v1 = vmul.f32 %v8728_v38, %v8640_v35 }
 0x4ba   : > { %v3951_v13 = vpop.permute.xlu1 %3950  ;;  %v8741_v55 = vpop.permute.xlu0 %3954 }
 0x4bb   : > { %9933 = vst [vmem:[#allocation12_spill] sm:$0xff] %v8741_v55  ;;  %v3991_v43 = vmul.f32 %v8728_v38, %v3951_v13  ;;  %v3994_v13 = vadd.f32 %v3962_v42, %v3798_v27  ;;  %v3967_v42 = vmul.f32 %v8728_v38, %v8653_v14 }
 0x4bd   : > { %v8752_v17 = vadd.f32 %v3991_v43, %v3827_v21  ;;  %4334 = vperm.xlu1 %5503, %v8485_v15   ;;  %v3799_v21 = vmul.f32 %v8724_v12, %v8529_v31  ;;  %v3801_v15 = vmul.f32 %v8724_v12, %v8543_v4  ;;  %v3803_v31 = vmul.f32 %v8724_v12, %v8549_v24 }
 0x4bf   : > { %v8759_v40 = vpop.permute.xlu1 %4026  ;;  %v4031_v49 = vpop.permute.xlu0 %4030  ;;  %v3995_v35 = vadd.f32 %v3963_v1, %v3799_v21  ;;  %v3997_v10 = vadd.f32 %v3965_v33, %v3801_v15  ;;  %v3969_v33 = vmul.f32 %v8728_v38, %v8659_v44 }
 0x4c0   : > { %v4158_v53 = vmul.f32 %v8750_v18, %v4031_v49 }
 0x4c1   : > { %4342 = vperm.xlu1 %5503, %v8497_v0  }
 0x4c2   : > { %v8769_v5 = vadd.f32 %v4158_v53, %v3994_v13  ;;  %v3999_v13 = vadd.f32 %v3967_v42, %v3803_v31  ;;  %v3805_v53 = vmul.f32 %v8724_v12, %v8557_v46 }
 0x4c3   : > { %v4035_v43 = vpop.permute.xlu1 %4034  ;;  %v4043_v55 = vpop.permute.xlu0 %4042 }
 0x4c4   : > { %v4159_v50 = vmul.f32 %v8750_v18, %v4035_v43  ;;  %v4161_v27 = vmul.f32 %v8750_v18, %v4043_v55  ;;  %v4001_v15 = vadd.f32 %v3969_v33, %v3805_v53  ;;  %v3807_v43 = vmul.f32 %v8724_v12, %v8565_v36 }
 0x4c6   : > { %v8777_v0 = vadd.f32 %v4159_v50, %v3995_v35  ;;  %v8779_v49 = vadd.f32 %v4161_v27, %v3997_v10  ;;  %v3971_v10 = vmul.f32 %v8728_v38, %v8665_v48  ;;  %v3973_v27 = vmul.f32 %v8728_v38, %v8671_v63 }
 0x4c7   : > { %v8781_v4 = vpop.permute.xlu1 %4038  ;;  %v4051_v1 = vpop.permute.xlu0 %4050 }
 0x4c8   : > { %v4163_v14 = vmul.f32 %v8750_v18, %v4051_v1  ;;  %v4003_v46 = vadd.f32 %v3971_v10, %v3807_v43  ;;  %v3809_v1 = vmul.f32 %v8724_v12, %v8571_v57 }
 0x4ca   : > { %v8788_v55 = vadd.f32 %v4163_v14, %v3999_v13  ;;  %v4005_v36 = vadd.f32 %v3973_v27, %v3809_v1  ;;  %v3975_v14 = vmul.f32 %v8728_v38, %v8677_v45 }
 0x4cb   : > { %v8790_v21 = vpop.permute.xlu1 %4046  ;;  %v4059_v24 = vpop.permute.xlu0 %4058 }
 0x4cc   : > { %v4165_v35 = vmul.f32 %v8750_v18, %v4059_v24  ;;  %v3811_v24 = vmul.f32 %v8724_v12, %v8577_v19 }
 0x4ce   : > { %v8797_v44 = vadd.f32 %v4165_v35, %v4001_v15  ;;  %v4007_v57 = vadd.f32 %v3975_v14, %v3811_v24  ;;  %v3977_v35 = vmul.f32 %v8728_v38, %v8683_v30 }
 0x4cf   : > { %v8799_v42 = vpop.permute.xlu1 %4054  ;;  %v4067_v50 = vpop.permute.xlu0 %4066 }
 0x4d0   : > { %v4167_v31 = vmul.f32 %v8750_v18, %v4067_v50  ;;  %v3813_v50 = vmul.f32 %v8724_v12, %v8583_v7 }
 0x4d2   : > { %v8806_v48 = vadd.f32 %v4167_v31, %v4003_v46  ;;  %v4009_v19 = vadd.f32 %v3977_v35, %v3813_v50  ;;  %v3979_v31 = vmul.f32 %v8728_v38, %v8689_v41 }
 0x4d3   : > { %v8808_v13 = vpop.permute.xlu1 %4062  ;;  %v4075_v33 = vpop.permute.xlu0 %4074 }
 0x4d4   : > { %v4169_v53 = vmul.f32 %v8750_v18, %v4075_v33  ;;  %v3815_v33 = vmul.f32 %v8724_v12, %v8589_v61 }
 0x4d6   : > { %v8815_v63 = vadd.f32 %v4169_v53, %v4005_v36  ;;  %v4011_v7 = vadd.f32 %v3979_v31, %v3815_v33  ;;  %v3981_v53 = vmul.f32 %v8728_v38, %v8695_v37 }
 0x4d7   : > { %v8817_v15 = vpop.permute.xlu1 %4070  ;;  %v4083_v10 = vpop.permute.xlu0 %4082 }
 0x4d8   : > { %v4171_v43 = vmul.f32 %v8750_v18, %v4083_v10  ;;  %v3817_v10 = vmul.f32 %v8724_v12, %v8597_v2 }
 0x4da   : > { %v8824_v45 = vadd.f32 %v4171_v43, %v4007_v57  ;;  %v4013_v61 = vadd.f32 %v3981_v53, %v3817_v10  ;;  %v3983_v43 = vmul.f32 %v8728_v38, %v8701_v20 }
 0x4db   : > { %v8826_v46 = vpop.permute.xlu1 %4078  ;;  %v4091_v27 = vpop.permute.xlu0 %4090 }
 0x4dc   : > { %v4173_v1 = vmul.f32 %v8750_v18, %v4091_v27  ;;  %v3819_v27 = vmul.f32 %v8724_v12, %v8603_v25 }
 0x4de   : > { %v8833_v30 = vadd.f32 %v4173_v1, %v4009_v19  ;;  %v4015_v2 = vadd.f32 %v3983_v43, %v3819_v27  ;;  %v3985_v1 = vmul.f32 %v8728_v38, %v8707_v9 }
 0x4df   : > { %v8835_v36 = vpop.permute.xlu1 %4086  ;;  %v4099_v14 = vpop.permute.xlu0 %4098 }
 0x4e0   : > { %v4175_v24 = vmul.f32 %v8750_v18, %v4099_v14  ;;  %v3821_v14 = vmul.f32 %v8724_v12, %v8609_v54 }
 0x4e2   : > { %v8842_v41 = vadd.f32 %v4175_v24, %v4011_v7  ;;  %v4017_v25 = vadd.f32 %v3985_v1, %v3821_v14  ;;  %v3987_v24 = vmul.f32 %v8728_v38, %v8718_v60 }
 0x4e3   : > { %v8844_v57 = vpop.permute.xlu1 %4094  ;;  %v4107_v35 = vpop.permute.xlu0 %4106 }
 0x4e4   : > { %v4177_v50 = vmul.f32 %v8750_v18, %v4107_v35  ;;  %v3823_v35 = vmul.f32 %v8724_v12, %v8615_v29  ;;  %v3961_v29 = vmul.f32 %v8728_v38, %v8636_v8  ;;  %v3964_v8 = vmul.f32 %v8728_v38, %v8642_v3 }
 0x4e5   : > { %v3966_v3 = vmul.f32 %v8728_v38, %v8649_v52 }
 0x4e6   : > { %v8851_v37 = vadd.f32 %v4177_v50, %v4013_v61  ;;  %v4019_v54 = vadd.f32 %v3987_v24, %v3823_v35  ;;  %v4157_v24 = vmul.f32 %v8750_v18, %v8759_v40  ;;  %v4160_v40 = vmul.f32 %v8750_v18, %v8781_v4 }
 0x4e7   : > { %v8853_v19 = vpop.permute.xlu1 %4102  ;;  %v4115_v31 = vpop.permute.xlu0 %4114  ;;  %v4162_v4 = vmul.f32 %v8750_v18, %v8790_v21 }
 0x4e8   : > { %v4179_v33 = vmul.f32 %v8750_v18, %v4115_v31 }
 0x4ea   : > { %v8860_v20 = vadd.f32 %v4179_v33, %v4015_v2 }
 0x4eb   : > { %v8862_v7 = vpop.permute.xlu1 %4110  ;;  %v4123_v53 = vpop.permute.xlu0 %4122 }
 0x4ec   : > { %v4181_v10 = vmul.f32 %v8750_v18, %v4123_v53 }
 0x4ee   : > { %v8869_v9 = vadd.f32 %v4181_v10, %v4017_v25  ;;  %v3797_v25 = vmul.f32 %v8724_v12, %v8531_v59  ;;  %v8893_v10 = vrot.slane %v8716_v6, %v6657_v26  ;;  %v3800_v59 = vmul.f32 %v8724_v12, %v8535_v58 }
 0x4ef   : > { %v8871_v61 = vpop.permute.xlu1 %4118  ;;  %v4131_v43 = vpop.permute.xlu0 %4130  ;;  %v3802_v58 = vmul.f32 %v8724_v12, %v8541_v23  ;;  %v4164_v23 = vmul.f32 %v8750_v18, %v8799_v42  ;;  %v3806_v42 = vmul.f32 %v8724_v12, %v8555_v11  ;;  %v3972_v11 = vmul.f32 %v8728_v38, %v8667_v62 }
 0x4f0   : > { %v4183_v50 = vmul.f32 %v8750_v18, %v4131_v43  ;;  %v3993_v35 = vadd.f32 %v3961_v29, %v3797_v25 }
 0x4f2   : > { %v8874_v27 = vadd.f32 %v4183_v50, %v4019_v54  ;;  %v4189_v50 = vadd.f32 %v4157_v24, %v3993_v35  ;;  %v3968_v35 = vmul.f32 %v8728_v38, %v8655_v22 }
 0x4f3   : > { %v8876_v31 = vpop.permute.xlu1 %4126  ;;  %v4139_v2 = vpop.permute.xlu0 %4138 }
 0x4f4   : > { %v4185_v60 = vmul.f32 %v8750_v18, %v4139_v2  ;;  %v3996_v2 = vadd.f32 %v3964_v8, %v3800_v59  ;;  %v3998_v8 = vadd.f32 %v3966_v3, %v3802_v58  ;;  %v3804_v59 = vmul.f32 %v8724_v12, %v8547_v47 }
 0x4f6   : > { %v8880_v1 = vadd.f32 %v4185_v60, %v8737_v34  ;;  %v4000_v3 = vadd.f32 %v3968_v35, %v3804_v59 }
 0x4f7   : > { %v8884_v33 = vpop.permute.xlu1 %4134  ;;  %v4147_v14 = vpop.permute.xlu0 %4146 }
 0x4f8   : > { %v4187_v53 = vmul.f32 %v8750_v18, %v4147_v14 }
 0x4fa   : > { %v8896_v34 = vadd.f32 %v4187_v53, %v8752_v17  ;;  %v8910_v17 = vld [vmem:[%s9688_s4 + $0x2] ss:$0 sm:$0xff]  ;;  %v4192_v53 = vadd.f32 %v4160_v40, %v3996_v2 }
 0x4fb   : > { %v8900_v43 = vpop.permute.xlu1 %4142 }
 0x4fc   : > { %v4223_v54 = vpop.permute.xlu0 %4222 }
 0x4fd   : > { %v4353_v6 = vmul.f32 %v8893_v10, %v4223_v54 }
 0x4ff   : > { %v4385_v60 = vadd.f32 %v4353_v6, %v4189_v50  ;;  %v8914_v29 = vpop.permute.xlu1 %4150  ;;  %v4194_v6 = vadd.f32 %v4162_v4, %v3998_v8  ;;  %v4166_v4 = vmul.f32 %v8750_v18, %v8808_v13 }
 0x500   : > { %v4235_v14 = vpop.permute.xlu0 %4234 }
 0x501   : > { %v4422_v25 = vadd.f32 %v8910_v17, %v4385_v60  ;;  %v4356_v24 = vmul.f32 %v8893_v10, %v4235_v14  ;;  %v3970_v60 = vmul.f32 %v8728_v38, %v8661_v56 }
 0x503   : > { %v4454_v52 = vmax.f32 %v4422_v25, 0.0  ;;  %v4388_v54 = vadd.f32 %v4356_v24, %v4192_v53  ;;  %v4196_v53 = vadd.f32 %v4164_v23, %v4000_v3 }
 0x504   : > { %v4227_v50 = vpop.permute.xlu1 %4226  ;;  %v4243_v40 = vpop.permute.xlu0 %4242 }
 0x505   : > { %4502 = vst.msk [vmem:[#allocation2 + $0x10] sm:$0xff] %vm403_vm0, %v4454_v52  ;;  %v4425_v21 = vadd.f32 %v8910_v17, %v4388_v54  ;;  %v4354_v2 = vmul.f32 %v8893_v10, %v4227_v50  ;;  %v4358_v22 = vmul.f32 %v8893_v10, %v4243_v40  ;;  %v4002_v52 = vadd.f32 %v3970_v60, %v3806_v42 }
 0x506   : > { %v3808_v50 = vmul.f32 %v8724_v12, %v8563_v39 }
 0x507   : > { %v4457_v58 = vmax.f32 %v4425_v21, 0.0  ;;  %v4386_v47 = vadd.f32 %v4354_v2, %v8769_v5  ;;  %v4390_v14 = vadd.f32 %v4358_v22, %v4194_v6  ;;  %v4198_v40 = vadd.f32 %v4166_v4, %v4002_v52 }
 0x508   : > { %v4231_v25 = vpop.permute.xlu1 %4230  ;;  %v4251_v24 = vpop.permute.xlu0 %4250  ;;  %v4168_v6 = vmul.f32 %v8750_v18, %v8817_v15  ;;  %v4004_v60 = vadd.f32 %v3972_v11, %v3808_v50 }
 0x509   : > { %4505 = vst.msk [vmem:[#allocation2 + $0x28] sm:$0xff] %vm403_vm0, %v4457_v58  ;;  %v4423_v35 = vadd.f32 %v8910_v17, %v4386_v47  ;;  %v4427_v8 = vadd.f32 %v8910_v17, %v4390_v14  ;;  %v4355_v56 = vmul.f32 %v8893_v10, %v4231_v25  ;;  %v4360_v5 = vmul.f32 %v8893_v10, %v4251_v24 }
 0x50a   : > { %v3974_v14 = vmul.f32 %v8728_v38, %v8673_v16  ;;  %v4200_v42 = vadd.f32 %v4168_v6, %v4004_v60  ;;  %v3976_v16 = vmul.f32 %v8728_v38, %v8679_v28  ;;  %v9935_v28 = vld [vmem:[#allocation4_spill] sm:$0xff] }
 0x50b   : > { %v4455_v54 = vmax.f32 %v4423_v35, 0.0  ;;  %v4459_v59 = vmax.f32 %v4427_v8, 0.0  ;;  %v4387_v13 = vadd.f32 %v4355_v56, %v8777_v0  ;;  %v4392_v23 = vadd.f32 %v4360_v5, %v4196_v53 }
 0x50c   : > { %v4239_v21 = vpop.permute.xlu1 %4238  ;;  %v4259_v2 = vpop.permute.xlu0 %4258  ;;  %v4170_v56 = vmul.f32 %v8750_v18, %v8826_v46 }
 0x50d   : > { %4503 = vst.msk [vmem:[#allocation2 + $0x18] sm:$0xff] %vm403_vm0, %v4455_v54  ;;  %4507 = vst.msk [vmem:[#allocation2 + $0x38] sm:$0xff] %vm403_vm0, %v4459_v59  ;;  %v4424_v62 = vadd.f32 %v8910_v17, %v4387_v13  ;;  %v4429_v22 = vadd.f32 %v8910_v17, %v4392_v23  ;;  %v4357_v0 = vmul.f32 %v8893_v10, %v4239_v21 }
 0x50e   : > { %v4362_v3 = vmul.f32 %v8893_v10, %v4259_v2  ;;  %v3812_v59 = vmul.f32 %v8724_v12, %v8575_v32  ;;  %v4172_v23 = vmul.f32 %v8750_v18, %v8835_v36 }
 0x50f   : > { %v4456_v39 = vmax.f32 %v4424_v62, 0.0  ;;  %v4461_v58 = vmax.f32 %v4429_v22, 0.0  ;;  %v4389_v47 = vadd.f32 %v4357_v0, %v8779_v49  ;;  %v3810_v49 = vmul.f32 %v8724_v12, %v8569_v51  ;;  %v9936_v0 = vld [vmem:[#allocation11_spill] sm:$0xff] }
 0x510   : > { %v4394_v15 = vadd.f32 %v4362_v3, %v4198_v40  ;;  %v4247_v53 = vpop.permute.xlu1 %4246  ;;  %v4267_v4 = vpop.permute.xlu0 %4266  ;;  %v4008_v32 = vadd.f32 %v3976_v16, %v3812_v59  ;;  %v3978_v3 = vmul.f32 %v8728_v38, %v9936_v0  ;;  %v9941_v59 = vld [vmem:[#allocation35_spill] sm:$0xff] }
 0x511   : > { %4504 = vst.msk [vmem:[#allocation2 + $0x20] sm:$0xff] %vm403_vm0, %v4456_v39  ;;  %4509 = vst.msk [vmem:[#allocation2 + $0x48] sm:$0xff] %vm403_vm0, %v4461_v58  ;;  %v4426_v25 = vadd.f32 %v8910_v17, %v4389_v47  ;;  %v4359_v35 = vmul.f32 %v8893_v10, %v4247_v53  ;;  %v4364_v8 = vmul.f32 %v8893_v10, %v4267_v4  ;;  %v9938_v4 = vld [vmem:[#allocation14_spill] sm:$0xff] }
 0x512   : > { %v4431_v24 = vadd.f32 %v8910_v17, %v4394_v15  ;;  %v4006_v13 = vadd.f32 %v3974_v14, %v3810_v49  ;;  %v4204_v60 = vadd.f32 %v4172_v23, %v4008_v32  ;;  %v9937_v15 = vld [vmem:[#allocation30_spill] sm:$0xff]  ;;  %v4176_v32 = vmul.f32 %v8750_v18, %v8853_v19 }
 0x513   : > { %v4458_v5 = vmax.f32 %v4426_v25, 0.0  ;;  %v4391_v11 = vadd.f32 %v4359_v35, %v8788_v55  ;;  %v4396_v54 = vadd.f32 %v4364_v8, %v4200_v42  ;;  %v3814_v25 = vmul.f32 %v8724_v12, %v9938_v4  ;;  %v9939_v8 = vld [vmem:[#allocation18_spill] sm:$0xff] }
 0x514   : > { %v4463_v52 = vmax.f32 %v4431_v24, 0.0  ;;  %v4255_v50 = vpop.permute.xlu1 %4254  ;;  %v4275_v51 = vpop.permute.xlu0 %4274  ;;  %v4202_v21 = vadd.f32 %v4170_v56, %v4006_v13  ;;  %v4174_v24 = vmul.f32 %v8750_v18, %v8844_v57  ;;  %v3816_v49 = vmul.f32 %v8724_v12, %v9939_v8  ;;  %v9942_v57 = vld [vmem:[#allocation32_spill] sm:$0xff] }
 0x515   : > { %4506 = vst.msk [vmem:[#allocation2 + $0x30] sm:$0xff] %vm403_vm0, %v4458_v5  ;;  %v4428_v46 = vadd.f32 %v8910_v17, %v4391_v11  ;;  %v4433_v55 = vadd.f32 %v8910_v17, %v4396_v54  ;;  %v4361_v6 = vmul.f32 %v8893_v10, %v4255_v50  ;;  %v4366_v2 = vmul.f32 %v8893_v10, %v4275_v51  ;;  %v9940_v11 = vld [vmem:[#allocation15_spill] sm:$0xff] }
 0x516   : > { %v8979_v40 = vadd.f32 %v4463_v52, %v9935_v28  ;;  %4511 = vst.msk [vmem:[#allocation2 + $0x58] sm:$0xff] %vm403_vm0, %v4463_v52  ;;  %v4010_v52 = vadd.f32 %v3978_v3, %v3814_v25  ;;  %v3980_v54 = vmul.f32 %v8728_v38, %v9940_v11  ;;  %v3982_v13 = vmul.f32 %v8728_v38, %v9941_v59  ;;  %v9944_v3 = vld [vmem:[#allocation31_spill] sm:$0xff] }
 0x517   : > { %v4460_v36 = vmax.f32 %v4428_v46, 0.0  ;;  %v4465_v62 = vmax.f32 %v4433_v55, 0.0  ;;  %v4393_v22 = vadd.f32 %v4361_v6, %v8797_v44  ;;  %v4398_v39 = vadd.f32 %v4366_v2, %v4202_v21  ;;  %v9943_v21 = vld [vmem:[#allocation28_spill] sm:$0xff] }
 0x518   : > { %v4263_v58 = vpop.permute.xlu1 %4262  ;;  %v4283_v47 = vpop.permute.xlu0 %4282  ;;  %v4206_v6 = vadd.f32 %v4174_v24, %v4010_v52 }
 0x519   : > { %4508 = vst.msk [vmem:[#allocation2 + $0x40] sm:$0xff] %vm403_vm0, %v4460_v36  ;;  %v8991_v14 = vadd.f32 %v4465_v62, %v9937_v15  ;;  %4513 = vst.msk [vmem:[#allocation2 + $0x68] sm:$0xff] %vm403_vm0, %v4465_v62  ;;  %v4430_v42 = vadd.f32 %v8910_v17, %v4393_v22  ;;  %v4363_v53 = vmul.f32 %v8893_v10, %v4263_v58 }
 0x51a   : > { %v4368_v44 = vmul.f32 %v8893_v10, %v4283_v47  ;;  %v4435_v35 = vadd.f32 %v8910_v17, %v4398_v39  ;;  %v4012_v39 = vadd.f32 %v3980_v54, %v3816_v49  ;;  %v4178_v58 = vmul.f32 %v8750_v18, %v8862_v7 }
 0x51b   : > { %v4462_v16 = vmax.f32 %v4430_v42, 0.0  ;;  %v4395_v56 = vadd.f32 %v4363_v53, %v8806_v48  ;;  %v9945_v42 = vld [vmem:[#allocation36_spill] sm:$0xff] }
 0x51c   : > { %v4400_v5 = vadd.f32 %v4368_v44, %v4204_v60  ;;  %v4467_v23 = vmax.f32 %v4435_v35, 0.0  ;;  %v4271_v50 = vpop.permute.xlu1 %4270  ;;  %v4291_v51 = vpop.permute.xlu0 %4290  ;;  %v3818_v60 = vmul.f32 %v8724_v12, %v9944_v3  ;;  %v9946_v44 = vld [vmem:[#allocation40_spill] sm:$0xff]  ;;  %v4208_v35 = vadd.f32 %v4176_v32, %v4012_v39  ;;  %v9952_v39 = vld [vmem:[#allocation7_spill] sm:$0xff] }
 0x51d   : > { %v9010_v28 = vadd.f32 %v4462_v16, %v9942_v57  ;;  %4510 = vst.msk [vmem:[#allocation2 + $0x50] sm:$0xff] %vm403_vm0, %v4462_v16  ;;  %v4432_v46 = vadd.f32 %v8910_v17, %v4395_v56  ;;  %v4365_v55 = vmul.f32 %v8893_v10, %v4271_v50  ;;  %v4370_v36 = vmul.f32 %v8893_v10, %v4291_v51  ;;  %v9947_v56 = vld [vmem:[#allocation17_spill] sm:$0xff] }
 0x51e   : > { %v4437_v48 = vadd.f32 %v8910_v17, %v4400_v5  ;;  %v9019_v2 = vadd.f32 %v4467_v23, %v9943_v21  ;;  %4515 = vst.msk [vmem:[#allocation2 + $0x78] sm:$0xff] %vm403_vm0, %v4467_v23  ;;  %v4014_v24 = vadd.f32 %v3982_v13, %v3818_v60  ;;  %v3984_v5 = vmul.f32 %v8728_v38, %v9947_v56  ;;  %v9948_v50 = vld [vmem:[#allocation13_spill] sm:$0xff] }
 0x51f   : > { %v4464_v62 = vmax.f32 %v4432_v46, 0.0  ;;  %v4397_v0 = vadd.f32 %v4365_v55, %v8815_v63  ;;  %v4402_v47 = vadd.f32 %v4370_v36, %v4206_v6  ;;  %v4180_v55 = vmul.f32 %v8750_v18, %v8871_v61  ;;  %v9950_v6 = vld [vmem:[#allocation6_spill] sm:$0xff] }
 0x520   : > { %v4469_v22 = vmax.f32 %v4437_v48, 0.0  ;;  %v4279_v19 = vpop.permute.xlu1 %4278  ;;  %v4299_v15 = vpop.permute.xlu0 %4298  ;;  %v4210_v52 = vadd.f32 %v4178_v58, %v4014_v24  ;;  %v9951_v36 = vld [vmem:[#allocation26_spill] sm:$0xff]  ;;  %v3986_v58 = vmul.f32 %v8728_v38, %v9952_v39 }
 0x521   : > { %v9029_v53 = vadd.f32 %v4464_v62, %v9945_v42  ;;  %4512 = vst.msk [vmem:[#allocation2 + $0x60] sm:$0xff] %vm403_vm0, %v4464_v62  ;;  %v4434_v63 = vadd.f32 %v8910_v17, %v4397_v0  ;;  %v4367_v25 = vmul.f32 %v8893_v10, %v4279_v19  ;;  %v4439_v7 = vadd.f32 %v8910_v17, %v4402_v47  ;;  %v9953_v47 = vld [vmem:[#allocation16_spill] sm:$0xff] }
 0x522   : > { %v9033_v4 = vadd.f32 %v4469_v22, %v9946_v44  ;;  %4517 = vst.msk [vmem:[#allocation2 + $0x88] sm:$0xff] %vm403_vm0, %v4469_v22  ;;  %v4372_v8 = vmul.f32 %v8893_v10, %v4299_v15  ;;  %v3822_v62 = vmul.f32 %v8724_v12, %v9951_v36  ;;  %v3988_v61 = vmul.f32 %v8728_v38, %v9953_v47  ;;  %v9954_v44 = vld [vmem:[#allocation24_spill] sm:$0xff] }
 0x523   : > { %v4466_v49 = vmax.f32 %v4434_v63, 0.0  ;;  %v4399_v16 = vadd.f32 %v4367_v25, %v8824_v45  ;;  %v4471_v11 = vmax.f32 %v4439_v7, 0.0  ;;  %v9949_v45 = vld [vmem:[#allocation8_spill] sm:$0xff]  ;;  %v4182_v7 = vmul.f32 %v8750_v18, %v8876_v31 }
 0x524   : > { %v4404_v54 = vadd.f32 %v4372_v8, %v4208_v35  ;;  %v4287_v59 = vpop.permute.xlu1 %4286  ;;  %v4307_v23 = vpop.permute.xlu0 %4306  ;;  %v3820_v48 = vmul.f32 %v8724_v12, %v9949_v45  ;;  %v9955_v8 = vld [vmem:[#allocation39_spill] sm:$0xff]  ;;  %v9959_v45 = vld [vmem:[#allocation33_spill] sm:$0xff] }
 0x525   : > { %v9044_v51 = vadd.f32 %v4466_v49, %v9948_v50  ;;  %4514 = vst.msk [vmem:[#allocation2 + $0x70] sm:$0xff] %vm403_vm0, %v4466_v49  ;;  %v4436_v13 = vadd.f32 %v8910_v17, %v4399_v16  ;;  %v4369_v57 = vmul.f32 %v8893_v10, %v4287_v59  ;;  %v4374_v46 = vmul.f32 %v8893_v10, %v4307_v23 }
 0x526   : > { %v9055_v32 = vadd.f32 %v4471_v11, %v9950_v6  ;;  %4519 = vst.msk [vmem:[#allocation2 + $0x98] sm:$0xff] %vm403_vm0, %v4471_v11  ;;  %v4441_v21 = vadd.f32 %v8910_v17, %v4404_v54  ;;  %v4016_v60 = vadd.f32 %v3984_v5, %v3820_v48  ;;  %v9956_v11 = vld [vmem:[#allocation29_spill] sm:$0xff]  ;;  %v4018_v59 = vadd.f32 %v3986_v58, %v3822_v62 }
 0x527   : > { %v4468_v22 = vmax.f32 %v4436_v13, 0.0  ;;  %v4401_v0 = vadd.f32 %v4369_v57, %v8833_v30  ;;  %v4406_v3 = vadd.f32 %v4374_v46, %v4210_v52  ;;  %v3824_v54 = vmul.f32 %v8724_v12, %v9956_v11  ;;  %v9957_v57 = vld [vmem:[#allocation25_spill] sm:$0xff] }
 0x528   : > { %v4473_v19 = vmax.f32 %v4441_v21, 0.0  ;;  %v4295_v15 = vpop.permute.xlu1 %4294  ;;  %v4315_v42 = vpop.permute.xlu0 %4314  ;;  %v4212_v35 = vadd.f32 %v4180_v55, %v4016_v60  ;;  %v4184_v23 = vmul.f32 %v8750_v18, %v8884_v33  ;;  %v4214_v21 = vadd.f32 %v4182_v7, %v4018_v59  ;;  %v9961_v62 = vld [vmem:[#allocation5_spill] sm:$0xff]  ;;  %v9962_v60 = vld [vmem:[#allocation27_spill] sm:$0xff] }
 0x529   : > { %v9067_v63 = vadd.f32 %v4468_v22, %v9954_v44  ;;  %4516 = vst.msk [vmem:[#allocation2 + $0x80] sm:$0xff] %vm403_vm0, %v4468_v22  ;;  %v4438_v25 = vadd.f32 %v8910_v17, %v4401_v0  ;;  %v4443_v30 = vadd.f32 %v8910_v17, %v4406_v3  ;;  %v4371_v24 = vmul.f32 %v8893_v10, %v4295_v15 }
 0x52a   : > { %v9076_v49 = vadd.f32 %v4473_v19, %v9955_v8  ;;  %4521 = vst.msk [vmem:[#allocation2 + $0xa8] sm:$0xff] %vm403_vm0, %v4473_v19  ;;  %v4376_v16 = vmul.f32 %v8893_v10, %v4315_v42  ;;  %v4020_v6 = vadd.f32 %v3988_v61, %v3824_v54  ;;  %v3826_v22 = vmul.f32 %v8724_v12, %v9961_v62  ;;  %v9963_v61 = vld [vmem:[#allocation42_spill] sm:$0xff] }
 0x52b   : > { %v4470_v56 = vmax.f32 %v4438_v25, 0.0  ;;  %v4475_v5 = vmax.f32 %v4443_v30, 0.0  ;;  %v4403_v52 = vadd.f32 %v4371_v24, %v8842_v41  ;;  %v3990_v39 = vmul.f32 %v8728_v38, %v9962_v60  ;;  %v9966_v8 = vld [vmem:[#allocation34_spill] sm:$0xff] }
 0x52c   : > { %v4408_v50 = vadd.f32 %v4376_v16, %v4212_v35  ;;  %v4303_v31 = vpop.permute.xlu1 %4302  ;;  %v4323_v13 = vpop.permute.xlu0 %4322  ;;  %v4216_v58 = vadd.f32 %v4184_v23, %v4020_v6  ;;  %v4186_v7 = vmul.f32 %v8750_v18, %v8900_v43  ;;  %v9968_v54 = vld [vmem:[#allocation10_spill] sm:$0xff] }
 0x52d   : > { %v9086_v46 = vadd.f32 %v4470_v56, %v9957_v57  ;;  %4518 = vst.msk [vmem:[#allocation2 + $0x90] sm:$0xff] %vm403_vm0, %v4470_v56  ;;  %v9090_v48 = vadd.f32 %v4475_v5, %v9959_v45  ;;  %4523 = vst.msk [vmem:[#allocation2 + $0xb8] sm:$0xff] %vm403_vm0, %v4475_v5  ;;  %v4440_v41 = vadd.f32 %v8910_v17, %v4403_v52 }
 0x52e   : > { %v4373_v55 = vmul.f32 %v8893_v10, %v4303_v31  ;;  %v4445_v33 = vadd.f32 %v8910_v17, %v4408_v50  ;;  %v4378_v36 = vmul.f32 %v8893_v10, %v4323_v13  ;;  %v3828_v59 = vmul.f32 %v8724_v12, %v9968_v54  ;;  %v9969_v13 = vld [vmem:[#allocation9_spill] sm:$0xff] }
 0x52f   : > { %9958 = vst [vmem:[#allocation4_spill] sm:$0xff] %v9086_v46  ;;  %9960 = vst [vmem:[#allocation11_spill] sm:$0xff] %v9090_v48  ;;  %v4472_v0 = vmax.f32 %v4440_v41, 0.0  ;;  %v4022_v23 = vadd.f32 %v3990_v39, %v3826_v22 }
 0x530   : > { %v4405_v3 = vadd.f32 %v4373_v55, %v8851_v37  ;;  %v4477_v47 = vmax.f32 %v4445_v33, 0.0  ;;  %v4410_v19 = vadd.f32 %v4378_v36, %v4214_v21  ;;  %v4311_v15 = vpop.permute.xlu1 %4310  ;;  %v4331_v42 = vpop.permute.xlu0 %4330  ;;  %v9965_v37 = vld [vmem:[#allocation12_spill] sm:$0xff] }
 0x531   : > { %v9103_v44 = vadd.f32 %v4472_v0, %v9963_v61  ;;  %4520 = vst.msk [vmem:[#allocation2 + $0xa0] sm:$0xff] %vm403_vm0, %v4472_v0  ;;  %v4375_v30 = vmul.f32 %v8893_v10, %v4311_v15  ;;  %v4380_v24 = vmul.f32 %v8893_v10, %v4331_v42  ;;  %v3992_v35 = vmul.f32 %v8728_v38, %v9965_v37  ;;  %v9971_v0 = vld [vmem:[#allocation3_spill] sm:$0xff] }
 0x532   : > { %v4442_v25 = vadd.f32 %v8910_v17, %v4405_v3  ;;  %v9114_v16 = vadd.f32 %v4477_v47, %v9966_v8  ;;  %4525 = vst.msk [vmem:[#allocation2 + $0xc8] sm:$0xff] %vm403_vm0, %v4477_v47  ;;  %v4447_v56 = vadd.f32 %v8910_v17, %v4410_v19  ;;  %v4188_v38 = vmul.f32 %v8750_v18, %v8914_v29 }
 0x533   : > { %9964 = vst [vmem:[#allocation30_spill] sm:$0xff] %v9103_v44  ;;  %v4407_v52 = vadd.f32 %v4375_v30, %v8860_v20  ;;  %v4412_v11 = vadd.f32 %v4380_v24, %v4216_v58  ;;  %v4024_v55 = vadd.f32 %v3992_v35, %v3828_v59  ;;  %v4218_v12 = vadd.f32 %v4186_v7, %v4022_v23 }
 0x534   : > { %9967 = vst [vmem:[#allocation14_spill] sm:$0xff] %v9114_v16  ;;  %v4474_v5 = vmax.f32 %v4442_v25, 0.0  ;;  %v4479_v50 = vmax.f32 %v4447_v56, 0.0  ;;  %v4319_v43 = vpop.permute.xlu1 %4318  ;;  %v4339_v31 = vpop.permute.xlu0 %4338 }
 0x535   : > { %v4444_v45 = vadd.f32 %v8910_v17, %v4407_v52  ;;  %v4449_v20 = vadd.f32 %v8910_v17, %v4412_v11  ;;  %v4377_v41 = vmul.f32 %v8893_v10, %v4319_v43  ;;  %v4382_v18 = vmul.f32 %v8893_v10, %v4339_v31 }
 0x536   : > { %v9124_v57 = vadd.f32 %v4474_v5, %v9969_v13  ;;  %4522 = vst.msk [vmem:[#allocation2 + $0xb0] sm:$0xff] %vm403_vm0, %v4474_v5  ;;  %4527 = vst.msk [vmem:[#allocation2 + $0xd8] sm:$0xff] %vm403_vm0, %v4479_v50  ;;  %v4220_v33 = vadd.f32 %v4188_v38, %v4024_v55 }
 0x537   : > { %v4476_v29 = vmax.f32 %v4444_v45, 0.0  ;;  %v4481_v6 = vmax.f32 %v4449_v20, 0.0  ;;  %v4409_v21 = vadd.f32 %v4377_v41, %v8869_v9  ;;  %v4414_v36 = vadd.f32 %v4382_v18, %v4218_v12 }
 0x538   : > { %9970 = vst [vmem:[#allocation18_spill] sm:$0xff] %v9124_v57  ;;  %v4327_v62 = vpop.permute.xlu1 %4326  ;;  %v4347_v22 = vpop.permute.xlu0 %4346 }
 0x539   : > { %v9134_v3 = vadd.f32 %v4476_v29, %v9971_v0  ;;  %4524 = vst.msk [vmem:[#allocation2 + $0xc0] sm:$0xff] %vm403_vm0, %v4476_v29  ;;  %4529 = vst.msk [vmem:[#allocation2 + $0xe8] sm:$0xff] %vm403_vm0, %v4481_v6  ;;  %v4446_v60 = vadd.f32 %v8910_v17, %v4409_v21  ;;  %v4379_v39 = vmul.f32 %v8893_v10, %v4327_v62 }
 0x53a   : > { %v4384_v58 = vmul.f32 %v8893_v10, %v4347_v22  ;;  %v4451_v47 = vadd.f32 %v8910_v17, %v4414_v36 }
 0x53b   : > { %9972 = vst [vmem:[#allocation15_spill] sm:$0xff] %v9134_v3  ;;  %v4478_v9 = vmax.f32 %v4446_v60, 0.0  ;;  %v4411_v19 = vadd.f32 %v4379_v39, %v8874_v27 }
 0x53c   : > { %v4416_v15 = vadd.f32 %v4384_v58, %v4220_v33  ;;  %v4483_v42 = vmax.f32 %v4451_v47, 0.0  ;;  %v4335_v61 = vpop.permute.xlu1 %4334 }
 0x53d   : > { %4526 = vst.msk [vmem:[#allocation2 + $0xd0] sm:$0xff] %vm403_vm0, %v4478_v9  ;;  %v4448_v25 = vadd.f32 %v8910_v17, %v4411_v19  ;;  %v4381_v24 = vmul.f32 %v8893_v10, %v4335_v61 }
 0x53e   : > { %v4453_v30 = vadd.f32 %v8910_v17, %v4416_v15  ;;  %4531 = vst.msk [vmem:[#allocation2 + $0xf8] sm:$0xff] %vm403_vm0, %v4483_v42 }
 0x53f   : > { %v4480_v37 = vmax.f32 %v4448_v25, 0.0  ;;  %v4413_v7 = vadd.f32 %v4381_v24, %v8880_v1  ;;  %v5563_v1 = vmov (!%p5406_p11), -3e+38  }
 0x540   : > { %v4485_v35 = vmax.f32 %v4453_v30, 0.0  ;;  %v4343_v8 = vpop.permute.xlu1 %4342  ;;  %4537 = vst.msk [vmem:[#allocation2 + $0x10] sm:$0xff] (!%p5406_p11), %vm403_vm0, %v5563_v1  ;;  %4538 = vst.msk [vmem:[#allocation2 + $0x18] sm:$0xff] (!%p5406_p11), %vm403_vm0, %v5563_v1 }
 0x541   : > { %4528 = vst.msk [vmem:[#allocation2 + $0xe0] sm:$0xff] %vm403_vm0, %v4480_v37  ;;  %v4450_v27 = vadd.f32 %v8910_v17, %v4413_v7  ;;  %v4383_v56 = vmul.f32 %v8893_v10, %v4343_v8  ;;  %4539 = vst.msk [vmem:[#allocation2 + $0x20] sm:$0xff] (!%p5406_p11), %vm403_vm0, %v5563_v1 }
 0x542   : > { %4533 = vst.msk [vmem:[#allocation2 + $0x108] sm:$0xff] %vm403_vm0, %v4485_v35  ;;  %4540 = vst.msk [vmem:[#allocation2 + $0x28] sm:$0xff] (!%p5406_p11), %vm403_vm0, %v5563_v1 }
 0x543   : > { %v4482_v5 = vmax.f32 %v4450_v27, 0.0  ;;  %v4415_v52 = vadd.f32 %v4383_v56, %v8896_v34  ;;  %4536 = sbr.rel (%p5406_p11) target bundleno = 1354 (0x54a), region = 68  ;;  %4541 = vst.msk [vmem:[#allocation2 + $0x30] sm:$0xff] (!%p5406_p11), %vm403_vm0, %v5563_v1  ;;  %4542 = vst.msk [vmem:[#allocation2 + $0x38] sm:$0xff] (!%p5406_p11), %vm403_vm0, %v5563_v1 }
 0x544   : > { %4543 = vst.msk [vmem:[#allocation2 + $0x40] sm:$0xff] (!%p5406_p11), %vm403_vm0, %v5563_v1  ;;  %4544 = vst.msk [vmem:[#allocation2 + $0x48] sm:$0xff] (!%p5406_p11), %vm403_vm0, %v5563_v1 }
 0x545   : > { %4530 = vst.msk [vmem:[#allocation2 + $0xf0] sm:$0xff] %vm403_vm0, %v4482_v5  ;;  %v4452_v11 = vadd.f32 %v8910_v17, %v4415_v52 }
 0x547   : > { %v4484_v54 = vmax.f32 %v4452_v11, 0.0 }
 0x549   : > { %4532 = vst.msk [vmem:[#allocation2 + $0x100] sm:$0xff] %vm403_vm0, %v4484_v54 }
 0x54a PF: > { %4547 = sbr.rel (%p5407_p12) target bundleno = 1361 (0x551), region = 72  ;;  %v5564_v10 = vmov (!%p5407_p12), -3e+38  }
 0x54b   : > { %4548 = vst.msk [vmem:[#allocation2 + $0xd0] sm:$0xff] (!%p5407_p12), %vm403_vm0, %v5564_v10  ;;  %4549 = vst.msk [vmem:[#allocation2 + $0xd8] sm:$0xff] (!%p5407_p12), %vm403_vm0, %v5564_v10 }
 0x54c   : > { %4550 = vst.msk [vmem:[#allocation2 + $0xe0] sm:$0xff] (!%p5407_p12), %vm403_vm0, %v5564_v10  ;;  %4551 = vst.msk [vmem:[#allocation2 + $0xe8] sm:$0xff] (!%p5407_p12), %vm403_vm0, %v5564_v10 }
 0x54d   : > { %4552 = vst.msk [vmem:[#allocation2 + $0xf0] sm:$0xff] (!%p5407_p12), %vm403_vm0, %v5564_v10  ;;  %4553 = vst.msk [vmem:[#allocation2 + $0xf8] sm:$0xff] (!%p5407_p12), %vm403_vm0, %v5564_v10 }
 0x54e   : > { %4554 = vst.msk [vmem:[#allocation2 + $0x100] sm:$0xff] (!%p5407_p12), %vm403_vm0, %v5564_v10  ;;  %4555 = vst.msk [vmem:[#allocation2 + $0x108] sm:$0xff] (!%p5407_p12), %vm403_vm0, %v5564_v10 }
 0x551 PF: > { %v9973_v34 = vmov 0   ;;  %v4558_v17 = vld [vmem:[#allocation2 + $0x50] sm:$0xff]  ;;  %v4559_v59 = vld [vmem:[#allocation2 + $0x58] sm:$0xff]  ;;  %v4574_v23 = vld [vmem:[#allocation2 + $0x60] sm:$0xff]  ;;  %v9979_v37 = vmov 1   ;;  %v9980_v56 = vmov 2  }
 0x552   : > { %5505 = vset.pattern.permute.xlu1 %v9973_v34  ;;  %5504 = vset.pattern.permute.xlu0 %v9973_v34  ;;  %v4575_v38 = vld [vmem:[#allocation2 + $0x68] sm:$0xff]  ;;  %v4590_v50 = vmax.f32 %v4558_v17, %v4574_v23  ;;  %v9179_v43 = vld [vmem:[#allocation2 + $0x70] sm:$0xff]  ;;  %v9181_v31 = vld [vmem:[#allocation2 + $0x78] sm:$0xff]  ;;  %v9981_v52 = vmov 3  }
 0x553   : > { %v4591_v13 = vmax.f32 %v4559_v59, %v4575_v38  ;;  %v4556_v45 = vld [vmem:[#allocation2 + $0x40] sm:$0xff]  ;;  %v4557_v20 = vld [vmem:[#allocation2 + $0x48] sm:$0xff]  ;;  %v4592_v41 = vmax.f32 %v4574_v23, %v9179_v43  ;;  %v4593_v55 = vmax.f32 %v4575_v38, %v9181_v31 }
 0x554   : > { %v9185_v12 = vld [vmem:[#allocation2 + $0x80] sm:$0xff]  ;;  %v4622_v18 = vmax.f32 %v4590_v50, %v9179_v43  ;;  %v4588_v29 = vmax.f32 %v4556_v45, %v4558_v17  ;;  %v4589_v6 = vmax.f32 %v4557_v20, %v4559_v59  ;;  %v9188_v21 = vld [vmem:[#allocation2 + $0x88] sm:$0xff] }
 0x555   : > { %v4594_v33 = vmax.f32 %v9179_v43, %v9185_v12  ;;  %v4623_v36 = vmax.f32 %v4591_v13, %v9181_v31  ;;  %v4624_v62 = vmax.f32 %v4592_v41, %v9185_v12  ;;  %v4625_v22 = vmax.f32 %v4593_v55, %v9188_v21 }
 0x556   : > { %v4595_v0 = vmax.f32 %v9181_v31, %v9188_v21  ;;  %v4637_v60 = vrot.slane %v4622_v18, 7  ;;  %v4685_v39 = vrot.slane %v4622_v18, 1  ;;  %v4620_v58 = vmax.f32 %v4588_v29, %v4574_v23 }
 0x557   : > { %v4621_v47 = vmax.f32 %v4589_v6, %v4575_v38  ;;  %v4645_v9 = vrot.slane %v4623_v36, 7  ;;  %v4693_v19 = vrot.slane %v4623_v36, 1  ;;  %v4638_v15 = vrot.slane %v4624_v62, 7 }
 0x558   : > { %v4646_v42 = vrot.slane %v4625_v22, 7  ;;  %v4636_v61 = vrot.slane %v4620_v58, 7  ;;  %v4684_v30 = vrot.slane %v4620_v58, 1 }
 0x559   : > { %v4644_v25 = vrot.slane %v4621_v47, 7  ;;  %v4692_v24 = vrot.slane %v4621_v47, 1  ;;  %v4661_v35 = vsel %vm505_vm1, %v4645_v9, %v4637_v60  ;;  %v4701_v7 = vsel %vm520_vm2, %v4685_v39, %v4693_v19 }
 0x55a   : > { %v4653_v8 = vsel %vm505_vm1, %v4637_v60, %v4645_v9  ;;  %v4709_v27 = vsel %vm520_vm2, %v4693_v19, %v4685_v39  ;;  %v4670_v5 = vsel %vm516_vm3, -3e+38, %v4661_v35  ;;  %v4718_v11 = vsel %vm531_vm4, -3e+38, %v4701_v7  ;;  %v4611_v39 = vld [vmem:[#allocation2 + $0x98] sm:$0xff] }
 0x55b   : > { %v4660_v54 = vsel %vm505_vm1, %v4644_v25, %v4636_v61  ;;  %v4700_v1 = vsel %vm520_vm2, %v4684_v30, %v4692_v24  ;;  %v4734_v10 = vmax.f32 %v4622_v18, %v4670_v5  ;;  %v4671_v23 = vsel %vm517_vm5, -3e+38, %v4653_v8  ;;  %v4610_v18 = vld [vmem:[#allocation2 + $0x90] sm:$0xff] }
 0x55c   : > { %v4668_v34 = vsel %vm516_vm3, -3e+38, %v4660_v54  ;;  %v4716_v17 = vsel %vm531_vm4, -3e+38, %v4700_v1  ;;  %v4719_v43 = vsel %vm532_vm6, -3e+38, %v4709_v27  ;;  %v4735_v31 = vmax.f32 %v4623_v36, %v4671_v23 }
 0x55d   : > { %v4732_v38 = vmax.f32 %v4620_v58, %v4668_v34  ;;  %v4652_v13 = vsel %vm505_vm1, %v4636_v61, %v4644_v25  ;;  %v9223_v45 = vmax.f32 %v4734_v10, %v4718_v11  ;;  %v4708_v41 = vsel %vm520_vm2, %v4692_v24, %v4684_v30  ;;  %v9260_v10 = vld [vmem:[#allocation2 + $0xa0] sm:$0xff] }
 0x55e   : > { %v4669_v20 = vsel %vm517_vm5, -3e+38, %v4652_v13  ;;  %v4654_v55 = vsel %vm505_vm1, %v4638_v15, %v4646_v42  ;;  %v9233_v6 = vmax.f32 %v4735_v31, %v4719_v43  ;;  %v4717_v36 = vsel %vm532_vm6, -3e+38, %v4708_v41 }
 0x55f   : > { %v9231_v29 = vmax.f32 %v4732_v38, %v4716_v17  ;;  %v4733_v60 = vmax.f32 %v4621_v47, %v4669_v20  ;;  %4778 = vperm.xlu1 %5505, %v9223_v45   ;;  %v4673_v58 = vsel %vm517_vm5, -3e+38, %v4654_v55  ;;  %v4686_v9 = vrot.slane %v4624_v62, 1  ;;  %v9277_v20 = vld [vmem:[#allocation2 + $0xb0] sm:$0xff] }
 0x560   : > { %v4694_v19 = vrot.slane %v4625_v22, 1  ;;  %v4662_v61 = vsel %vm505_vm1, %v4646_v42, %v4638_v15  ;;  %v4737_v30 = vmax.f32 %v4625_v22, %v4673_v58  ;;  %v4626_v47 = vmax.f32 %v4594_v33, %v4610_v18 }
 0x561   : > { %4768 = vperm.xlu0 %5504, %v9231_v29   ;;  %v9243_v25 = vmax.f32 %v4733_v60, %v4717_v36  ;;  %v4672_v24 = vsel %vm516_vm3, -3e+38, %v4662_v61  ;;  %v4627_v27 = vmax.f32 %v4595_v0, %v4611_v39  ;;  %v4596_v0 = vmax.f32 %v9185_v12, %v4610_v18  ;;  %v9279_v12 = vld [vmem:[#allocation2 + $0xb8] sm:$0xff] }
 0x562   : > { %v4710_v35 = vsel %vm520_vm2, %v4694_v19, %v4686_v9  ;;  %v4702_v7 = vsel %vm520_vm2, %v4686_v9, %v4694_v19  ;;  %v4736_v8 = vmax.f32 %v4624_v62, %v4672_v24  ;;  %v4639_v5 = vrot.slane %v4626_v47, 7  ;;  %v9262_v62 = vld [vmem:[#allocation2 + $0xa8] sm:$0xff] }
 0x563   : > { %v4721_v15 = vsel %vm532_vm6, -3e+38, %v4710_v35  ;;  %v4720_v42 = vsel %vm531_vm4, -3e+38, %v4702_v7  ;;  %v4687_v22 = vrot.slane %v4626_v47, 1  ;;  %4783 = vperm.xlu1 %5505, %v9233_v6   ;;  %v4647_v54 = vrot.slane %v4627_v27, 7 }
 0x564   : > { %v9256_v11 = vmax.f32 %v4737_v30, %v4721_v15  ;;  %v9258_v33 = vmax.f32 %v4736_v8, %v4720_v42  ;;  %v4695_v1 = vrot.slane %v4627_v27, 1  ;;  %v4597_v34 = vmax.f32 %v9188_v21, %v4611_v39 }
 0x565   : > { %4773 = vperm.xlu0 %5504, %v9243_v25   ;;  %v4598_v17 = vmax.f32 %v4610_v18, %v9260_v10  ;;  %v4599_v23 = vmax.f32 %v4611_v39, %v9262_v62  ;;  %v4655_v38 = vsel %vm505_vm1, %v4639_v5, %v4647_v54  ;;  %v4663_v31 = vsel %vm505_vm1, %v4647_v54, %v4639_v5 }
 0x566   : > { %v4711_v43 = vsel %vm520_vm2, %v4695_v1, %v4687_v22  ;;  %v4703_v13 = vsel %vm520_vm2, %v4687_v22, %v4695_v1  ;;  %v4675_v21 = vsel %vm517_vm5, -3e+38, %v4655_v38  ;;  %v4674_v55 = vsel %vm516_vm3, -3e+38, %v4663_v31 }
 0x567   : > { %v4723_v41 = vsel %vm532_vm6, -3e+38, %v4711_v43  ;;  %v4628_v18 = vmax.f32 %v4596_v0, %v9260_v10  ;;  %4793 = vperm.xlu1 %5505, %v9256_v11   ;;  %v4739_v36 = vmax.f32 %v4627_v27, %v4675_v21  ;;  %v4722_v60 = vsel %vm531_vm4, -3e+38, %v4703_v13 }
 0x568   : > { %v4738_v39 = vmax.f32 %v4626_v47, %v4674_v55  ;;  %v4629_v58 = vmax.f32 %v4597_v34, %v9262_v62  ;;  %v4630_v61 = vmax.f32 %v4598_v17, %v9277_v20  ;;  %v4631_v30 = vmax.f32 %v4599_v23, %v9279_v12 }
 0x569   : > { %4788 = vperm.xlu0 %5504, %v9258_v33   ;;  %v4640_v9 = vrot.slane %v4628_v18, 7  ;;  %v4688_v19 = vrot.slane %v4628_v18, 1  ;;  %v9295_v24 = vmax.f32 %v4739_v36, %v4723_v41 }
 0x56a   : > { %v9297_v35 = vmax.f32 %v4738_v39, %v4722_v60  ;;  %v4648_v7 = vrot.slane %v4629_v58, 7  ;;  %v4696_v8 = vrot.slane %v4629_v58, 1  ;;  %v4641_v27 = vrot.slane %v4630_v61, 7 }
 0x56b   : > { %v4649_v15 = vrot.slane %v4631_v30, 7  ;;  %v4689_v42 = vrot.slane %v4630_v61, 1  ;;  %v4697_v47 = vrot.slane %v4631_v30, 1  ;;  %4803 = vperm.xlu1 %5505, %v9295_v24  }
 0x56c   : > { %v4656_v5 = vsel %vm505_vm1, %v4640_v9, %v4648_v7  ;;  %v4712_v22 = vsel %vm520_vm2, %v4696_v8, %v4688_v19  ;;  %v4664_v54 = vsel %vm505_vm1, %v4648_v7, %v4640_v9  ;;  %v4704_v1 = vsel %vm520_vm2, %v4688_v19, %v4696_v8  ;;  %v4616_v9 = vld [vmem:[#allocation2 + $0xc0] sm:$0xff] }
 0x56d   : > { %4798 = vperm.xlu0 %5504, %v9297_v35   ;;  %v4677_v0 = vsel %vm517_vm5, -3e+38, %v4656_v5  ;;  %v4725_v34 = vsel %vm532_vm6, -3e+38, %v4712_v22  ;;  %v4676_v17 = vsel %vm516_vm3, -3e+38, %v4664_v54  ;;  %v4657_v23 = vsel %vm505_vm1, %v4641_v27, %v4649_v15 }
 0x56e   : > { %v4741_v38 = vmax.f32 %v4629_v58, %v4677_v0  ;;  %v4724_v43 = vsel %vm531_vm4, -3e+38, %v4704_v1  ;;  %v4740_v31 = vmax.f32 %v4628_v18, %v4676_v17  ;;  %v4679_v13 = vsel %vm517_vm5, -3e+38, %v4657_v23 }
 0x56f   : > { %v4713_v21 = vsel %vm520_vm2, %v4697_v47, %v4689_v42  ;;  %v4743_v41 = vmax.f32 %v4631_v30, %v4679_v13  ;;  %v4665_v55 = vsel %vm505_vm1, %v4649_v15, %v4641_v27  ;;  %v4705_v36 = vsel %vm520_vm2, %v4689_v42, %v4697_v47  ;;  %v4617_v27 = vld [vmem:[#allocation2 + $0xc8] sm:$0xff]  ;;  %v4618_v15 = vld [vmem:[#allocation2 + $0xd0] sm:$0xff]  ;;  %v4619_v42 = vld [vmem:[#allocation2 + $0xd8] sm:$0xff] }
 0x570   : > { %v9327_v60 = vmax.f32 %v4741_v38, %v4725_v34  ;;  %v9329_v39 = vmax.f32 %v4740_v31, %v4724_v43  ;;  %v4727_v18 = vsel %vm532_vm6, -3e+38, %v4713_v21  ;;  %v4678_v58 = vsel %vm516_vm3, -3e+38, %v4665_v55 }
 0x571   : > { %v9335_v19 = vmax.f32 %v4743_v41, %v4727_v18  ;;  %v4726_v30 = vsel %vm531_vm4, -3e+38, %v4705_v36  ;;  %v4742_v7 = vmax.f32 %v4630_v61, %v4678_v58  ;;  %v4600_v8 = vmax.f32 %v9260_v10, %v9277_v20 }
 0x572   : > { %4813 = vperm.xlu1 %5505, %v9327_v60   ;;  %4808 = vperm.xlu0 %5504, %v9329_v39   ;;  %v4601_v47 = vmax.f32 %v9262_v62, %v9279_v12  ;;  %v4602_v5 = vmax.f32 %v9277_v20, %v4616_v9  ;;  %v4603_v22 = vmax.f32 %v9279_v12, %v4617_v27 }
 0x573   : > { %v9347_v54 = vmax.f32 %v4742_v7, %v4726_v30  ;;  %v4632_v61 = vmax.f32 %v4600_v8, %v4616_v9 }
 0x574   : > { %v4633_v1 = vmax.f32 %v4601_v47, %v4617_v27  ;;  %v4634_v0 = vmax.f32 %v4602_v5, %v4618_v15  ;;  %v4635_v10 = vmax.f32 %v4603_v22, %v4619_v42 }
 0x575   : > { %v4642_v34 = vrot.slane %v4632_v61, 7  ;;  %v4690_v17 = vrot.slane %v4632_v61, 1 }
 0x576   : > { %4823 = vperm.xlu1 %5505, %v9335_v19   ;;  %4818 = vperm.xlu0 %5504, %v9347_v54   ;;  %v4650_v23 = vrot.slane %v4633_v1, 7  ;;  %v4698_v38 = vrot.slane %v4633_v1, 1  ;;  %v4643_v43 = vrot.slane %v4634_v0, 7  ;;  %v4651_v62 = vrot.slane %v4635_v10, 7 }
 0x577   : > { %v4691_v31 = vrot.slane %v4634_v0, 1  ;;  %v4699_v20 = vrot.slane %v4635_v10, 1 }
 0x578   : > { %v4658_v12 = vsel %vm505_vm1, %v4642_v34, %v4650_v23  ;;  %v4714_v13 = vsel %vm520_vm2, %v4698_v38, %v4690_v17  ;;  %v4666_v21 = vsel %vm505_vm1, %v4650_v23, %v4642_v34  ;;  %v4706_v41 = vsel %vm520_vm2, %v4690_v17, %v4698_v38 }
 0x579   : > { %v4681_v55 = vsel %vm517_vm5, -3e+38, %v4658_v12  ;;  %v4729_v36 = vsel %vm532_vm6, -3e+38, %v4714_v13  ;;  %v4680_v18 = vsel %vm516_vm3, -3e+38, %v4666_v21  ;;  %v4659_v58 = vsel %vm505_vm1, %v4643_v43, %v4651_v62 }
 0x57a   : > { %v4745_v9 = vmax.f32 %v4633_v1, %v4681_v55  ;;  %v4728_v30 = vsel %vm531_vm4, -3e+38, %v4706_v41  ;;  %v4744_v7 = vmax.f32 %v4632_v61, %v4680_v18  ;;  %v4683_v8 = vsel %vm517_vm5, -3e+38, %v4659_v58 }
 0x57b   : > { %v4715_v27 = vsel %vm520_vm2, %v4699_v20, %v4691_v31  ;;  %v4747_v15 = vmax.f32 %v4635_v10, %v4683_v8  ;;  %v4667_v42 = vsel %vm505_vm1, %v4651_v62, %v4643_v43  ;;  %v4707_v47 = vsel %vm520_vm2, %v4691_v31, %v4699_v20  ;;  %v5423_v43 = vld [vmem:[%s9687_s3 + $0xc] sm:$0xf]  ;;  %v9982_v62 = vld [vmem:[#allocation38_spill] sm:$0xff]  ;;  %v9983_v20 = vld [vmem:[#allocation37_spill] sm:$0xff] }
 0x57c   : > { %v4761_v5 = vmax.f32 %v4745_v9, %v4729_v36  ;;  %v9377_v22 = vmax.f32 %v4744_v7, %v4728_v30  ;;  %v4731_v1 = vsel %vm532_vm6, -3e+38, %v4715_v27  ;;  %v4682_v59 = vsel %vm516_vm3, -3e+38, %v4667_v42 }
 0x57d   : > { %v4730_v61 = vsel %vm531_vm4, -3e+38, %v4707_v47  ;;  %v4746_v34 = vmax.f32 %v4634_v0, %v4682_v59  ;;  %v4763_v10 = vmax.f32 %v4747_v15, %v4731_v1  ;;  %v9451_v31 = vrot.slane %v5423_v43, %v9982_v62 }
 0x57e   : > { %4833 = vperm.xlu1 %5505, %v4761_v5   ;;  %4828 = vperm.xlu0 %5504, %v9377_v22   ;;  %v9454_v12 = vrot.slane %v5423_v43, %v9983_v20 }
 0x57f   : > { %v4762_v17 = vmax.f32 %v4746_v34, %v4730_v61 }
 0x582   : > { %4843 = vperm.xlu1 %5505, %v4763_v10   ;;  %4838 = vperm.xlu0 %5504, %v4762_v17  }
 0x586   : > { %5507 = vset.pattern.permute.xlu1 %v9979_v37  ;;  %5506 = vset.pattern.permute.xlu0 %v9979_v37 }
 0x587   : > { %4871 = vperm.xlu1 %5507, %v9243_v25   ;;  %4867 = vperm.xlu0 %5506, %v9231_v29  }
 0x58b   : > { %4875 = vperm.xlu1 %5507, %v9223_v45   ;;  %4879 = vperm.xlu0 %5506, %v9233_v6  }
 0x58f   : > { %4883 = vperm.xlu1 %5507, %v9258_v33   ;;  %4887 = vperm.xlu0 %5506, %v9256_v11  }
 0x593   : > { %4891 = vperm.xlu1 %5507, %v9297_v35   ;;  %4895 = vperm.xlu0 %5506, %v9295_v24  }
 0x597   : > { %4899 = vperm.xlu1 %5507, %v9329_v39   ;;  %4903 = vperm.xlu0 %5506, %v9327_v60  }
 0x59b   : > { %4907 = vperm.xlu1 %5507, %v9347_v54   ;;  %4911 = vperm.xlu0 %5506, %v9335_v19  }
 0x59f   : > { %4915 = vperm.xlu1 %5507, %v9377_v22   ;;  %4919 = vperm.xlu0 %5506, %v4761_v5  }
 0x5a3   : > { %4923 = vperm.xlu1 %5507, %v4762_v17   ;;  %4927 = vperm.xlu0 %5506, %v4763_v10  }
 0x5a7   : > { %5508 = vset.pattern.permute.xlu1 %v9980_v56  ;;  %5509 = vset.pattern.permute.xlu0 %v9980_v56 }
 0x5a8   : > { %4967 = vperm.xlu1 %5508, %v9231_v29   ;;  %4971 = vperm.xlu0 %5509, %v9243_v25  }
 0x5ac   : > { %4975 = vperm.xlu1 %5508, %v9223_v45   ;;  %4983 = vperm.xlu0 %5509, %v9258_v33  }
 0x5b0   : > { %4979 = vperm.xlu1 %5508, %v9233_v6   ;;  %4991 = vperm.xlu0 %5509, %v9297_v35  }
 0x5b4   : > { %4987 = vperm.xlu1 %5508, %v9256_v11   ;;  %4999 = vperm.xlu0 %5509, %v9329_v39  }
 0x5b8   : > { %4995 = vperm.xlu1 %5508, %v9295_v24   ;;  %5007 = vperm.xlu0 %5509, %v9347_v54  }
 0x5bc   : > { %5003 = vperm.xlu1 %5508, %v9327_v60   ;;  %5015 = vperm.xlu0 %5509, %v9377_v22  }
 0x5c0   : > { %5011 = vperm.xlu1 %5508, %v9335_v19   ;;  %5023 = vperm.xlu0 %5509, %v4762_v17  }
 0x5c4   : > { %5019 = vperm.xlu1 %5508, %v4761_v5   ;;  %5510 = vset.pattern.permute.xlu0 %v9981_v52 }
 0x5c5   : > { %5067 = vperm.xlu0 %5510, %v9231_v29  }
 0x5c8   : > { %5027 = vperm.xlu1 %5508, %v4763_v10  }
 0x5c9   : > { %5079 = vperm.xlu0 %5510, %v9233_v6  }
 0x5cc   : > { %5511 = vset.pattern.permute.xlu1 %v9981_v52 }
 0x5cd   : > { %5071 = vperm.xlu1 %5511, %v9243_v25   ;;  %5087 = vperm.xlu0 %5510, %v9256_v11  }
 0x5d1   : > { %5075 = vperm.xlu1 %5511, %v9223_v45   ;;  %5095 = vperm.xlu0 %5510, %v9295_v24  }
 0x5d5   : > { %5083 = vperm.xlu1 %5511, %v9258_v33   ;;  %5103 = vperm.xlu0 %5510, %v9327_v60  }
 0x5d9   : > { %5091 = vperm.xlu1 %5511, %v9297_v35   ;;  %5111 = vperm.xlu0 %5510, %v9335_v19  }
 0x5dd   : > { %5099 = vperm.xlu1 %5511, %v9329_v39   ;;  %5119 = vperm.xlu0 %5510, %v4761_v5  }
 0x5de   : > { %v4779_v50 = vpop.permute.xlu1 %4778 }
 0x5df   : > { %v4852_v9 = vmul.f32 %v9454_v12, %v4779_v50 }
 0x5e0   : > { %v9429_v29 = vpop.permute.xlu0 %4768 }
 0x5e1   : > { %5107 = vperm.xlu1 %5511, %v9347_v54   ;;  %5127 = vperm.xlu0 %5510, %v4763_v10  }
 0x5e2   : > { %v9432_v45 = vpop.permute.xlu1 %4783 }
 0x5e4   : > { %v4774_v6 = vpop.permute.xlu0 %4773 }
 0x5e5   : > { %5115 = vperm.xlu1 %5511, %v9377_v22   ;;  %v4851_v41 = vmul.f32 %v9454_v12, %v4774_v6 }
 0x5e6   : > { %v9435_v25 = vpop.permute.xlu1 %4793 }
 0x5e8   : > { %v4789_v11 = vpop.permute.xlu0 %4788 }
 0x5e9   : > { %5123 = vperm.xlu1 %5511, %v4762_v17   ;;  %v4854_v15 = vmul.f32 %v9454_v12, %v4789_v11 }
 0x5ea   : > { %v9437_v33 = vpop.permute.xlu1 %4803 }
 0x5ec   : > { %v4799_v24 = vpop.permute.xlu0 %4798 }
 0x5ed   : > { %v4856_v1 = vmul.f32 %v9454_v12, %v4799_v24 }
 0x5f1   : > { %v9439_v35 = vpop.permute.xlu1 %4813  ;;  %v4809_v60 = vpop.permute.xlu0 %4808 }
 0x5f2   : > { %v4858_v17 = vmul.f32 %v9454_v12, %v4809_v60 }
 0x5f5   : > { %v9441_v39 = vpop.permute.xlu1 %4823  ;;  %v4819_v19 = vpop.permute.xlu0 %4818 }
 0x5f6   : > { %v4860_v6 = vmul.f32 %v9454_v12, %v4819_v19 }
 0x5fd   : > { %v9443_v54 = vpop.permute.xlu1 %4833  ;;  %v4829_v0 = vpop.permute.xlu0 %4828 }
 0x601   : > { %v9445_v23 = vpop.permute.xlu1 %4843  ;;  %v4839_v38 = vpop.permute.xlu0 %4838 }
 0x606   : > { %v4872_v13 = vpop.permute.xlu1 %4871  ;;  %v4868_v21 = vpop.permute.xlu0 %4867 }
 0x607   : > { %v4935_v55 = vmul.f32 %v9451_v31, %v4872_v13  ;;  %v4862_v13 = vmul.f32 %v9454_v12, %v4829_v0 }
 0x609   : > { %v9458_v36 = vadd.f32 %v4935_v55, %v4851_v41 }
 0x60a   : > { %v4876_v18 = vpop.permute.xlu1 %4875  ;;  %v4880_v58 = vpop.permute.xlu0 %4879 }
 0x60b   : > { %v4936_v30 = vmul.f32 %v9451_v31, %v4876_v18  ;;  %v4937_v57 = vmul.f32 %v9451_v31, %v4880_v58 }
 0x60d   : > { %v9462_v7 = vadd.f32 %v4936_v30, %v4852_v9  ;;  %v4864_v9 = vmul.f32 %v9454_v12, %v4839_v38 }
 0x60e   : > { %v4884_v8 = vpop.permute.xlu1 %4883  ;;  %v4888_v27 = vpop.permute.xlu0 %4887 }
 0x60f   : > { %v4938_v42 = vmul.f32 %v9451_v31, %v4884_v8 }
 0x611   : > { %v9466_v47 = vadd.f32 %v4938_v42, %v4854_v15 }
 0x612   : > { %v4892_v5 = vpop.permute.xlu1 %4891  ;;  %v9468_v22 = vpop.permute.xlu0 %4895 }
 0x613   : > { %v4940_v59 = vmul.f32 %v9451_v31, %v4892_v5 }
 0x615   : > { %v9472_v61 = vadd.f32 %v4940_v59, %v4856_v1 }
 0x616   : > { %v4900_v34 = vpop.permute.xlu1 %4899  ;;  %v9474_v10 = vpop.permute.xlu0 %4903 }
 0x617   : > { %v4942_v37 = vmul.f32 %v9451_v31, %v4900_v34 }
 0x619   : > { %v9478_v56 = vadd.f32 %v4942_v37, %v4858_v17 }
 0x61a   : > { %v4908_v52 = vpop.permute.xlu1 %4907  ;;  %v9480_v50 = vpop.permute.xlu0 %4911 }
 0x61b   : > { %v4944_v11 = vmul.f32 %v9451_v31, %v4908_v52 }
 0x61d   : > { %v9484_v24 = vadd.f32 %v4944_v11, %v4860_v6  ;;  %v9985_v6 = vld [vmem:[#allocation41_spill] sm:$0xff] }
 0x61e   : > { %v4916_v62 = vpop.permute.xlu1 %4915  ;;  %v9486_v20 = vpop.permute.xlu0 %4919  ;;  %v9509_v11 = vrot.slane %v5423_v43, %v9985_v6 }
 0x61f   : > { %v4946_v60 = vmul.f32 %v9451_v31, %v4916_v62  ;;  %v4934_v62 = vmul.f32 %v9451_v31, %v4868_v21  ;;  %v4853_v21 = vmul.f32 %v9454_v12, %v9432_v45 }
 0x621   : > { %v9490_v41 = vadd.f32 %v4946_v60, %v4862_v13 }
 0x622   : > { %v4924_v55 = vpop.permute.xlu1 %4923  ;;  %v9492_v18 = vpop.permute.xlu0 %4927 }
 0x623   : > { %v4948_v19 = vmul.f32 %v9451_v31, %v4924_v55  ;;  %v4850_v55 = vmul.f32 %v9454_v12, %v9429_v29  ;;  %v4939_v29 = vmul.f32 %v9451_v31, %v4888_v27 }
 0x625   : > { %v9496_v30 = vadd.f32 %v4948_v19, %v4864_v9  ;;  %v9520_v19 = vrot.slane %v5423_v43, %v6657_v26  ;;  %v4950_v3 = vadd.f32 %v4934_v62, %v4850_v55  ;;  %v9533_v26 = vld [vmem:[%s9688_s4 + $0x3] ss:$0 sm:$0xff]  ;;  %v4953_v43 = vadd.f32 %v4937_v57, %v4853_v21 }
 0x626   : > { %v4855_v62 = vmul.f32 %v9454_v12, %v9435_v25 }
 0x627   : > { %9984 = vst [vmem:[#allocation35_spill] sm:$0xff] %v9496_v30  ;;  %v4968_v8 = vpop.permute.xlu1 %4967  ;;  %v4972_v15 = vpop.permute.xlu0 %4971 }
 0x628   : > { %v5034_v9 = vmul.f32 %v9509_v11, %v4968_v8 }
 0x62a   : > { %v5050_v44 = vadd.f32 %v5034_v9, %v4950_v3  ;;  %v5035_v3 = vmul.f32 %v9509_v11, %v4972_v15 }
 0x62b   : > { %v4976_v42 = vpop.permute.xlu1 %4975  ;;  %v4984_v5 = vpop.permute.xlu0 %4983 }
 0x62c   : > { %v5036_v57 = vmul.f32 %v9509_v11, %v4976_v42 }
 0x62f   : > { %v4980_v1 = vpop.permute.xlu1 %4979  ;;  %v9498_v59 = vpop.permute.xlu0 %4991 }
 0x630   : > { %v5037_v30 = vmul.f32 %v9509_v11, %v4980_v1 }
 0x632   : > { %v5053_v55 = vadd.f32 %v5037_v30, %v4953_v43 }
 0x633   : > { %v4988_v0 = vpop.permute.xlu1 %4987  ;;  %v9500_v34 = vpop.permute.xlu0 %4999 }
 0x634   : > { %v5039_v45 = vmul.f32 %v9509_v11, %v4988_v0 }
 0x637   : > { %v4996_v17 = vpop.permute.xlu1 %4995  ;;  %v9502_v37 = vpop.permute.xlu0 %5007 }
 0x638   : > { %v5041_v42 = vmul.f32 %v9509_v11, %v4996_v17 }
 0x63b   : > { %v9504_v52 = vpop.permute.xlu1 %5003  ;;  %v9506_v38 = vpop.permute.xlu0 %5015 }
 0x63f   : > { %v9512_v13 = vpop.permute.xlu1 %5011  ;;  %v9514_v60 = vpop.permute.xlu0 %5023 }
 0x640   : > { %9986 = vst [vmem:[#allocation32_spill] sm:$0xff] %v9514_v60 }
 0x643   : > { %v9523_v16 = vpop.permute.xlu1 %5019 }
 0x644   : > { %v5068_v6 = vpop.permute.xlu0 %5067 }
 0x645   : > { %v5134_v48 = vmul.f32 %v9520_v19, %v5068_v6  ;;  %v4955_v6 = vadd.f32 %v4939_v29, %v4855_v62 }
 0x647   : > { %v5150_v58 = vadd.f32 %v5134_v48, %v5050_v44  ;;  %v9535_v8 = vpop.permute.xlu1 %5027  ;;  %v4941_v48 = vmul.f32 %v9451_v31, %v9468_v22  ;;  %v5051_v44 = vadd.f32 %v5035_v3, %v9458_v36  ;;  %v5055_v25 = vadd.f32 %v5039_v45, %v4955_v6 }
 0x648   : > { %v5080_v1 = vpop.permute.xlu0 %5079  ;;  %v4859_v22 = vmul.f32 %v9454_v12, %v9439_v35  ;;  %v4861_v36 = vmul.f32 %v9454_v12, %v9441_v39  ;;  %v5052_v35 = vadd.f32 %v5036_v57, %v9462_v7  ;;  %v5038_v45 = vmul.f32 %v9509_v11, %v4984_v5 }
 0x649   : > { %v5171_v27 = vadd.f32 %v9533_v26, %v5150_v58  ;;  %v5137_v9 = vmul.f32 %v9520_v19, %v5080_v1  ;;  %v4857_v58 = vmul.f32 %v9454_v12, %v9437_v33  ;;  %v4943_v33 = vmul.f32 %v9451_v31, %v9474_v10 }
 0x64a   : > { %v5043_v10 = vmul.f32 %v9509_v11, %v9504_v52  ;;  %v5040_v5 = vmul.f32 %v9509_v11, %v9498_v59 }
 0x64b   : > { %v5187_v46 = vmax.f32 %v5171_v27, 0.0  ;;  %v5153_v60 = vadd.f32 %v5137_v9, %v5053_v55  ;;  %v4957_v3 = vadd.f32 %v4941_v48, %v4857_v58  ;;  %v4945_v9 = vmul.f32 %v9451_v31, %v9480_v50 }
 0x64c   : > { %v5072_v15 = vpop.permute.xlu1 %5071  ;;  %v5088_v0 = vpop.permute.xlu0 %5087  ;;  %v4959_v57 = vadd.f32 %v4943_v33, %v4859_v22  ;;  %v5045_v50 = vmul.f32 %v9509_v11, %v9512_v13  ;;  %v4947_v13 = vmul.f32 %v9451_v31, %v9486_v20 }
 0x64d   : > { %v5203_v30 = vadd.f32 %v5187_v46, %v9010_v28  ;;  %v5174_v21 = vadd.f32 %v9533_v26, %v5153_v60  ;;  %v5135_v43 = vmul.f32 %v9520_v19, %v5072_v15  ;;  %v5139_v29 = vmul.f32 %v9520_v19, %v5088_v0 }
 0x64e   : > { %v4863_v28 = vmul.f32 %v9454_v12, %v9443_v54  ;;  %v5057_v6 = vadd.f32 %v5041_v42, %v4957_v3  ;;  %v5059_v58 = vadd.f32 %v5043_v10, %v4959_v57  ;;  %v5056_v42 = vadd.f32 %v5040_v5, %v9472_v61 }
 0x64f   : > { %5219 = vst.msk [vmem:[%s5644_s13] sm:$0xff] %vm403_vm0, %v5203_v30  ;;  %v5190_v46 = vmax.f32 %v5174_v21, 0.0  ;;  %v5151_v60 = vadd.f32 %v5135_v43, %v5051_v44  ;;  %v5155_v62 = vadd.f32 %v5139_v29, %v5055_v25  ;;  %v5054_v25 = vadd.f32 %v5038_v45, %v9466_v47 }
 0x650   : > { %v5076_v39 = vpop.permute.xlu1 %5075  ;;  %v5096_v1 = vpop.permute.xlu0 %5095  ;;  %v4961_v29 = vadd.f32 %v4945_v9, %v4861_v36  ;;  %v5042_v36 = vmul.f32 %v9509_v11, %v9500_v34  ;;  %v5047_v34 = vmul.f32 %v9509_v11, %v9523_v16  ;;  %v4949_v9 = vmul.f32 %v9451_v31, %v9492_v18 }
 0x651   : > { %v5206_v17 = vadd.f32 %v5190_v46, %v8991_v14  ;;  %v5172_v54 = vadd.f32 %v9533_v26, %v5151_v60  ;;  %v5176_v55 = vadd.f32 %v9533_v26, %v5155_v62  ;;  %v5136_v27 = vmul.f32 %v9520_v19, %v5076_v39 }
 0x652   : > { %v5141_v7 = vmul.f32 %v9520_v19, %v5096_v1  ;;  %v5061_v46 = vadd.f32 %v5045_v50, %v4961_v29  ;;  %v4865_v39 = vmul.f32 %v9454_v12, %v9445_v23  ;;  %v5044_v23 = vmul.f32 %v9509_v11, %v9502_v37 }
 0x653   : > { %5222 = vst.msk [vmem:[%s5644_s13 + $0x18] sm:$0xff] %vm403_vm0, %v5206_v17  ;;  %v5188_v14 = vmax.f32 %v5172_v54, 0.0  ;;  %v5192_v48 = vmax.f32 %v5176_v55, 0.0  ;;  %v5152_v44 = vadd.f32 %v5136_v27, %v5052_v35  ;;  %v4963_v54 = vadd.f32 %v4947_v13, %v4863_v28  ;;  %v9988_v13 = vld [vmem:[#allocation4_spill] sm:$0xff] }
 0x654   : > { %v5157_v15 = vadd.f32 %v5141_v7, %v5057_v6  ;;  %v5084_v52 = vpop.permute.xlu1 %5083  ;;  %v5104_v0 = vpop.permute.xlu0 %5103  ;;  %v5058_v6 = vadd.f32 %v5042_v36, %v9478_v56  ;;  %v5049_v56 = vmul.f32 %v9509_v11, %v9535_v8  ;;  %v5060_v57 = vadd.f32 %v5044_v23, %v9484_v24  ;;  %v9989_v36 = vld [vmem:[#allocation11_spill] sm:$0xff] }
 0x655   : > { %v5204_v30 = vadd.f32 %v5188_v14, %v8979_v40  ;;  %v5208_v59 = vadd.f32 %v5192_v48, %v9019_v2  ;;  %v5173_v21 = vadd.f32 %v9533_v26, %v5152_v44  ;;  %v5138_v43 = vmul.f32 %v9520_v19, %v5084_v52 }
 0x656   : > { %v5178_v22 = vadd.f32 %v9533_v26, %v5157_v15  ;;  %v5143_v47 = vmul.f32 %v9520_v19, %v5104_v0  ;;  %v5063_v31 = vadd.f32 %v5047_v34, %v4963_v54  ;;  %v4965_v44 = vadd.f32 %v4949_v9, %v4865_v39  ;;  %v9992_v34 = vld [vmem:[#allocation14_spill] sm:$0xff] }
 0x657   : > { %5220 = vst.msk [vmem:[%s5644_s13 + $0x8] sm:$0xff] %vm403_vm0, %v5204_v30  ;;  %5224 = vst.msk [vmem:[%s5644_s13 + $0x28] sm:$0xff] %vm403_vm0, %v5208_v59  ;;  %v5189_v40 = vmax.f32 %v5173_v21, 0.0  ;;  %v5154_v2 = vadd.f32 %v5138_v43, %v5054_v25  ;;  %v5046_v25 = vmul.f32 %v9509_v11, %v9506_v38 }
 0x658   : > { %v5194_v60 = vmax.f32 %v5178_v22, 0.0  ;;  %v5159_v62 = vadd.f32 %v5143_v47, %v5059_v58  ;;  %v5092_v3 = vpop.permute.xlu1 %5091  ;;  %v5112_v33 = vpop.permute.xlu0 %5111  ;;  %v5065_v59 = vadd.f32 %v5049_v56, %v4965_v44  ;;  %v9987_v22 = vld [vmem:[#allocation32_spill] sm:$0xff] }
 0x659   : > { %v5205_v35 = vadd.f32 %v5189_v40, %v9029_v53  ;;  %v5175_v61 = vadd.f32 %v9533_v26, %v5154_v2  ;;  %v5140_v20 = vmul.f32 %v9520_v19, %v5092_v3  ;;  %v5145_v45 = vmul.f32 %v9520_v19, %v5112_v33  ;;  %v9990_v33 = vld [vmem:[#allocation35_spill] sm:$0xff] }
 0x65a   : > { %v5210_v1 = vadd.f32 %v5194_v60, %v9033_v4  ;;  %v5180_v17 = vadd.f32 %v9533_v26, %v5159_v62  ;;  %v5048_v47 = vmul.f32 %v9509_v11, %v9987_v22 }
 0x65b   : > { %5221 = vst.msk [vmem:[%s5644_s13 + $0x10] sm:$0xff] %vm403_vm0, %v5205_v35  ;;  %v5191_v53 = vmax.f32 %v5175_v61, 0.0  ;;  %v5156_v55 = vadd.f32 %v5140_v20, %v5056_v42  ;;  %v5161_v27 = vadd.f32 %v5145_v45, %v5061_v46  ;;  %v9991_v61 = vld [vmem:[#allocation30_spill] sm:$0xff] }
 0x65c   : > { %5226 = vst.msk [vmem:[%s5644_s13 + $0x38] sm:$0xff] %vm403_vm0, %v5210_v1  ;;  %v5196_v4 = vmax.f32 %v5180_v17, 0.0  ;;  %v5100_v16 = vpop.permute.xlu1 %5099  ;;  %v5120_v12 = vpop.permute.xlu0 %5119  ;;  %v5064_v35 = vadd.f32 %v5048_v47, %v9990_v33 }
 0x65d   : > { %v5207_v28 = vadd.f32 %v5191_v53, %v9044_v51  ;;  %v5177_v10 = vadd.f32 %v9533_v26, %v5156_v55  ;;  %v5182_v7 = vadd.f32 %v9533_v26, %v5161_v27  ;;  %v5142_v5 = vmul.f32 %v9520_v19, %v5100_v16  ;;  %v9993_v53 = vld [vmem:[#allocation18_spill] sm:$0xff] }
 0x65e   : > { %v5212_v18 = vadd.f32 %v5196_v4, %v9055_v32  ;;  %v5147_v37 = vmul.f32 %v9520_v19, %v5120_v12 }
 0x65f   : > { %5223 = vst.msk [vmem:[%s5644_s13 + $0x20] sm:$0xff] %vm403_vm0, %v5207_v28  ;;  %v5193_v14 = vmax.f32 %v5177_v10, 0.0  ;;  %v5198_v48 = vmax.f32 %v5182_v7, 0.0  ;;  %v5158_v51 = vadd.f32 %v5142_v5, %v5058_v6  ;;  %v9994_v6 = vld [vmem:[#allocation15_spill] sm:$0xff] }
 0x660   : > { %5228 = vst.msk [vmem:[%s5644_s13 + $0x48] sm:$0xff] %vm403_vm0, %v5212_v18  ;;  %v5163_v8 = vadd.f32 %v5147_v37, %v5063_v31  ;;  %v5108_v50 = vpop.permute.xlu1 %5107  ;;  %v5128_v32 = vpop.permute.xlu0 %5127 }
 0x661   : > { %v5209_v15 = vadd.f32 %v5193_v14, %v9067_v63  ;;  %v5214_v52 = vadd.f32 %v5198_v48, %v9076_v49  ;;  %v5179_v0 = vadd.f32 %v9533_v26, %v5158_v51  ;;  %v5144_v30 = vmul.f32 %v9520_v19, %v5108_v50 }
 0x662   : > { %v5184_v21 = vadd.f32 %v9533_v26, %v5163_v8  ;;  %v5149_v24 = vmul.f32 %v9520_v19, %v5128_v32  ;;  %v5062_v63 = vadd.f32 %v5046_v25, %v9490_v41 }
 0x663   : > { %5225 = vst.msk [vmem:[%s5644_s13 + $0x30] sm:$0xff] %vm403_vm0, %v5209_v15  ;;  %5230 = vst.msk [vmem:[%s5644_s13 + $0x58] sm:$0xff] %vm403_vm0, %v5214_v52  ;;  %v5195_v38 = vmax.f32 %v5179_v0, 0.0  ;;  %v5160_v43 = vadd.f32 %v5144_v30, %v5060_v57 }
 0x664   : > { %v5200_v49 = vmax.f32 %v5184_v21, 0.0  ;;  %v5165_v29 = vadd.f32 %v5149_v24, %v5065_v59  ;;  %v5116_v58 = vpop.permute.xlu1 %5115 }
 0x665   : > { %v5211_v42 = vadd.f32 %v5195_v38, %v9988_v13  ;;  %v5181_v40 = vadd.f32 %v9533_v26, %v5160_v43  ;;  %v5146_v2 = vmul.f32 %v9520_v19, %v5116_v58 }
 0x666   : > { %v5216_v46 = vadd.f32 %v5200_v49, %v9989_v36  ;;  %v5186_v60 = vadd.f32 %v9533_v26, %v5165_v29 }
 0x667   : > { %5227 = vst.msk [vmem:[%s5644_s13 + $0x40] sm:$0xff] %vm403_vm0, %v5211_v42  ;;  %v5197_v41 = vmax.f32 %v5181_v40, 0.0  ;;  %v5162_v62 = vadd.f32 %v5146_v2, %v5062_v63 }
 0x668   : > { %5232 = vst.msk [vmem:[%s5644_s13 + $0x68] sm:$0xff] %vm403_vm0, %v5216_v46  ;;  %v5202_v11 = vmax.f32 %v5186_v60, 0.0  ;;  %v5124_v3 = vpop.permute.xlu1 %5123 }
 0x669   : > { %v5213_v20 = vadd.f32 %v5197_v41, %v9991_v61  ;;  %v5183_v45 = vadd.f32 %v9533_v26, %v5162_v62  ;;  %v5148_v39 = vmul.f32 %v9520_v19, %v5124_v3 }
 0x66a   : > { %v5218_v1 = vadd.f32 %v5202_v11, %v9992_v34 }
 0x66b   : > { %5229 = vst.msk [vmem:[%s5644_s13 + $0x50] sm:$0xff] %vm403_vm0, %v5213_v20  ;;  %v5199_v17 = vmax.f32 %v5183_v45, 0.0  ;;  %v5164_v54 = vadd.f32 %v5148_v39, %v5064_v35 }
 0x66c   : > { %5234 = vst.msk [vmem:[%s5644_s13 + $0x78] sm:$0xff] %vm403_vm0, %v5218_v1 }
 0x66d   : > { %v5215_v55 = vadd.f32 %v5199_v17, %v9993_v53  ;;  %v5185_v27 = vadd.f32 %v9533_v26, %v5164_v54 }
 0x66f   : > { %5231 = vst.msk [vmem:[%s5644_s13 + $0x60] sm:$0xff] %vm403_vm0, %v5215_v55  ;;  %v5201_v9 = vmax.f32 %v5185_v27, 0.0 }
 0x671   : > { %v5217_v23 = vadd.f32 %v5201_v9, %v9994_v6 }
 0x673   : > { %5233 = vst.msk [vmem:[%s5644_s13 + $0x70] sm:$0xff] %vm403_vm0, %v5217_v23 }
 0x674 PF: > { %s15_s22 = sadd.s32 1, %s5550_s22   ;;  %s9995_s18 = smov %s5542_s20 }
 0x675   : > { %p12_p13 = scmp.ge.s32.totalorder %s15_s22, 6   ;;  %s9996_s19 = smov %s5546_s21 }
 0x676   : > { %s9997_s20 = smov %s10000_s23  ;;  %s9998_s21 = smov %s10004_s24 }
 0x677   :  { %14 = sbr.rel (!%p12_p13) target bundleno = 3 (0x3), region = 116 }

</bundles_post_ra>
